<compile_context>
chip_gen: v5e
topology: v5e:2x2
jax: 0.10.0
libtpu: 0.0.40
codegen_flags: <defaults>
</compile_context>

<pallas_src>
import functools

import jax
import jax.numpy as jnp
from jax import lax
from jax.experimental import pallas as pl
from jax.experimental.pallas import tpu as pltpu

LANES = 128  # channel lane-padding width (TPU lane count)


def _round_up(x, m):
    return ((x + m - 1) // m) * m


# ---------------------------------------------------------------------------
# Fused kernel: one (batch, layer) grid step
# ---------------------------------------------------------------------------
def dncnn_fused_kernel(xpad_ref, xres_ref, w_ref, b_ref, o_ref, act_ref, *,
                       H, W, WL, Cout, dep, slope):
    """One grid step (n, l) = one conv3x3(+bias)(+LeakyReLU) layer.

    xpad_ref: (1, H, W, CACT)     bf16  lane-padded input (conv path)
    xres_ref: (1, H, W, Cout)     f32   dense input (residual path)
    w_ref   : (1, 9, CACT, CF)    bf16  layer-l weights, tap-major (dy*3 + dx)
    b_ref   : (1, 1, CF)          f32   layer-l bias
    o_ref   : (1, H, W, Cout)     f32   y - conv_last(...)
    act_ref : (2, H+2, WP, CACT)  bf16  ping-pong activations with zero halo;
                                        interior columns are [WL, WL+W).
    """
    l = pl.program_id(1)
    WP = act_ref.shape[2]
    CACT = act_ref.shape[3]
    CF = w_ref.shape[3]

    # ---- per-batch-element init: zero halo/pad strips, stage layer-0 input ---
    @pl.when(l == 0)
    def _init():
        # Left pad block (cols [0, WL), includes the left halo col WL-1) and
        # right pad block (cols [WL+W, WP), includes the right halo col WL+W).
        act_ref[:, :, 0:WL, :] = jnp.zeros((2, H + 2, WL, CACT), act_ref.dtype)
        act_ref[:, :, WL + W:WP, :] = jnp.zeros((2, H + 2, WP - WL - W, CACT),
                                                act_ref.dtype)
        # Top / bottom halo rows (full width, overlap with the blocks is fine).
        act_ref[:, 0:1, :, :] = jnp.zeros((2, 1, WP, CACT), act_ref.dtype)
        act_ref[:, H + 1:H + 2, :, :] = jnp.zeros((2, 1, WP, CACT),
                                                  act_ref.dtype)
        # Layer-0 input -> buffer 0 interior (aligned, full-lane bf16 store).
        act_ref[0, 1:H + 1, WL:WL + W, :] = xpad_ref[0]

    # ---- one conv layer: 9 per-tap MXU matmuls, f32 accumulation ------------
    def conv_layer(src, dst):
        acc = jnp.zeros((H, W, CF), jnp.float32)
        for dy in range(3):
            # Full-width, column-aligned bf16 load of one padded row band.
            band = act_ref[src, dy:dy + H, :, :]              # (H, WP, CACT)
            for dx in range(3):
                t = lax.dot_general(
                    band, w_ref[0, 3 * dy + dx],
                    dimension_numbers=(((2,), (0,)), ((), ())),
                    preferred_element_type=jnp.float32)       # (H, WP, CF) f32
                # +/-1 column shift applied to the f32 matmul output.
                c0 = WL - 1 + dx
                acc = acc + t[:, c0:c0 + W, :]
        acc = acc + b_ref[0]                                  # (1, CF) f32

        @pl.when(l < dep - 1)
        def _mid():
            z = jnp.where(acc >= 0.0, acc, slope * acc)       # LeakyReLU (f32)
            # Aligned, unmasked bf16 interior store (single f32->bf16 cast).
            act_ref[dst, 1:H + 1, WL:WL + W, :] = z.astype(act_ref.dtype)

        @pl.when(l == dep - 1)
        def _last():
            # Fused residual: out = y - conv_last(h), y = exact f32 input.
            o_ref[0] = xres_ref[0] - acc[:, :, :Cout]

    # Static ping-pong: even layers read buffer 0, odd layers read buffer 1.
    @pl.when(l % 2 == 0)
    def _even():
        conv_layer(0, 1)

    @pl.when(l % 2 == 1)
    def _odd():
        conv_layer(1, 0)


# ---------------------------------------------------------------------------
# Host-side packing + pallas_call wrapper
# ---------------------------------------------------------------------------
def _pack_params(params, cact, cf):
    """Stack per-layer (3,3,cin,cout) HWIO weights / (cout,) biases into
    channel-padded, tap-major tensors."""
    w_stack, b_stack = [], []
    for (w, b) in params:
        cin, cout = w.shape[2], w.shape[3]
        wp = jnp.zeros((9, cact, cf), jnp.float32)
        wp = wp.at[:, :cin, :cout].set(w.reshape(9, cin, cout))
        w_stack.append(wp)
        b_stack.append(jnp.zeros((cf,), jnp.float32).at[:cout].set(b))
    w_all = jnp.stack(w_stack).astype(jnp.bfloat16)           # (dep, 9, cact, cf)
    b_all = jnp.stack(b_stack)[:, None, :]                    # (dep, 1, cf) f32
    return w_all, b_all


def dncnn_forward_pallas(x_nhwc, params, slope):
    """Fused DnCNN forward. x_nhwc: (N,H,W,Cin) f32. Returns (N,H,W,Cout) f32."""
    N, H, W, Cin = x_nhwc.shape
    dep = len(params)
    Cout = params[-1][0].shape[-1]
    assert Cin == Cout, "DnCNN residual y - out needs in_channels == out_channels"
    CACT = CF = LANES
    WL = 16                              # bf16-tile-aligned interior start column
    WP = _round_up(WL + W + 1, 16)       # halo col on each side + right padding

    w_all, b_all = _pack_params(params, CACT, CF)
    # Lane-padded bf16 conv-path input (zero pad channels keeps the math exact).
    xpad = jnp.zeros((N, H, W, CACT), jnp.bfloat16).at[..., :Cin].set(
        x_nhwc.astype(jnp.bfloat16))
    # Dense f32 residual-path input (exact f32 `y` in y - conv_last(...)).
    xres = x_nhwc.astype(jnp.float32)

    kern = functools.partial(dncnn_fused_kernel, H=H, W=W, WL=WL, Cout=Cout,
                             dep=dep, slope=slope)
    return pl.pallas_call(
        kern,
        out_shape=jax.ShapeDtypeStruct((N, H, W, Cout), jnp.float32),
        grid=(N, dep),
        in_specs=[
            pl.BlockSpec((1, H, W, CACT), lambda n, l: (n, 0, 0, 0)),   # conv in
            pl.BlockSpec((1, H, W, Cout), lambda n, l: (n, 0, 0, 0)),   # resid in
            pl.BlockSpec((1, 9, CACT, CF), lambda n, l: (l, 0, 0, 0)),  # weights
            pl.BlockSpec((1, 1, CF), lambda n, l: (l, 0, 0)),           # bias
        ],
        out_specs=pl.BlockSpec((1, H, W, Cout), lambda n, l: (n, 0, 0, 0)),
        scratch_shapes=[pltpu.VMEM((2, H + 2, WP, CACT), jnp.bfloat16)],
        compiler_params=pltpu.CompilerParams(
            dimension_semantics=("parallel", "arbitrary"),
            # Above the 32 MiB scoped default (v5e/v6e), under v7x's 64 MiB.
            vmem_limit_bytes=48 * 1024 * 1024),
    )(xpad, xres, w_all, b_all)


# ---------------------------------------------------------------------------
# DnCNN parameters + pure-JAX reference
# ---------------------------------------------------------------------------
def init_dncnn_params(key, in_channels, out_channels, dep, num_filters):
    """Deterministic params; PyTorch-style uniform init, HWIO layout."""
    params = []
    chans = [in_channels] + [num_filters] * (dep - 1) + [out_channels]
    for li in range(dep):
        cin, cout = chans[li], chans[li + 1]
        key, kw, kb = jax.random.split(key, 3)
        fan_in = cin * 9
        bound = 1.0 / jnp.sqrt(fan_in)
        w = jax.random.uniform(kw, (3, 3, cin, cout), jnp.float32,
                               minval=-bound, maxval=bound)
        b = jax.random.uniform(kb, (cout,), jnp.float32,
                               minval=-bound, maxval=bound)
        params.append((w, b))
    return params


def dncnn_forward_ref(x_nhwc, params, slope):
    """Pure-JAX reference mirroring the kernel's bf16-operand / f32-accumulate
    math (and the exact-f32 residual input)."""
    dn = ("NHWC", "HWIO", "NHWC")
    y = x_nhwc.astype(jnp.float32)
    h = x_nhwc.astype(jnp.bfloat16)
    for (w, b) in params[:-1]:
        z = lax.conv_general_dilated(
            h, w.astype(jnp.bfloat16), (1, 1), ((1, 1), (1, 1)),
            dimension_numbers=dn, preferred_element_type=jnp.float32) + b
        z = jnp.where(z >= 0.0, z, slope * z)
        h = z.astype(jnp.bfloat16)
    w_last, b_last = params[-1]
    out = lax.conv_general_dilated(
        h, w_last.astype(jnp.bfloat16), (1, 1), ((1, 1), (1, 1)),
        dimension_numbers=dn, preferred_element_type=jnp.float32) + b_last
    return y - out


# ---------------------------------------------------------------------------
if __name__ == "__main__":
    # Small, DnCNN-consistent config (in_channels == out_channels for residual)
    N, C_IN, H, W = 2, 4, 16, 16
    C_OUT = 4
    DEP = 4            # conv1 + 2 mid layers + conv_last
    NUM_FILTERS = 32
    SLOPE = 0.2

    key = jax.random.PRNGKey(0)
    key, kx = jax.random.split(key)
    # Input generated in the PyTorch NCHW convention, then moved to NHWC.
    x_nchw = jax.random.normal(kx, (N, C_IN, H, W), jnp.float32)
    x_nhwc = jnp.transpose(x_nchw, (0, 2, 3, 1))

    params = init_dncnn_params(key, C_IN, C_OUT, DEP, NUM_FILTERS)

    out_nhwc = dncnn_forward_pallas(x_nhwc, params, SLOPE)
    out_nhwc = jax.block_until_ready(out_nhwc)

    # Sanity check against a pure-JAX (lax.conv) reference with matching bf16
    # operand casting (f32 accumulation in both paths).
    ref_nhwc = dncnn_forward_ref(x_nhwc, params, SLOPE).astype(jnp.float32)
    assert out_nhwc.shape == (N, H, W, C_OUT)
    max_err = float(jnp.max(jnp.abs(out_nhwc - ref_nhwc)))
    assert jnp.allclose(out_nhwc, ref_nhwc, atol=1e-2, rtol=1e-2), max_err

    # Back to NCHW to match the PyTorch output convention.
    out_nchw = jnp.transpose(out_nhwc, (0, 3, 1, 2))
    jax.block_until_ready(out_nchw)

    print("KERNEL_OK")
</pallas_src>

<mosaic_0001>
module attributes {stable_mosaic.version = 11 : i64} {
  func.func @dncnn_fused_kernel(%arg0: i32, %arg1: i32, %arg2: memref<1x16x16x128xbf16, #tpu.memory_space<vmem>>, %arg3: memref<1x16x16x4xf32, #tpu.memory_space<vmem>>, %arg4: memref<1x9x128x128xbf16, #tpu.memory_space<vmem>>, %arg5: memref<1x1x128xf32, #tpu.memory_space<vmem>>, %arg6: memref<1x16x16x4xf32, #tpu.memory_space<vmem>>, %arg7: memref<2x18x48x128xbf16, #tpu.memory_space<vmem>>) attributes {dimension_semantics = [#tpu.dimension_semantics<parallel>, #tpu.dimension_semantics<arbitrary>], iteration_bounds = array<i64: 2, 4>, scalar_prefetch = 0 : i64, scratch_operands = 1 : i64, tpu.core_type = #tpu.core_type<tc>, window_params = [{transform_indices = @transform_0, window_bounds = array<i64: 1, 16, 16, 128>}, {transform_indices = @transform_1, window_bounds = array<i64: 1, 16, 16, 4>}, {transform_indices = @transform_2, window_bounds = array<i64: 1, 9, 128, 128>}, {transform_indices = @transform_3, window_bounds = array<i64: 1, 1, 128>}, {transform_indices = @transform_4, window_bounds = array<i64: 1, 16, 16, 4>}]} {
    %c0_i32 = arith.constant 0 : i32
    %0 = arith.cmpi eq, %arg1, %c0_i32 : i32
    %1 = arith.extui %0 : i1 to i32
    %c0_i32_0 = arith.constant 0 : i32
    %2 = arith.cmpi ne, %1, %c0_i32_0 : i32
    scf.if %2 {
      %cst = arith.constant 0.000000e+00 : bf16
      %29 = vector.broadcast %cst : bf16 to vector<2x18x16x128xbf16>
      %c0 = arith.constant 0 : index
      %c0_15 = arith.constant 0 : index
      %c0_16 = arith.constant 0 : index
      %c0_17 = arith.constant 0 : index
      %30 = vector.load %arg7[%c0, %c0_15, %c0_16, %c0_17] : memref<2x18x48x128xbf16, #tpu.memory_space<vmem>>, vector<2x18x16x128xbf16>
      tpu.vector_store %arg7[%c0, %c0_15, %c0_16, %c0_17], %29 {strides = array<i32>} : memref<2x18x48x128xbf16, #tpu.memory_space<vmem>>, vector<2x18x16x128xbf16>,
      %cst_18 = arith.constant 0.000000e+00 : bf16
      %31 = vector.broadcast %cst_18 : bf16 to vector<2x18x16x128xbf16>
      %c0_19 = arith.constant 0 : index
      %c0_20 = arith.constant 0 : index
      %c32 = arith.constant 32 : index
      %c0_21 = arith.constant 0 : index
      %32 = vector.load %arg7[%c0_19, %c0_20, %c32, %c0_21] : memref<2x18x48x128xbf16, #tpu.memory_space<vmem>>, vector<2x18x16x128xbf16>
      tpu.vector_store %arg7[%c0_19, %c0_20, %c32, %c0_21], %31 {strides = array<i32>} : memref<2x18x48x128xbf16, #tpu.memory_space<vmem>>, vector<2x18x16x128xbf16>,
      %cst_22 = arith.constant 0.000000e+00 : bf16
      %33 = vector.broadcast %cst_22 : bf16 to vector<2x1x48x128xbf16>
      %c0_23 = arith.constant 0 : index
      %c0_24 = arith.constant 0 : index
      %c0_25 = arith.constant 0 : index
      %c0_26 = arith.constant 0 : index
      %34 = vector.load %arg7[%c0_23, %c0_24, %c0_25, %c0_26] : memref<2x18x48x128xbf16, #tpu.memory_space<vmem>>, vector<2x1x48x128xbf16>
      tpu.vector_store %arg7[%c0_23, %c0_24, %c0_25, %c0_26], %33 {strides = array<i32>} : memref<2x18x48x128xbf16, #tpu.memory_space<vmem>>, vector<2x1x48x128xbf16>,
      %cst_27 = arith.constant 0.000000e+00 : bf16
      %35 = vector.broadcast %cst_27 : bf16 to vector<2x1x48x128xbf16>
      %c0_28 = arith.constant 0 : index
      %c17 = arith.constant 17 : index
      %c0_29 = arith.constant 0 : index
      %c0_30 = arith.constant 0 : index
      %36 = vector.load %arg7[%c0_28, %c17, %c0_29, %c0_30] : memref<2x18x48x128xbf16, #tpu.memory_space<vmem>>, vector<2x1x48x128xbf16>
      tpu.vector_store %arg7[%c0_28, %c17, %c0_29, %c0_30], %35 {strides = array<i32>} : memref<2x18x48x128xbf16, #tpu.memory_space<vmem>>, vector<2x1x48x128xbf16>,
      %c0_31 = arith.constant 0 : index
      %c0_32 = arith.constant 0 : index
      %c0_33 = arith.constant 0 : index
      %c0_34 = arith.constant 0 : index
      %37 = vector.load %arg2[%c0_31, %c0_32, %c0_33, %c0_34] : memref<1x16x16x128xbf16, #tpu.memory_space<vmem>>, vector<1x16x16x128xbf16>
      %38 = vector.shape_cast %37 : vector<1x16x16x128xbf16> to vector<16x16x128xbf16>
      %c0_35 = arith.constant 0 : index
      %c1 = arith.constant 1 : index
      %c16 = arith.constant 16 : index
      %c0_36 = arith.constant 0 : index
      %39 = vector.load %arg7[%c0_35, %c1, %c16, %c0_36] : memref<2x18x48x128xbf16, #tpu.memory_space<vmem>>, vector<1x16x16x128xbf16>
      %40 = vector.shape_cast %39 : vector<1x16x16x128xbf16> to vector<16x16x128xbf16>
      %41 = vector.shape_cast %38 : vector<16x16x128xbf16> to vector<1x16x16x128xbf16>
      tpu.vector_store %arg7[%c0_35, %c1, %c16, %c0_36], %41 {strides = array<i32>} : memref<2x18x48x128xbf16, #tpu.memory_space<vmem>>, vector<1x16x16x128xbf16>,
    } else {
    }
    %c2_i32 = arith.constant 2 : i32
    %c0_i32_1 = arith.constant 0 : i32
    %3 = arith.cmpi eq, %c2_i32, %c0_i32_1 : i32
    %c1_i32 = arith.constant 1 : i32
    %4 = arith.select %3, %c1_i32, %c2_i32 : i32
    %5 = arith.remsi %arg1, %4 : i32
    %c0_i32_2 = arith.constant 0 : i32
    %6 = arith.cmpi ne, %5, %c0_i32_2 : i32
    %c0_i32_3 = arith.constant 0 : i32
    %7 = arith.cmpi slt, %5, %c0_i32_3 : i32
    %c0_i32_4 = arith.constant 0 : i32
    %8 = arith.cmpi slt, %4, %c0_i32_4 : i32
    %9 = arith.xori %7, %8 : i1
    %10 = arith.andi %9, %6 : i1
    %11 = arith.addi %5, %4 : i32
    %12 = arith.select %10, %11, %5 : i32
    %c0_i32_5 = arith.constant 0 : i32
    %13 = arith.cmpi eq, %12, %c0_i32_5 : i32
    %14 = arith.extui %13 : i1 to i32
    %c0_i32_6 = arith.constant 0 : i32
    %15 = arith.cmpi ne, %14, %c0_i32_6 : i32
    scf.if %15 {
      %cst = arith.constant 0.000000e+00 : f32
      %29 = vector.broadcast %cst : f32 to vector<16x16x128xf32>
      %c0 = arith.constant 0 : index
      %c0_15 = arith.constant 0 : index
      %c0_16 = arith.constant 0 : index
      %c0_17 = arith.constant 0 : index
      %30 = vector.load %arg7[%c0, %c0_15, %c0_16, %c0_17] : memref<2x18x48x128xbf16, #tpu.memory_space<vmem>>, vector<1x16x48x128xbf16>
      %31 = vector.shape_cast %30 : vector<1x16x48x128xbf16> to vector<16x48x128xbf16>
      %c0_18 = arith.constant 0 : index
      %c0_19 = arith.constant 0 : index
      %c0_20 = arith.constant 0 : index
      %c0_21 = arith.constant 0 : index
      %32 = vector.load %arg4[%c0_18, %c0_19, %c0_20, %c0_21] : memref<1x9x128x128xbf16, #tpu.memory_space<vmem>>, vector<1x1x128x128xbf16>
      %33 = vector.shape_cast %32 : vector<1x1x128x128xbf16> to vector<128x128xbf16>
      %cst_22 = arith.constant dense<0.000000e+00> : vector<16x48x128xf32>
      %34 = tpu.matmul %31, %33, %cst_22 {dimension_numbers = #tpu.dot_dimension_numbers<[2], [0], [0, 1], [1], [0, 0, 0, 1, 1, 1], [], []>} : vector<16x48x128xbf16>, vector<128x128xbf16>, vector<16x48x128xf32> -> vector<16x48x128xf32>
      %35 = vector.extract_strided_slice %34 {offsets = [0, 15, 0], sizes = [16, 16, 128], strides = [1, 1, 1]} : vector<16x48x128xf32> to vector<16x16x128xf32>
      %36 = arith.addf %29, %35 : vector<16x16x128xf32>
      %c0_23 = arith.constant 0 : index
      %c1 = arith.constant 1 : index
      %c0_24 = arith.constant 0 : index
      %c0_25 = arith.constant 0 : index
      %37 = vector.load %arg4[%c0_23, %c1, %c0_24, %c0_25] : memref<1x9x128x128xbf16, #tpu.memory_space<vmem>>, vector<1x1x128x128xbf16>
      %38 = vector.shape_cast %37 : vector<1x1x128x128xbf16> to vector<128x128xbf16>
      %cst_26 = arith.constant dense<0.000000e+00> : vector<16x48x128xf32>
      %39 = tpu.matmul %31, %38, %cst_26 {dimension_numbers = #tpu.dot_dimension_numbers<[2], [0], [0, 1], [1], [0, 0, 0, 1, 1, 1], [], []>} : vector<16x48x128xbf16>, vector<128x128xbf16>, vector<16x48x128xf32> -> vector<16x48x128xf32>
      %40 = vector.extract_strided_slice %39 {offsets = [0, 16, 0], sizes = [16, 16, 128], strides = [1, 1, 1]} : vector<16x48x128xf32> to vector<16x16x128xf32>
      %41 = arith.addf %36, %40 : vector<16x16x128xf32>
      %c0_27 = arith.constant 0 : index
      %c2 = arith.constant 2 : index
      %c0_28 = arith.constant 0 : index
      %c0_29 = arith.constant 0 : index
      %42 = vector.load %arg4[%c0_27, %c2, %c0_28, %c0_29] : memref<1x9x128x128xbf16, #tpu.memory_space<vmem>>, vector<1x1x128x128xbf16>
      %43 = vector.shape_cast %42 : vector<1x1x128x128xbf16> to vector<128x128xbf16>
      %cst_30 = arith.constant dense<0.000000e+00> : vector<16x48x128xf32>
      %44 = tpu.matmul %31, %43, %cst_30 {dimension_numbers = #tpu.dot_dimension_numbers<[2], [0], [0, 1], [1], [0, 0, 0, 1, 1, 1], [], []>} : vector<16x48x128xbf16>, vector<128x128xbf16>, vector<16x48x128xf32> -> vector<16x48x128xf32>
      %45 = vector.extract_strided_slice %44 {offsets = [0, 17, 0], sizes = [16, 16, 128], strides = [1, 1, 1]} : vector<16x48x128xf32> to vector<16x16x128xf32>
      %46 = arith.addf %41, %45 : vector<16x16x128xf32>
      %c0_31 = arith.constant 0 : index
      %c1_32 = arith.constant 1 : index
      %c0_33 = arith.constant 0 : index
      %c0_34 = arith.constant 0 : index
      %47 = vector.load %arg7[%c0_31, %c1_32, %c0_33, %c0_34] : memref<2x18x48x128xbf16, #tpu.memory_space<vmem>>, vector<1x16x48x128xbf16>
      %48 = vector.shape_cast %47 : vector<1x16x48x128xbf16> to vector<16x48x128xbf16>
      %c0_35 = arith.constant 0 : index
      %c3 = arith.constant 3 : index
      %c0_36 = arith.constant 0 : index
      %c0_37 = arith.constant 0 : index
      %49 = vector.load %arg4[%c0_35, %c3, %c0_36, %c0_37] : memref<1x9x128x128xbf16, #tpu.memory_space<vmem>>, vector<1x1x128x128xbf16>
      %50 = vector.shape_cast %49 : vector<1x1x128x128xbf16> to vector<128x128xbf16>
      %cst_38 = arith.constant dense<0.000000e+00> : vector<16x48x128xf32>
      %51 = tpu.matmul %48, %50, %cst_38 {dimension_numbers = #tpu.dot_dimension_numbers<[2], [0], [0, 1], [1], [0, 0, 0, 1, 1, 1], [], []>} : vector<16x48x128xbf16>, vector<128x128xbf16>, vector<16x48x128xf32> -> vector<16x48x128xf32>
      %52 = vector.extract_strided_slice %51 {offsets = [0, 15, 0], sizes = [16, 16, 128], strides = [1, 1, 1]} : vector<16x48x128xf32> to vector<16x16x128xf32>
      %53 = arith.addf %46, %52 : vector<16x16x128xf32>
      %c0_39 = arith.constant 0 : index
      %c4 = arith.constant 4 : index
      %c0_40 = arith.constant 0 : index
      %c0_41 = arith.constant 0 : index
      %54 = vector.load %arg4[%c0_39, %c4, %c0_40, %c0_41] : memref<1x9x128x128xbf16, #tpu.memory_space<vmem>>, vector<1x1x128x128xbf16>
      %55 = vector.shape_cast %54 : vector<1x1x128x128xbf16> to vector<128x128xbf16>
      %cst_42 = arith.constant dense<0.000000e+00> : vector<16x48x128xf32>
      %56 = tpu.matmul %48, %55, %cst_42 {dimension_numbers = #tpu.dot_dimension_numbers<[2], [0], [0, 1], [1], [0, 0, 0, 1, 1, 1], [], []>} : vector<16x48x128xbf16>, vector<128x128xbf16>, vector<16x48x128xf32> -> vector<16x48x128xf32>
      %57 = vector.extract_strided_slice %56 {offsets = [0, 16, 0], sizes = [16, 16, 128], strides = [1, 1, 1]} : vector<16x48x128xf32> to vector<16x16x128xf32>
      %58 = arith.addf %53, %57 : vector<16x16x128xf32>
      %c0_43 = arith.constant 0 : index
      %c5 = arith.constant 5 : index
      %c0_44 = arith.constant 0 : index
      %c0_45 = arith.constant 0 : index
      %59 = vector.load %arg4[%c0_43, %c5, %c0_44, %c0_45] : memref<1x9x128x128xbf16, #tpu.memory_space<vmem>>, vector<1x1x128x128xbf16>
      %60 = vector.shape_cast %59 : vector<1x1x128x128xbf16> to vector<128x128xbf16>
      %cst_46 = arith.constant dense<0.000000e+00> : vector<16x48x128xf32>
      %61 = tpu.matmul %48, %60, %cst_46 {dimension_numbers = #tpu.dot_dimension_numbers<[2], [0], [0, 1], [1], [0, 0, 0, 1, 1, 1], [], []>} : vector<16x48x128xbf16>, vector<128x128xbf16>, vector<16x48x128xf32> -> vector<16x48x128xf32>
      %62 = vector.extract_strided_slice %61 {offsets = [0, 17, 0], sizes = [16, 16, 128], strides = [1, 1, 1]} : vector<16x48x128xf32> to vector<16x16x128xf32>
      %63 = arith.addf %58, %62 : vector<16x16x128xf32>
      %c0_47 = arith.constant 0 : index
      %c2_48 = arith.constant 2 : index
      %c0_49 = arith.constant 0 : index
      %c0_50 = arith.constant 0 : index
      %64 = vector.load %arg7[%c0_47, %c2_48, %c0_49, %c0_50] : memref<2x18x48x128xbf16, #tpu.memory_space<vmem>>, vector<1x16x48x128xbf16>
      %65 = vector.shape_cast %64 : vector<1x16x48x128xbf16> to vector<16x48x128xbf16>
      %c0_51 = arith.constant 0 : index
      %c6 = arith.constant 6 : index
      %c0_52 = arith.constant 0 : index
      %c0_53 = arith.constant 0 : index
      %66 = vector.load %arg4[%c0_51, %c6, %c0_52, %c0_53] : memref<1x9x128x128xbf16, #tpu.memory_space<vmem>>, vector<1x1x128x128xbf16>
      %67 = vector.shape_cast %66 : vector<1x1x128x128xbf16> to vector<128x128xbf16>
      %cst_54 = arith.constant dense<0.000000e+00> : vector<16x48x128xf32>
      %68 = tpu.matmul %65, %67, %cst_54 {dimension_numbers = #tpu.dot_dimension_numbers<[2], [0], [0, 1], [1], [0, 0, 0, 1, 1, 1], [], []>} : vector<16x48x128xbf16>, vector<128x128xbf16>, vector<16x48x128xf32> -> vector<16x48x128xf32>
      %69 = vector.extract_strided_slice %68 {offsets = [0, 15, 0], sizes = [16, 16, 128], strides = [1, 1, 1]} : vector<16x48x128xf32> to vector<16x16x128xf32>
      %70 = arith.addf %63, %69 : vector<16x16x128xf32>
      %c0_55 = arith.constant 0 : index
      %c7 = arith.constant 7 : index
      %c0_56 = arith.constant 0 : index
      %c0_57 = arith.constant 0 : index
      %71 = vector.load %arg4[%c0_55, %c7, %c0_56, %c0_57] : memref<1x9x128x128xbf16, #tpu.memory_space<vmem>>, vector<1x1x128x128xbf16>
      %72 = vector.shape_cast %71 : vector<1x1x128x128xbf16> to vector<128x128xbf16>
      %cst_58 = arith.constant dense<0.000000e+00> : vector<16x48x128xf32>
      %73 = tpu.matmul %65, %72, %cst_58 {dimension_numbers = #tpu.dot_dimension_numbers<[2], [0], [0, 1], [1], [0, 0, 0, 1, 1, 1], [], []>} : vector<16x48x128xbf16>, vector<128x128xbf16>, vector<16x48x128xf32> -> vector<16x48x128xf32>
      %74 = vector.extract_strided_slice %73 {offsets = [0, 16, 0], sizes = [16, 16, 128], strides = [1, 1, 1]} : vector<16x48x128xf32> to vector<16x16x128xf32>
      %75 = arith.addf %70, %74 : vector<16x16x128xf32>
      %c0_59 = arith.constant 0 : index
      %c8 = arith.constant 8 : index
      %c0_60 = arith.constant 0 : index
      %c0_61 = arith.constant 0 : index
      %76 = vector.load %arg4[%c0_59, %c8, %c0_60, %c0_61] : memref<1x9x128x128xbf16, #tpu.memory_space<vmem>>, vector<1x1x128x128xbf16>
      %77 = vector.shape_cast %76 : vector<1x1x128x128xbf16> to vector<128x128xbf16>
      %cst_62 = arith.constant dense<0.000000e+00> : vector<16x48x128xf32>
      %78 = tpu.matmul %65, %77, %cst_62 {dimension_numbers = #tpu.dot_dimension_numbers<[2], [0], [0, 1], [1], [0, 0, 0, 1, 1, 1], [], []>} : vector<16x48x128xbf16>, vector<128x128xbf16>, vector<16x48x128xf32> -> vector<16x48x128xf32>
      %79 = vector.extract_strided_slice %78 {offsets = [0, 17, 0], sizes = [16, 16, 128], strides = [1, 1, 1]} : vector<16x48x128xf32> to vector<16x16x128xf32>
      %80 = arith.addf %75, %79 : vector<16x16x128xf32>
      %c0_63 = arith.constant 0 : index
      %c0_64 = arith.constant 0 : index
      %c0_65 = arith.constant 0 : index
      %81 = vector.load %arg5[%c0_63, %c0_64, %c0_65] : memref<1x1x128xf32, #tpu.memory_space<vmem>>, vector<1x1x128xf32>
      %82 = vector.shape_cast %81 : vector<1x1x128xf32> to vector<1x128xf32>
      %83 = vector.shape_cast %82 : vector<1x128xf32> to vector<1x1x128xf32>
      %84 = vector.broadcast %83 : vector<1x1x128xf32> to vector<16x16x128xf32>
      %85 = arith.addf %80, %84 : vector<16x16x128xf32>
      %c3_i32 = arith.constant 3 : i32
      %86 = arith.cmpi slt, %arg1, %c3_i32 : i32
      %87 = arith.extui %86 : i1 to i32
      %c0_i32_66 = arith.constant 0 : i32
      %88 = arith.cmpi ne, %87, %c0_i32_66 : i32
      scf.if %88 {
        %cst_69 = arith.constant 0.000000e+00 : f32
        %92 = vector.broadcast %cst_69 : f32 to vector<16x16x128xf32>
        %93 = arith.cmpf oge, %85, %92 : vector<16x16x128xf32>
        %cst_70 = arith.constant 2.000000e-01 : f32
        %94 = vector.broadcast %cst_70 : f32 to vector<16x16x128xf32>
        %95 = arith.mulf %94, %85 : vector<16x16x128xf32>
        %96 = arith.select %93, %85, %95 : vector<16x16x128xi1>, vector<16x16x128xf32>
        %97 = arith.truncf %96 : vector<16x16x128xf32> to vector<16x16x128xbf16>
        %c1_71 = arith.constant 1 : index
        %c1_72 = arith.constant 1 : index
        %c16 = arith.constant 16 : index
        %c0_73 = arith.constant 0 : index
        %98 = vector.load %arg7[%c1_71, %c1_72, %c16, %c0_73] : memref<2x18x48x128xbf16, #tpu.memory_space<vmem>>, vector<1x16x16x128xbf16>
        %99 = vector.shape_cast %98 : vector<1x16x16x128xbf16> to vector<16x16x128xbf16>
        %100 = vector.shape_cast %97 : vector<16x16x128xbf16> to vector<1x16x16x128xbf16>
        tpu.vector_store %arg7[%c1_71, %c1_72, %c16, %c0_73], %100 {strides = array<i32>} : memref<2x18x48x128xbf16, #tpu.memory_space<vmem>>, vector<1x16x16x128xbf16>,
      } else {
      }
      %c3_i32_67 = arith.constant 3 : i32
      %89 = arith.cmpi eq, %arg1, %c3_i32_67 : i32
      %90 = arith.extui %89 : i1 to i32
      %c0_i32_68 = arith.constant 0 : i32
      %91 = arith.cmpi ne, %90, %c0_i32_68 : i32
      scf.if %91 {
        %c0_69 = arith.constant 0 : index
        %c0_70 = arith.constant 0 : index
        %c0_71 = arith.constant 0 : index
        %c0_72 = arith.constant 0 : index
        %92 = vector.load %arg3[%c0_69, %c0_70, %c0_71, %c0_72] : memref<1x16x16x4xf32, #tpu.memory_space<vmem>>, vector<1x16x16x4xf32>
        %93 = vector.shape_cast %92 : vector<1x16x16x4xf32> to vector<16x16x4xf32>
        %94 = vector.extract_strided_slice %85 {offsets = [0, 0, 0], sizes = [16, 16, 4], strides = [1, 1, 1]} : vector<16x16x128xf32> to vector<16x16x4xf32>
        %95 = arith.subf %93, %94 : vector<16x16x4xf32>
        %c0_73 = arith.constant 0 : index
        %c0_74 = arith.constant 0 : index
        %c0_75 = arith.constant 0 : index
        %c0_76 = arith.constant 0 : index
        %96 = vector.load %arg6[%c0_73, %c0_74, %c0_75, %c0_76] : memref<1x16x16x4xf32, #tpu.memory_space<vmem>>, vector<1x16x16x4xf32>
        %97 = vector.shape_cast %96 : vector<1x16x16x4xf32> to vector<16x16x4xf32>
        %98 = vector.shape_cast %95 : vector<16x16x4xf32> to vector<1x16x16x4xf32>
        tpu.vector_store %arg6[%c0_73, %c0_74, %c0_75, %c0_76], %98 {strides = array<i32>} : memref<1x16x16x4xf32, #tpu.memory_space<vmem>>, vector<1x16x16x4xf32>,
      } else {
      }
    } else {
    }
    %c2_i32_7 = arith.constant 2 : i32
    %c0_i32_8 = arith.constant 0 : i32
    %16 = arith.cmpi eq, %c2_i32_7, %c0_i32_8 : i32
    %c1_i32_9 = arith.constant 1 : i32
    %17 = arith.select %16, %c1_i32_9, %c2_i32_7 : i32
    %18 = arith.remsi %arg1, %17 : i32
    %c0_i32_10 = arith.constant 0 : i32
    %19 = arith.cmpi ne, %18, %c0_i32_10 : i32
    %c0_i32_11 = arith.constant 0 : i32
    %20 = arith.cmpi slt, %18, %c0_i32_11 : i32
    %c0_i32_12 = arith.constant 0 : i32
    %21 = arith.cmpi slt, %17, %c0_i32_12 : i32
    %22 = arith.xori %20, %21 : i1
    %23 = arith.andi %22, %19 : i1
    %24 = arith.addi %18, %17 : i32
    %25 = arith.select %23, %24, %18 : i32
    %c1_i32_13 = arith.constant 1 : i32
    %26 = arith.cmpi eq, %25, %c1_i32_13 : i32
    %27 = arith.extui %26 : i1 to i32
    %c0_i32_14 = arith.constant 0 : i32
    %28 = arith.cmpi ne, %27, %c0_i32_14 : i32
    scf.if %28 {
      %cst = arith.constant 0.000000e+00 : f32
      %29 = vector.broadcast %cst : f32 to vector<16x16x128xf32>
      %c1 = arith.constant 1 : index
      %c0 = arith.constant 0 : index
      %c0_15 = arith.constant 0 : index
      %c0_16 = arith.constant 0 : index
      %30 = vector.load %arg7[%c1, %c0, %c0_15, %c0_16] : memref<2x18x48x128xbf16, #tpu.memory_space<vmem>>, vector<1x16x48x128xbf16>
      %31 = vector.shape_cast %30 : vector<1x16x48x128xbf16> to vector<16x48x128xbf16>
      %c0_17 = arith.constant 0 : index
      %c0_18 = arith.constant 0 : index
      %c0_19 = arith.constant 0 : index
      %c0_20 = arith.constant 0 : index
      %32 = vector.load %arg4[%c0_17, %c0_18, %c0_19, %c0_20] : memref<1x9x128x128xbf16, #tpu.memory_space<vmem>>, vector<1x1x128x128xbf16>
      %33 = vector.shape_cast %32 : vector<1x1x128x128xbf16> to vector<128x128xbf16>
      %cst_21 = arith.constant dense<0.000000e+00> : vector<16x48x128xf32>
      %34 = tpu.matmul %31, %33, %cst_21 {dimension_numbers = #tpu.dot_dimension_numbers<[2], [0], [0, 1], [1], [0, 0, 0, 1, 1, 1], [], []>} : vector<16x48x128xbf16>, vector<128x128xbf16>, vector<16x48x128xf32> -> vector<16x48x128xf32>
      %35 = vector.extract_strided_slice %34 {offsets = [0, 15, 0], sizes = [16, 16, 128], strides = [1, 1, 1]} : vector<16x48x128xf32> to vector<16x16x128xf32>
      %36 = arith.addf %29, %35 : vector<16x16x128xf32>
      %c0_22 = arith.constant 0 : index
      %c1_23 = arith.constant 1 : index
      %c0_24 = arith.constant 0 : index
      %c0_25 = arith.constant 0 : index
      %37 = vector.load %arg4[%c0_22, %c1_23, %c0_24, %c0_25] : memref<1x9x128x128xbf16, #tpu.memory_space<vmem>>, vector<1x1x128x128xbf16>
      %38 = vector.shape_cast %37 : vector<1x1x128x128xbf16> to vector<128x128xbf16>
      %cst_26 = arith.constant dense<0.000000e+00> : vector<16x48x128xf32>
      %39 = tpu.matmul %31, %38, %cst_26 {dimension_numbers = #tpu.dot_dimension_numbers<[2], [0], [0, 1], [1], [0, 0, 0, 1, 1, 1], [], []>} : vector<16x48x128xbf16>, vector<128x128xbf16>, vector<16x48x128xf32> -> vector<16x48x128xf32>
      %40 = vector.extract_strided_slice %39 {offsets = [0, 16, 0], sizes = [16, 16, 128], strides = [1, 1, 1]} : vector<16x48x128xf32> to vector<16x16x128xf32>
      %41 = arith.addf %36, %40 : vector<16x16x128xf32>
      %c0_27 = arith.constant 0 : index
      %c2 = arith.constant 2 : index
      %c0_28 = arith.constant 0 : index
      %c0_29 = arith.constant 0 : index
      %42 = vector.load %arg4[%c0_27, %c2, %c0_28, %c0_29] : memref<1x9x128x128xbf16, #tpu.memory_space<vmem>>, vector<1x1x128x128xbf16>
      %43 = vector.shape_cast %42 : vector<1x1x128x128xbf16> to vector<128x128xbf16>
      %cst_30 = arith.constant dense<0.000000e+00> : vector<16x48x128xf32>
      %44 = tpu.matmul %31, %43, %cst_30 {dimension_numbers = #tpu.dot_dimension_numbers<[2], [0], [0, 1], [1], [0, 0, 0, 1, 1, 1], [], []>} : vector<16x48x128xbf16>, vector<128x128xbf16>, vector<16x48x128xf32> -> vector<16x48x128xf32>
      %45 = vector.extract_strided_slice %44 {offsets = [0, 17, 0], sizes = [16, 16, 128], strides = [1, 1, 1]} : vector<16x48x128xf32> to vector<16x16x128xf32>
      %46 = arith.addf %41, %45 : vector<16x16x128xf32>
      %c1_31 = arith.constant 1 : index
      %c1_32 = arith.constant 1 : index
      %c0_33 = arith.constant 0 : index
      %c0_34 = arith.constant 0 : index
      %47 = vector.load %arg7[%c1_31, %c1_32, %c0_33, %c0_34] : memref<2x18x48x128xbf16, #tpu.memory_space<vmem>>, vector<1x16x48x128xbf16>
      %48 = vector.shape_cast %47 : vector<1x16x48x128xbf16> to vector<16x48x128xbf16>
      %c0_35 = arith.constant 0 : index
      %c3 = arith.constant 3 : index
      %c0_36 = arith.constant 0 : index
      %c0_37 = arith.constant 0 : index
      %49 = vector.load %arg4[%c0_35, %c3, %c0_36, %c0_37] : memref<1x9x128x128xbf16, #tpu.memory_space<vmem>>, vector<1x1x128x128xbf16>
      %50 = vector.shape_cast %49 : vector<1x1x128x128xbf16> to vector<128x128xbf16>
      %cst_38 = arith.constant dense<0.000000e+00> : vector<16x48x128xf32>
      %51 = tpu.matmul %48, %50, %cst_38 {dimension_numbers = #tpu.dot_dimension_numbers<[2], [0], [0, 1], [1], [0, 0, 0, 1, 1, 1], [], []>} : vector<16x48x128xbf16>, vector<128x128xbf16>, vector<16x48x128xf32> -> vector<16x48x128xf32>
      %52 = vector.extract_strided_slice %51 {offsets = [0, 15, 0], sizes = [16, 16, 128], strides = [1, 1, 1]} : vector<16x48x128xf32> to vector<16x16x128xf32>
      %53 = arith.addf %46, %52 : vector<16x16x128xf32>
      %c0_39 = arith.constant 0 : index
      %c4 = arith.constant 4 : index
      %c0_40 = arith.constant 0 : index
      %c0_41 = arith.constant 0 : index
      %54 = vector.load %arg4[%c0_39, %c4, %c0_40, %c0_41] : memref<1x9x128x128xbf16, #tpu.memory_space<vmem>>, vector<1x1x128x128xbf16>
      %55 = vector.shape_cast %54 : vector<1x1x128x128xbf16> to vector<128x128xbf16>
      %cst_42 = arith.constant dense<0.000000e+00> : vector<16x48x128xf32>
      %56 = tpu.matmul %48, %55, %cst_42 {dimension_numbers = #tpu.dot_dimension_numbers<[2], [0], [0, 1], [1], [0, 0, 0, 1, 1, 1], [], []>} : vector<16x48x128xbf16>, vector<128x128xbf16>, vector<16x48x128xf32> -> vector<16x48x128xf32>
      %57 = vector.extract_strided_slice %56 {offsets = [0, 16, 0], sizes = [16, 16, 128], strides = [1, 1, 1]} : vector<16x48x128xf32> to vector<16x16x128xf32>
      %58 = arith.addf %53, %57 : vector<16x16x128xf32>
      %c0_43 = arith.constant 0 : index
      %c5 = arith.constant 5 : index
      %c0_44 = arith.constant 0 : index
      %c0_45 = arith.constant 0 : index
      %59 = vector.load %arg4[%c0_43, %c5, %c0_44, %c0_45] : memref<1x9x128x128xbf16, #tpu.memory_space<vmem>>, vector<1x1x128x128xbf16>
      %60 = vector.shape_cast %59 : vector<1x1x128x128xbf16> to vector<128x128xbf16>
      %cst_46 = arith.constant dense<0.000000e+00> : vector<16x48x128xf32>
      %61 = tpu.matmul %48, %60, %cst_46 {dimension_numbers = #tpu.dot_dimension_numbers<[2], [0], [0, 1], [1], [0, 0, 0, 1, 1, 1], [], []>} : vector<16x48x128xbf16>, vector<128x128xbf16>, vector<16x48x128xf32> -> vector<16x48x128xf32>
      %62 = vector.extract_strided_slice %61 {offsets = [0, 17, 0], sizes = [16, 16, 128], strides = [1, 1, 1]} : vector<16x48x128xf32> to vector<16x16x128xf32>
      %63 = arith.addf %58, %62 : vector<16x16x128xf32>
      %c1_47 = arith.constant 1 : index
      %c2_48 = arith.constant 2 : index
      %c0_49 = arith.constant 0 : index
      %c0_50 = arith.constant 0 : index
      %64 = vector.load %arg7[%c1_47, %c2_48, %c0_49, %c0_50] : memref<2x18x48x128xbf16, #tpu.memory_space<vmem>>, vector<1x16x48x128xbf16>
      %65 = vector.shape_cast %64 : vector<1x16x48x128xbf16> to vector<16x48x128xbf16>
      %c0_51 = arith.constant 0 : index
      %c6 = arith.constant 6 : index
      %c0_52 = arith.constant 0 : index
      %c0_53 = arith.constant 0 : index
      %66 = vector.load %arg4[%c0_51, %c6, %c0_52, %c0_53] : memref<1x9x128x128xbf16, #tpu.memory_space<vmem>>, vector<1x1x128x128xbf16>
      %67 = vector.shape_cast %66 : vector<1x1x128x128xbf16> to vector<128x128xbf16>
      %cst_54 = arith.constant dense<0.000000e+00> : vector<16x48x128xf32>
      %68 = tpu.matmul %65, %67, %cst_54 {dimension_numbers = #tpu.dot_dimension_numbers<[2], [0], [0, 1], [1], [0, 0, 0, 1, 1, 1], [], []>} : vector<16x48x128xbf16>, vector<128x128xbf16>, vector<16x48x128xf32> -> vector<16x48x128xf32>
      %69 = vector.extract_strided_slice %68 {offsets = [0, 15, 0], sizes = [16, 16, 128], strides = [1, 1, 1]} : vector<16x48x128xf32> to vector<16x16x128xf32>
      %70 = arith.addf %63, %69 : vector<16x16x128xf32>
      %c0_55 = arith.constant 0 : index
      %c7 = arith.constant 7 : index
      %c0_56 = arith.constant 0 : index
      %c0_57 = arith.constant 0 : index
      %71 = vector.load %arg4[%c0_55, %c7, %c0_56, %c0_57] : memref<1x9x128x128xbf16, #tpu.memory_space<vmem>>, vector<1x1x128x128xbf16>
      %72 = vector.shape_cast %71 : vector<1x1x128x128xbf16> to vector<128x128xbf16>
      %cst_58 = arith.constant dense<0.000000e+00> : vector<16x48x128xf32>
      %73 = tpu.matmul %65, %72, %cst_58 {dimension_numbers = #tpu.dot_dimension_numbers<[2], [0], [0, 1], [1], [0, 0, 0, 1, 1, 1], [], []>} : vector<16x48x128xbf16>, vector<128x128xbf16>, vector<16x48x128xf32> -> vector<16x48x128xf32>
      %74 = vector.extract_strided_slice %73 {offsets = [0, 16, 0], sizes = [16, 16, 128], strides = [1, 1, 1]} : vector<16x48x128xf32> to vector<16x16x128xf32>
      %75 = arith.addf %70, %74 : vector<16x16x128xf32>
      %c0_59 = arith.constant 0 : index
      %c8 = arith.constant 8 : index
      %c0_60 = arith.constant 0 : index
      %c0_61 = arith.constant 0 : index
      %76 = vector.load %arg4[%c0_59, %c8, %c0_60, %c0_61] : memref<1x9x128x128xbf16, #tpu.memory_space<vmem>>, vector<1x1x128x128xbf16>
      %77 = vector.shape_cast %76 : vector<1x1x128x128xbf16> to vector<128x128xbf16>
      %cst_62 = arith.constant dense<0.000000e+00> : vector<16x48x128xf32>
      %78 = tpu.matmul %65, %77, %cst_62 {dimension_numbers = #tpu.dot_dimension_numbers<[2], [0], [0, 1], [1], [0, 0, 0, 1, 1, 1], [], []>} : vector<16x48x128xbf16>, vector<128x128xbf16>, vector<16x48x128xf32> -> vector<16x48x128xf32>
      %79 = vector.extract_strided_slice %78 {offsets = [0, 17, 0], sizes = [16, 16, 128], strides = [1, 1, 1]} : vector<16x48x128xf32> to vector<16x16x128xf32>
      %80 = arith.addf %75, %79 : vector<16x16x128xf32>
      %c0_63 = arith.constant 0 : index
      %c0_64 = arith.constant 0 : index
      %c0_65 = arith.constant 0 : index
      %81 = vector.load %arg5[%c0_63, %c0_64, %c0_65] : memref<1x1x128xf32, #tpu.memory_space<vmem>>, vector<1x1x128xf32>
      %82 = vector.shape_cast %81 : vector<1x1x128xf32> to vector<1x128xf32>
      %83 = vector.shape_cast %82 : vector<1x128xf32> to vector<1x1x128xf32>
      %84 = vector.broadcast %83 : vector<1x1x128xf32> to vector<16x16x128xf32>
      %85 = arith.addf %80, %84 : vector<16x16x128xf32>
      %c3_i32 = arith.constant 3 : i32
      %86 = arith.cmpi slt, %arg1, %c3_i32 : i32
      %87 = arith.extui %86 : i1 to i32
      %c0_i32_66 = arith.constant 0 : i32
      %88 = arith.cmpi ne, %87, %c0_i32_66 : i32
      scf.if %88 {
        %cst_69 = arith.constant 0.000000e+00 : f32
        %92 = vector.broadcast %cst_69 : f32 to vector<16x16x128xf32>
        %93 = arith.cmpf oge, %85, %92 : vector<16x16x128xf32>
        %cst_70 = arith.constant 2.000000e-01 : f32
        %94 = vector.broadcast %cst_70 : f32 to vector<16x16x128xf32>
        %95 = arith.mulf %94, %85 : vector<16x16x128xf32>
        %96 = arith.select %93, %85, %95 : vector<16x16x128xi1>, vector<16x16x128xf32>
        %97 = arith.truncf %96 : vector<16x16x128xf32> to vector<16x16x128xbf16>
        %c0_71 = arith.constant 0 : index
        %c1_72 = arith.constant 1 : index
        %c16 = arith.constant 16 : index
        %c0_73 = arith.constant 0 : index
        %98 = vector.load %arg7[%c0_71, %c1_72, %c16, %c0_73] : memref<2x18x48x128xbf16, #tpu.memory_space<vmem>>, vector<1x16x16x128xbf16>
        %99 = vector.shape_cast %98 : vector<1x16x16x128xbf16> to vector<16x16x128xbf16>
        %100 = vector.shape_cast %97 : vector<16x16x128xbf16> to vector<1x16x16x128xbf16>
        tpu.vector_store %arg7[%c0_71, %c1_72, %c16, %c0_73], %100 {strides = array<i32>} : memref<2x18x48x128xbf16, #tpu.memory_space<vmem>>, vector<1x16x16x128xbf16>,
      } else {
      }
      %c3_i32_67 = arith.constant 3 : i32
      %89 = arith.cmpi eq, %arg1, %c3_i32_67 : i32
      %90 = arith.extui %89 : i1 to i32
      %c0_i32_68 = arith.constant 0 : i32
      %91 = arith.cmpi ne, %90, %c0_i32_68 : i32
      scf.if %91 {
        %c0_69 = arith.constant 0 : index
        %c0_70 = arith.constant 0 : index
        %c0_71 = arith.constant 0 : index
        %c0_72 = arith.constant 0 : index
        %92 = vector.load %arg3[%c0_69, %c0_70, %c0_71, %c0_72] : memref<1x16x16x4xf32, #tpu.memory_space<vmem>>, vector<1x16x16x4xf32>
        %93 = vector.shape_cast %92 : vector<1x16x16x4xf32> to vector<16x16x4xf32>
        %94 = vector.extract_strided_slice %85 {offsets = [0, 0, 0], sizes = [16, 16, 4], strides = [1, 1, 1]} : vector<16x16x128xf32> to vector<16x16x4xf32>
        %95 = arith.subf %93, %94 : vector<16x16x4xf32>
        %c0_73 = arith.constant 0 : index
        %c0_74 = arith.constant 0 : index
        %c0_75 = arith.constant 0 : index
        %c0_76 = arith.constant 0 : index
        %96 = vector.load %arg6[%c0_73, %c0_74, %c0_75, %c0_76] : memref<1x16x16x4xf32, #tpu.memory_space<vmem>>, vector<1x16x16x4xf32>
        %97 = vector.shape_cast %96 : vector<1x16x16x4xf32> to vector<16x16x4xf32>
        %98 = vector.shape_cast %95 : vector<16x16x4xf32> to vector<1x16x16x4xf32>
        tpu.vector_store %arg6[%c0_73, %c0_74, %c0_75, %c0_76], %98 {strides = array<i32>} : memref<1x16x16x4xf32, #tpu.memory_space<vmem>>, vector<1x16x16x4xf32>,
      } else {
      }
    } else {
    }
    return
  }
  func.func @transform_0(%arg0: i32, %arg1: i32) -> (i32, i32, i32, i32) {
    %c0_i32 = arith.constant 0 : i32
    %c0_i32_0 = arith.constant 0 : i32
    %c0_i32_1 = arith.constant 0 : i32
    %c0_i32_2 = arith.constant 0 : i32
    return %arg0, %c0_i32, %c0_i32_0, %c0_i32_1 : i32, i32, i32, i32
  }
  func.func @transform_1(%arg0: i32, %arg1: i32) -> (i32, i32, i32, i32) {
    %c0_i32 = arith.constant 0 : i32
    %c0_i32_0 = arith.constant 0 : i32
    %c0_i32_1 = arith.constant 0 : i32
    %c0_i32_2 = arith.constant 0 : i32
    return %arg0, %c0_i32, %c0_i32_0, %c0_i32_1 : i32, i32, i32, i32
  }
  func.func @transform_2(%arg0: i32, %arg1: i32) -> (i32, i32, i32, i32) {
    %c0_i32 = arith.constant 0 : i32
    %c0_i32_0 = arith.constant 0 : i32
    %c0_i32_1 = arith.constant 0 : i32
    %c0_i32_2 = arith.constant 0 : i32
    return %arg1, %c0_i32, %c0_i32_0, %c0_i32_1 : i32, i32, i32, i32
  }
  func.func @transform_3(%arg0: i32, %arg1: i32) -> (i32, i32, i32) {
    %c0_i32 = arith.constant 0 : i32
    %c0_i32_0 = arith.constant 0 : i32
    %c0_i32_1 = arith.constant 0 : i32
    return %arg1, %c0_i32, %c0_i32_0 : i32, i32, i32
  }
  func.func @transform_4(%arg0: i32, %arg1: i32) -> (i32, i32, i32, i32) {
    %c0_i32 = arith.constant 0 : i32
    %c0_i32_0 = arith.constant 0 : i32
    %c0_i32_1 = arith.constant 0 : i32
    %c0_i32_2 = arith.constant 0 : i32
    return %arg0, %c0_i32, %c0_i32_0, %c0_i32_1 : i32, i32, i32, i32
  }
}

</mosaic_0001>

<bundles_post_ra>
// kernel: tpu_custom_call.1
= control target key start
LH: loop header
LB: loop body
LE: loop exit
PB: predicated region body
PF: predicated region fallthrough
CT: control target
= control target key end

     0   :  { %s18105_s0 = inlined_call_operand.hbm [shape: bf16[2,16,16,128], index: 0, kind: input, shape index: {}]   ;;  %s18106_s1 = inlined_call_operand.vmem [shape: f32[2,16,16,4], index: 1, kind: input, shape index: {}]   ;;  %s18107_s2 = inlined_call_operand.hbm [shape: bf16[4,9,128,128], index: 2, kind: input, shape index: {}]   ;;  %s18108_s3 = inlined_call_operand.hbm [shape: f32[4,1,128], index: 3, kind: input, shape index: {}]   ;;  %s18109_s4 = inlined_call_operand.vmem [shape: f32[2,16,16,4], index: 4, kind: output, shape index: {}]  }
   0x1   :  { %18136 = sst [smem:[#allocation53_spill]] %s18106_s1 }
   0x2   :  { %18137 = sst [smem:[#allocation54_spill]] %s18107_s2 }
   0x3   :  { %18138 = sst [smem:[#allocation55_spill]] %s18109_s4 }
   0x4   :  { %9 = vsyncpa [#allocation4], 0 }
   0x5   :  { %11 = vsyncpa [#allocation4 + $0x1], 0 }
   0x6   :  { %12 = vsyncpa [#allocation6], 0 }
   0x7   :  { %14 = vsyncpa [#allocation6 + $0x1], 0  ;;  %s15263_s15 = smov 0   ;;  %s15265_s16 = smov 0  }
   0x8   :  { %s15267_s17 = smov 0   ;;  %s15269_s18 = smov 0  }
   0x9   :  { %s15271_s19 = smov 0   ;;  %s15273_s20 = smov 0  }
   0xa   :  { %s15275_s21 = smov 0   ;;  %s15277_s22 = smov 0  }
   0xb   :  { %s15279_s23 = smov 0   ;;  %s15281_s24 = smov 0  }
   0xc   :  { %s15283_s25 = smov 0  }
   0xd LB: > { %18139 = sst [smem:[#allocation10_spill]] %s15217_s21  ;;  %s18110_s26 = sadd.s32 4294967295, %s15233_s25   ;;  %s15233_s25 = sphi %s15283_s25, %s20_s25   ;;  %s15229_s24 = sphi %s15281_s24, %s18327_s24   ;;  %s15225_s23 = sphi %s15279_s23, %s18335_s23   ;;  %s15221_s22 = sphi %s15277_s22, %s18325_s22   ;;  %s15217_s21 = sphi %s15275_s21, %s18334_s21   ;;  %s15213_s20 = sphi %s15273_s20, %s18333_s20   ;;  %s15209_s19 = sphi %s15271_s19, %s18332_s19   ;;  %s15205_s18 = sphi %s15269_s18, %s18331_s18   ;;  %s15201_s17 = sphi %s15267_s17, %s18330_s17   ;;  %s15197_s16 = sphi %s15265_s16, %s18329_s16   ;;  %s15193_s15 = sphi %s15263_s15, %s18328_s15  }
   0xe   : > { %18140 = sst [smem:[#allocation11_spill]] %s15229_s24  ;;  %s29_s27 = sadd.s32 1, %s15225_s23 }
   0xf   : > { %p15318_p0 = scmp.ge.s32.totalorder %s29_s27, 4  ;;  %p47_p1 = scmp.eq.s32.totalorder %s15233_s25, 0 }
  0x10   : > { %p15325_p2 = scmp.eq.s32.totalorder %s18110_s26, 0  ;;  %s91_s30 = sadd.s32 1, %s15201_s17 }
  0x11   : > { %s18337_s27 = smov (%p15318_p0, %s29_s27), 0  ;;  %p98_p3 = scmp.ne.s32.totalorder %s15201_s17, %s15197_s16 }
  0x12   : > { %18143 = sst [smem:[#allocation12_spill]] %s18337_s27  ;;  %p104_p4 = scmp.ne.s32.totalorder %s15197_s16, %s15193_s15 }
  0x13   : > { %s88_s5 = ssub.s32 %s15225_s23, %s18337_s27  ;;  %p100_p6 = por %p98_p3, %p47_p1 }
  0x14   : > { %p89_p5 = scmp.eq.s32.totalorder %s88_s5, 0  ;;  %p15343_p7 = por %p104_p4, %p15325_p2 }
  0x15   : > { %p14809_p8 = scmp.lt.s32.totalorder %s15233_s25, 8  ;;  %s210_s8 = sand.u32 1, %s15233_s25  }
  0x16   : > { %s15349_s7 = scalar_select %p89_p5, %s15201_s17, %s91_s30  }
  0x17   : > { %s18111_s9 = sand.u32 1, %s15201_s17   ;;  %s14791_s11 = smul.u32 576, %s15225_s23 }
  0x18   : > { %18145 = sst [smem:[#allocation13_spill]] %s15349_s7  ;;  %s14790_s10 = smul.u32 576, %s18111_s9 }
  0x19   : > { %p15358_p9 = pnand %p14809_p8, %p100_p6  ;;  %p12273_p10 = scmp.ge.s32.totalorder %s15233_s25, 1 }
  0x1a   : > { %s18147_s2 = sld [smem:[#allocation54_spill]]  ;;  %s214_s30 = scalar_lea.vmem [#allocation5], %s14790_s10 }
  0x1b   : > { %s222_s5 = sshll.u32 %s214_s30, 4  ;;  %s15366_s9 = scalar_lea.sflag [#allocation6], %s210_s8  ;;  %s223_s5 = int_to_ptr.vmem [resolvable:$true] %s222_s5 }
  0x1c   : > { %s18113_s27 = smov 64   ;;  %s18114_s7 = smov 4  }
  0x1d   : > { %p247_p11 = scmp.lt.s32.totalorder %s15233_s25, 9  ;;  %s39_s13 = sadd.s32 1, %s15213_s20 }
  0x1e   : > { %p46_p13 = scmp.ne.s32.totalorder %s15213_s20, %s15209_s19  ;;  %p52_p3 = scmp.ne.s32.totalorder %s15209_s19, %s15205_s18 }
  0x1f   : > { %p15375_p12 = pnand %p12273_p10, %p247_p11  ;;  %s180_s8 = sand.u32 1, %s15213_s20  }
  0x20   : > { %s219_s15 = scalar_lea.hbm %s18147_s2, %s14791_s11  ;;  %s32_s11 = sadd.s32 1, %s15229_s24 }
  0x21   : > { %s220_s26 = sshll.u32 %s219_s15, 4  ;;  %s18339_s11 = smov (!%p15318_p0, %s32_s11), %s15229_s24  ;;  %s221_s26 = int_to_ptr.hbm [resolvable:$true] %s220_s26 }
  0x22   : > { %14805 = dma.hbm_to_vmem [thread:$0]  (!%p15358_p9), %s221_s26, 9216, %s223_s5, %s15366_s9, %s18113_s27, %s18113_s27, %s18114_s7  }
  0x23   : > { %p34_p4 = scmp.ge.s32.totalorder %s18339_s11, 2  ;;  %p15391_p5 = por %p47_p1, %p46_p13 }
  0x24   : > { %p15397_p6 = por %p15325_p2, %p52_p3  ;;  %s12269_s28 = sshll.u32 %s180_s8, 7 }
  0x25   : > { %s18341_s11 = smov (%p34_p4, %s18339_s11), 0  ;;  %s14307_s15 = sshll.u32 %s15229_s24, 7 }
  0x26   : > { %18151 = sst [smem:[#allocation14_spill]] %s18341_s11  ;;  %s36_s18 = ssub.s32 %s15229_s24, %s18341_s11 }
  0x27   : > { %p37_p0 = scmp.eq.s32.totalorder %s36_s18, 0  ;;  %s189_s27 = scalar_lea.hbm %s18105_s0, %s14307_s15 }
  0x28   : > { %s184_s29 = scalar_lea.vmem [#allocation3], %s12269_s28  ;;  %s190_s21 = sshll.u32 %s189_s27, 4  ;;  %s191_s21 = int_to_ptr.hbm [resolvable:$true] %s190_s21 }
  0x29   : > { %s192_s7 = sshll.u32 %s184_s29, 4  ;;  %p14800_p1 = pnand %p14809_p8, %p15391_p5  ;;  %s193_s7 = int_to_ptr.vmem [resolvable:$true] %s192_s7 }
  0x2a   : > { %s15410_s2 = scalar_select %p37_p0, %s15213_s20, %s39_s13  }
  0x2b   : > { %s238_s18 = scalar_lea.hbm %s18108_s3, %s15225_s23  ;;  %s181_s1 = scalar_lea.sflag [#allocation4], %s180_s8 }
  0x2c   : > { %s240_s24 = sshll.u32 %s238_s18, 4  ;;  %s18152_s30 = smov 4   ;;  %s241_s24 = int_to_ptr.hbm [resolvable:$true] %s240_s24 }
  0x2d   : > { %s18153_s15 = smov 64   ;;  %s18154_s28 = sand.u32 1, %s15201_s17  }
  0x2e   : > { %14802 = dma.hbm_to_vmem [thread:$0]  (!%p14800_p1), %s191_s21, 2048, %s193_s7, %s181_s1, %s18153_s15, %s18153_s15, %s18152_s30  }
  0x2f   : > { %s235_s13 = scalar_lea.vmem [#allocation7], %s18154_s28  ;;  %251 = sbr.rel (%p15375_p12) target bundleno = 4374 (0x1116), region = 36 }
  0x30   : > { %s242_s5 = sshll.u32 %s235_s13, 4  ;;  %s253_s4 = sand.u32 (!%p15375_p12), 1, %s15209_s19   ;;  %s243_s5 = int_to_ptr.vmem [resolvable:$true] %s242_s5 }
  0x31   : > { %14808 = dma.hbm_to_vmem [thread:$0]  (!%p15358_p9), %s241_s24, 16, %s243_s5, %s15366_s9  }
  0x32   : > { %s12274_s27 = sshll.u32 (!%p15375_p12), %s253_s4, 7  ;;  %s254_s11 = scalar_lea.sflag (!%p15375_p12), [#allocation4], %s253_s4 }
  0x33   : > { %s15431_s8 = scalar_lea.vmem (!%p15375_p12), [#allocation3], %s12274_s27 }
  0x34   : > { %15184 = dma.done.wait (%p15397_p6), %s254_s11, 2048  }
  0x35   : > { %15186 = vsyncadd (%p15397_p6), %s254_s11, 4294965248  ;;  %s18155_s1 = sadd.s32 4294967295, %s15233_s25   ;;  %s265_s24 = sand.u32 1, %s15197_s16  }
  0x36   : > { %s263_s21 = sand.u32 1, %s18155_s1   ;;  %s14792_s7 = smul.u32 576, %s265_s24 }
  0x37   : > { %s264_s9 = scalar_lea.sflag [#allocation6], %s263_s21 }
  0x38   : > { %s15440_s12 = scalar_lea.vmem [#allocation5], %s14792_s7 }
  0x39   : > { %15188 = dma.done.wait (%p15343_p7), %s264_s9, 9232  }
  0x3a   : > { %15190 = vsyncadd (%p15343_p7), %s264_s9, 4294958064  ;;  %p316_p2 = scmp.lt.s32.totalorder %s15221_s22, 1  ;;  %s18156_s29 = sld [smem:[#allocation53_spill]] }
  0x3b   : > { %s18157_s28 = sld [smem:[#allocation55_spill]]  ;;  %s15458_s5 = scalar_lea.vmem [#allocation7], %s265_s24 }
  0x3c   : > { %s18343_s22 = smov (!%p316_p2, %s15221_s22), 1  ;;  %s18158_s4 = sld [smem:[#allocation10_spill]] }
  0x3d   : > { %s14308_s10 = sshll.u32 %s18343_s22, 8 }
  0x40   : > { %s15451_s18 = scalar_lea.vmem %s18156_s29, %s14308_s10 }
  0x41   : > { %s15456_s13 = scalar_lea.vmem %s18157_s28, %s14308_s10 }
  0x42   : > { %p12279_p8 = scmp.ne.s32.totalorder %s18158_s4, 0 }
  0x44   : > { %330 = sbr.rel (%p12279_p8) target bundleno = 258 (0x102), region = 52 }
  0x49   : > { %v15237_v0 = vmov 0   ;;  %v500_v1 = vld [vmem:[%s15431_s8] sm:$0xff]   ;;  %v502_v2 = vld [vmem:[%s15431_s8 + $0x8] sm:$0xff]   ;;  %v504_v3 = vld [vmem:[%s15431_s8 + $0x10] sm:$0xff]  }
  0x4a   : > { %331 = vst [vmem:[#allocation2] sm:$0xf] %v15237_v0  ;;  %v506_v4 = vld [vmem:[%s15431_s8 + $0x18] sm:$0xff]   ;;  %v508_v5 = vld [vmem:[%s15431_s8 + $0x20] sm:$0xff]   ;;  %v510_v6 = vld [vmem:[%s15431_s8 + $0x28] sm:$0xff]  }
  0x4b   : > { %332 = vst [vmem:[#allocation2 + $0x4] sm:$0xf] %v15237_v0  ;;  %v512_v7 = vld [vmem:[%s15431_s8 + $0x30] sm:$0xff]   ;;  %v514_v8 = vld [vmem:[%s15431_s8 + $0x38] sm:$0xff]   ;;  %v516_v9 = vld [vmem:[%s15431_s8 + $0x40] sm:$0xff]  }
  0x4c   : > { %333 = vst [vmem:[#allocation2 + $0x18] sm:$0xf] %v15237_v0  ;;  %v518_v10 = vld [vmem:[%s15431_s8 + $0x48] sm:$0xff]   ;;  %v520_v11 = vld [vmem:[%s15431_s8 + $0x50] sm:$0xff]   ;;  %v522_v12 = vld [vmem:[%s15431_s8 + $0x58] sm:$0xff]  }
  0x4d   : > { %334 = vst [vmem:[#allocation2 + $0x1c] sm:$0xf] %v15237_v0  ;;  %v524_v13 = vld [vmem:[%s15431_s8 + $0x60] sm:$0xff]   ;;  %v526_v14 = vld [vmem:[%s15431_s8 + $0x68] sm:$0xff]   ;;  %v528_v15 = vld [vmem:[%s15431_s8 + $0x70] sm:$0xff]  }
  0x4e   : > { %335 = vst [vmem:[#allocation2 + $0x30] sm:$0xf] %v15237_v0  ;;  %v530_v16 = vld [vmem:[%s15431_s8 + $0x78] sm:$0xff]  }
  0x4f   : > { %336 = vst [vmem:[#allocation2 + $0x34] sm:$0xf] %v15237_v0 }
  0x50   : > { %337 = vst [vmem:[#allocation2 + $0x48] sm:$0xf] %v15237_v0 }
  0x51   : > { %338 = vst [vmem:[#allocation2 + $0x4c] sm:$0xf] %v15237_v0 }
  0x52   : > { %339 = vst [vmem:[#allocation2 + $0x60] sm:$0xf] %v15237_v0 }
  0x53   : > { %340 = vst [vmem:[#allocation2 + $0x64] sm:$0xf] %v15237_v0 }
  0x54   : > { %341 = vst [vmem:[#allocation2 + $0x78] sm:$0xf] %v15237_v0 }
  0x55   : > { %342 = vst [vmem:[#allocation2 + $0x7c] sm:$0xf] %v15237_v0 }
  0x56   : > { %343 = vst [vmem:[#allocation2 + $0x90] sm:$0xf] %v15237_v0 }
  0x57   : > { %344 = vst [vmem:[#allocation2 + $0x94] sm:$0xf] %v15237_v0 }
  0x58   : > { %345 = vst [vmem:[#allocation2 + $0xa8] sm:$0xf] %v15237_v0 }
  0x59   : > { %346 = vst [vmem:[#allocation2 + $0xac] sm:$0xf] %v15237_v0 }
  0x5a   : > { %347 = vst [vmem:[#allocation2 + $0xc0] sm:$0xf] %v15237_v0 }
  0x5b   : > { %348 = vst [vmem:[#allocation2 + $0xc4] sm:$0xf] %v15237_v0 }
  0x5c   : > { %349 = vst [vmem:[#allocation2 + $0xd8] sm:$0xf] %v15237_v0 }
  0x5d   : > { %350 = vst [vmem:[#allocation2 + $0xdc] sm:$0xf] %v15237_v0 }
  0x5e   : > { %351 = vst [vmem:[#allocation2 + $0xf0] sm:$0xf] %v15237_v0 }
  0x5f   : > { %352 = vst [vmem:[#allocation2 + $0xf4] sm:$0xf] %v15237_v0 }
  0x60   : > { %353 = vst [vmem:[#allocation2 + $0x108] sm:$0xf] %v15237_v0 }
  0x61   : > { %354 = vst [vmem:[#allocation2 + $0x10c] sm:$0xf] %v15237_v0 }
  0x62   : > { %355 = vst [vmem:[#allocation2 + $0x120] sm:$0xf] %v15237_v0 }
  0x63   : > { %356 = vst [vmem:[#allocation2 + $0x124] sm:$0xf] %v15237_v0 }
  0x64   : > { %357 = vst [vmem:[#allocation2 + $0x138] sm:$0xf] %v15237_v0 }
  0x65   : > { %358 = vst [vmem:[#allocation2 + $0x13c] sm:$0xf] %v15237_v0 }
  0x66   : > { %359 = vst [vmem:[#allocation2 + $0x150] sm:$0xf] %v15237_v0 }
  0x67   : > { %360 = vst [vmem:[#allocation2 + $0x154] sm:$0xf] %v15237_v0 }
  0x68   : > { %361 = vst [vmem:[#allocation2 + $0x168] sm:$0xf] %v15237_v0 }
  0x69   : > { %362 = vst [vmem:[#allocation2 + $0x16c] sm:$0xf] %v15237_v0 }
  0x6a   : > { %363 = vst [vmem:[#allocation2 + $0x180] sm:$0xf] %v15237_v0 }
  0x6b   : > { %364 = vst [vmem:[#allocation2 + $0x184] sm:$0xf] %v15237_v0 }
  0x6c   : > { %365 = vst [vmem:[#allocation2 + $0x198] sm:$0xf] %v15237_v0 }
  0x6d   : > { %366 = vst [vmem:[#allocation2 + $0x19c] sm:$0xf] %v15237_v0 }
  0x6e   : > { %367 = vst [vmem:[#allocation2 + $0x1b0] sm:$0xf] %v15237_v0 }
  0x6f   : > { %368 = vst [vmem:[#allocation2 + $0x1b4] sm:$0xf] %v15237_v0 }
  0x70   : > { %369 = vst [vmem:[#allocation2 + $0x1c8] sm:$0xf] %v15237_v0 }
  0x71   : > { %370 = vst [vmem:[#allocation2 + $0x1cc] sm:$0xf] %v15237_v0 }
  0x72   : > { %371 = vst [vmem:[#allocation2 + $0x1e0] sm:$0xf] %v15237_v0 }
  0x73   : > { %372 = vst [vmem:[#allocation2 + $0x1e4] sm:$0xf] %v15237_v0 }
  0x74   : > { %373 = vst [vmem:[#allocation2 + $0x1f8] sm:$0xf] %v15237_v0 }
  0x75   : > { %374 = vst [vmem:[#allocation2 + $0x1fc] sm:$0xf] %v15237_v0 }
  0x76   : > { %375 = vst [vmem:[#allocation2 + $0x210] sm:$0xf] %v15237_v0 }
  0x77   : > { %376 = vst [vmem:[#allocation2 + $0x214] sm:$0xf] %v15237_v0 }
  0x78   : > { %377 = vst [vmem:[#allocation2 + $0x228] sm:$0xf] %v15237_v0 }
  0x79   : > { %378 = vst [vmem:[#allocation2 + $0x22c] sm:$0xf] %v15237_v0 }
  0x7a   : > { %379 = vst [vmem:[#allocation2 + $0x240] sm:$0xf] %v15237_v0 }
  0x7b   : > { %380 = vst [vmem:[#allocation2 + $0x244] sm:$0xf] %v15237_v0 }
  0x7c   : > { %381 = vst [vmem:[#allocation2 + $0x258] sm:$0xf] %v15237_v0 }
  0x7d   : > { %382 = vst [vmem:[#allocation2 + $0x25c] sm:$0xf] %v15237_v0 }
  0x7e   : > { %383 = vst [vmem:[#allocation2 + $0x270] sm:$0xf] %v15237_v0 }
  0x7f   : > { %384 = vst [vmem:[#allocation2 + $0x274] sm:$0xf] %v15237_v0 }
  0x80   : > { %385 = vst [vmem:[#allocation2 + $0x288] sm:$0xf] %v15237_v0 }
  0x81   : > { %386 = vst [vmem:[#allocation2 + $0x28c] sm:$0xf] %v15237_v0 }
  0x82   : > { %387 = vst [vmem:[#allocation2 + $0x2a0] sm:$0xf] %v15237_v0 }
  0x83   : > { %388 = vst [vmem:[#allocation2 + $0x2a4] sm:$0xf] %v15237_v0 }
  0x84   : > { %389 = vst [vmem:[#allocation2 + $0x2b8] sm:$0xf] %v15237_v0 }
  0x85   : > { %390 = vst [vmem:[#allocation2 + $0x2bc] sm:$0xf] %v15237_v0 }
  0x86   : > { %391 = vst [vmem:[#allocation2 + $0x2d0] sm:$0xf] %v15237_v0 }
  0x87   : > { %392 = vst [vmem:[#allocation2 + $0x2d4] sm:$0xf] %v15237_v0 }
  0x88   : > { %393 = vst [vmem:[#allocation2 + $0x2e8] sm:$0xf] %v15237_v0 }
  0x89   : > { %394 = vst [vmem:[#allocation2 + $0x2ec] sm:$0xf] %v15237_v0 }
  0x8a   : > { %395 = vst [vmem:[#allocation2 + $0x300] sm:$0xf] %v15237_v0 }
  0x8b   : > { %396 = vst [vmem:[#allocation2 + $0x304] sm:$0xf] %v15237_v0 }
  0x8c   : > { %397 = vst [vmem:[#allocation2 + $0x318] sm:$0xf] %v15237_v0 }
  0x8d   : > { %398 = vst [vmem:[#allocation2 + $0x31c] sm:$0xf] %v15237_v0 }
  0x8e   : > { %399 = vst [vmem:[#allocation2 + $0x330] sm:$0xf] %v15237_v0 }
  0x8f   : > { %400 = vst [vmem:[#allocation2 + $0x334] sm:$0xf] %v15237_v0 }
  0x90   : > { %401 = vst [vmem:[#allocation2 + $0x348] sm:$0xf] %v15237_v0 }
  0x91   : > { %402 = vst [vmem:[#allocation2 + $0x34c] sm:$0xf] %v15237_v0 }
  0x92   : > { %403 = vst [vmem:[#allocation2 + $0x10] sm:$0xf] %v15237_v0 }
  0x93   : > { %404 = vst [vmem:[#allocation2 + $0x14] sm:$0xf] %v15237_v0 }
  0x94   : > { %405 = vst [vmem:[#allocation2 + $0x28] sm:$0xf] %v15237_v0 }
  0x95   : > { %406 = vst [vmem:[#allocation2 + $0x2c] sm:$0xf] %v15237_v0 }
  0x96   : > { %407 = vst [vmem:[#allocation2 + $0x40] sm:$0xf] %v15237_v0 }
  0x97   : > { %408 = vst [vmem:[#allocation2 + $0x44] sm:$0xf] %v15237_v0 }
  0x98   : > { %409 = vst [vmem:[#allocation2 + $0x58] sm:$0xf] %v15237_v0 }
  0x99   : > { %410 = vst [vmem:[#allocation2 + $0x5c] sm:$0xf] %v15237_v0 }
  0x9a   : > { %411 = vst [vmem:[#allocation2 + $0x70] sm:$0xf] %v15237_v0 }
  0x9b   : > { %412 = vst [vmem:[#allocation2 + $0x74] sm:$0xf] %v15237_v0 }
  0x9c   : > { %413 = vst [vmem:[#allocation2 + $0x88] sm:$0xf] %v15237_v0 }
  0x9d   : > { %414 = vst [vmem:[#allocation2 + $0x8c] sm:$0xf] %v15237_v0 }
  0x9e   : > { %415 = vst [vmem:[#allocation2 + $0xa0] sm:$0xf] %v15237_v0 }
  0x9f   : > { %416 = vst [vmem:[#allocation2 + $0xa4] sm:$0xf] %v15237_v0 }
  0xa0   : > { %417 = vst [vmem:[#allocation2 + $0xb8] sm:$0xf] %v15237_v0 }
  0xa1   : > { %418 = vst [vmem:[#allocation2 + $0xbc] sm:$0xf] %v15237_v0 }
  0xa2   : > { %419 = vst [vmem:[#allocation2 + $0xd0] sm:$0xf] %v15237_v0 }
  0xa3   : > { %420 = vst [vmem:[#allocation2 + $0xd4] sm:$0xf] %v15237_v0 }
  0xa4   : > { %421 = vst [vmem:[#allocation2 + $0xe8] sm:$0xf] %v15237_v0 }
  0xa5   : > { %422 = vst [vmem:[#allocation2 + $0xec] sm:$0xf] %v15237_v0 }
  0xa6   : > { %423 = vst [vmem:[#allocation2 + $0x100] sm:$0xf] %v15237_v0 }
  0xa7   : > { %424 = vst [vmem:[#allocation2 + $0x104] sm:$0xf] %v15237_v0 }
  0xa8   : > { %425 = vst [vmem:[#allocation2 + $0x118] sm:$0xf] %v15237_v0 }
  0xa9   : > { %426 = vst [vmem:[#allocation2 + $0x11c] sm:$0xf] %v15237_v0 }
  0xaa   : > { %427 = vst [vmem:[#allocation2 + $0x130] sm:$0xf] %v15237_v0 }
  0xab   : > { %428 = vst [vmem:[#allocation2 + $0x134] sm:$0xf] %v15237_v0 }
  0xac   : > { %429 = vst [vmem:[#allocation2 + $0x148] sm:$0xf] %v15237_v0 }
  0xad   : > { %430 = vst [vmem:[#allocation2 + $0x14c] sm:$0xf] %v15237_v0 }
  0xae   : > { %431 = vst [vmem:[#allocation2 + $0x160] sm:$0xf] %v15237_v0 }
  0xaf   : > { %432 = vst [vmem:[#allocation2 + $0x164] sm:$0xf] %v15237_v0 }
  0xb0   : > { %433 = vst [vmem:[#allocation2 + $0x178] sm:$0xf] %v15237_v0 }
  0xb1   : > { %434 = vst [vmem:[#allocation2 + $0x17c] sm:$0xf] %v15237_v0 }
  0xb2   : > { %435 = vst [vmem:[#allocation2 + $0x190] sm:$0xf] %v15237_v0 }
  0xb3   : > { %436 = vst [vmem:[#allocation2 + $0x194] sm:$0xf] %v15237_v0 }
  0xb4   : > { %437 = vst [vmem:[#allocation2 + $0x1a8] sm:$0xf] %v15237_v0 }
  0xb5   : > { %438 = vst [vmem:[#allocation2 + $0x1ac] sm:$0xf] %v15237_v0 }
  0xb6   : > { %439 = vst [vmem:[#allocation2 + $0x1c0] sm:$0xf] %v15237_v0 }
  0xb7   : > { %440 = vst [vmem:[#allocation2 + $0x1c4] sm:$0xf] %v15237_v0 }
  0xb8   : > { %441 = vst [vmem:[#allocation2 + $0x1d8] sm:$0xf] %v15237_v0 }
  0xb9   : > { %442 = vst [vmem:[#allocation2 + $0x1dc] sm:$0xf] %v15237_v0 }
  0xba   : > { %443 = vst [vmem:[#allocation2 + $0x1f0] sm:$0xf] %v15237_v0 }
  0xbb   : > { %444 = vst [vmem:[#allocation2 + $0x1f4] sm:$0xf] %v15237_v0 }
  0xbc   : > { %445 = vst [vmem:[#allocation2 + $0x208] sm:$0xf] %v15237_v0 }
  0xbd   : > { %446 = vst [vmem:[#allocation2 + $0x20c] sm:$0xf] %v15237_v0 }
  0xbe   : > { %447 = vst [vmem:[#allocation2 + $0x220] sm:$0xf] %v15237_v0 }
  0xbf   : > { %448 = vst [vmem:[#allocation2 + $0x224] sm:$0xf] %v15237_v0 }
  0xc0   : > { %449 = vst [vmem:[#allocation2 + $0x238] sm:$0xf] %v15237_v0 }
  0xc1   : > { %450 = vst [vmem:[#allocation2 + $0x23c] sm:$0xf] %v15237_v0 }
  0xc2   : > { %451 = vst [vmem:[#allocation2 + $0x250] sm:$0xf] %v15237_v0 }
  0xc3   : > { %452 = vst [vmem:[#allocation2 + $0x254] sm:$0xf] %v15237_v0 }
  0xc4   : > { %453 = vst [vmem:[#allocation2 + $0x268] sm:$0xf] %v15237_v0 }
  0xc5   : > { %454 = vst [vmem:[#allocation2 + $0x26c] sm:$0xf] %v15237_v0 }
  0xc6   : > { %455 = vst [vmem:[#allocation2 + $0x280] sm:$0xf] %v15237_v0 }
  0xc7   : > { %456 = vst [vmem:[#allocation2 + $0x284] sm:$0xf] %v15237_v0 }
  0xc8   : > { %457 = vst [vmem:[#allocation2 + $0x298] sm:$0xf] %v15237_v0 }
  0xc9   : > { %458 = vst [vmem:[#allocation2 + $0x29c] sm:$0xf] %v15237_v0 }
  0xca   : > { %459 = vst [vmem:[#allocation2 + $0x2b0] sm:$0xf] %v15237_v0 }
  0xcb   : > { %460 = vst [vmem:[#allocation2 + $0x2b4] sm:$0xf] %v15237_v0 }
  0xcc   : > { %461 = vst [vmem:[#allocation2 + $0x2c8] sm:$0xf] %v15237_v0 }
  0xcd   : > { %462 = vst [vmem:[#allocation2 + $0x2cc] sm:$0xf] %v15237_v0 }
  0xce   : > { %463 = vst [vmem:[#allocation2 + $0x2e0] sm:$0xf] %v15237_v0 }
  0xcf   : > { %464 = vst [vmem:[#allocation2 + $0x2e4] sm:$0xf] %v15237_v0 }
  0xd0   : > { %465 = vst [vmem:[#allocation2 + $0x2f8] sm:$0xf] %v15237_v0 }
  0xd1   : > { %466 = vst [vmem:[#allocation2 + $0x2fc] sm:$0xf] %v15237_v0 }
  0xd2   : > { %467 = vst [vmem:[#allocation2 + $0x310] sm:$0xf] %v15237_v0 }
  0xd3   : > { %468 = vst [vmem:[#allocation2 + $0x314] sm:$0xf] %v15237_v0 }
  0xd4   : > { %469 = vst [vmem:[#allocation2 + $0x328] sm:$0xf] %v15237_v0 }
  0xd5   : > { %470 = vst [vmem:[#allocation2 + $0x32c] sm:$0xf] %v15237_v0 }
  0xd6   : > { %471 = vst [vmem:[#allocation2 + $0x340] sm:$0xf] %v15237_v0 }
  0xd7   : > { %472 = vst [vmem:[#allocation2 + $0x344] sm:$0xf] %v15237_v0 }
  0xd8   : > { %473 = vst [vmem:[#allocation2 + $0x358] sm:$0xf] %v15237_v0 }
  0xd9   : > { %474 = vst [vmem:[#allocation2 + $0x35c] sm:$0xf] %v15237_v0 }
  0xda   : > { %475 = vst [vmem:[#allocation2] sm:$0xf] %v15237_v0 }
  0xdb   : > { %477 = vst [vmem:[#allocation2 + $0x8] sm:$0xf] %v15237_v0 }
  0xdc   : > { %478 = vst [vmem:[#allocation2 + $0xc] sm:$0xf] %v15237_v0 }
  0xdd   : > { %483 = vst [vmem:[#allocation2 + $0x1b8] sm:$0xf] %v15237_v0 }
  0xde   : > { %484 = vst [vmem:[#allocation2 + $0x1bc] sm:$0xf] %v15237_v0 }
  0xdf   : > { %490 = vst [vmem:[#allocation2 + $0x1a0] sm:$0xf] %v15237_v0 }
  0xe0   : > { %491 = vst [vmem:[#allocation2 + $0x1a4] sm:$0xf] %v15237_v0 }
  0xe1   : > { %496 = vst [vmem:[#allocation2 + $0x350] sm:$0xf] %v15237_v0 }
  0xe2   : > { %497 = vst [vmem:[#allocation2 + $0x354] sm:$0xf] %v15237_v0 }
  0xe3   : > { %476 = vst [vmem:[#allocation2 + $0x4] sm:$0xf] %v15237_v0 }
  0xe4   : > { %479 = vst [vmem:[#allocation2 + $0x10] sm:$0xf] %v15237_v0 }
  0xe5   : > { %480 = vst [vmem:[#allocation2 + $0x14] sm:$0xf] %v15237_v0 }
  0xe6   : > { %481 = vst [vmem:[#allocation2 + $0x1b0] sm:$0xf] %v15237_v0 }
  0xe7   : > { %482 = vst [vmem:[#allocation2 + $0x1b4] sm:$0xf] %v15237_v0 }
  0xe8   : > { %485 = vst [vmem:[#allocation2 + $0x1c0] sm:$0xf] %v15237_v0 }
  0xe9   : > { %486 = vst [vmem:[#allocation2 + $0x1c4] sm:$0xf] %v15237_v0 }
  0xea   : > { %488 = vst [vmem:[#allocation2 + $0x198] sm:$0xf] %v15237_v0 }
  0xeb   : > { %489 = vst [vmem:[#allocation2 + $0x19c] sm:$0xf] %v15237_v0 }
  0xec   : > { %492 = vst [vmem:[#allocation2 + $0x1a8] sm:$0xf] %v15237_v0 }
  0xed   : > { %493 = vst [vmem:[#allocation2 + $0x1ac] sm:$0xf] %v15237_v0 }
  0xee   : > { %494 = vst [vmem:[#allocation2 + $0x348] sm:$0xf] %v15237_v0 }
  0xef   : > { %495 = vst [vmem:[#allocation2 + $0x34c] sm:$0xf] %v15237_v0 }
  0xf0   : > { %498 = vst [vmem:[#allocation2 + $0x358] sm:$0xf] %v15237_v0 }
  0xf1   : > { %499 = vst [vmem:[#allocation2 + $0x35c] sm:$0xf] %v15237_v0 }
  0xf2   : > { %533 = vst [vmem:[#allocation2 + $0x20] sm:$0xff] %v500_v1  }
  0xf3   : > { %535 = vst [vmem:[#allocation2 + $0x38] sm:$0xff] %v502_v2  }
  0xf4   : > { %537 = vst [vmem:[#allocation2 + $0x50] sm:$0xff] %v504_v3  }
  0xf5   : > { %539 = vst [vmem:[#allocation2 + $0x68] sm:$0xff] %v506_v4  }
  0xf6   : > { %541 = vst [vmem:[#allocation2 + $0x80] sm:$0xff] %v508_v5  }
  0xf7   : > { %543 = vst [vmem:[#allocation2 + $0x98] sm:$0xff] %v510_v6  }
  0xf8   : > { %545 = vst [vmem:[#allocation2 + $0xb0] sm:$0xff] %v512_v7  }
  0xf9   : > { %547 = vst [vmem:[#allocation2 + $0xc8] sm:$0xff] %v514_v8  }
  0xfa   : > { %549 = vst [vmem:[#allocation2 + $0xe0] sm:$0xff] %v516_v9  }
  0xfb   : > { %551 = vst [vmem:[#allocation2 + $0xf8] sm:$0xff] %v518_v10  }
  0xfc   : > { %553 = vst [vmem:[#allocation2 + $0x110] sm:$0xff] %v520_v11  }
  0xfd   : > { %555 = vst [vmem:[#allocation2 + $0x128] sm:$0xff] %v522_v12  }
  0xfe   : > { %557 = vst [vmem:[#allocation2 + $0x140] sm:$0xff] %v524_v13  }
  0xff   : > { %559 = vst [vmem:[#allocation2 + $0x158] sm:$0xff] %v526_v14  }
 0x100   : > { %561 = vst [vmem:[#allocation2 + $0x170] sm:$0xff] %v528_v15  }
 0x101   : > { %563 = vst [vmem:[#allocation2 + $0x188] sm:$0xff] %v530_v16  }
 0x102 PF: > { %s18159_s22 = sld [smem:[#allocation10_spill]] }
 0x108   : > { %p565_p7 = scmp.lt.s32.totalorder %s18159_s22, 0  ;;  %s566_s6 = ssub.s32 0, %s18159_s22 }
 0x109   : > { %s12280_s27 = smin.u32 %s18159_s22, %s566_s6 }
 0x10a   : > { %s568_s11 = sand.u32 1, %s12280_s27  }
 0x10b   : > { %s569_s1 = ssub.s32 0, %s568_s11 }
 0x10c   : > { %s18345_s1 = smov (!%p565_p7, %s569_s1), %s568_s11 }
 0x10d   : > { %p12282_p9 = scmp.lt.s32.totalorder %s18345_s1, 0  ;;  %s575_s21 = sadd.s32 2, %s18345_s1 }
 0x10f   : > { %s18347_s21 = smov (!%p12282_p9, %s575_s21), %s18345_s1 }
 0x110   : > { %p12283_p10 = scmp.ne.s32.totalorder %s18347_s21, 0 }
 0x112   : > { %580 = sbr.rel (%p12283_p10) target bundleno = 2323 (0x913), region = 56 }
 0x117   : > { %v14365_v17 = vld [vmem:[%s15440_s12 + $0x38] sm:$0xff]  ;;  %v14364_v18 = vld [vmem:[%s15440_s12 + $0x30] sm:$0xff]  ;;  %v14363_v19 = vld [vmem:[%s15440_s12 + $0x28] sm:$0xff]  ;;  %vm1560_vm0 = vcmask 1046528   ;;  %vm2019_vm1 = vcmask 1045504   ;;  %s18221_s8 = sld [smem:[#allocation10_spill]] }
 0x118   : > { %1029 = vmatpush.bf16.msra.mxu0 %v14365_v17  ;;  %14742 = vmatpush.bf16.msra.mxu1 %v14365_v17  ;;  %v14362_v20 = vld [vmem:[%s15440_s12 + $0x20] sm:$0xff]  ;;  %v14361_v21 = vld [vmem:[%s15440_s12 + $0x18] sm:$0xff]  ;;  %v14360_v22 = vld [vmem:[%s15440_s12 + $0x10] sm:$0xff] }
 0x119   : > { %14743 = vmatpush.bf16.msra.mxu2 %v14365_v17  ;;  %14744 = vmatpush.bf16.msra.mxu3 %v14365_v17  ;;  %v14359_v23 = vld [vmem:[%s15440_s12 + $0x8] sm:$0xff]  ;;  %v14358_v24 = vld [vmem:[%s15440_s12] sm:$0xff]  ;;  %v14381_v25 = vld [vmem:[%s15440_s12 + $0xb8] sm:$0xff] }
 0x11a   : > { %v14437_v26 = vld [vmem:[%s15440_s12 + $0xf8] sm:$0xff]  ;;  %v15661_v27 = vld [vmem:[#allocation2] sm:$0xff]  ;;  %v14380_v33 = vld [vmem:[%s15440_s12 + $0xb0] sm:$0xff] }
 0x11b   : > { %v15663_v28 = vld [vmem:[#allocation2 + $0x60] sm:$0xff]  ;;  %v14373_v31 = vld [vmem:[%s15440_s12 + $0x78] sm:$0xff]  ;;  %v14436_v34 = vld [vmem:[%s15440_s12 + $0xf0] sm:$0xff] }
 0x11c   : > { %1030 = vmatpush.bf16.msra.mxu0 %v14364_v18  ;;  %14745 = vmatpush.bf16.msra.mxu1 %v14364_v18  ;;  %v14334_v29 = vld [vmem:[#allocation2 + $0xc0] sm:$0xff]  ;;  %v14445_v32 = vld [vmem:[%s15440_s12 + $0x138] sm:$0xff]  ;;  %v14372_v35 = vld [vmem:[%s15440_s12 + $0x70] sm:$0xff] }
 0x11d   : > { %14746 = vmatpush.bf16.msra.mxu2 %v14364_v18  ;;  %14747 = vmatpush.bf16.msra.mxu3 %v14364_v18  ;;  %v14346_v30 = vld [vmem:[#allocation2 + $0x120] sm:$0xff]  ;;  %v14444_v36 = vld [vmem:[%s15440_s12 + $0x130] sm:$0xff]  ;;  %v15673_v37 = vld [vmem:[#allocation2 + $0x8] sm:$0xff]  ;;  %p13276_p11 = scmp.ge.s32.totalorder %s18221_s8, 3 }
 0x11e   : > { %v15675_v38 = vld [vmem:[#allocation2 + $0x68] sm:$0xff]  ;;  %v15683_v45 = vld [vmem:[#allocation2 + $0x10] sm:$0xff]  ;;  %v14378_v49 = vld [vmem:[%s15440_s12 + $0xa0] sm:$0xff] }
 0x11f   : > { %v14335_v39 = vld [vmem:[#allocation2 + $0xc8] sm:$0xff]  ;;  %v15685_v46 = vld [vmem:[#allocation2 + $0x70] sm:$0xff]  ;;  %v14434_v50 = vld [vmem:[%s15440_s12 + $0xe0] sm:$0xff] }
 0x120   : > { %1031 = vmatpush.bf16.msra.mxu0 %v14363_v19  ;;  %14748 = vmatpush.bf16.msra.mxu1 %v14363_v19  ;;  %v14347_v40 = vld [vmem:[#allocation2 + $0x128] sm:$0xff]  ;;  %v14336_v47 = vld [vmem:[#allocation2 + $0xd0] sm:$0xff]  ;;  %v14370_v51 = vld [vmem:[%s15440_s12 + $0x60] sm:$0xff] }
 0x121   : > { %14749 = vmatpush.bf16.msra.mxu2 %v14363_v19  ;;  %14750 = vmatpush.bf16.msra.mxu3 %v14363_v19  ;;  %v14379_v41 = vld [vmem:[%s15440_s12 + $0xa8] sm:$0xff]  ;;  %v14348_v48 = vld [vmem:[#allocation2 + $0x130] sm:$0xff]  ;;  %v14442_v52 = vld [vmem:[%s15440_s12 + $0x120] sm:$0xff] }
 0x122   : > { %v14435_v42 = vld [vmem:[%s15440_s12 + $0xe8] sm:$0xff]  ;;  %v15693_v53 = vld [vmem:[#allocation2 + $0x18] sm:$0xff]  ;;  %v15699_v57 = vld [vmem:[#allocation2 + $0x20] sm:$0xff] }
 0x123   : > { %v14371_v43 = vld [vmem:[%s15440_s12 + $0x68] sm:$0xff]  ;;  %v15695_v54 = vld [vmem:[#allocation2 + $0x78] sm:$0xff]  ;;  %v15701_v58 = vld [vmem:[#allocation2 + $0x80] sm:$0xff] }
 0x124   : > { %1032 = vmatpush.bf16.msra.mxu0 %v14362_v20  ;;  %14751 = vmatpush.bf16.msra.mxu1 %v14362_v20  ;;  %v14443_v44 = vld [vmem:[%s15440_s12 + $0x128] sm:$0xff]  ;;  %v14337_v55 = vld [vmem:[#allocation2 + $0xd8] sm:$0xff]  ;;  %v14338_v59 = vld [vmem:[#allocation2 + $0xe0] sm:$0xff] }
 0x125   : > { %14752 = vmatpush.bf16.msra.mxu2 %v14362_v20  ;;  %14753 = vmatpush.bf16.msra.mxu3 %v14362_v20  ;;  %v14349_v56 = vld [vmem:[#allocation2 + $0x138] sm:$0xff]  ;;  %v14350_v60 = vld [vmem:[#allocation2 + $0x140] sm:$0xff]  ;;  %v15709_v1 = vld [vmem:[#allocation2 + $0x28] sm:$0xff] }
 0x126   : > { %v14377_v61 = vld [vmem:[%s15440_s12 + $0x98] sm:$0xff]  ;;  %v15711_v2 = vld [vmem:[#allocation2 + $0x88] sm:$0xff]  ;;  %v14376_v5 = vld [vmem:[%s15440_s12 + $0x90] sm:$0xff] }
 0x127   : > { %v14433_v62 = vld [vmem:[%s15440_s12 + $0xd8] sm:$0xff]  ;;  %v14339_v3 = vld [vmem:[#allocation2 + $0xe8] sm:$0xff]  ;;  %v14432_v6 = vld [vmem:[%s15440_s12 + $0xd0] sm:$0xff] }
 0x128   : > { %1033 = vmatpush.bf16.msra.mxu0 %v14361_v21  ;;  %14754 = vmatpush.bf16.msra.mxu1 %v14361_v21  ;;  %v14369_v63 = vld [vmem:[%s15440_s12 + $0x58] sm:$0xff]  ;;  %v14351_v4 = vld [vmem:[#allocation2 + $0x148] sm:$0xff]  ;;  %v14368_v7 = vld [vmem:[%s15440_s12 + $0x50] sm:$0xff] }
 0x129   : > { %14755 = vmatpush.bf16.msra.mxu2 %v14361_v21  ;;  %14756 = vmatpush.bf16.msra.mxu3 %v14361_v21  ;;  %v14441_v0 = vld [vmem:[%s15440_s12 + $0x118] sm:$0xff]  ;;  %v15718_v8 = vld [vmem:[#allocation2 + $0x30] sm:$0xff]  ;;  %v14375_v17 = vld [vmem:[%s15440_s12 + $0x88] sm:$0xff] }
 0x12a   : > { %v15720_v9 = vld [vmem:[#allocation2 + $0x90] sm:$0xff]  ;;  %v15725_v13 = vld [vmem:[#allocation2 + $0x38] sm:$0xff]  ;;  %v14431_v18 = vld [vmem:[%s15440_s12 + $0xc8] sm:$0xff] }
 0x12b   : > { %v14340_v10 = vld [vmem:[#allocation2 + $0xf0] sm:$0xff]  ;;  %v15727_v14 = vld [vmem:[#allocation2 + $0x98] sm:$0xff]  ;;  %v14367_v19 = vld [vmem:[%s15440_s12 + $0x48] sm:$0xff] }
 0x12c   : > { %1034 = vmatpush.bf16.msra.mxu0 %v14360_v22  ;;  %14757 = vmatpush.bf16.msra.mxu1 %v14360_v22  ;;  %v14352_v11 = vld [vmem:[#allocation2 + $0x150] sm:$0xff]  ;;  %v14341_v15 = vld [vmem:[#allocation2 + $0xf8] sm:$0xff]  ;;  %v14439_v20 = vld [vmem:[%s15440_s12 + $0x108] sm:$0xff] }
 0x12d   : > { %14758 = vmatpush.bf16.msra.mxu2 %v14360_v22  ;;  %14759 = vmatpush.bf16.msra.mxu3 %v14360_v22  ;;  %v14440_v12 = vld [vmem:[%s15440_s12 + $0x110] sm:$0xff]  ;;  %v14353_v16 = vld [vmem:[#allocation2 + $0x158] sm:$0xff]  ;;  %v15735_v21 = vld [vmem:[#allocation2 + $0x40] sm:$0xff] }
 0x12e   : > { %v15737_v22 = vld [vmem:[#allocation2 + $0xa0] sm:$0xff] }
 0x130   : > { %1035 = vmatpush.bf16.msra.mxu0 %v14359_v23  ;;  %14760 = vmatpush.bf16.msra.mxu1 %v14359_v23 }
 0x131   : > { %14761 = vmatpush.bf16.msra.mxu2 %v14359_v23  ;;  %14762 = vmatpush.bf16.msra.mxu3 %v14359_v23 }
 0x134   : > { %1036 = vmatpush.bf16.msra.mxu0 %v14358_v24  ;;  %14763 = vmatpush.bf16.msra.mxu1 %v14358_v24 }
 0x135   : > { %14764 = vmatpush.bf16.msra.mxu2 %v14358_v24  ;;  %14765 = vmatpush.bf16.msra.mxu3 %v14358_v24 }
 0x137   : > { %1037 = vmatmul.bf16.vlgmr.msra.gmra.mxu0 %v15661_v27  ;;  %1085 = vmatmul.bf16.vlgmr.msra.gmra.mxu1 %v15663_v28 }
 0x138   : > { %1133 = vmatmul.bf16.vlgmr.msra.gmra.mxu2 %v14334_v29  ;;  %1181 = vmatmul.bf16.vlgmr.msra.gmra.mxu3 %v14346_v30 }
 0x139   : > { %1770 = vmatpush.bf16.msrb.mxu2 %v14381_v25  ;;  %2646 = vmatpush.bf16.msrb.mxu3 %v14437_v26  ;;  %v14342_v25 = vld [vmem:[#allocation2 + $0x100] sm:$0xff] }
 0x13a   : > { %1343 = vmatpush.bf16.msrb.mxu1 %v14373_v31  ;;  %2960 = vmatpush.bf16.msrb.mxu0 %v14445_v32  ;;  %v14354_v26 = vld [vmem:[#allocation2 + $0x160] sm:$0xff] }
 0x13d   : > { %1771 = vmatpush.bf16.msrb.mxu2 %v14380_v33  ;;  %2647 = vmatpush.bf16.msrb.mxu3 %v14436_v34  ;;  %v14374_v33 = vld [vmem:[%s15440_s12 + $0x80] sm:$0xff] }
 0x13e   : > { %1344 = vmatpush.bf16.msrb.mxu1 %v14372_v35  ;;  %2961 = vmatpush.bf16.msrb.mxu0 %v14444_v36  ;;  %v14430_v34 = vld [vmem:[%s15440_s12 + $0xc0] sm:$0xff] }
 0x13f   : > { %v14366_v35 = vld [vmem:[%s15440_s12 + $0x40] sm:$0xff] }
 0x141   : > { %1772 = vmatpush.bf16.msrb.mxu2 %v14379_v41  ;;  %2648 = vmatpush.bf16.msrb.mxu3 %v14435_v42  ;;  %v15754_v41 = vld [vmem:[#allocation2 + $0xa8] sm:$0xff] }
 0x142   : > { %1345 = vmatpush.bf16.msrb.mxu1 %v14371_v43  ;;  %2962 = vmatpush.bf16.msrb.mxu0 %v14443_v44  ;;  %v14343_v44 = vld [vmem:[#allocation2 + $0x108] sm:$0xff] }
 0x145   : > { %1773 = vmatpush.bf16.msrb.mxu2 %v14378_v49  ;;  %2649 = vmatpush.bf16.msrb.mxu3 %v14434_v50 }
 0x146   : > { %1346 = vmatpush.bf16.msrb.mxu1 %v14370_v51  ;;  %2963 = vmatpush.bf16.msrb.mxu0 %v14442_v52 }
 0x147   : > { %1041 = vmatmul.bf16.gmra.mxu0 %v15673_v37  ;;  %1089 = vmatmul.bf16.gmra.mxu1 %v15675_v38 }
 0x148   : > { %1137 = vmatmul.bf16.gmra.mxu2 %v14335_v39  ;;  %1185 = vmatmul.bf16.gmra.mxu3 %v14347_v40  ;;  %v15752_v40 = vld [vmem:[#allocation2 + $0x48] sm:$0xff] }
 0x149   : > { %1774 = vmatpush.bf16.msrb.mxu2 %v14377_v61  ;;  %2650 = vmatpush.bf16.msrb.mxu3 %v14433_v62 }
 0x14a   : > { %1347 = vmatpush.bf16.msrb.mxu1 %v14369_v63  ;;  %2964 = vmatpush.bf16.msrb.mxu0 %v14441_v0  ;;  %v14344_v63 = vld [vmem:[#allocation2 + $0x110] sm:$0xff] }
 0x14b   : > { %v14356_v0 = vld [vmem:[#allocation2 + $0x170] sm:$0xff] }
 0x14d   : > { %1775 = vmatpush.bf16.msrb.mxu2 %v14376_v5  ;;  %2651 = vmatpush.bf16.msrb.mxu3 %v14432_v6  ;;  %v14453_v5 = vld [vmem:[%s15440_s12 + $0x178] sm:$0xff] }
 0x14e   : > { %1348 = vmatpush.bf16.msrb.mxu1 %v14368_v7  ;;  %2965 = vmatpush.bf16.msrb.mxu0 %v14440_v12  ;;  %v14525_v12 = vld [vmem:[%s15440_s12 + $0x238] sm:$0xff] }
 0x151   : > { %1776 = vmatpush.bf16.msrb.mxu2 %v14375_v17  ;;  %2652 = vmatpush.bf16.msrb.mxu3 %v14431_v18  ;;  %v15785_v17 = vld [vmem:[#allocation2 + $0x58] sm:$0xff] }
 0x152   : > { %1349 = vmatpush.bf16.msrb.mxu1 %v14367_v19  ;;  %2966 = vmatpush.bf16.msrb.mxu0 %v14439_v20  ;;  %v15787_v18 = vld [vmem:[#allocation2 + $0xb8] sm:$0xff] }
 0x155   : > { %1777 = vmatpush.bf16.msrb.mxu2 %v14374_v33  ;;  %2653 = vmatpush.bf16.msrb.mxu3 %v14430_v34 }
 0x156   : > { %1350 = vmatpush.bf16.msrb.mxu1 %v14366_v35  ;;  %v14382_v35 = vld [vmem:[#allocation2 + $0x18] sm:$0xff] }
 0x157   : > { %1046 = vmatmul.bf16.gmra.mxu0 %v15683_v45  ;;  %1094 = vmatmul.bf16.gmra.mxu1 %v15685_v46 }
 0x158   : > { %1142 = vmatmul.bf16.gmra.mxu2 %v14336_v47  ;;  %1190 = vmatmul.bf16.gmra.mxu3 %v14348_v48  ;;  %v14355_v47 = vld [vmem:[#allocation2 + $0x168] sm:$0xff]  ;;  %v14438_v48 = vld [vmem:[%s15440_s12 + $0x100] sm:$0xff] }
 0x159   : > { %2967 = vmatpush.bf16.msrb.mxu0 %v14438_v48 }
 0x15a   : > { %3386 = vmatpush.bf16.msra.mxu1 %v14453_v5 }
 0x15d   : > { %5001 = vmatpush.bf16.msra.mxu0 %v14525_v12 }
 0x167   : > { %1049 = vmatmul.bf16.gmra.mxu0 %v15693_v53  ;;  %1097 = vmatmul.bf16.gmra.mxu1 %v15695_v54 }
 0x168   : > { %1145 = vmatmul.bf16.gmra.mxu2 %v14337_v55  ;;  %1193 = vmatmul.bf16.gmra.mxu3 %v14349_v56 }
 0x177   : > { %1053 = vmatmul.bf16.gmra.mxu0 %v15699_v57  ;;  %1101 = vmatmul.bf16.gmra.mxu1 %v15701_v58 }
 0x178   : > { %1149 = vmatmul.bf16.gmra.mxu2 %v14338_v59  ;;  %1197 = vmatmul.bf16.gmra.mxu3 %v14350_v60  ;;  %v15775_v59 = vld [vmem:[#allocation2 + $0x50] sm:$0xff] }
 0x179   : > { %v15777_v60 = vld [vmem:[#allocation2 + $0xb0] sm:$0xff] }
 0x187   : > { %1058 = vmatmul.bf16.gmra.mxu0 %v15709_v1  ;;  %1106 = vmatmul.bf16.gmra.mxu1 %v15711_v2 }
 0x188   : > { %1154 = vmatmul.bf16.gmra.mxu2 %v14339_v3  ;;  %1202 = vmatmul.bf16.gmra.mxu3 %v14351_v4  ;;  %v14509_v3 = vld [vmem:[%s15440_s12 + $0x1b8] sm:$0xff] }
 0x189   : > { %v14517_v4 = vld [vmem:[%s15440_s12 + $0x1f8] sm:$0xff]  ;;  %4261 = vmatpush.bf16.msra.mxu2 %v14509_v3 }
 0x18a   : > { %4575 = vmatpush.bf16.msra.mxu3 %v14517_v4  ;;  %v14383_v4 = vld [vmem:[#allocation2 + $0x20] sm:$0xff] }
 0x197   : > { %1061 = vmatmul.bf16.gmra.mxu0 %v15718_v8  ;;  %1109 = vmatmul.bf16.gmra.mxu1 %v15720_v9 }
 0x198   : > { %1157 = vmatmul.bf16.gmra.mxu2 %v14340_v10  ;;  %1205 = vmatmul.bf16.gmra.mxu3 %v14352_v11 }
 0x1a7   : > { %1065 = vmatmul.bf16.gmra.mxu0 %v15725_v13  ;;  %1113 = vmatmul.bf16.gmra.mxu1 %v15727_v14 }
 0x1a8   : > { %1161 = vmatmul.bf16.gmra.mxu2 %v14341_v15  ;;  %1209 = vmatmul.bf16.gmra.mxu3 %v14353_v16 }
 0x1b4   : > { %v1038_v23 = vpop.f32.mrf.mxu0  ;;  %v1086_v24 = vpop.f32.mrf.mxu1 }
 0x1b5   : > { %v14345_v23 = vld [vmem:[#allocation2 + $0x118] sm:$0xff] }
 0x1b6   : > { %v14357_v24 = vld [vmem:[#allocation2 + $0x178] sm:$0xff] }
 0x1b7   : > { %1070 = vmatmul.bf16.gmra.mxu0 %v15735_v21  ;;  %1118 = vmatmul.bf16.gmra.mxu1 %v15737_v22 }
 0x1b8   : > { %1166 = vmatmul.bf16.gmra.mxu2 %v14342_v25  ;;  %1214 = vmatmul.bf16.gmra.mxu3 %v14354_v26 }
 0x1bb   : > { %v1134_v29 = vpop.f32.mrf.mxu2  ;;  %v1182_v30 = vpop.f32.mrf.mxu3 }
 0x1bc   : > { %v15741_v31 = vpop.f32.mrf.mxu0  ;;  %v15743_v32 = vpop.f32.mrf.mxu1 }
 0x1c3   : > { %v15748_v36 = vpop.f32.mrf.mxu2  ;;  %v15750_v39 = vpop.f32.mrf.mxu3 }
 0x1c4   : > { %18160 = vst [vmem:[#allocation15_spill] sm:$0xff] %v15750_v39  ;;  %v15756_v42 = vpop.f32.mrf.mxu0  ;;  %v15758_v43 = vpop.f32.mrf.mxu1  ;;  %v14390_v39 = vld [vmem:[#allocation2 + $0x58] sm:$0xff] }
 0x1c7   : > { %1073 = vmatmul.bf16.gmra.mxu0 %v15752_v40  ;;  %1121 = vmatmul.bf16.gmra.mxu1 %v15754_v41 }
 0x1c8   : > { %1169 = vmatmul.bf16.gmra.mxu2 %v14343_v44  ;;  %1217 = vmatmul.bf16.gmra.mxu3 %v14355_v47 }
 0x1cb   : > { %v15763_v49 = vpop.f32.mrf.mxu2  ;;  %v15765_v50 = vpop.f32.mrf.mxu3 }
 0x1cc   : > { %18161 = vst [vmem:[#allocation16_spill] sm:$0xff] %v15765_v50  ;;  %v15767_v51 = vpop.f32.mrf.mxu0  ;;  %v15769_v52 = vpop.f32.mrf.mxu1 }
 0x1d3   : > { %v15771_v55 = vpop.f32.mrf.mxu2  ;;  %v15773_v56 = vpop.f32.mrf.mxu3 }
 0x1d4   : > { %18162 = vst [vmem:[#allocation17_spill] sm:$0xff] %v15773_v56  ;;  %v1047_v61 = vpop.f32.mrf.mxu0  ;;  %v1095_v62 = vpop.f32.mrf.mxu1 }
 0x1d7   : > { %1077 = vmatmul.bf16.gmra.mxu0 %v15775_v59  ;;  %1125 = vmatmul.bf16.gmra.mxu1 %v15777_v60 }
 0x1d8   : > { %1173 = vmatmul.bf16.gmra.mxu2 %v14344_v63  ;;  %1221 = vmatmul.bf16.gmra.mxu3 %v14356_v0 }
 0x1db   : > { %v1143_v6 = vpop.f32.mrf.mxu2  ;;  %v1191_v7 = vpop.f32.mrf.mxu3 }
 0x1dc   : > { %v1048_v10 = vpop.f32.mrf.mxu0  ;;  %v1096_v11 = vpop.f32.mrf.mxu1 }
 0x1e3   : > { %v1144_v15 = vpop.f32.mrf.mxu2  ;;  %v1192_v16 = vpop.f32.mrf.mxu3 }
 0x1e4   : > { %v1050_v19 = vpop.f32.mrf.mxu0  ;;  %v1098_v20 = vpop.f32.mrf.mxu1  ;;  %v14384_v16 = vld [vmem:[#allocation2 + $0x28] sm:$0xff] }
 0x1e7   : > { %1082 = vmatmul.bf16.gmra.mxu0 %v15785_v17  ;;  %1130 = vmatmul.bf16.gmra.mxu1 %v15787_v18 }
 0x1e8   : > { %1178 = vmatmul.bf16.gmra.mxu2 %v14345_v23  ;;  %1226 = vmatmul.bf16.gmra.mxu3 %v14357_v24 }
 0x1eb   : > { %v1146_v25 = vpop.f32.mrf.mxu2  ;;  %v1194_v26 = vpop.f32.mrf.mxu3 }
 0x1ec   : > { %v15791_v29 = vpop.f32.mrf.mxu0  ;;  %v15793_v30 = vpop.f32.mrf.mxu1 }
 0x1f3   : > { %v15795_v33 = vpop.f32.mrf.mxu2  ;;  %v15797_v34 = vpop.f32.mrf.mxu3 }
 0x1f4   : > { %18163 = vst [vmem:[#allocation18_spill] sm:$0xff] %v15797_v34  ;;  %v15799_v44 = vpop.f32.mrf.mxu0  ;;  %v15801_v47 = vpop.f32.mrf.mxu1 }
 0x1f7   : > { %1351 = vmatmul.bf16.vlgmr.msrb.gmra.mxu1 %v15661_v27  ;;  %2968 = vmatmul.bf16.vlgmr.msrb.gmra.mxu0 %v14382_v35 }
 0x1f8   : > { %1778 = vmatmul.bf16.vlgmr.msrb.gmra.mxu2 %v15661_v27  ;;  %2654 = vmatmul.bf16.vlgmr.msrb.gmra.mxu3 %v14382_v35 }
 0x1fb   : > { %v15805_v48 = vpop.f32.mrf.mxu2  ;;  %v15807_v61 = vpop.f32.mrf.mxu3 }
 0x1fc   : > { %18164 = vst [vmem:[#allocation19_spill] sm:$0xff] %v15807_v61  ;;  %v15809_v62 = vpop.f32.mrf.mxu0  ;;  %v15811_v63 = vpop.f32.mrf.mxu1 }
 0x203   : > { %v15813_v0 = vpop.f32.mrf.mxu2  ;;  %v15815_v3 = vpop.f32.mrf.mxu3 }
 0x204   : > { %18165 = vst [vmem:[#allocation20_spill] sm:$0xff] %v15815_v3  ;;  %v1059_v5 = vpop.f32.mrf.mxu0  ;;  %v1107_v6 = vpop.f32.mrf.mxu1  ;;  %v14387_v3 = vld [vmem:[#allocation2 + $0x40] sm:$0xff] }
 0x207   : > { %1354 = vmatmul.bf16.gmra.mxu1 %v15673_v37  ;;  %2971 = vmatmul.bf16.gmra.mxu0 %v14383_v4 }
 0x208   : > { %1781 = vmatmul.bf16.gmra.mxu2 %v15673_v37  ;;  %2658 = vmatmul.bf16.gmra.mxu3 %v14383_v4  ;;  %v14385_v4 = vld [vmem:[#allocation2 + $0x30] sm:$0xff] }
 0x20b   : > { %v1155_v27 = vpop.f32.mrf.mxu2  ;;  %v1203_v7 = vpop.f32.mrf.mxu3 }
 0x20c   : > { %v1060_v10 = vpop.f32.mrf.mxu0  ;;  %v1108_v11 = vpop.f32.mrf.mxu1 }
 0x213   : > { %v1156_v12 = vpop.f32.mrf.mxu2  ;;  %v1204_v15 = vpop.f32.mrf.mxu3 }
 0x214   : > { %v1062_v19 = vpop.f32.mrf.mxu0  ;;  %v1110_v20 = vpop.f32.mrf.mxu1  ;;  %v14386_v15 = vld [vmem:[#allocation2 + $0x38] sm:$0xff] }
 0x215   : > { %v14516_v20 = vld [vmem:[%s15440_s12 + $0x1f0] sm:$0xff] }
 0x216   : > { %4576 = vmatpush.bf16.msra.mxu3 %v14516_v20 }
 0x217   : > { %1359 = vmatmul.bf16.gmra.mxu1 %v15683_v45  ;;  %2976 = vmatmul.bf16.gmra.mxu0 %v14384_v16 }
 0x218   : > { %1786 = vmatmul.bf16.gmra.mxu2 %v15683_v45  ;;  %2663 = vmatmul.bf16.gmra.mxu3 %v14384_v16 }
 0x21b   : > { %v1158_v23 = vpop.f32.mrf.mxu2  ;;  %v1206_v24 = vpop.f32.mrf.mxu3 }
 0x21c   : > { %v15821_v25 = vpop.f32.mrf.mxu0  ;;  %v15823_v37 = vpop.f32.mrf.mxu1  ;;  %v14452_v23 = vld [vmem:[%s15440_s12 + $0x170] sm:$0xff] }
 0x21d   : > { %3387 = vmatpush.bf16.msra.mxu1 %v14452_v23 }
 0x223   : > { %v15825_v26 = vpop.f32.mrf.mxu2  ;;  %v15827_v35 = vpop.f32.mrf.mxu3 }
 0x224   : > { %18166 = vst [vmem:[#allocation21_spill] sm:$0xff] %v15825_v26  ;;  %v15829_v5 = vpop.f32.mrf.mxu0  ;;  %v15831_v6 = vpop.f32.mrf.mxu1 }
 0x225   : > { %18167 = vst [vmem:[#allocation22_spill] sm:$0xff] %v15827_v35  ;;  %v14524_v35 = vld [vmem:[%s15440_s12 + $0x230] sm:$0xff] }
 0x226   : > { %5002 = vmatpush.bf16.msra.mxu0 %v14524_v35 }
 0x227   : > { %1362 = vmatmul.bf16.gmra.mxu1 %v15693_v53  ;;  %2979 = vmatmul.bf16.gmra.mxu0 %v14385_v4 }
 0x228   : > { %1790 = vmatmul.bf16.gmra.mxu2 %v15693_v53  ;;  %2666 = vmatmul.bf16.gmra.mxu3 %v14385_v4  ;;  %v14508_v53 = vld [vmem:[%s15440_s12 + $0x1b0] sm:$0xff] }
 0x229   : > { %4262 = vmatpush.bf16.msra.mxu2 %v14508_v53 }
 0x22b   : > { %v15835_v45 = vpop.f32.mrf.mxu2  ;;  %v15837_v27 = vpop.f32.mrf.mxu3 }
 0x22c   : > { %18168 = vst [vmem:[#allocation23_spill] sm:$0xff] %v15835_v45  ;;  %v15839_v7 = vpop.f32.mrf.mxu0  ;;  %v15841_v10 = vpop.f32.mrf.mxu1 }
 0x22d   : > { %18169 = vst [vmem:[#allocation24_spill] sm:$0xff] %v15837_v27 }
 0x233   : > { %v15843_v11 = vpop.f32.mrf.mxu2  ;;  %v15845_v12 = vpop.f32.mrf.mxu3 }
 0x234   : > { %18170 = vst [vmem:[#allocation25_spill] sm:$0xff] %v15843_v11  ;;  %v1071_v16 = vpop.f32.mrf.mxu0  ;;  %v1119_v19 = vpop.f32.mrf.mxu1 }
 0x235   : > { %18171 = vst [vmem:[#allocation26_spill] sm:$0xff] %v15845_v12 }
 0x237   : > { %1365 = vmatmul.bf16.gmra.mxu1 %v15699_v57  ;;  %2982 = vmatmul.bf16.gmra.mxu0 %v14386_v15 }
 0x238   : > { %1793 = vmatmul.bf16.gmra.mxu2 %v15699_v57  ;;  %2670 = vmatmul.bf16.gmra.mxu3 %v14386_v15 }
 0x23b   : > { %v1167_v24 = vpop.f32.mrf.mxu2  ;;  %v1215_v4 = vpop.f32.mrf.mxu3 }
 0x23c   : > { %v1072_v27 = vpop.f32.mrf.mxu0  ;;  %v1120_v12 = vpop.f32.mrf.mxu1 }
 0x23d   : > { %v14388_v12 = vld [vmem:[#allocation2 + $0x48] sm:$0xff] }
 0x243   : > { %v1168_v16 = vpop.f32.mrf.mxu2  ;;  %v1216_v19 = vpop.f32.mrf.mxu3 }
 0x244   : > { %v1074_v61 = vpop.f32.mrf.mxu0  ;;  %v1122_v34 = vpop.f32.mrf.mxu1  ;;  %v14389_v19 = vld [vmem:[#allocation2 + $0x50] sm:$0xff] }
 0x247   : > { %1370 = vmatmul.bf16.gmra.mxu1 %v15709_v1  ;;  %2987 = vmatmul.bf16.gmra.mxu0 %v14387_v3 }
 0x248   : > { %1798 = vmatmul.bf16.gmra.mxu2 %v15709_v1  ;;  %2675 = vmatmul.bf16.gmra.mxu3 %v14387_v3 }
 0x24b   : > { %v1170_v57 = vpop.f32.mrf.mxu2  ;;  %v1218_v15 = vpop.f32.mrf.mxu3 }
 0x24c   : > { %v15855_v53 = vpop.f32.mrf.mxu0  ;;  %v15857_v20 = vpop.f32.mrf.mxu1 }
 0x253   : > { %v15859_v27 = vpop.f32.mrf.mxu2  ;;  %v15861_v35 = vpop.f32.mrf.mxu3 }
 0x254   : > { %18172 = vst [vmem:[#allocation27_spill] sm:$0xff] %v15859_v27  ;;  %v15863_v23 = vpop.f32.mrf.mxu0  ;;  %v15865_v34 = vpop.f32.mrf.mxu1 }
 0x255   : > { %18173 = vst [vmem:[#allocation28_spill] sm:$0xff] %v15861_v35 }
 0x257   : > { %1373 = vmatmul.bf16.gmra.mxu1 %v15718_v8  ;;  %2990 = vmatmul.bf16.gmra.mxu0 %v14388_v12 }
 0x258   : > { %1802 = vmatmul.bf16.gmra.mxu2 %v15718_v8  ;;  %2678 = vmatmul.bf16.gmra.mxu3 %v14388_v12 }
 0x25b   : > { %v15869_v1 = vpop.f32.mrf.mxu2  ;;  %v15871_v61 = vpop.f32.mrf.mxu3 }
 0x25c   : > { %18174 = vst [vmem:[#allocation29_spill] sm:$0xff] %v15869_v1  ;;  %v15873_v3 = vpop.f32.mrf.mxu0  ;;  %v15875_v24 = vpop.f32.mrf.mxu1 }
 0x25d   : > { %18175 = vst [vmem:[#allocation30_spill] sm:$0xff] %v15871_v61 }
 0x263   : > { %v15877_v4 = vpop.f32.mrf.mxu2  ;;  %v15879_v16 = vpop.f32.mrf.mxu3 }
 0x264   : > { %18176 = vst [vmem:[#allocation31_spill] sm:$0xff] %v15877_v4  ;;  %v1083_v57 = vpop.f32.mrf.mxu0  ;;  %v1131_v15 = vpop.f32.mrf.mxu1 }
 0x265   : > { %18177 = vst [vmem:[#allocation32_spill] sm:$0xff] %v15879_v16 }
 0x267   : > { %1376 = vmatmul.bf16.gmra.mxu1 %v15725_v13  ;;  %2993 = vmatmul.bf16.gmra.mxu0 %v14389_v19 }
 0x268   : > { %1805 = vmatmul.bf16.gmra.mxu2 %v15725_v13  ;;  %2682 = vmatmul.bf16.gmra.mxu3 %v14389_v19 }
 0x26b   : > { %v1179_v8 = vpop.f32.mrf.mxu2  ;;  %v1227_v12 = vpop.f32.mrf.mxu3 }
 0x26c   : > { %v1084_v61 = vpop.f32.mrf.mxu0  ;;  %v1132_v35 = vpop.f32.mrf.mxu1  ;;  %v14391_v12 = vld [vmem:[#allocation2 + $0x60] sm:$0xff] }
 0x273   : > { %v1180_v56 = vpop.f32.mrf.mxu2  ;;  %v1228_v50 = vpop.f32.mrf.mxu3 }
 0x274   : > { %v1352_v1 = vpop.f32.mrf.mxu1  ;;  %v2969_v4 = vpop.f32.mrf.mxu0 }
 0x277   : > { %1381 = vmatmul.bf16.gmra.mxu1 %v15735_v21  ;;  %2998 = vmatmul.bf16.gmra.mxu0 %v14390_v39 }
 0x278   : > { %1810 = vmatmul.bf16.gmra.mxu2 %v15735_v21  ;;  %2687 = vmatmul.bf16.gmra.mxu3 %v14390_v39 }
 0x27b   : > { %v1779_v57 = vpop.f32.mrf.mxu2  ;;  %v2655_v15 = vpop.f32.mrf.mxu3 }
 0x27c   : > { %v1353_v16 = vpop.f32.mrf.mxu1  ;;  %v2970_v13 = vpop.f32.mrf.mxu0 }
 0x283   : > { %v1780_v19 = vpop.f32.mrf.mxu2  ;;  %v2656_v8 = vpop.f32.mrf.mxu3 }
 0x284   : > { %v1355_v61 = vpop.f32.mrf.mxu1  ;;  %v2972_v35 = vpop.f32.mrf.mxu0 }
 0x285   : > { %v1561_v50 = vrot.slane %v1355_v61, 1  ;;  %v3177_v57 = vrot.slane %v2972_v35, 1 }
 0x287   : > { %1384 = vmatmul.bf16.gmra.mxu1 %v15752_v40  ;;  %3001 = vmatmul.bf16.gmra.mxu0 %v14391_v12  ;;  %v1657_v21 = vadd.f32 %v1561_v50, %v15741_v31 }
 0x288   : > { %1814 = vmatmul.bf16.gmra.mxu2 %v15752_v40  ;;  %2690 = vmatmul.bf16.gmra.mxu3 %v14391_v12 }
 0x28b   : > { %v1782_v56 = vpop.f32.mrf.mxu2  ;;  %v2659_v1 = vpop.f32.mrf.mxu3 }
 0x28c   : > { %v2020_v39 = vrot.slane %v1782_v56, 2  ;;  %v1357_v4 = vpop.f32.mrf.mxu1  ;;  %v2974_v16 = vpop.f32.mrf.mxu0  ;;  %v14392_v56 = vld [vmem:[#allocation2 + $0x68] sm:$0xff] }
 0x28d   : > { %v1562_v15 = vrot.slane %v1357_v4, 1  ;;  %v3178_v13 = vrot.slane %v2974_v16, 1  ;;  %v14515_v16 = vld [vmem:[%s15440_s12 + $0x1e8] sm:$0xff] }
 0x28e   : > { %v2148_v19 = vadd.f32 %v2020_v39, %v1657_v21  ;;  %4577 = vmatpush.bf16.msra.mxu3 %v14515_v16 }
 0x28f   : > { %v1563_v27 = vsel %vm1560_vm0, %v1561_v50, %v1562_v15  ;;  %v3179_v11 = vsel %vm1560_vm0, %v3177_v57, %v3178_v13 }
 0x290   : > { %v2847_v61 = vadd.f32 %v2656_v8, %v2148_v19  ;;  %v1658_v4 = vadd.f32 %v1563_v27, %v15756_v42  ;;  %v14507_v8 = vld [vmem:[%s15440_s12 + $0x1a8] sm:$0xff] }
 0x291   : > { %4263 = vmatpush.bf16.msra.mxu2 %v14507_v8 }
 0x292   : > { %v15890_v40 = vadd.f32 %v3177_v57, %v2847_v61  ;;  %v14451_v57 = vld [vmem:[%s15440_s12 + $0x168] sm:$0xff] }
 0x293   : > { %v1784_v12 = vpop.f32.mrf.mxu2  ;;  %v2661_v31 = vpop.f32.mrf.mxu3  ;;  %3388 = vmatpush.bf16.msra.mxu1 %v14451_v57 }
 0x294   : > { %18178 = vst [vmem:[#allocation33_spill] sm:$0xff] %v15890_v40  ;;  %v2021_v45 = vrot.slane %v1784_v12, 2  ;;  %v1360_v26 = vpop.f32.mrf.mxu1  ;;  %v2977_v35 = vpop.f32.mrf.mxu0 }
 0x295   : > { %v1659_v35 = vadd.f32 %v1562_v15, %v15767_v51 }
 0x296   : > { %v2022_v21 = vsel %vm2019_vm1, %v2020_v39, %v2021_v45 }
 0x297   : > { %v2149_v50 = vadd.f32 %v2022_v21, %v1658_v4  ;;  %1387 = vmatmul.bf16.gmra.mxu1 %v15775_v59  ;;  %3004 = vmatmul.bf16.gmra.mxu0 %v14392_v56  ;;  %v14523_v4 = vld [vmem:[%s15440_s12 + $0x228] sm:$0xff] }
 0x298   : > { %1817 = vmatmul.bf16.gmra.mxu2 %v15775_v59  ;;  %2694 = vmatmul.bf16.gmra.mxu3 %v14392_v56 }
 0x299   : > { %v2848_v19 = vadd.f32 %v2659_v1, %v2149_v50  ;;  %5003 = vmatpush.bf16.msra.mxu0 %v14523_v4  ;;  %v14393_v50 = vld [vmem:[#allocation2 + $0x70] sm:$0xff] }
 0x29b   : > { %v1787_v26 = vpop.f32.mrf.mxu2  ;;  %v2664_v61 = vpop.f32.mrf.mxu3  ;;  %v15899_v42 = vadd.f32 %v3179_v11, %v2848_v19 }
 0x29c   : > { %v2023_v27 = vrot.slane %v1787_v26, 2  ;;  %v1361_v39 = vpop.f32.mrf.mxu1  ;;  %v2978_v12 = vpop.f32.mrf.mxu0  ;;  %v14394_v26 = vld [vmem:[#allocation2 + $0x78] sm:$0xff] }
 0x29e   : > { %v2024_v59 = vsel %vm2019_vm1, %v2021_v45, %v2023_v27 }
 0x29f   : > { %v2150_v56 = vadd.f32 %v2024_v59, %v1659_v35 }
 0x2a1   : > { %v2849_v21 = vadd.f32 %v2661_v31, %v2150_v56 }
 0x2a3   : > { %v1789_v40 = vpop.f32.mrf.mxu2  ;;  %v2665_v1 = vpop.f32.mrf.mxu3  ;;  %v15904_v8 = vadd.f32 %v3178_v13, %v2849_v21 }
 0x2a4   : > { %v1363_v16 = vpop.f32.mrf.mxu1  ;;  %v2980_v57 = vpop.f32.mrf.mxu0 }
 0x2a7   : > { %1392 = vmatmul.bf16.gmra.mxu1 %v15785_v17  ;;  %3009 = vmatmul.bf16.gmra.mxu0 %v14393_v50 }
 0x2a8   : > { %1822 = vmatmul.bf16.gmra.mxu2 %v15785_v17  ;;  %2699 = vmatmul.bf16.gmra.mxu3 %v14393_v50 }
 0x2ab   : > { %v1791_v51 = vpop.f32.mrf.mxu2  ;;  %v2667_v11 = vpop.f32.mrf.mxu3 }
 0x2ac   : > { %v1364_v45 = vpop.f32.mrf.mxu1  ;;  %v2981_v15 = vpop.f32.mrf.mxu0 }
 0x2ad   : > { %v14395_v45 = vld [vmem:[#allocation2 + $0x80] sm:$0xff] }
 0x2b3   : > { %v1792_v19 = vpop.f32.mrf.mxu2  ;;  %v2668_v31 = vpop.f32.mrf.mxu3 }
 0x2b4   : > { %v1366_v40 = vpop.f32.mrf.mxu1  ;;  %v2983_v61 = vpop.f32.mrf.mxu0 }
 0x2b5   : > { %v1564_v13 = vrot.slane %v1366_v40, 1  ;;  %v3180_v56 = vrot.slane %v2983_v61, 1 }
 0x2b7   : > { %1395 = vmatmul.bf16.gmra.mxu1 %v15663_v28  ;;  %3012 = vmatmul.bf16.gmra.mxu0 %v14394_v26  ;;  %v1660_v17 = vadd.f32 %v1564_v13, %v15791_v29 }
 0x2b8   : > { %1826 = vmatmul.bf16.gmra.mxu2 %v15663_v28  ;;  %2702 = vmatmul.bf16.gmra.mxu3 %v14394_v26 }
 0x2bb   : > { %v1794_v27 = vpop.f32.mrf.mxu2  ;;  %v2671_v39 = vpop.f32.mrf.mxu3 }
 0x2bc   : > { %v2025_v12 = vrot.slane %v1794_v27, 2  ;;  %v1368_v35 = vpop.f32.mrf.mxu1  ;;  %v2985_v59 = vpop.f32.mrf.mxu0 }
 0x2bd   : > { %v1565_v4 = vrot.slane %v1368_v35, 1  ;;  %v3181_v21 = vrot.slane %v2985_v59, 1 }
 0x2be   : > { %v2151_v1 = vadd.f32 %v2025_v12, %v1660_v17 }
 0x2bf   : > { %v1566_v50 = vsel %vm1560_vm0, %v1564_v13, %v1565_v4  ;;  %v3182_v16 = vsel %vm1560_vm0, %v3180_v56, %v3181_v21 }
 0x2c0   : > { %v2850_v57 = vadd.f32 %v2668_v31, %v2151_v1  ;;  %v1661_v26 = vadd.f32 %v1566_v50, %v15799_v44  ;;  %v1662_v1 = vadd.f32 %v1565_v4, %v15809_v62 }
 0x2c2   : > { %v15913_v51 = vadd.f32 %v3180_v56, %v2850_v57 }
 0x2c3   : > { %v1796_v28 = vpop.f32.mrf.mxu2  ;;  %v2673_v11 = vpop.f32.mrf.mxu3 }
 0x2c4   : > { %v2026_v15 = vrot.slane %v1796_v28, 2  ;;  %v1371_v19 = vpop.f32.mrf.mxu1  ;;  %v2988_v29 = vpop.f32.mrf.mxu0 }
 0x2c5   : > { %v14396_v19 = vld [vmem:[#allocation2 + $0x88] sm:$0xff] }
 0x2c6   : > { %v2027_v40 = vsel %vm2019_vm1, %v2025_v12, %v2026_v15 }
 0x2c7   : > { %v2152_v61 = vadd.f32 %v2027_v40, %v1661_v26  ;;  %1398 = vmatmul.bf16.gmra.mxu1 %v15675_v38  ;;  %3015 = vmatmul.bf16.gmra.mxu0 %v14395_v45 }
 0x2c8   : > { %1829 = vmatmul.bf16.gmra.mxu2 %v15675_v38  ;;  %2706 = vmatmul.bf16.gmra.mxu3 %v14395_v45 }
 0x2c9   : > { %v2851_v31 = vadd.f32 %v2671_v39, %v2152_v61 }
 0x2cb   : > { %v1799_v13 = vpop.f32.mrf.mxu2  ;;  %v2676_v27 = vpop.f32.mrf.mxu3  ;;  %v15919_v17 = vadd.f32 %v3182_v16, %v2851_v31 }
 0x2cc   : > { %v2028_v35 = vrot.slane %v1799_v13, 2  ;;  %v1372_v59 = vpop.f32.mrf.mxu1  ;;  %v2989_v56 = vpop.f32.mrf.mxu0 }
 0x2ce   : > { %v2029_v44 = vsel %vm2019_vm1, %v2026_v15, %v2028_v35 }
 0x2cf   : > { %v2153_v12 = vadd.f32 %v2029_v44, %v1662_v1 }
 0x2d1   : > { %v2852_v50 = vadd.f32 %v2673_v11, %v2153_v12  ;;  %v14397_v11 = vld [vmem:[#allocation2 + $0x90] sm:$0xff] }
 0x2d3   : > { %v1801_v57 = vpop.f32.mrf.mxu2  ;;  %v2677_v28 = vpop.f32.mrf.mxu3  ;;  %v15923_v29 = vadd.f32 %v3181_v21, %v2852_v50 }
 0x2d4   : > { %v1374_v38 = vpop.f32.mrf.mxu1  ;;  %v2991_v39 = vpop.f32.mrf.mxu0 }
 0x2d7   : > { %1403 = vmatmul.bf16.gmra.mxu1 %v15685_v46  ;;  %3020 = vmatmul.bf16.gmra.mxu0 %v14396_v19 }
 0x2d8   : > { %1834 = vmatmul.bf16.gmra.mxu2 %v15685_v46  ;;  %2711 = vmatmul.bf16.gmra.mxu3 %v14396_v19 }
 0x2db   : > { %v1803_v16 = vpop.f32.mrf.mxu2  ;;  %v2679_v45 = vpop.f32.mrf.mxu3 }
 0x2dc   : > { %v1375_v62 = vpop.f32.mrf.mxu1  ;;  %v2992_v4 = vpop.f32.mrf.mxu0 }
 0x2e3   : > { %v1804_v15 = vpop.f32.mrf.mxu2  ;;  %v2680_v26 = vpop.f32.mrf.mxu3 }
 0x2e4   : > { %v1377_v40 = vpop.f32.mrf.mxu1  ;;  %v2994_v61 = vpop.f32.mrf.mxu0 }
 0x2e5   : > { %v1567_v21 = vrot.slane %v1377_v40, 1  ;;  %v3183_v56 = vrot.slane %v2994_v61, 1  ;;  %v14450_v40 = vld [vmem:[%s15440_s12 + $0x160] sm:$0xff] }
 0x2e6   : > { %3389 = vmatpush.bf16.msra.mxu1 %v14450_v40 }
 0x2e7   : > { %1406 = vmatmul.bf16.gmra.mxu1 %v15695_v54  ;;  %3023 = vmatmul.bf16.gmra.mxu0 %v14397_v11  ;;  %v1663_v46 = vadd.f32 %v1567_v21, %v15821_v25  ;;  %v14398_v25 = vld [vmem:[#allocation2 + $0x98] sm:$0xff] }
 0x2e8   : > { %1838 = vmatmul.bf16.gmra.mxu2 %v15695_v54  ;;  %2714 = vmatmul.bf16.gmra.mxu3 %v14397_v11  ;;  %v14514_v11 = vld [vmem:[%s15440_s12 + $0x1e0] sm:$0xff] }
 0x2e9   : > { %4578 = vmatpush.bf16.msra.mxu3 %v14514_v11 }
 0x2eb   : > { %v1806_v31 = vpop.f32.mrf.mxu2  ;;  %v2683_v13 = vpop.f32.mrf.mxu3 }
 0x2ec   : > { %v2030_v27 = vrot.slane %v1806_v31, 2  ;;  %v1379_v35 = vpop.f32.mrf.mxu1  ;;  %v2996_v59 = vpop.f32.mrf.mxu0 }
 0x2ed   : > { %v1568_v1 = vrot.slane %v1379_v35, 1  ;;  %v3184_v44 = vrot.slane %v2996_v59, 1 }
 0x2ee   : > { %v2154_v12 = vadd.f32 %v2030_v27, %v1663_v46 }
 0x2ef   : > { %v1569_v50 = vsel %vm1560_vm0, %v1567_v21, %v1568_v1  ;;  %v3185_v57 = vsel %vm1560_vm0, %v3183_v56, %v3184_v44  ;;  %v1665_v59 = vadd.f32 %v1568_v1, %v15839_v7 }
 0x2f0   : > { %v2853_v28 = vadd.f32 %v2680_v26, %v2154_v12  ;;  %v1664_v62 = vadd.f32 %v1569_v50, %v15829_v5  ;;  %v14506_v26 = vld [vmem:[%s15440_s12 + $0x1a0] sm:$0xff] }
 0x2f1   : > { %4264 = vmatpush.bf16.msra.mxu2 %v14506_v26  ;;  %v14522_v12 = vld [vmem:[%s15440_s12 + $0x220] sm:$0xff] }
 0x2f2   : > { %v15932_v54 = vadd.f32 %v3183_v56, %v2853_v28  ;;  %5004 = vmatpush.bf16.msra.mxu0 %v14522_v12 }
 0x2f3   : > { %v1808_v19 = vpop.f32.mrf.mxu2  ;;  %v2685_v38 = vpop.f32.mrf.mxu3 }
 0x2f4   : > { %v2031_v39 = vrot.slane %v1808_v19, 2  ;;  %v1382_v16 = vpop.f32.mrf.mxu1  ;;  %v2999_v45 = vpop.f32.mrf.mxu0  ;;  %v14399_v19 = vld [vmem:[#allocation2 + $0xa0] sm:$0xff] }
 0x2f6   : > { %v2032_v4 = vsel %vm2019_vm1, %v2030_v27, %v2031_v39 }
 0x2f7   : > { %v2155_v15 = vadd.f32 %v2032_v4, %v1664_v62  ;;  %1409 = vmatmul.bf16.gmra.mxu1 %v15701_v58  ;;  %3026 = vmatmul.bf16.gmra.mxu0 %v14398_v25  ;;  %v14400_v4 = vld [vmem:[#allocation2 + $0xa8] sm:$0xff] }
 0x2f8   : > { %1841 = vmatmul.bf16.gmra.mxu2 %v15701_v58  ;;  %2718 = vmatmul.bf16.gmra.mxu3 %v14398_v25 }
 0x2f9   : > { %v2854_v61 = vadd.f32 %v2683_v13, %v2155_v15 }
 0x2fb   : > { %v1811_v21 = vpop.f32.mrf.mxu2  ;;  %v2688_v31 = vpop.f32.mrf.mxu3  ;;  %v15941_v5 = vadd.f32 %v3185_v57, %v2854_v61 }
 0x2fc   : > { %v2033_v46 = vrot.slane %v1811_v21, 2  ;;  %v1383_v27 = vpop.f32.mrf.mxu1  ;;  %v3000_v35 = vpop.f32.mrf.mxu0 }
 0x2fe   : > { %v2034_v58 = vsel %vm2019_vm1, %v2031_v39, %v2033_v46 }
 0x2ff   : > { %v2156_v56 = vadd.f32 %v2034_v58, %v1665_v59 }
 0x301   : > { %v2855_v50 = vadd.f32 %v2685_v38, %v2156_v56 }
 0x303   : > { %v1813_v28 = vpop.f32.mrf.mxu2  ;;  %v2689_v13 = vpop.f32.mrf.mxu3  ;;  %v15946_v25 = vadd.f32 %v3184_v44, %v2855_v50 }
 0x304   : > { %v1385_v16 = vpop.f32.mrf.mxu1  ;;  %v3002_v45 = vpop.f32.mrf.mxu0  ;;  %v14401_v13 = vld [vmem:[#allocation2 + $0xb0] sm:$0xff] }
 0x307   : > { %1414 = vmatmul.bf16.gmra.mxu1 %v15711_v2  ;;  %3031 = vmatmul.bf16.gmra.mxu0 %v14399_v19 }
 0x308   : > { %1846 = vmatmul.bf16.gmra.mxu2 %v15711_v2  ;;  %2723 = vmatmul.bf16.gmra.mxu3 %v14399_v19 }
 0x30b   : > { %v1815_v7 = vpop.f32.mrf.mxu2  ;;  %v2691_v1 = vpop.f32.mrf.mxu3 }
 0x30c   : > { %v1386_v57 = vpop.f32.mrf.mxu1  ;;  %v3003_v39 = vpop.f32.mrf.mxu0 }
 0x313   : > { %v1816_v62 = vpop.f32.mrf.mxu2  ;;  %v2692_v38 = vpop.f32.mrf.mxu3 }
 0x314   : > { %v1388_v15 = vpop.f32.mrf.mxu1  ;;  %v3005_v26 = vpop.f32.mrf.mxu0 }
 0x315   : > { %v1570_v44 = vrot.slane %v1388_v15, 1  ;;  %v3186_v46 = vrot.slane %v3005_v26, 1 }
 0x317   : > { %1417 = vmatmul.bf16.gmra.mxu1 %v15720_v9  ;;  %3034 = vmatmul.bf16.gmra.mxu0 %v14400_v4  ;;  %v1666_v2 = vadd.f32 %v1570_v44, %v15855_v53 }
 0x318   : > { %1850 = vmatmul.bf16.gmra.mxu2 %v15720_v9  ;;  %2726 = vmatmul.bf16.gmra.mxu3 %v14400_v4 }
 0x31b   : > { %v1818_v11 = vpop.f32.mrf.mxu2  ;;  %v2695_v40 = vpop.f32.mrf.mxu3 }
 0x31c   : > { %v2035_v61 = vrot.slane %v1818_v11, 2  ;;  %v1390_v21 = vpop.f32.mrf.mxu1  ;;  %v3007_v31 = vpop.f32.mrf.mxu0 }
 0x31d   : > { %v1571_v27 = vrot.slane %v1390_v21, 1  ;;  %v3187_v35 = vrot.slane %v3007_v31, 1  ;;  %v14402_v31 = vld [vmem:[#allocation2 + $0xb8] sm:$0xff] }
 0x31e   : > { %v2157_v59 = vadd.f32 %v2035_v61, %v1666_v2 }
 0x31f   : > { %v1572_v58 = vsel %vm1560_vm0, %v1570_v44, %v1571_v27  ;;  %v3188_v56 = vsel %vm1560_vm0, %v3186_v46, %v3187_v35  ;;  %v1668_v44 = vadd.f32 %v1571_v27, %v15873_v3 }
 0x320   : > { %v2856_v12 = vadd.f32 %v2692_v38, %v2157_v59  ;;  %v1667_v45 = vadd.f32 %v1572_v58, %v15863_v23 }
 0x322   : > { %v15955_v50 = vadd.f32 %v3186_v46, %v2856_v12 }
 0x323   : > { %v1820_v9 = vpop.f32.mrf.mxu2  ;;  %v2697_v28 = vpop.f32.mrf.mxu3 }
 0x324   : > { %v2036_v19 = vrot.slane %v1820_v9, 2  ;;  %v1393_v16 = vpop.f32.mrf.mxu1  ;;  %v3010_v53 = vpop.f32.mrf.mxu0  ;;  %v14403_v9 = vld [vmem:[#allocation2 + $0xc0] sm:$0xff] }
 0x326   : > { %v2037_v7 = vsel %vm2019_vm1, %v2035_v61, %v2036_v19 }
 0x327   : > { %v2158_v1 = vadd.f32 %v2037_v7, %v1667_v45  ;;  %1420 = vmatmul.bf16.gmra.mxu1 %v15727_v14  ;;  %3037 = vmatmul.bf16.gmra.mxu0 %v14401_v13 }
 0x328   : > { %1853 = vmatmul.bf16.gmra.mxu2 %v15727_v14  ;;  %2730 = vmatmul.bf16.gmra.mxu3 %v14401_v13 }
 0x329   : > { %v2857_v57 = vadd.f32 %v2695_v40, %v2158_v1 }
 0x32b   : > { %v1823_v39 = vpop.f32.mrf.mxu2  ;;  %v2700_v62 = vpop.f32.mrf.mxu3  ;;  %v15961_v38 = vadd.f32 %v3188_v56, %v2857_v57 }
 0x32c   : > { %v2038_v4 = vrot.slane %v1823_v39, 2  ;;  %v1394_v15 = vpop.f32.mrf.mxu1  ;;  %v3011_v26 = vpop.f32.mrf.mxu0 }
 0x32e   : > { %v2039_v23 = vsel %vm2019_vm1, %v2036_v19, %v2038_v4 }
 0x32f   : > { %v2159_v11 = vadd.f32 %v2039_v23, %v1668_v44 }
 0x331   : > { %v2858_v2 = vadd.f32 %v2697_v28, %v2159_v11 }
 0x333   : > { %v1825_v61 = vpop.f32.mrf.mxu2  ;;  %v2701_v21 = vpop.f32.mrf.mxu3  ;;  %v15965_v46 = vadd.f32 %v3187_v35, %v2858_v2 }
 0x334   : > { %v1396_v14 = vpop.f32.mrf.mxu1  ;;  %v3013_v40 = vpop.f32.mrf.mxu0 }
 0x335   : > { %v14505_v40 = vld [vmem:[%s15440_s12 + $0x198] sm:$0xff] }
 0x336   : > { %4265 = vmatpush.bf16.msra.mxu2 %v14505_v40 }
 0x337   : > { %1425 = vmatmul.bf16.gmra.mxu1 %v15737_v22  ;;  %3042 = vmatmul.bf16.gmra.mxu0 %v14402_v31 }
 0x338   : > { %1858 = vmatmul.bf16.gmra.mxu2 %v15737_v22  ;;  %2735 = vmatmul.bf16.gmra.mxu3 %v14402_v31 }
 0x33b   : > { %v1827_v59 = vpop.f32.mrf.mxu2  ;;  %v2703_v58 = vpop.f32.mrf.mxu3 }
 0x33c   : > { %v1397_v3 = vpop.f32.mrf.mxu1  ;;  %v3014_v27 = vpop.f32.mrf.mxu0  ;;  %v14513_v59 = vld [vmem:[%s15440_s12 + $0x1d8] sm:$0xff] }
 0x33d   : > { %v14449_v58 = vld [vmem:[%s15440_s12 + $0x158] sm:$0xff]  ;;  %4579 = vmatpush.bf16.msra.mxu3 %v14513_v59 }
 0x33e   : > { %3390 = vmatpush.bf16.msra.mxu1 %v14449_v58 }
 0x343   : > { %v1828_v56 = vpop.f32.mrf.mxu2  ;;  %v2704_v12 = vpop.f32.mrf.mxu3 }
 0x344   : > { %v1399_v28 = vpop.f32.mrf.mxu1  ;;  %v3016_v13 = vpop.f32.mrf.mxu0 }
 0x345   : > { %v1573_v35 = vrot.slane %v1399_v28, 1  ;;  %v3189_v1 = vrot.slane %v3016_v13, 1 }
 0x347   : > { %1428 = vmatmul.bf16.gmra.mxu1 %v15754_v41  ;;  %3045 = vmatmul.bf16.gmra.mxu0 %v14403_v9  ;;  %v1669_v22 = vadd.f32 %v1573_v35, %v15743_v32  ;;  %v14404_v32 = vld [vmem:[#allocation2 + $0xc8] sm:$0xff] }
 0x348   : > { %1862 = vmatmul.bf16.gmra.mxu2 %v15754_v41  ;;  %2738 = vmatmul.bf16.gmra.mxu3 %v14403_v9 }
 0x34b   : > { %v1830_v19 = vpop.f32.mrf.mxu2  ;;  %v2707_v16 = vpop.f32.mrf.mxu3 }
 0x34c   : > { %v2040_v53 = vrot.slane %v1830_v19, 2  ;;  %v1401_v45 = vpop.f32.mrf.mxu1  ;;  %v3018_v7 = vpop.f32.mrf.mxu0  ;;  %v14521_v19 = vld [vmem:[%s15440_s12 + $0x218] sm:$0xff] }
 0x34d   : > { %v1574_v57 = vrot.slane %v1401_v45, 1  ;;  %v3190_v39 = vrot.slane %v3018_v7, 1  ;;  %5005 = vmatpush.bf16.msra.mxu0 %v14521_v19  ;;  %v14405_v45 = vld [vmem:[#allocation2 + $0xd0] sm:$0xff] }
 0x34e   : > { %v2160_v62 = vadd.f32 %v2040_v53, %v1669_v22 }
 0x34f   : > { %v1575_v4 = vsel %vm1560_vm0, %v1573_v35, %v1574_v57  ;;  %v3191_v15 = vsel %vm1560_vm0, %v3189_v1, %v3190_v39  ;;  %v1671_v13 = vadd.f32 %v1574_v57, %v15769_v52 }
 0x350   : > { %v2859_v26 = vadd.f32 %v2704_v12, %v2160_v62  ;;  %v1670_v21 = vadd.f32 %v1575_v4, %v15758_v43 }
 0x352   : > { %v15974_v41 = vadd.f32 %v3189_v1, %v2859_v26 }
 0x353   : > { %v1832_v44 = vpop.f32.mrf.mxu2  ;;  %v2709_v23 = vpop.f32.mrf.mxu3 }
 0x354   : > { %v2041_v11 = vrot.slane %v1832_v44, 2  ;;  %v1404_v2 = vpop.f32.mrf.mxu1  ;;  %v3021_v61 = vpop.f32.mrf.mxu0 }
 0x355   : > { %v14902_v2 = vld [vmem:[#allocation2 + $0xc0] sm:$0xff] }
 0x356   : > { %v2042_v31 = vsel %vm2019_vm1, %v2040_v53, %v2041_v11 }
 0x357   : > { %v2161_v14 = vadd.f32 %v2042_v31, %v1670_v21  ;;  %1431 = vmatmul.bf16.gmra.mxu1 %v15777_v60  ;;  %3048 = vmatmul.bf16.gmra.mxu0 %v14404_v32 }
 0x358   : > { %1865 = vmatmul.bf16.gmra.mxu2 %v15777_v60  ;;  %2742 = vmatmul.bf16.gmra.mxu3 %v14404_v32 }
 0x359   : > { %v2860_v3 = vadd.f32 %v2707_v16, %v2161_v14 }
 0x35b   : > { %v1835_v27 = vpop.f32.mrf.mxu2  ;;  %v2712_v56 = vpop.f32.mrf.mxu3  ;;  %v15983_v43 = vadd.f32 %v3191_v15, %v2860_v3 }
 0x35c   : > { %v2043_v12 = vrot.slane %v1835_v27, 2  ;;  %v1405_v9 = vpop.f32.mrf.mxu1  ;;  %v3022_v28 = vpop.f32.mrf.mxu0 }
 0x35e   : > { %v2044_v60 = vsel %vm2019_vm1, %v2041_v11, %v2043_v12 }
 0x35f   : > { %v2162_v35 = vadd.f32 %v2044_v60, %v1671_v13 }
 0x361   : > { %v2861_v22 = vadd.f32 %v2709_v23, %v2162_v35  ;;  %v14406_v23 = vld [vmem:[#allocation2 + $0xd8] sm:$0xff]  ;;  %v14407_v35 = vld [vmem:[#allocation2 + $0xe0] sm:$0xff] }
 0x363   : > { %v1837_v53 = vpop.f32.mrf.mxu2  ;;  %v2713_v16 = vpop.f32.mrf.mxu3  ;;  %v15988_v7 = vadd.f32 %v3190_v39, %v2861_v22 }
 0x364   : > { %v1407_v1 = vpop.f32.mrf.mxu1  ;;  %v3024_v62 = vpop.f32.mrf.mxu0 }
 0x365   : > { %v14903_v1 = vld [vmem:[#allocation2 + $0xc8] sm:$0xff] }
 0x367   : > { %1436 = vmatmul.bf16.gmra.mxu1 %v15787_v18  ;;  %3053 = vmatmul.bf16.gmra.mxu0 %v14405_v45 }
 0x368   : > { %1870 = vmatmul.bf16.gmra.mxu2 %v15787_v18  ;;  %2747 = vmatmul.bf16.gmra.mxu3 %v14405_v45 }
 0x36b   : > { %v1839_v52 = vpop.f32.mrf.mxu2  ;;  %v2715_v57 = vpop.f32.mrf.mxu3 }
 0x36c   : > { %v1408_v4 = vpop.f32.mrf.mxu1  ;;  %v3025_v15 = vpop.f32.mrf.mxu0 }
 0x373   : > { %v1840_v26 = vpop.f32.mrf.mxu2  ;;  %v2716_v44 = vpop.f32.mrf.mxu3 }
 0x374   : > { %v1410_v32 = vpop.f32.mrf.mxu1  ;;  %v3027_v11 = vpop.f32.mrf.mxu0 }
 0x375   : > { %v1576_v39 = vrot.slane %v1410_v32, 1  ;;  %v3192_v59 = vrot.slane %v3027_v11, 1 }
 0x377   : > { %1439 = vmatmul.bf16.gmra.mxu1 %v14902_v2  ;;  %3056 = vmatmul.bf16.gmra.mxu0 %v14406_v23  ;;  %v1672_v18 = vadd.f32 %v1576_v39, %v15793_v30 }
 0x378   : > { %1874 = vmatmul.bf16.gmra.mxu2 %v14902_v2  ;;  %2750 = vmatmul.bf16.gmra.mxu3 %v14406_v23 }
 0x37b   : > { %v1842_v61 = vpop.f32.mrf.mxu2  ;;  %v2719_v21 = vpop.f32.mrf.mxu3 }
 0x37c   : > { %v2045_v31 = vrot.slane %v1842_v61, 2  ;;  %v1412_v14 = vpop.f32.mrf.mxu1  ;;  %v3029_v40 = vpop.f32.mrf.mxu0  ;;  %v14408_v61 = vld [vmem:[#allocation2 + $0xe8] sm:$0xff] }
 0x37d   : > { %v1577_v58 = vrot.slane %v1412_v14, 1  ;;  %v3193_v3 = vrot.slane %v3029_v40, 1  ;;  %v14904_v14 = vld [vmem:[#allocation2 + $0xd0] sm:$0xff] }
 0x37e   : > { %v2163_v27 = vadd.f32 %v2045_v31, %v1672_v18 }
 0x37f   : > { %v1578_v56 = vsel %vm1560_vm0, %v1576_v39, %v1577_v58  ;;  %v3194_v12 = vsel %vm1560_vm0, %v3192_v59, %v3193_v3  ;;  %v1674_v23 = vadd.f32 %v1577_v58, %v15811_v63 }
 0x380   : > { %v2862_v9 = vadd.f32 %v2716_v44, %v2163_v27  ;;  %v1673_v53 = vadd.f32 %v1578_v56, %v15801_v47 }
 0x382   : > { %v15995_v28 = vadd.f32 %v3192_v59, %v2862_v9 }
 0x383   : > { %v1844_v13 = vpop.f32.mrf.mxu2  ;;  %v2721_v60 = vpop.f32.mrf.mxu3 }
 0x384   : > { %v2046_v19 = vrot.slane %v1844_v13, 2  ;;  %v1415_v22 = vpop.f32.mrf.mxu1  ;;  %v3032_v30 = vpop.f32.mrf.mxu0 }
 0x386   : > { %v2047_v16 = vsel %vm2019_vm1, %v2045_v31, %v2046_v19 }
 0x387   : > { %v2164_v45 = vadd.f32 %v2047_v16, %v1673_v53  ;;  %1442 = vmatmul.bf16.gmra.mxu1 %v14903_v1  ;;  %3059 = vmatmul.bf16.gmra.mxu0 %v14407_v35 }
 0x388   : > { %1877 = vmatmul.bf16.gmra.mxu2 %v14903_v1  ;;  %2754 = vmatmul.bf16.gmra.mxu3 %v14407_v35 }
 0x389   : > { %v2863_v62 = vadd.f32 %v2719_v21, %v2164_v45 }
 0x38b   : > { %v1847_v52 = vpop.f32.mrf.mxu2  ;;  %v2724_v57 = vpop.f32.mrf.mxu3  ;;  %v15999_v4 = vadd.f32 %v3194_v12, %v2863_v62  ;;  %v14409_v12 = vld [vmem:[#allocation2 + $0xf0] sm:$0xff] }
 0x38c   : > { %v2048_v15 = vrot.slane %v1847_v52, 2  ;;  %v1416_v26 = vpop.f32.mrf.mxu1  ;;  %v3033_v44 = vpop.f32.mrf.mxu0 }
 0x38e   : > { %v2049_v47 = vsel %vm2019_vm1, %v2046_v19, %v2048_v15 }
 0x38f   : > { %v2165_v32 = vadd.f32 %v2049_v47, %v1674_v23 }
 0x391   : > { %v2864_v11 = vadd.f32 %v2721_v60, %v2165_v32  ;;  %v14905_v60 = vld [vmem:[#allocation2 + $0xd8] sm:$0xff] }
 0x393   : > { %v1849_v2 = vpop.f32.mrf.mxu2  ;;  %v2725_v39 = vpop.f32.mrf.mxu3  ;;  %v16003_v18 = vadd.f32 %v3193_v3, %v2864_v11 }
 0x394   : > { %v1418_v31 = vpop.f32.mrf.mxu1  ;;  %v3035_v21 = vpop.f32.mrf.mxu0 }
 0x395   : > { %v14906_v21 = vld [vmem:[#allocation2 + $0xe0] sm:$0xff] }
 0x397   : > { %1447 = vmatmul.bf16.gmra.mxu1 %v14904_v14  ;;  %3064 = vmatmul.bf16.gmra.mxu0 %v14408_v61 }
 0x398   : > { %1882 = vmatmul.bf16.gmra.mxu2 %v14904_v14  ;;  %2759 = vmatmul.bf16.gmra.mxu3 %v14408_v61  ;;  %v14504_v14 = vld [vmem:[%s15440_s12 + $0x190] sm:$0xff] }
 0x399   : > { %4266 = vmatpush.bf16.msra.mxu2 %v14504_v14 }
 0x39b   : > { %v1851_v40 = vpop.f32.mrf.mxu2  ;;  %v2727_v59 = vpop.f32.mrf.mxu3 }
 0x39c   : > { %v1419_v27 = vpop.f32.mrf.mxu1  ;;  %v3036_v63 = vpop.f32.mrf.mxu0  ;;  %v14512_v40 = vld [vmem:[%s15440_s12 + $0x1d0] sm:$0xff] }
 0x39d   : > { %v14448_v59 = vld [vmem:[%s15440_s12 + $0x150] sm:$0xff]  ;;  %4580 = vmatpush.bf16.msra.mxu3 %v14512_v40 }
 0x39e   : > { %3391 = vmatpush.bf16.msra.mxu1 %v14448_v59 }
 0x3a3   : > { %v1852_v58 = vpop.f32.mrf.mxu2  ;;  %v2728_v56 = vpop.f32.mrf.mxu3 }
 0x3a4   : > { %v1421_v9 = vpop.f32.mrf.mxu1  ;;  %v3038_v13 = vpop.f32.mrf.mxu0 }
 0x3a5   : > { %v1579_v3 = vrot.slane %v1421_v9, 1  ;;  %v3195_v45 = vrot.slane %v3038_v13, 1 }
 0x3a7   : > { %1450 = vmatmul.bf16.gmra.mxu1 %v14905_v60  ;;  %3067 = vmatmul.bf16.gmra.mxu0 %v14409_v12  ;;  %v1675_v22 = vadd.f32 %v1579_v3, %v15823_v37  ;;  %v14410_v37 = vld [vmem:[#allocation2 + $0xf8] sm:$0xff] }
 0x3a8   : > { %1886 = vmatmul.bf16.gmra.mxu2 %v14905_v60  ;;  %2762 = vmatmul.bf16.gmra.mxu3 %v14409_v12 }
 0x3ab   : > { %v1854_v35 = vpop.f32.mrf.mxu2  ;;  %v2731_v19 = vpop.f32.mrf.mxu3 }
 0x3ac   : > { %v2050_v30 = vrot.slane %v1854_v35, 2  ;;  %v1423_v53 = vpop.f32.mrf.mxu1  ;;  %v3040_v16 = vpop.f32.mrf.mxu0  ;;  %v14520_v35 = vld [vmem:[%s15440_s12 + $0x210] sm:$0xff] }
 0x3ad   : > { %v1580_v1 = vrot.slane %v1423_v53, 1  ;;  %v3196_v62 = vrot.slane %v3040_v16, 1  ;;  %5006 = vmatpush.bf16.msra.mxu0 %v14520_v35  ;;  %v14411_v53 = vld [vmem:[#allocation2 + $0x100] sm:$0xff]  ;;  %v14413_v35 = vld [vmem:[#allocation2 + $0x110] sm:$0xff] }
 0x3ae   : > { %v2166_v52 = vadd.f32 %v2050_v30, %v1675_v22 }
 0x3af   : > { %v1581_v57 = vsel %vm1560_vm0, %v1579_v3, %v1580_v1  ;;  %v3197_v15 = vsel %vm1560_vm0, %v3195_v45, %v3196_v62  ;;  %v1677_v13 = vadd.f32 %v1580_v1, %v15841_v10 }
 0x3b0   : > { %v2865_v26 = vadd.f32 %v2728_v56, %v2166_v52  ;;  %v1676_v39 = vadd.f32 %v1581_v57, %v15831_v6  ;;  %v14907_v57 = vld [vmem:[#allocation2 + $0xe8] sm:$0xff] }
 0x3b2   : > { %v16008_v44 = vadd.f32 %v3195_v45, %v2865_v26 }
 0x3b3   : > { %v1856_v23 = vpop.f32.mrf.mxu2  ;;  %v2733_v47 = vpop.f32.mrf.mxu3 }
 0x3b4   : > { %v2051_v32 = vrot.slane %v1856_v23, 2  ;;  %v1426_v11 = vpop.f32.mrf.mxu1  ;;  %v3043_v2 = vpop.f32.mrf.mxu0 }
 0x3b5   : > { %v14908_v2 = vld [vmem:[#allocation2 + $0xf0] sm:$0xff] }
 0x3b6   : > { %v2052_v61 = vsel %vm2019_vm1, %v2050_v30, %v2051_v32 }
 0x3b7   : > { %v2167_v31 = vadd.f32 %v2052_v61, %v1676_v39  ;;  %1453 = vmatmul.bf16.gmra.mxu1 %v14906_v21  ;;  %3070 = vmatmul.bf16.gmra.mxu0 %v14410_v37 }
 0x3b8   : > { %1889 = vmatmul.bf16.gmra.mxu2 %v14906_v21  ;;  %2766 = vmatmul.bf16.gmra.mxu3 %v14410_v37 }
 0x3b9   : > { %v2866_v27 = vadd.f32 %v2731_v19, %v2167_v31 }
 0x3bb   : > { %v1859_v63 = vpop.f32.mrf.mxu2  ;;  %v2736_v58 = vpop.f32.mrf.mxu3  ;;  %v16015_v56 = vadd.f32 %v3197_v15, %v2866_v27 }
 0x3bc   : > { %v2053_v6 = vrot.slane %v1859_v63, 2  ;;  %v1427_v12 = vpop.f32.mrf.mxu1  ;;  %v3044_v9 = vpop.f32.mrf.mxu0 }
 0x3be   : > { %v2054_v60 = vsel %vm2019_vm1, %v2051_v32, %v2053_v6 }
 0x3bf   : > { %v2168_v3 = vadd.f32 %v2054_v60, %v1677_v13 }
 0x3c1   : > { %v2867_v22 = vadd.f32 %v2733_v47, %v2168_v3  ;;  %v14412_v47 = vld [vmem:[#allocation2 + $0x108] sm:$0xff] }
 0x3c3   : > { %v1861_v30 = vpop.f32.mrf.mxu2  ;;  %v2737_v19 = vpop.f32.mrf.mxu3  ;;  %v16020_v16 = vadd.f32 %v3196_v62, %v2867_v22 }
 0x3c4   : > { %v1429_v45 = vpop.f32.mrf.mxu1  ;;  %v3046_v52 = vpop.f32.mrf.mxu0 }
 0x3c5   : > { %v14909_v52 = vld [vmem:[#allocation2 + $0xf8] sm:$0xff] }
 0x3c7   : > { %1458 = vmatmul.bf16.gmra.mxu1 %v14907_v57  ;;  %3075 = vmatmul.bf16.gmra.mxu0 %v14411_v53 }
 0x3c8   : > { %1894 = vmatmul.bf16.gmra.mxu2 %v14907_v57  ;;  %2771 = vmatmul.bf16.gmra.mxu3 %v14411_v53 }
 0x3cb   : > { %v1863_v15 = vpop.f32.mrf.mxu2  ;;  %v2739_v10 = vpop.f32.mrf.mxu3 }
 0x3cc   : > { %v1430_v1 = vpop.f32.mrf.mxu1  ;;  %v3047_v26 = vpop.f32.mrf.mxu0 }
 0x3d3   : > { %v1864_v23 = vpop.f32.mrf.mxu2  ;;  %v2740_v37 = vpop.f32.mrf.mxu3 }
 0x3d4   : > { %v1432_v32 = vpop.f32.mrf.mxu1  ;;  %v3049_v11 = vpop.f32.mrf.mxu0 }
 0x3d5   : > { %v1582_v62 = vrot.slane %v1432_v32, 1  ;;  %v3198_v59 = vrot.slane %v3049_v11, 1 }
 0x3d7   : > { %1461 = vmatmul.bf16.gmra.mxu1 %v14908_v2  ;;  %3078 = vmatmul.bf16.gmra.mxu0 %v14412_v47  ;;  %v1678_v31 = vadd.f32 %v1582_v62, %v15857_v20 }
 0x3d8   : > { %1898 = vmatmul.bf16.gmra.mxu2 %v14908_v2  ;;  %2774 = vmatmul.bf16.gmra.mxu3 %v14412_v47 }
 0x3db   : > { %v1866_v39 = vpop.f32.mrf.mxu2  ;;  %v2743_v61 = vpop.f32.mrf.mxu3 }
 0x3dc   : > { %v2055_v21 = vrot.slane %v1866_v39, 2  ;;  %v1434_v14 = vpop.f32.mrf.mxu1  ;;  %v3051_v40 = vpop.f32.mrf.mxu0  ;;  %v14414_v39 = vld [vmem:[#allocation2 + $0x118] sm:$0xff] }
 0x3dd   : > { %v1583_v27 = vrot.slane %v1434_v14, 1  ;;  %v3199_v63 = vrot.slane %v3051_v40, 1  ;;  %v14910_v14 = vld [vmem:[#allocation2 + $0x100] sm:$0xff] }
 0x3de   : > { %v2169_v58 = vadd.f32 %v2055_v21, %v1678_v31 }
 0x3df   : > { %v1584_v6 = vsel %vm1560_vm0, %v1582_v62, %v1583_v27  ;;  %v3200_v12 = vsel %vm1560_vm0, %v3198_v59, %v3199_v63  ;;  %v1680_v47 = vadd.f32 %v1583_v27, %v15875_v24 }
 0x3e0   : > { %v2868_v9 = vadd.f32 %v2740_v37, %v2169_v58  ;;  %v1679_v19 = vadd.f32 %v1584_v6, %v15865_v34 }
 0x3e2   : > { %v16025_v13 = vadd.f32 %v3198_v59, %v2868_v9 }
 0x3e3   : > { %v1868_v60 = vpop.f32.mrf.mxu2  ;;  %v2745_v3 = vpop.f32.mrf.mxu3 }
 0x3e4   : > { %v2056_v22 = vrot.slane %v1868_v60, 2  ;;  %v1437_v30 = vpop.f32.mrf.mxu1  ;;  %v3054_v20 = vpop.f32.mrf.mxu0 }
 0x3e6   : > { %v2057_v53 = vsel %vm2019_vm1, %v2055_v21, %v2056_v22 }
 0x3e7   : > { %v2170_v45 = vadd.f32 %v2057_v53, %v1679_v19  ;;  %1464 = vmatmul.bf16.gmra.mxu1 %v14909_v52  ;;  %3081 = vmatmul.bf16.gmra.mxu0 %v14413_v35 }
 0x3e8   : > { %1901 = vmatmul.bf16.gmra.mxu2 %v14909_v52  ;;  %2778 = vmatmul.bf16.gmra.mxu3 %v14413_v35 }
 0x3e9   : > { %v2869_v57 = vadd.f32 %v2743_v61, %v2170_v45 }
 0x3eb   : > { %v1871_v15 = vpop.f32.mrf.mxu2  ;;  %v2748_v10 = vpop.f32.mrf.mxu3  ;;  %v16029_v1 = vadd.f32 %v3200_v12, %v2869_v57  ;;  %v14415_v12 = vld [vmem:[#allocation2 + $0x120] sm:$0xff] }
 0x3ec   : > { %v2058_v26 = vrot.slane %v1871_v15, 2  ;;  %v1438_v23 = vpop.f32.mrf.mxu1  ;;  %v3055_v37 = vpop.f32.mrf.mxu0 }
 0x3ee   : > { %v2059_v34 = vsel %vm2019_vm1, %v2056_v22, %v2058_v26 }
 0x3ef   : > { %v2171_v32 = vadd.f32 %v2059_v34, %v1680_v47 }
 0x3f1   : > { %v2870_v11 = vadd.f32 %v2745_v3, %v2171_v32  ;;  %v14911_v3 = vld [vmem:[#allocation2 + $0x108] sm:$0xff] }
 0x3f3   : > { %v1873_v2 = vpop.f32.mrf.mxu2  ;;  %v2749_v62 = vpop.f32.mrf.mxu3  ;;  %v16033_v31 = vadd.f32 %v3199_v63, %v2870_v11 }
 0x3f4   : > { %v1440_v21 = vpop.f32.mrf.mxu1  ;;  %v3057_v61 = vpop.f32.mrf.mxu0 }
 0x3f5   : > { %v14912_v61 = vld [vmem:[#allocation2 + $0x110] sm:$0xff] }
 0x3f7   : > { %1469 = vmatmul.bf16.gmra.mxu1 %v14910_v14  ;;  %3086 = vmatmul.bf16.gmra.mxu0 %v14414_v39 }
 0x3f8   : > { %1906 = vmatmul.bf16.gmra.mxu2 %v14910_v14  ;;  %2783 = vmatmul.bf16.gmra.mxu3 %v14414_v39  ;;  %v14503_v14 = vld [vmem:[%s15440_s12 + $0x188] sm:$0xff] }
 0x3f9   : > { %4267 = vmatpush.bf16.msra.mxu2 %v14503_v14 }
 0x3fb   : > { %v1875_v40 = vpop.f32.mrf.mxu2  ;;  %v2751_v59 = vpop.f32.mrf.mxu3 }
 0x3fc   : > { %v1441_v58 = vpop.f32.mrf.mxu1  ;;  %v3058_v24 = vpop.f32.mrf.mxu0  ;;  %v14511_v40 = vld [vmem:[%s15440_s12 + $0x1c8] sm:$0xff] }
 0x3fd   : > { %v14447_v59 = vld [vmem:[%s15440_s12 + $0x148] sm:$0xff]  ;;  %4581 = vmatpush.bf16.msra.mxu3 %v14511_v40 }
 0x3fe   : > { %3392 = vmatpush.bf16.msra.mxu1 %v14447_v59 }
 0x403   : > { %v1876_v27 = vpop.f32.mrf.mxu2  ;;  %v2752_v6 = vpop.f32.mrf.mxu3 }
 0x404   : > { %v1443_v9 = vpop.f32.mrf.mxu1  ;;  %v3060_v60 = vpop.f32.mrf.mxu0 }
 0x405   : > { %v1585_v63 = vrot.slane %v1443_v9, 1  ;;  %v3201_v45 = vrot.slane %v3060_v60, 1 }
 0x407   : > { %1472 = vmatmul.bf16.gmra.mxu1 %v14911_v3  ;;  %3089 = vmatmul.bf16.gmra.mxu0 %v14415_v12  ;;  %v1681_v30 = vadd.f32 %v1585_v63, %v15748_v36  ;;  %v14416_v36 = vld [vmem:[#allocation2 + $0x128] sm:$0xff] }
 0x408   : > { %1910 = vmatmul.bf16.gmra.mxu2 %v14911_v3  ;;  %2786 = vmatmul.bf16.gmra.mxu3 %v14415_v12 }
 0x40b   : > { %v1878_v35 = vpop.f32.mrf.mxu2  ;;  %v2755_v22 = vpop.f32.mrf.mxu3 }
 0x40c   : > { %v2060_v20 = vrot.slane %v1878_v35, 2  ;;  %v1445_v19 = vpop.f32.mrf.mxu1  ;;  %v3062_v53 = vpop.f32.mrf.mxu0  ;;  %v14519_v35 = vld [vmem:[%s15440_s12 + $0x208] sm:$0xff] }
 0x40d   : > { %v1586_v52 = vrot.slane %v1445_v19, 1  ;;  %v3202_v57 = vrot.slane %v3062_v53, 1  ;;  %5007 = vmatpush.bf16.msra.mxu0 %v14519_v35  ;;  %v14417_v19 = vld [vmem:[#allocation2 + $0x130] sm:$0xff]  ;;  %v14419_v35 = vld [vmem:[#allocation2 + $0x140] sm:$0xff] }
 0x40e   : > { %v2172_v15 = vadd.f32 %v2060_v20, %v1681_v30 }
 0x40f   : > { %v1587_v10 = vsel %vm1560_vm0, %v1585_v63, %v1586_v52  ;;  %v3203_v26 = vsel %vm1560_vm0, %v3201_v45, %v3202_v57  ;;  %v1683_v60 = vadd.f32 %v1586_v52, %v15771_v55 }
 0x410   : > { %v2871_v23 = vadd.f32 %v2752_v6, %v2172_v15  ;;  %v1682_v62 = vadd.f32 %v1587_v10, %v15763_v49  ;;  %v14913_v10 = vld [vmem:[#allocation2 + $0x118] sm:$0xff] }
 0x412   : > { %v16038_v37 = vadd.f32 %v3201_v45, %v2871_v23 }
 0x413   : > { %v1880_v47 = vpop.f32.mrf.mxu2  ;;  %v2757_v34 = vpop.f32.mrf.mxu3 }
 0x414   : > { %v2061_v32 = vrot.slane %v1880_v47, 2  ;;  %v1448_v11 = vpop.f32.mrf.mxu1  ;;  %v3065_v2 = vpop.f32.mrf.mxu0 }
 0x415   : > { %v14914_v2 = vld [vmem:[#allocation2 + $0x120] sm:$0xff] }
 0x416   : > { %v2062_v39 = vsel %vm2019_vm1, %v2060_v20, %v2061_v32 }
 0x417   : > { %v2173_v21 = vadd.f32 %v2062_v39, %v1682_v62  ;;  %1475 = vmatmul.bf16.gmra.mxu1 %v14912_v61  ;;  %3092 = vmatmul.bf16.gmra.mxu0 %v14416_v36 }
 0x418   : > { %1913 = vmatmul.bf16.gmra.mxu2 %v14912_v61  ;;  %2790 = vmatmul.bf16.gmra.mxu3 %v14416_v36 }
 0x419   : > { %v2872_v58 = vadd.f32 %v2755_v22, %v2173_v21 }
 0x41b   : > { %v1883_v24 = vpop.f32.mrf.mxu2  ;;  %v2760_v27 = vpop.f32.mrf.mxu3  ;;  %v16045_v6 = vadd.f32 %v3203_v26, %v2872_v58 }
 0x41c   : > { %v2063_v49 = vrot.slane %v1883_v24, 2  ;;  %v1449_v12 = vpop.f32.mrf.mxu1  ;;  %v3066_v9 = vpop.f32.mrf.mxu0 }
 0x41e   : > { %v2064_v3 = vsel %vm2019_vm1, %v2061_v32, %v2063_v49 }
 0x41f   : > { %v2174_v63 = vadd.f32 %v2064_v3, %v1683_v60 }
 0x421   : > { %v2873_v30 = vadd.f32 %v2757_v34, %v2174_v63  ;;  %v14418_v34 = vld [vmem:[#allocation2 + $0x138] sm:$0xff] }
 0x423   : > { %v1885_v20 = vpop.f32.mrf.mxu2  ;;  %v2761_v22 = vpop.f32.mrf.mxu3  ;;  %v16050_v53 = vadd.f32 %v3202_v57, %v2873_v30 }
 0x424   : > { %v1451_v45 = vpop.f32.mrf.mxu1  ;;  %v3068_v15 = vpop.f32.mrf.mxu0 }
 0x425   : > { %v14915_v15 = vld [vmem:[#allocation2 + $0x128] sm:$0xff] }
 0x427   : > { %1480 = vmatmul.bf16.gmra.mxu1 %v14913_v10  ;;  %3097 = vmatmul.bf16.gmra.mxu0 %v14417_v19 }
 0x428   : > { %1918 = vmatmul.bf16.gmra.mxu2 %v14913_v10  ;;  %2795 = vmatmul.bf16.gmra.mxu3 %v14417_v19 }
 0x42b   : > { %v1887_v26 = vpop.f32.mrf.mxu2  ;;  %v2763_v55 = vpop.f32.mrf.mxu3 }
 0x42c   : > { %v1452_v52 = vpop.f32.mrf.mxu1  ;;  %v3069_v23 = vpop.f32.mrf.mxu0 }
 0x433   : > { %v1888_v47 = vpop.f32.mrf.mxu2  ;;  %v2764_v36 = vpop.f32.mrf.mxu3 }
 0x434   : > { %v1454_v32 = vpop.f32.mrf.mxu1  ;;  %v3071_v11 = vpop.f32.mrf.mxu0 }
 0x435   : > { %v1588_v57 = vrot.slane %v1454_v32, 1  ;;  %v3204_v59 = vrot.slane %v3071_v11, 1 }
 0x437   : > { %1483 = vmatmul.bf16.gmra.mxu1 %v14914_v2  ;;  %3100 = vmatmul.bf16.gmra.mxu0 %v14418_v34  ;;  %v1684_v21 = vadd.f32 %v1588_v57, %v15795_v33 }
 0x438   : > { %1922 = vmatmul.bf16.gmra.mxu2 %v14914_v2  ;;  %2798 = vmatmul.bf16.gmra.mxu3 %v14418_v34 }
 0x43b   : > { %v1890_v62 = vpop.f32.mrf.mxu2  ;;  %v2767_v39 = vpop.f32.mrf.mxu3 }
 0x43c   : > { %v2065_v61 = vrot.slane %v1890_v62, 2  ;;  %v1456_v14 = vpop.f32.mrf.mxu1  ;;  %v3073_v40 = vpop.f32.mrf.mxu0  ;;  %v14420_v62 = vld [vmem:[#allocation2 + $0x148] sm:$0xff] }
 0x43d   : > { %v1589_v58 = vrot.slane %v1456_v14, 1  ;;  %v3205_v24 = vrot.slane %v3073_v40, 1  ;;  %v14916_v14 = vld [vmem:[#allocation2 + $0x130] sm:$0xff] }
 0x43e   : > { %v2175_v27 = vadd.f32 %v2065_v61, %v1684_v21 }
 0x43f   : > { %v1590_v49 = vsel %vm1560_vm0, %v1588_v57, %v1589_v58  ;;  %v3206_v12 = vsel %vm1560_vm0, %v3204_v59, %v3205_v24  ;;  %v1686_v34 = vadd.f32 %v1589_v58, %v15813_v0 }
 0x440   : > { %v2874_v9 = vadd.f32 %v2764_v36, %v2175_v27  ;;  %v1685_v22 = vadd.f32 %v1590_v49, %v15805_v48 }
 0x442   : > { %v16055_v60 = vadd.f32 %v3204_v59, %v2874_v9 }
 0x443   : > { %v1892_v3 = vpop.f32.mrf.mxu2  ;;  %v2769_v63 = vpop.f32.mrf.mxu3 }
 0x444   : > { %v2066_v30 = vrot.slane %v1892_v3, 2  ;;  %v1459_v20 = vpop.f32.mrf.mxu1  ;;  %v3076_v33 = vpop.f32.mrf.mxu0 }
 0x445   : > { %v18179_v20 = vld [vmem:[#allocation21_spill] sm:$0xff] }
 0x446   : > { %v2067_v19 = vsel %vm2019_vm1, %v2065_v61, %v2066_v30 }
 0x447   : > { %v2176_v45 = vadd.f32 %v2067_v19, %v1685_v22  ;;  %1486 = vmatmul.bf16.gmra.mxu1 %v14915_v15  ;;  %3103 = vmatmul.bf16.gmra.mxu0 %v14419_v35 }
 0x448   : > { %1925 = vmatmul.bf16.gmra.mxu2 %v14915_v15  ;;  %2802 = vmatmul.bf16.gmra.mxu3 %v14419_v35 }
 0x449   : > { %v2875_v10 = vadd.f32 %v2767_v39, %v2176_v45 }
 0x44b   : > { %v1895_v26 = vpop.f32.mrf.mxu2  ;;  %v2772_v55 = vpop.f32.mrf.mxu3  ;;  %v16059_v52 = vadd.f32 %v3206_v12, %v2875_v10  ;;  %v14421_v12 = vld [vmem:[#allocation2 + $0x150] sm:$0xff] }
 0x44c   : > { %v2068_v23 = vrot.slane %v1895_v26, 2  ;;  %v1460_v47 = vpop.f32.mrf.mxu1  ;;  %v3077_v36 = vpop.f32.mrf.mxu0 }
 0x44e   : > { %v2069_v48 = vsel %vm2019_vm1, %v2066_v30, %v2068_v23 }
 0x44f   : > { %v2177_v32 = vadd.f32 %v2069_v48, %v1686_v34 }
 0x451   : > { %v2876_v11 = vadd.f32 %v2769_v63, %v2177_v32  ;;  %v14917_v63 = vld [vmem:[#allocation2 + $0x138] sm:$0xff] }
 0x453   : > { %v1897_v2 = vpop.f32.mrf.mxu2  ;;  %v2773_v57 = vpop.f32.mrf.mxu3  ;;  %v16063_v21 = vadd.f32 %v3205_v24, %v2876_v11  ;;  %v14422_v11 = vld [vmem:[#allocation2 + $0x158] sm:$0xff] }
 0x454   : > { %v1462_v61 = vpop.f32.mrf.mxu1  ;;  %v3079_v39 = vpop.f32.mrf.mxu0 }
 0x455   : > { %v18180_v61 = vld [vmem:[#allocation23_spill] sm:$0xff] }
 0x457   : > { %1491 = vmatmul.bf16.gmra.mxu1 %v14916_v14  ;;  %3108 = vmatmul.bf16.gmra.mxu0 %v14420_v62 }
 0x458   : > { %1930 = vmatmul.bf16.gmra.mxu2 %v14916_v14  ;;  %2807 = vmatmul.bf16.gmra.mxu3 %v14420_v62 }
 0x45b   : > { %v1899_v40 = vpop.f32.mrf.mxu2  ;;  %v2775_v59 = vpop.f32.mrf.mxu3 }
 0x45c   : > { %v1463_v27 = vpop.f32.mrf.mxu1  ;;  %v3080_v0 = vpop.f32.mrf.mxu0  ;;  %v14918_v59 = vld [vmem:[#allocation2 + $0x140] sm:$0xff] }
 0x45d   : > { %v14502_v27 = vld [vmem:[%s15440_s12 + $0x180] sm:$0xff] }
 0x45e   : > { %v14510_v0 = vld [vmem:[%s15440_s12 + $0x1c0] sm:$0xff]  ;;  %4268 = vmatpush.bf16.msra.mxu2 %v14502_v27 }
 0x45f   : > { %4582 = vmatpush.bf16.msra.mxu3 %v14510_v0 }
 0x463   : > { %v1900_v58 = vpop.f32.mrf.mxu2  ;;  %v2776_v49 = vpop.f32.mrf.mxu3 }
 0x464   : > { %v1465_v9 = vpop.f32.mrf.mxu1  ;;  %v3082_v3 = vpop.f32.mrf.mxu0  ;;  %v14446_v58 = vld [vmem:[%s15440_s12 + $0x140] sm:$0xff] }
 0x465   : > { %v1591_v24 = vrot.slane %v1465_v9, 1  ;;  %v3207_v15 = vrot.slane %v3082_v3, 1  ;;  %3393 = vmatpush.bf16.msra.mxu1 %v14446_v58  ;;  %v18182_v58 = vld [vmem:[#allocation27_spill] sm:$0xff] }
 0x467   : > { %1494 = vmatmul.bf16.gmra.mxu1 %v14917_v63  ;;  %3111 = vmatmul.bf16.gmra.mxu0 %v14421_v12  ;;  %v1687_v33 = vadd.f32 %v1591_v24, %v18179_v20  ;;  %v18181_v20 = vld [vmem:[#allocation25_spill] sm:$0xff] }
 0x468   : > { %1934 = vmatmul.bf16.gmra.mxu2 %v14917_v63  ;;  %2810 = vmatmul.bf16.gmra.mxu3 %v14421_v12 }
 0x46b   : > { %v1902_v35 = vpop.f32.mrf.mxu2  ;;  %v2779_v30 = vpop.f32.mrf.mxu3 }
 0x46c   : > { %v2070_v22 = vrot.slane %v1902_v35, 2  ;;  %v1467_v19 = vpop.f32.mrf.mxu1  ;;  %v3084_v45 = vpop.f32.mrf.mxu0 }
 0x46d   : > { %v1592_v10 = vrot.slane %v1467_v19, 1  ;;  %v3208_v26 = vrot.slane %v3084_v45, 1  ;;  %v14518_v45 = vld [vmem:[%s15440_s12 + $0x200] sm:$0xff] }
 0x46e   : > { %v2178_v55 = vadd.f32 %v2070_v22, %v1687_v33  ;;  %5008 = vmatpush.bf16.msra.mxu0 %v14518_v45 }
 0x46f   : > { %v1593_v23 = vsel %vm1560_vm0, %v1591_v24, %v1592_v10  ;;  %v3209_v47 = vsel %vm1560_vm0, %v3207_v15, %v3208_v26  ;;  %v1689_v33 = vadd.f32 %v1592_v10, %v18181_v20 }
 0x470   : > { %v2877_v36 = vadd.f32 %v2776_v49, %v2178_v55  ;;  %v1688_v39 = vadd.f32 %v1593_v23, %v18180_v61  ;;  %v14423_v23 = vld [vmem:[#allocation2 + $0x160] sm:$0xff] }
 0x472   : > { %v16068_v34 = vadd.f32 %v3207_v15, %v2877_v36 }
 0x473   : > { %v1904_v48 = vpop.f32.mrf.mxu2  ;;  %v2781_v32 = vpop.f32.mrf.mxu3 }
 0x474   : > { %v2071_v2 = vrot.slane %v1904_v48, 2  ;;  %v1470_v57 = vpop.f32.mrf.mxu1  ;;  %v3087_v62 = vpop.f32.mrf.mxu0 }
 0x476   : > { %v2072_v14 = vsel %vm2019_vm1, %v2070_v22, %v2071_v2 }
 0x477   : > { %v2179_v40 = vadd.f32 %v2072_v14, %v1688_v39  ;;  %1497 = vmatmul.bf16.gmra.mxu1 %v14918_v59  ;;  %3114 = vmatmul.bf16.gmra.mxu0 %v14422_v11 }
 0x478   : > { %1937 = vmatmul.bf16.gmra.mxu2 %v14918_v59  ;;  %2814 = vmatmul.bf16.gmra.mxu3 %v14422_v11  ;;  %v14920_v59 = vld [vmem:[#allocation2 + $0x150] sm:$0xff] }
 0x479   : > { %v2878_v49 = vadd.f32 %v2779_v30, %v2179_v40 }
 0x47b   : > { %v1907_v12 = vpop.f32.mrf.mxu2  ;;  %v2784_v9 = vpop.f32.mrf.mxu3  ;;  %v16075_v3 = vadd.f32 %v3209_v47, %v2878_v49  ;;  %v14919_v47 = vld [vmem:[#allocation2 + $0x148] sm:$0xff] }
 0x47c   : > { %v2073_v63 = vrot.slane %v1907_v12, 2  ;;  %v1471_v24 = vpop.f32.mrf.mxu1  ;;  %v3088_v35 = vpop.f32.mrf.mxu0 }
 0x47e   : > { %v2074_v22 = vsel %vm2019_vm1, %v2071_v2, %v2073_v63 }
 0x47f   : > { %v2180_v19 = vadd.f32 %v2074_v22, %v1689_v33 }
 0x481   : > { %v2879_v15 = vadd.f32 %v2781_v32, %v2180_v19  ;;  %v14424_v32 = vld [vmem:[#allocation2 + $0x168] sm:$0xff] }
 0x483   : > { %v1909_v55 = vpop.f32.mrf.mxu2  ;;  %v2785_v30 = vpop.f32.mrf.mxu3  ;;  %v16080_v36 = vadd.f32 %v3208_v26, %v2879_v15 }
 0x484   : > { %v1473_v48 = vpop.f32.mrf.mxu1  ;;  %v3090_v11 = vpop.f32.mrf.mxu0 }
 0x487   : > { %1502 = vmatmul.bf16.gmra.mxu1 %v14919_v47  ;;  %3119 = vmatmul.bf16.gmra.mxu0 %v14423_v23 }
 0x488   : > { %1942 = vmatmul.bf16.gmra.mxu2 %v14919_v47  ;;  %2819 = vmatmul.bf16.gmra.mxu3 %v14423_v23  ;;  %v14425_v23 = vld [vmem:[#allocation2 + $0x170] sm:$0xff] }
 0x48b   : > { %v1911_v57 = vpop.f32.mrf.mxu2  ;;  %v2787_v10 = vpop.f32.mrf.mxu3 }
 0x48c   : > { %v1474_v62 = vpop.f32.mrf.mxu1  ;;  %v3091_v2 = vpop.f32.mrf.mxu0  ;;  %v18183_v57 = vld [vmem:[#allocation29_spill] sm:$0xff] }
 0x493   : > { %v1912_v61 = vpop.f32.mrf.mxu2  ;;  %v2788_v39 = vpop.f32.mrf.mxu3 }
 0x494   : > { %v1476_v14 = vpop.f32.mrf.mxu1  ;;  %v3093_v40 = vpop.f32.mrf.mxu0  ;;  %v14921_v61 = vld [vmem:[#allocation2 + $0x158] sm:$0xff] }
 0x495   : > { %v1594_v26 = vrot.slane %v1476_v14, 1  ;;  %v3210_v24 = vrot.slane %v3093_v40, 1 }
 0x497   : > { %1505 = vmatmul.bf16.gmra.mxu1 %v14920_v59  ;;  %3122 = vmatmul.bf16.gmra.mxu0 %v14424_v32  ;;  %v1690_v49 = vadd.f32 %v1594_v26, %v18182_v58  ;;  %v18184_v58 = vld [vmem:[#allocation31_spill] sm:$0xff] }
 0x498   : > { %1946 = vmatmul.bf16.gmra.mxu2 %v14920_v59  ;;  %2822 = vmatmul.bf16.gmra.mxu3 %v14424_v32 }
 0x49b   : > { %v1914_v27 = vpop.f32.mrf.mxu2  ;;  %v2791_v0 = vpop.f32.mrf.mxu3 }
 0x49c   : > { %v2075_v12 = vrot.slane %v1914_v27, 2  ;;  %v1478_v9 = vpop.f32.mrf.mxu1  ;;  %v3095_v63 = vpop.f32.mrf.mxu0 }
 0x49d   : > { %v1595_v35 = vrot.slane %v1478_v9, 1  ;;  %v3211_v20 = vrot.slane %v3095_v63, 1 }
 0x49e   : > { %v2181_v33 = vadd.f32 %v2075_v12, %v1690_v49 }
 0x49f   : > { %v1596_v22 = vsel %vm1560_vm0, %v1594_v26, %v1595_v35  ;;  %v3212_v19 = vsel %vm1560_vm0, %v3210_v24, %v3211_v20  ;;  %v1692_v49 = vadd.f32 %v1595_v35, %v18184_v58 }
 0x4a0   : > { %v2880_v45 = vadd.f32 %v2788_v39, %v2181_v33  ;;  %v1691_v10 = vadd.f32 %v1596_v22, %v18183_v57  ;;  %v14426_v22 = vld [vmem:[#allocation2 + $0x178] sm:$0xff] }
 0x4a2   : > { %v16085_v15 = vadd.f32 %v3210_v24, %v2880_v45 }
 0x4a3   : > { %v1916_v55 = vpop.f32.mrf.mxu2  ;;  %v2793_v30 = vpop.f32.mrf.mxu3 }
 0x4a4   : > { %v2076_v48 = vrot.slane %v1916_v55, 2  ;;  %v1481_v11 = vpop.f32.mrf.mxu1  ;;  %v3098_v47 = vpop.f32.mrf.mxu0 }
 0x4a6   : > { %v2077_v62 = vsel %vm2019_vm1, %v2075_v12, %v2076_v48 }
 0x4a7   : > { %v2182_v2 = vadd.f32 %v2077_v62, %v1691_v10  ;;  %1508 = vmatmul.bf16.gmra.mxu1 %v14921_v61  ;;  %3125 = vmatmul.bf16.gmra.mxu0 %v14425_v23  ;;  %v14427_v10 = vld [vmem:[#allocation2 + $0x180] sm:$0xff] }
 0x4a8   : > { %1949 = vmatmul.bf16.gmra.mxu2 %v14921_v61  ;;  %2826 = vmatmul.bf16.gmra.mxu3 %v14425_v23  ;;  %v14922_v23 = vld [vmem:[#allocation2 + $0x160] sm:$0xff] }
 0x4a9   : > { %v2881_v32 = vadd.f32 %v2791_v0, %v2182_v2  ;;  %v14923_v2 = vld [vmem:[#allocation2 + $0x168] sm:$0xff] }
 0x4ab   : > { %v1919_v39 = vpop.f32.mrf.mxu2  ;;  %v2796_v14 = vpop.f32.mrf.mxu3  ;;  %v16089_v40 = vadd.f32 %v3212_v19, %v2881_v32 }
 0x4ac   : > { %v2078_v59 = vrot.slane %v1919_v39, 2  ;;  %v1482_v26 = vpop.f32.mrf.mxu1  ;;  %v3099_v27 = vpop.f32.mrf.mxu0  ;;  %v18185_v39 = vld [vmem:[#allocation15_spill] sm:$0xff] }
 0x4ae   : > { %v2079_v9 = vsel %vm2019_vm1, %v2076_v48, %v2078_v59 }
 0x4af   : > { %v2183_v63 = vadd.f32 %v2079_v9, %v1692_v49 }
 0x4b1   : > { %v2882_v12 = vadd.f32 %v2793_v30, %v2183_v63 }
 0x4b3   : > { %v1921_v24 = vpop.f32.mrf.mxu2  ;;  %v2797_v33 = vpop.f32.mrf.mxu3  ;;  %v16093_v45 = vadd.f32 %v3211_v20, %v2882_v12 }
 0x4b4   : > { %v1484_v55 = vpop.f32.mrf.mxu1  ;;  %v3101_v0 = vpop.f32.mrf.mxu0 }
 0x4b7   : > { %1513 = vmatmul.bf16.gmra.mxu1 %v14922_v23  ;;  %3130 = vmatmul.bf16.gmra.mxu0 %v14426_v22 }
 0x4b8   : > { %1954 = vmatmul.bf16.gmra.mxu2 %v14922_v23  ;;  %2831 = vmatmul.bf16.gmra.mxu3 %v14426_v22  ;;  %v14428_v23 = vld [vmem:[#allocation2 + $0x188] sm:$0xff] }
 0x4bb   : > { %v1923_v19 = vpop.f32.mrf.mxu2  ;;  %v2799_v11 = vpop.f32.mrf.mxu3 }
 0x4bc   : > { %v1485_v47 = vpop.f32.mrf.mxu1  ;;  %v3102_v35 = vpop.f32.mrf.mxu0 }
 0x4bd   : > { %v18186_v35 = vld [vmem:[#allocation16_spill] sm:$0xff] }
 0x4c3   : > { %v1924_v57 = vpop.f32.mrf.mxu2  ;;  %v2800_v48 = vpop.f32.mrf.mxu3 }
 0x4c4   : > { %v1487_v30 = vpop.f32.mrf.mxu1  ;;  %v3104_v62 = vpop.f32.mrf.mxu0 }
 0x4c5   : > { %v1597_v20 = vrot.slane %v1487_v30, 1  ;;  %v3213_v58 = vrot.slane %v3104_v62, 1  ;;  %v14924_v62 = vld [vmem:[#allocation2 + $0x170] sm:$0xff] }
 0x4c7   : > { %1516 = vmatmul.bf16.gmra.mxu1 %v14923_v2  ;;  %3133 = vmatmul.bf16.gmra.mxu0 %v14427_v10  ;;  %v1693_v14 = vadd.f32 %v1597_v20, %v18185_v39 }
 0x4c8   : > { %1958 = vmatmul.bf16.gmra.mxu2 %v14923_v2  ;;  %2834 = vmatmul.bf16.gmra.mxu3 %v14427_v10 }
 0x4cb   : > { %v1926_v61 = vpop.f32.mrf.mxu2  ;;  %v2803_v32 = vpop.f32.mrf.mxu3 }
 0x4cc   : > { %v2080_v59 = vrot.slane %v1926_v61, 2  ;;  %v1489_v26 = vpop.f32.mrf.mxu1  ;;  %v3106_v27 = vpop.f32.mrf.mxu0 }
 0x4cd   : > { %v1598_v49 = vrot.slane %v1489_v26, 1  ;;  %v3214_v9 = vrot.slane %v3106_v27, 1  ;;  %v18187_v27 = vld [vmem:[#allocation17_spill] sm:$0xff] }
 0x4ce   : > { %v2184_v63 = vadd.f32 %v2080_v59, %v1693_v14 }
 0x4cf   : > { %v1599_v12 = vsel %vm1560_vm0, %v1597_v20, %v1598_v49  ;;  %v3215_v24 = vsel %vm1560_vm0, %v3213_v58, %v3214_v9 }
 0x4d0   : > { %v2883_v33 = vadd.f32 %v2800_v48, %v2184_v63  ;;  %v1694_v57 = vadd.f32 %v1599_v12, %v18186_v35  ;;  %v14925_v35 = vld [vmem:[#allocation2 + $0x178] sm:$0xff] }
 0x4d2   : > { %v16098_v22 = vadd.f32 %v3213_v58, %v2883_v33  ;;  %v1695_v58 = vadd.f32 %v1598_v49, %v18187_v27 }
 0x4d3   : > { %v1928_v55 = vpop.f32.mrf.mxu2  ;;  %v2805_v0 = vpop.f32.mrf.mxu3 }
 0x4d4   : > { %v2081_v19 = vrot.slane %v1928_v55, 2  ;;  %v1492_v11 = vpop.f32.mrf.mxu1  ;;  %v3109_v47 = vpop.f32.mrf.mxu0 }
 0x4d5   : > { %v14429_v11 = vld [vmem:[#allocation2 + $0x190] sm:$0xff] }
 0x4d6   : > { %v2082_v10 = vsel %vm2019_vm1, %v2080_v59, %v2081_v19 }
 0x4d7   : > { %v2185_v30 = vadd.f32 %v2082_v10, %v1694_v57  ;;  %1519 = vmatmul.bf16.gmra.mxu1 %v14924_v62  ;;  %3136 = vmatmul.bf16.gmra.mxu0 %v14428_v23 }
 0x4d8   : > { %1961 = vmatmul.bf16.gmra.mxu2 %v14924_v62  ;;  %2838 = vmatmul.bf16.gmra.mxu3 %v14428_v23  ;;  %v14454_v62 = vld [vmem:[#allocation2 + $0x30] sm:$0xff] }
 0x4d9   : > { %v2884_v2 = vadd.f32 %v2803_v32, %v2185_v30 }
 0x4db   : > { %v1931_v48 = vpop.f32.mrf.mxu2  ;;  %v2808_v20 = vpop.f32.mrf.mxu3  ;;  %v16102_v61 = vadd.f32 %v3215_v24, %v2884_v2 }
 0x4dc   : > { %v2083_v39 = vrot.slane %v1931_v48, 2  ;;  %v1493_v14 = vpop.f32.mrf.mxu1  ;;  %v3110_v26 = vpop.f32.mrf.mxu0  ;;  %v14926_v48 = vld [vmem:[#allocation2 + $0x18] sm:$0xff] }
 0x4dd   : > { %v18188_v14 = vld [vmem:[#allocation18_spill] sm:$0xff] }
 0x4de   : > { %v2084_v63 = vsel %vm2019_vm1, %v2081_v19, %v2083_v39 }
 0x4df   : > { %v2186_v12 = vadd.f32 %v2084_v63, %v1695_v58 }
 0x4e1   : > { %v2885_v59 = vadd.f32 %v2805_v0, %v2186_v12 }
 0x4e3   : > { %v1933_v33 = vpop.f32.mrf.mxu2  ;;  %v2809_v55 = vpop.f32.mrf.mxu3  ;;  %v16106_v47 = vadd.f32 %v3214_v9, %v2885_v59 }
 0x4e4   : > { %v1495_v23 = vpop.f32.mrf.mxu1  ;;  %v3112_v32 = vpop.f32.mrf.mxu0 }
 0x4e7   : > { %1524 = vmatmul.bf16.gmra.mxu1 %v14925_v35  ;;  %3141 = vmatmul.bf16.gmra.mxu0 %v14429_v11 }
 0x4e8   : > { %1966 = vmatmul.bf16.gmra.mxu2 %v14925_v35  ;;  %2843 = vmatmul.bf16.gmra.mxu3 %v14429_v11 }
 0x4eb   : > { %v1935_v24 = vpop.f32.mrf.mxu2  ;;  %v2811_v57 = vpop.f32.mrf.mxu3 }
 0x4ec   : > { %v1496_v10 = vpop.f32.mrf.mxu1  ;;  %v3113_v49 = vpop.f32.mrf.mxu0 }
 0x4ed   : > { %v14455_v10 = vld [vmem:[#allocation2 + $0x38] sm:$0xff] }
 0x4f3   : > { %v1936_v30 = vpop.f32.mrf.mxu2  ;;  %v2812_v19 = vpop.f32.mrf.mxu3 }
 0x4f4   : > { %v1498_v0 = vpop.f32.mrf.mxu1  ;;  %v3115_v2 = vpop.f32.mrf.mxu0 }
 0x4f5   : > { %v1600_v9 = vrot.slane %v1498_v0, 1  ;;  %v3216_v12 = vrot.slane %v3115_v2, 1  ;;  %v18189_v0 = vld [vmem:[#allocation19_spill] sm:$0xff] }
 0x4f7   : > { %3394 = vmatmul.bf16.vlgmr.msra.gmra.mxu1 %v14926_v48  ;;  %5009 = vmatmul.bf16.vlgmr.msra.gmra.mxu0 %v14454_v62  ;;  %v1696_v26 = vadd.f32 %v1600_v9, %v18188_v14  ;;  %v14927_v14 = vld [vmem:[#allocation2 + $0x20] sm:$0xff] }
 0x4f8   : > { %4269 = vmatmul.bf16.vlgmr.msra.gmra.mxu2 %v14454_v62  ;;  %4583 = vmatmul.bf16.vlgmr.msra.gmra.mxu3 %v14454_v62 }
 0x4fb   : > { %v1938_v20 = vpop.f32.mrf.mxu2  ;;  %v2815_v39 = vpop.f32.mrf.mxu3 }
 0x4fc   : > { %v2085_v27 = vrot.slane %v1938_v20, 2  ;;  %v1500_v58 = vpop.f32.mrf.mxu1  ;;  %v3117_v63 = vpop.f32.mrf.mxu0 }
 0x4fd   : > { %v1601_v59 = vrot.slane %v1500_v58, 1  ;;  %v3217_v33 = vrot.slane %v3117_v63, 1 }
 0x4fe   : > { %v2187_v55 = vadd.f32 %v2085_v27, %v1696_v26 }
 0x4ff   : > { %v1602_v11 = vsel %vm1560_vm0, %v1600_v9, %v1601_v59  ;;  %v3218_v23 = vsel %vm1560_vm0, %v3216_v12, %v3217_v33 }
 0x500   : > { %v2886_v32 = vadd.f32 %v2812_v19, %v2187_v55  ;;  %v1697_v48 = vadd.f32 %v1602_v11, %v18189_v0 }
 0x502   : > { %v16111_v35 = vadd.f32 %v3216_v12, %v2886_v32  ;;  %v18190_v32 = vld [vmem:[#allocation20_spill] sm:$0xff] }
 0x503   : > { %v1940_v24 = vpop.f32.mrf.mxu2  ;;  %v2817_v57 = vpop.f32.mrf.mxu3 }
 0x504   : > { %v2086_v49 = vrot.slane %v1940_v24, 2  ;;  %v1503_v30 = vpop.f32.mrf.mxu1  ;;  %v3120_v62 = vpop.f32.mrf.mxu0  ;;  %v1698_v24 = vadd.f32 %v1601_v59, %v18190_v32 }
 0x506   : > { %v2087_v2 = vsel %vm2019_vm1, %v2085_v27, %v2086_v49 }
 0x507   : > { %v2188_v20 = vadd.f32 %v2087_v2, %v1697_v48  ;;  %3397 = vmatmul.bf16.gmra.mxu1 %v14927_v14  ;;  %5012 = vmatmul.bf16.gmra.mxu0 %v14455_v10  ;;  %v14456_v48 = vld [vmem:[#allocation2 + $0x40] sm:$0xff] }
 0x508   : > { %4273 = vmatmul.bf16.gmra.mxu2 %v14455_v10  ;;  %4586 = vmatmul.bf16.gmra.mxu3 %v14455_v10 }
 0x509   : > { %v2887_v9 = vadd.f32 %v2815_v39, %v2188_v20  ;;  %v14928_v20 = vld [vmem:[#allocation2 + $0x28] sm:$0xff] }
 0x50b   : > { %v1943_v19 = vpop.f32.mrf.mxu2  ;;  %v2820_v26 = vpop.f32.mrf.mxu3  ;;  %v16115_v58 = vadd.f32 %v3218_v23, %v2887_v9 }
 0x50c   : > { %v2088_v63 = vrot.slane %v1943_v19, 2  ;;  %v1504_v12 = vpop.f32.mrf.mxu1  ;;  %v3121_v55 = vpop.f32.mrf.mxu0  ;;  %v14457_v26 = vld [vmem:[#allocation2 + $0x48] sm:$0xff] }
 0x50d   : > { %v14929_v12 = vld [vmem:[#allocation2 + $0x30] sm:$0xff] }
 0x50e   : > { %v2089_v11 = vsel %vm2019_vm1, %v2086_v49, %v2088_v63 }
 0x50f   : > { %v2189_v30 = vadd.f32 %v2089_v11, %v1698_v24  ;;  %v18192_v24 = vld [vmem:[#allocation22_spill] sm:$0xff] }
 0x511   : > { %v2888_v27 = vadd.f32 %v2817_v57, %v2189_v30 }
 0x513   : > { %v1945_v62 = vpop.f32.mrf.mxu2  ;;  %v2821_v0 = vpop.f32.mrf.mxu3  ;;  %v16119_v2 = vadd.f32 %v3217_v33, %v2888_v27 }
 0x514   : > { %v1506_v10 = vpop.f32.mrf.mxu1  ;;  %v3123_v39 = vpop.f32.mrf.mxu0 }
 0x515   : > { %18191 = vst [vmem:[#allocation21_spill] sm:$0xff] %v16119_v2 }
 0x517   : > { %3402 = vmatmul.bf16.gmra.mxu1 %v14928_v20  ;;  %5017 = vmatmul.bf16.gmra.mxu0 %v14456_v48 }
 0x518   : > { %4278 = vmatmul.bf16.gmra.mxu2 %v14456_v48  ;;  %4591 = vmatmul.bf16.gmra.mxu3 %v14456_v48 }
 0x51b   : > { %v1947_v23 = vpop.f32.mrf.mxu2  ;;  %v2823_v14 = vpop.f32.mrf.mxu3 }
 0x51c   : > { %v1507_v9 = vpop.f32.mrf.mxu1  ;;  %v3124_v59 = vpop.f32.mrf.mxu0 }
 0x523   : > { %v1948_v19 = vpop.f32.mrf.mxu2  ;;  %v2824_v49 = vpop.f32.mrf.mxu3 }
 0x524   : > { %v1509_v57 = vpop.f32.mrf.mxu1  ;;  %v3126_v63 = vpop.f32.mrf.mxu0 }
 0x525   : > { %v1603_v33 = vrot.slane %v1509_v57, 1  ;;  %v3219_v0 = vrot.slane %v3126_v63, 1 }
 0x527   : > { %3406 = vmatmul.bf16.gmra.mxu1 %v14929_v12  ;;  %5021 = vmatmul.bf16.gmra.mxu0 %v14457_v26  ;;  %v1699_v11 = vadd.f32 %v1603_v33, %v18192_v24 }
 0x528   : > { %4281 = vmatmul.bf16.gmra.mxu2 %v14457_v26  ;;  %4594 = vmatmul.bf16.gmra.mxu3 %v14457_v26  ;;  %v14458_v26 = vld [vmem:[#allocation2 + $0x50] sm:$0xff] }
 0x52b   : > { %v1950_v55 = vpop.f32.mrf.mxu2  ;;  %v2827_v32 = vpop.f32.mrf.mxu3 }
 0x52c   : > { %v2090_v30 = vrot.slane %v1950_v55, 2  ;;  %v1511_v27 = vpop.f32.mrf.mxu1  ;;  %v3128_v62 = vpop.f32.mrf.mxu0  ;;  %v18194_v55 = vld [vmem:[#allocation24_spill] sm:$0xff] }
 0x52d   : > { %v1604_v48 = vrot.slane %v1511_v27, 1  ;;  %v3220_v10 = vrot.slane %v3128_v62, 1  ;;  %v14930_v62 = vld [vmem:[#allocation2 + $0x38] sm:$0xff] }
 0x52e   : > { %v2190_v39 = vadd.f32 %v2090_v30, %v1699_v11 }
 0x52f   : > { %v1605_v20 = vsel %vm1560_vm0, %v1603_v33, %v1604_v48  ;;  %v3221_v23 = vsel %vm1560_vm0, %v3219_v0, %v3220_v10 }
 0x530   : > { %v2889_v14 = vadd.f32 %v2824_v49, %v2190_v39  ;;  %v1700_v2 = vadd.f32 %v1605_v20, %v18194_v55 }
 0x532   : > { %v16124_v9 = vadd.f32 %v3219_v0, %v2889_v14 }
 0x533   : > { %v1952_v59 = vpop.f32.mrf.mxu2  ;;  %v2829_v19 = vpop.f32.mrf.mxu3 }
 0x534   : > { %18193 = vst [vmem:[#allocation23_spill] sm:$0xff] %v16124_v9  ;;  %v2091_v57 = vrot.slane %v1952_v59, 2  ;;  %v1514_v12 = vpop.f32.mrf.mxu1  ;;  %v3131_v24 = vpop.f32.mrf.mxu0 }
 0x535   : > { %v18196_v12 = vld [vmem:[#allocation26_spill] sm:$0xff] }
 0x536   : > { %v2092_v63 = vsel %vm2019_vm1, %v2090_v30, %v2091_v57  ;;  %v1701_v24 = vadd.f32 %v1604_v48, %v18196_v12 }
 0x537   : > { %v2191_v27 = vadd.f32 %v2092_v63, %v1700_v2  ;;  %3409 = vmatmul.bf16.gmra.mxu1 %v14930_v62  ;;  %5024 = vmatmul.bf16.gmra.mxu0 %v14458_v26  ;;  %v14459_v62 = vld [vmem:[#allocation2 + $0x58] sm:$0xff] }
 0x538   : > { %4285 = vmatmul.bf16.gmra.mxu2 %v14458_v26  ;;  %4597 = vmatmul.bf16.gmra.mxu3 %v14458_v26 }
 0x539   : > { %v2890_v33 = vadd.f32 %v2827_v32, %v2191_v27  ;;  %v14931_v27 = vld [vmem:[#allocation2 + $0x40] sm:$0xff] }
 0x53b   : > { %v1955_v49 = vpop.f32.mrf.mxu2  ;;  %v2832_v11 = vpop.f32.mrf.mxu3  ;;  %v16128_v0 = vadd.f32 %v3221_v23, %v2890_v33 }
 0x53c   : > { %v2093_v39 = vrot.slane %v1955_v49, 2  ;;  %v1515_v14 = vpop.f32.mrf.mxu1  ;;  %v3132_v59 = vpop.f32.mrf.mxu0 }
 0x53d   : > { %18195 = vst [vmem:[#allocation25_spill] sm:$0xff] %v16128_v0  ;;  %v14932_v59 = vld [vmem:[#allocation2 + $0x48] sm:$0xff] }
 0x53e   : > { %v2094_v20 = vsel %vm2019_vm1, %v2091_v57, %v2093_v39  ;;  %v14460_v39 = vld [vmem:[#allocation2 + $0x60] sm:$0xff] }
 0x53f   : > { %v2192_v55 = vadd.f32 %v2094_v20, %v1701_v24  ;;  %v18198_v20 = vld [vmem:[#allocation28_spill] sm:$0xff] }
 0x541   : > { %v2891_v30 = vadd.f32 %v2829_v19, %v2192_v55 }
 0x543   : > { %v1957_v2 = vpop.f32.mrf.mxu2  ;;  %v2833_v63 = vpop.f32.mrf.mxu3  ;;  %v16132_v9 = vadd.f32 %v3220_v10, %v2891_v30 }
 0x544   : > { %v1517_v26 = vpop.f32.mrf.mxu1  ;;  %v3134_v32 = vpop.f32.mrf.mxu0 }
 0x545   : > { %18197 = vst [vmem:[#allocation27_spill] sm:$0xff] %v16132_v9 }
 0x547   : > { %3414 = vmatmul.bf16.gmra.mxu1 %v14931_v27  ;;  %5029 = vmatmul.bf16.gmra.mxu0 %v14459_v62 }
 0x548   : > { %4290 = vmatmul.bf16.gmra.mxu2 %v14459_v62  ;;  %4602 = vmatmul.bf16.gmra.mxu3 %v14459_v62 }
 0x54b   : > { %v1959_v23 = vpop.f32.mrf.mxu2  ;;  %v2835_v33 = vpop.f32.mrf.mxu3 }
 0x54c   : > { %v1518_v49 = vpop.f32.mrf.mxu1  ;;  %v3135_v48 = vpop.f32.mrf.mxu0 }
 0x553   : > { %v1960_v11 = vpop.f32.mrf.mxu2  ;;  %v2836_v57 = vpop.f32.mrf.mxu3 }
 0x554   : > { %v1520_v19 = vpop.f32.mrf.mxu1  ;;  %v3137_v14 = vpop.f32.mrf.mxu0 }
 0x555   : > { %v1606_v10 = vrot.slane %v1520_v19, 1  ;;  %v3222_v62 = vrot.slane %v3137_v14, 1  ;;  %v14461_v19 = vld [vmem:[#allocation2 + $0x68] sm:$0xff] }
 0x557   : > { %3418 = vmatmul.bf16.gmra.mxu1 %v14932_v59  ;;  %5033 = vmatmul.bf16.gmra.mxu0 %v14460_v39  ;;  %v1702_v55 = vadd.f32 %v1606_v10, %v18198_v20 }
 0x558   : > { %4293 = vmatmul.bf16.gmra.mxu2 %v14460_v39  ;;  %4605 = vmatmul.bf16.gmra.mxu3 %v14460_v39 }
 0x55b   : > { %v1962_v12 = vpop.f32.mrf.mxu2  ;;  %v2839_v24 = vpop.f32.mrf.mxu3 }
 0x55c   : > { %v2095_v30 = vrot.slane %v1962_v12, 2  ;;  %v1522_v2 = vpop.f32.mrf.mxu1  ;;  %v3139_v63 = vpop.f32.mrf.mxu0  ;;  %v18200_v12 = vld [vmem:[#allocation30_spill] sm:$0xff] }
 0x55d   : > { %v1607_v26 = vrot.slane %v1522_v2, 1  ;;  %v3223_v32 = vrot.slane %v3139_v63, 1  ;;  %v14933_v63 = vld [vmem:[#allocation2 + $0x50] sm:$0xff] }
 0x55e   : > { %v2193_v27 = vadd.f32 %v2095_v30, %v1702_v55 }
 0x55f   : > { %v1608_v23 = vsel %vm1560_vm0, %v1606_v10, %v1607_v26  ;;  %v3224_v33 = vsel %vm1560_vm0, %v3222_v62, %v3223_v32 }
 0x560   : > { %v2892_v49 = vadd.f32 %v2836_v57, %v2193_v27  ;;  %v1703_v0 = vadd.f32 %v1608_v23, %v18200_v12 }
 0x562   : > { %v16137_v48 = vadd.f32 %v3222_v62, %v2892_v49 }
 0x563   : > { %v1964_v11 = vpop.f32.mrf.mxu2  ;;  %v2841_v39 = vpop.f32.mrf.mxu3 }
 0x564   : > { %18199 = vst [vmem:[#allocation29_spill] sm:$0xff] %v16137_v48  ;;  %v2096_v59 = vrot.slane %v1964_v11, 2  ;;  %v1525_v9 = vpop.f32.mrf.mxu1  ;;  %v3142_v20 = vpop.f32.mrf.mxu0 }
 0x565   : > { %v18202_v9 = vld [vmem:[#allocation32_spill] sm:$0xff] }
 0x566   : > { %v2097_v14 = vsel %vm2019_vm1, %v2095_v30, %v2096_v59  ;;  %v1704_v20 = vadd.f32 %v1607_v26, %v18202_v9  ;;  %v18204_v9 = vld [vmem:[#allocation33_spill] sm:$0xff] }
 0x567   : > { %v2194_v2 = vadd.f32 %v2097_v14, %v1703_v0  ;;  %3421 = vmatmul.bf16.gmra.mxu1 %v14933_v63  ;;  %5036 = vmatmul.bf16.gmra.mxu0 %v14461_v19  ;;  %v14462_v63 = vld [vmem:[#allocation2 + $0x70] sm:$0xff] }
 0x568   : > { %4297 = vmatmul.bf16.gmra.mxu2 %v14461_v19  ;;  %4608 = vmatmul.bf16.gmra.mxu3 %v14461_v19 }
 0x569   : > { %v2893_v10 = vadd.f32 %v2839_v24, %v2194_v2  ;;  %v14934_v2 = vld [vmem:[#allocation2 + $0x58] sm:$0xff] }
 0x56b   : > { %v1967_v57 = vpop.f32.mrf.mxu2  ;;  %v2844_v55 = vpop.f32.mrf.mxu3  ;;  %v16141_v62 = vadd.f32 %v3224_v33, %v2893_v10 }
 0x56c   : > { %v2098_v27 = vrot.slane %v1967_v57, 2  ;;  %v1526_v49 = vpop.f32.mrf.mxu1  ;;  %v3143_v11 = vpop.f32.mrf.mxu0 }
 0x56d   : > { %18201 = vst [vmem:[#allocation31_spill] sm:$0xff] %v16141_v62 }
 0x56e   : > { %v2099_v23 = vsel %vm2019_vm1, %v2096_v59, %v2098_v27  ;;  %v14463_v27 = vld [vmem:[#allocation2 + $0x78] sm:$0xff] }
 0x56f   : > { %v2195_v12 = vadd.f32 %v2099_v23, %v1704_v20  ;;  %v14935_v20 = vld [vmem:[#allocation2 + $0x60] sm:$0xff] }
 0x571   : > { %v2894_v30 = vadd.f32 %v2841_v39, %v2195_v12 }
 0x573   : > { %v1969_v0 = vpop.f32.mrf.mxu2  ;;  %v2845_v14 = vpop.f32.mrf.mxu3  ;;  %v16145_v48 = vadd.f32 %v3223_v32, %v2894_v30 }
 0x574   : > { %v3395_v19 = vpop.f32.mrf.mxu1  ;;  %v5010_v24 = vpop.f32.mrf.mxu0 }
 0x575   : > { %18203 = vst [vmem:[#allocation15_spill] sm:$0xff] %v16145_v48 }
 0x577   : > { %3426 = vmatmul.bf16.gmra.mxu1 %v14934_v2  ;;  %5041 = vmatmul.bf16.gmra.mxu0 %v14462_v63 }
 0x578   : > { %4302 = vmatmul.bf16.gmra.mxu2 %v14462_v63  ;;  %4613 = vmatmul.bf16.gmra.mxu3 %v14462_v63 }
 0x57b   : > { %v4270_v33 = vpop.f32.mrf.mxu2  ;;  %v4584_v10 = vpop.f32.mrf.mxu3 }
 0x57c   : > { %v3396_v57 = vpop.f32.mrf.mxu1  ;;  %v5011_v26 = vpop.f32.mrf.mxu0  ;;  %v16149_v10 = vld [vmem:[%s15458_s5] ss:$0 sm:$0xff] }
 0x583   : > { %v4271_v55 = vpop.f32.mrf.mxu2  ;;  %v4585_v59 = vpop.f32.mrf.mxu3 }
 0x584   : > { %v3398_v39 = vpop.f32.mrf.mxu1  ;;  %v5013_v49 = vpop.f32.mrf.mxu0 }
 0x585   : > { %v3635_v11 = vrot.slane %v3398_v39, 2  ;;  %v5250_v19 = vrot.slane %v5013_v49, 2 }
 0x587   : > { %v3763_v32 = vadd.f32 %v3635_v11, %v18204_v9  ;;  %3430 = vmatmul.bf16.gmra.mxu1 %v14935_v20  ;;  %5045 = vmatmul.bf16.gmra.mxu0 %v14463_v27  ;;  %v14464_v20 = vld [vmem:[#allocation2 + $0x80] sm:$0xff] }
 0x588   : > { %4305 = vmatmul.bf16.gmra.mxu2 %v14463_v27  ;;  %4616 = vmatmul.bf16.gmra.mxu3 %v14463_v27 }
 0x589   : > { %v4462_v23 = vadd.f32 %v4271_v55, %v3763_v32 }
 0x58b   : > { %v4274_v12 = vpop.f32.mrf.mxu2  ;;  %v4587_v30 = vpop.f32.mrf.mxu3 }
 0x58c   : > { %v4792_v0 = vrot.slane %v4587_v30, 1  ;;  %v3400_v14 = vpop.f32.mrf.mxu1  ;;  %v5015_v63 = vpop.f32.mrf.mxu0 }
 0x58d   : > { %v3636_v24 = vrot.slane %v3400_v14, 2  ;;  %v5251_v2 = vrot.slane %v5015_v63, 2 }
 0x58e   : > { %v4888_v33 = vadd.f32 %v4792_v0, %v4462_v23 }
 0x58f   : > { %v3637_v57 = vsel %vm2019_vm1, %v3635_v11, %v3636_v24  ;;  %v5252_v26 = vsel %vm2019_vm1, %v5250_v19, %v5251_v2 }
 0x590   : > { %v5378_v59 = vadd.f32 %v5250_v19, %v4888_v33  ;;  %v3764_v39 = vadd.f32 %v3637_v57, %v15899_v42  ;;  %v14936_v42 = vld [vmem:[#allocation2 + $0x68] sm:$0xff] }
 0x592   : > { %v16155_v55 = vadd.f32 %v16149_v10, %v5378_v59  ;;  %v4463_v27 = vadd.f32 %v4274_v12, %v3764_v39 }
 0x593   : > { %v4276_v9 = vpop.f32.mrf.mxu2  ;;  %v4589_v32 = vpop.f32.mrf.mxu3 }
 0x594   : > { %v4793_v49 = vrot.slane %v4589_v32, 1  ;;  %v3403_v30 = vpop.f32.mrf.mxu1  ;;  %v5018_v14 = vpop.f32.mrf.mxu0 }
 0x595   : > { %v3638_v23 = vrot.slane %v3403_v30, 2  ;;  %v5253_v63 = vrot.slane %v5018_v14, 2 }
 0x596   : > { %v4794_v48 = vsel %vm1560_vm0, %v4792_v0, %v4793_v49 }
 0x597   : > { %v4889_v11 = vadd.f32 %v4794_v48, %v4463_v27  ;;  %v3639_v62 = vsel %vm2019_vm1, %v3636_v24, %v3638_v23  ;;  %v5254_v19 = vsel %vm2019_vm1, %v5251_v2, %v5253_v63  ;;  %3433 = vmatmul.bf16.gmra.mxu1 %v14936_v42  ;;  %5048 = vmatmul.bf16.gmra.mxu0 %v14464_v20  ;;  %v14465_v23 = vld [vmem:[#allocation2 + $0x88] sm:$0xff] }
 0x598   : > { %v3765_v12 = vadd.f32 %v3639_v62, %v15904_v8  ;;  %4309 = vmatmul.bf16.gmra.mxu2 %v14464_v20  ;;  %4619 = vmatmul.bf16.gmra.mxu3 %v14464_v20  ;;  %v14937_v20 = vld [vmem:[#allocation2 + $0x70] sm:$0xff] }
 0x599   : > { %v5379_v33 = vadd.f32 %v5252_v26, %v4889_v11 }
 0x59a   : > { %v4464_v57 = vadd.f32 %v4276_v9, %v3765_v12 }
 0x59b   : > { %v16162_v59 = vadd.f32 %v16149_v10, %v5379_v33  ;;  %v4279_v39 = vpop.f32.mrf.mxu2  ;;  %v4592_v32 = vpop.f32.mrf.mxu3 }
 0x59c   : > { %v4890_v0 = vadd.f32 %v4793_v49, %v4464_v57  ;;  %v3405_v48 = vpop.f32.mrf.mxu1  ;;  %v5020_v27 = vpop.f32.mrf.mxu0  ;;  %v14938_v32 = vld [vmem:[#allocation2 + $0x78] sm:$0xff] }
 0x59e   : > { %v5380_v24 = vadd.f32 %v5254_v19, %v4890_v0  ;;  %v14466_v19 = vld [vmem:[#allocation2 + $0x90] sm:$0xff] }
 0x5a0   : > { %v16165_v2 = vadd.f32 %v16149_v10, %v5380_v24 }
 0x5a3   : > { %v4280_v30 = vpop.f32.mrf.mxu2  ;;  %v4593_v14 = vpop.f32.mrf.mxu3 }
 0x5a4   : > { %v3407_v8 = vpop.f32.mrf.mxu1  ;;  %v5022_v62 = vpop.f32.mrf.mxu0 }
 0x5a7   : > { %3438 = vmatmul.bf16.gmra.mxu1 %v14937_v20  ;;  %5053 = vmatmul.bf16.gmra.mxu0 %v14465_v23 }
 0x5a8   : > { %4314 = vmatmul.bf16.gmra.mxu2 %v14465_v23  ;;  %4624 = vmatmul.bf16.gmra.mxu3 %v14465_v23 }
 0x5ab   : > { %v4282_v26 = vpop.f32.mrf.mxu2  ;;  %v4595_v9 = vpop.f32.mrf.mxu3 }
 0x5ac   : > { %v3408_v63 = vpop.f32.mrf.mxu1  ;;  %v5023_v49 = vpop.f32.mrf.mxu0 }
 0x5b3   : > { %v4283_v11 = vpop.f32.mrf.mxu2  ;;  %v4596_v42 = vpop.f32.mrf.mxu3 }
 0x5b4   : > { %v3410_v12 = vpop.f32.mrf.mxu1  ;;  %v5025_v33 = vpop.f32.mrf.mxu0 }
 0x5b5   : > { %v3640_v57 = vrot.slane %v3410_v12, 2  ;;  %v5255_v23 = vrot.slane %v5025_v33, 2  ;;  %v14467_v12 = vld [vmem:[#allocation2 + $0x98] sm:$0xff] }
 0x5b7   : > { %v3766_v39 = vadd.f32 %v3640_v57, %v15913_v51  ;;  %3442 = vmatmul.bf16.gmra.mxu1 %v14938_v32  ;;  %5057 = vmatmul.bf16.gmra.mxu0 %v14466_v19 }
 0x5b8   : > { %4317 = vmatmul.bf16.gmra.mxu2 %v14466_v19  ;;  %4627 = vmatmul.bf16.gmra.mxu3 %v14466_v19 }
 0x5b9   : > { %v4465_v0 = vadd.f32 %v4283_v11, %v3766_v39 }
 0x5bb   : > { %v4286_v48 = vpop.f32.mrf.mxu2  ;;  %v4598_v27 = vpop.f32.mrf.mxu3 }
 0x5bc   : > { %v4795_v24 = vrot.slane %v4598_v27, 1  ;;  %v3412_v30 = vpop.f32.mrf.mxu1  ;;  %v5027_v14 = vpop.f32.mrf.mxu0 }
 0x5bd   : > { %v3641_v8 = vrot.slane %v3412_v30, 2  ;;  %v5256_v62 = vrot.slane %v5027_v14, 2 }
 0x5be   : > { %v4891_v20 = vadd.f32 %v4795_v24, %v4465_v0 }
 0x5bf   : > { %v3642_v26 = vsel %vm2019_vm1, %v3640_v57, %v3641_v8  ;;  %v5257_v9 = vsel %vm2019_vm1, %v5255_v23, %v5256_v62 }
 0x5c0   : > { %v5381_v51 = vadd.f32 %v5255_v23, %v4891_v20  ;;  %v3767_v63 = vadd.f32 %v3642_v26, %v15919_v17  ;;  %v14939_v17 = vld [vmem:[#allocation2 + $0x80] sm:$0xff] }
 0x5c2   : > { %v16172_v49 = vadd.f32 %v16149_v10, %v5381_v51  ;;  %v4466_v11 = vadd.f32 %v4286_v48, %v3767_v63 }
 0x5c3   : > { %v4288_v42 = vpop.f32.mrf.mxu2  ;;  %v4600_v19 = vpop.f32.mrf.mxu3 }
 0x5c4   : > { %v4796_v39 = vrot.slane %v4600_v19, 1  ;;  %v3415_v32 = vpop.f32.mrf.mxu1  ;;  %v5030_v33 = vpop.f32.mrf.mxu0 }
 0x5c5   : > { %v3643_v27 = vrot.slane %v3415_v32, 2  ;;  %v5258_v30 = vrot.slane %v5030_v33, 2 }
 0x5c6   : > { %v4797_v0 = vsel %vm1560_vm0, %v4795_v24, %v4796_v39 }
 0x5c7   : > { %v4892_v57 = vadd.f32 %v4797_v0, %v4466_v11  ;;  %v3644_v14 = vsel %vm2019_vm1, %v3641_v8, %v3643_v27  ;;  %v5259_v23 = vsel %vm2019_vm1, %v5256_v62, %v5258_v30  ;;  %3445 = vmatmul.bf16.gmra.mxu1 %v14939_v17  ;;  %5060 = vmatmul.bf16.gmra.mxu0 %v14467_v12  ;;  %v14468_v30 = vld [vmem:[#allocation2 + $0xa0] sm:$0xff] }
 0x5c8   : > { %v3768_v48 = vadd.f32 %v3644_v14, %v15923_v29  ;;  %4321 = vmatmul.bf16.gmra.mxu2 %v14467_v12  ;;  %4630 = vmatmul.bf16.gmra.mxu3 %v14467_v12  ;;  %v14940_v12 = vld [vmem:[#allocation2 + $0x88] sm:$0xff] }
 0x5c9   : > { %v5382_v20 = vadd.f32 %v5257_v9, %v4892_v57 }
 0x5ca   : > { %v4467_v26 = vadd.f32 %v4288_v42, %v3768_v48 }
 0x5cb   : > { %v16179_v51 = vadd.f32 %v16149_v10, %v5382_v20  ;;  %v4291_v63 = vpop.f32.mrf.mxu2  ;;  %v4603_v19 = vpop.f32.mrf.mxu3 }
 0x5cc   : > { %v4893_v24 = vadd.f32 %v4796_v39, %v4467_v26  ;;  %v3417_v11 = vpop.f32.mrf.mxu1  ;;  %v5032_v32 = vpop.f32.mrf.mxu0  ;;  %v14941_v19 = vld [vmem:[#allocation2 + $0x90] sm:$0xff] }
 0x5ce   : > { %v5383_v8 = vadd.f32 %v5259_v23, %v4893_v24  ;;  %v14469_v23 = vld [vmem:[#allocation2 + $0xa8] sm:$0xff] }
 0x5d0   : > { %v16182_v62 = vadd.f32 %v16149_v10, %v5383_v8 }
 0x5d3   : > { %v4292_v33 = vpop.f32.mrf.mxu2  ;;  %v4604_v27 = vpop.f32.mrf.mxu3 }
 0x5d4   : > { %v3419_v29 = vpop.f32.mrf.mxu1  ;;  %v5034_v0 = vpop.f32.mrf.mxu0 }
 0x5d7   : > { %3450 = vmatmul.bf16.gmra.mxu1 %v14940_v12  ;;  %5065 = vmatmul.bf16.gmra.mxu0 %v14468_v30 }
 0x5d8   : > { %4326 = vmatmul.bf16.gmra.mxu2 %v14468_v30  ;;  %4635 = vmatmul.bf16.gmra.mxu3 %v14468_v30 }
 0x5db   : > { %v4294_v9 = vpop.f32.mrf.mxu2  ;;  %v4606_v42 = vpop.f32.mrf.mxu3 }
 0x5dc   : > { %v3420_v57 = vpop.f32.mrf.mxu1  ;;  %v5035_v39 = vpop.f32.mrf.mxu0 }
 0x5e3   : > { %v4295_v14 = vpop.f32.mrf.mxu2  ;;  %v4607_v17 = vpop.f32.mrf.mxu3 }
 0x5e4   : > { %v3422_v48 = vpop.f32.mrf.mxu1  ;;  %v5037_v20 = vpop.f32.mrf.mxu0 }
 0x5e5   : > { %v3645_v26 = vrot.slane %v3422_v48, 2  ;;  %v5260_v30 = vrot.slane %v5037_v20, 2  ;;  %v14470_v48 = vld [vmem:[#allocation2 + $0xb0] sm:$0xff] }
 0x5e7   : > { %v3769_v63 = vadd.f32 %v3645_v26, %v15932_v54  ;;  %3454 = vmatmul.bf16.gmra.mxu1 %v14941_v19  ;;  %5069 = vmatmul.bf16.gmra.mxu0 %v14469_v23 }
 0x5e8   : > { %4329 = vmatmul.bf16.gmra.mxu2 %v14469_v23  ;;  %4638 = vmatmul.bf16.gmra.mxu3 %v14469_v23 }
 0x5e9   : > { %v4468_v24 = vadd.f32 %v4295_v14, %v3769_v63 }
 0x5eb   : > { %v4298_v11 = vpop.f32.mrf.mxu2  ;;  %v4609_v32 = vpop.f32.mrf.mxu3 }
 0x5ec   : > { %v4798_v8 = vrot.slane %v4609_v32, 1  ;;  %v3424_v33 = vpop.f32.mrf.mxu1  ;;  %v5039_v27 = vpop.f32.mrf.mxu0 }
 0x5ed   : > { %v3646_v29 = vrot.slane %v3424_v33, 2  ;;  %v5261_v0 = vrot.slane %v5039_v27, 2 }
 0x5ee   : > { %v4894_v12 = vadd.f32 %v4798_v8, %v4468_v24 }
 0x5ef   : > { %v3647_v9 = vsel %vm2019_vm1, %v3645_v26, %v3646_v29  ;;  %v5262_v42 = vsel %vm2019_vm1, %v5260_v30, %v5261_v0 }
 0x5f0   : > { %v5384_v54 = vadd.f32 %v5260_v30, %v4894_v12  ;;  %v3770_v57 = vadd.f32 %v3647_v9, %v15941_v5  ;;  %v14942_v5 = vld [vmem:[#allocation2 + $0x98] sm:$0xff] }
 0x5f2   : > { %v16189_v39 = vadd.f32 %v16149_v10, %v5384_v54  ;;  %v4469_v14 = vadd.f32 %v4298_v11, %v3770_v57 }
 0x5f3   : > { %v4300_v17 = vpop.f32.mrf.mxu2  ;;  %v4611_v23 = vpop.f32.mrf.mxu3 }
 0x5f4   : > { %v4799_v63 = vrot.slane %v4611_v23, 1  ;;  %v3427_v19 = vpop.f32.mrf.mxu1  ;;  %v5042_v20 = vpop.f32.mrf.mxu0 }
 0x5f5   : > { %v3648_v32 = vrot.slane %v3427_v19, 2  ;;  %v5263_v33 = vrot.slane %v5042_v20, 2 }
 0x5f6   : > { %v4800_v24 = vsel %vm1560_vm0, %v4798_v8, %v4799_v63 }
 0x5f7   : > { %v4895_v26 = vadd.f32 %v4800_v24, %v4469_v14  ;;  %v3649_v27 = vsel %vm2019_vm1, %v3646_v29, %v3648_v32  ;;  %v5264_v30 = vsel %vm2019_vm1, %v5261_v0, %v5263_v33  ;;  %3457 = vmatmul.bf16.gmra.mxu1 %v14942_v5  ;;  %5072 = vmatmul.bf16.gmra.mxu0 %v14470_v48  ;;  %v14471_v33 = vld [vmem:[#allocation2 + $0xb8] sm:$0xff] }
 0x5f8   : > { %v3771_v11 = vadd.f32 %v3649_v27, %v15946_v25  ;;  %4333 = vmatmul.bf16.gmra.mxu2 %v14470_v48  ;;  %4641 = vmatmul.bf16.gmra.mxu3 %v14470_v48  ;;  %v14943_v48 = vld [vmem:[#allocation2 + $0xa0] sm:$0xff] }
 0x5f9   : > { %v5385_v12 = vadd.f32 %v5262_v42, %v4895_v26 }
 0x5fa   : > { %v4470_v9 = vadd.f32 %v4300_v17, %v3771_v11 }
 0x5fb   : > { %v16196_v54 = vadd.f32 %v16149_v10, %v5385_v12  ;;  %v4303_v57 = vpop.f32.mrf.mxu2  ;;  %v4614_v23 = vpop.f32.mrf.mxu3 }
 0x5fc   : > { %v4896_v8 = vadd.f32 %v4799_v63, %v4470_v9  ;;  %v3429_v14 = vpop.f32.mrf.mxu1  ;;  %v5044_v19 = vpop.f32.mrf.mxu0  ;;  %v14944_v23 = vld [vmem:[#allocation2 + $0xa8] sm:$0xff] }
 0x5fe   : > { %v5386_v29 = vadd.f32 %v5264_v30, %v4896_v8  ;;  %v14472_v30 = vld [vmem:[#allocation2 + $0xc0] sm:$0xff] }
 0x600   : > { %v16199_v0 = vadd.f32 %v16149_v10, %v5386_v29 }
 0x603   : > { %v4304_v20 = vpop.f32.mrf.mxu2  ;;  %v4615_v32 = vpop.f32.mrf.mxu3 }
 0x604   : > { %v3431_v25 = vpop.f32.mrf.mxu1  ;;  %v5046_v24 = vpop.f32.mrf.mxu0 }
 0x607   : > { %3462 = vmatmul.bf16.gmra.mxu1 %v14943_v48  ;;  %5077 = vmatmul.bf16.gmra.mxu0 %v14471_v33 }
 0x608   : > { %4338 = vmatmul.bf16.gmra.mxu2 %v14471_v33  ;;  %4646 = vmatmul.bf16.gmra.mxu3 %v14471_v33 }
 0x60b   : > { %v4306_v42 = vpop.f32.mrf.mxu2  ;;  %v4617_v17 = vpop.f32.mrf.mxu3 }
 0x60c   : > { %v3432_v26 = vpop.f32.mrf.mxu1  ;;  %v5047_v63 = vpop.f32.mrf.mxu0 }
 0x613   : > { %v4307_v27 = vpop.f32.mrf.mxu2  ;;  %v4618_v5 = vpop.f32.mrf.mxu3 }
 0x614   : > { %v3434_v11 = vpop.f32.mrf.mxu1  ;;  %v5049_v12 = vpop.f32.mrf.mxu0 }
 0x615   : > { %v3650_v9 = vrot.slane %v3434_v11, 2  ;;  %v5265_v33 = vrot.slane %v5049_v12, 2  ;;  %v14473_v11 = vld [vmem:[#allocation2 + $0xc8] sm:$0xff] }
 0x617   : > { %v3772_v57 = vadd.f32 %v3650_v9, %v15955_v50  ;;  %3466 = vmatmul.bf16.gmra.mxu1 %v14944_v23  ;;  %5081 = vmatmul.bf16.gmra.mxu0 %v14472_v30 }
 0x618   : > { %4341 = vmatmul.bf16.gmra.mxu2 %v14472_v30  ;;  %4649 = vmatmul.bf16.gmra.mxu3 %v14472_v30 }
 0x619   : > { %v4471_v8 = vadd.f32 %v4307_v27, %v3772_v57 }
 0x61b   : > { %v4310_v14 = vpop.f32.mrf.mxu2  ;;  %v4620_v19 = vpop.f32.mrf.mxu3 }
 0x61c   : > { %v4801_v29 = vrot.slane %v4620_v19, 1  ;;  %v3436_v20 = vpop.f32.mrf.mxu1  ;;  %v5051_v32 = vpop.f32.mrf.mxu0 }
 0x61d   : > { %v3651_v25 = vrot.slane %v3436_v20, 2  ;;  %v5266_v24 = vrot.slane %v5051_v32, 2 }
 0x61e   : > { %v4897_v48 = vadd.f32 %v4801_v29, %v4471_v8 }
 0x61f   : > { %v3652_v42 = vsel %vm2019_vm1, %v3650_v9, %v3651_v25  ;;  %v5267_v17 = vsel %vm2019_vm1, %v5265_v33, %v5266_v24 }
 0x620   : > { %v5387_v50 = vadd.f32 %v5265_v33, %v4897_v48  ;;  %v3773_v26 = vadd.f32 %v3652_v42, %v15961_v38  ;;  %v14945_v38 = vld [vmem:[#allocation2 + $0xb0] sm:$0xff] }
 0x622   : > { %v16206_v63 = vadd.f32 %v16149_v10, %v5387_v50  ;;  %v4472_v27 = vadd.f32 %v4310_v14, %v3773_v26 }
 0x623   : > { %v4312_v5 = vpop.f32.mrf.mxu2  ;;  %v4622_v30 = vpop.f32.mrf.mxu3 }
 0x624   : > { %v4802_v57 = vrot.slane %v4622_v30, 1  ;;  %v3439_v23 = vpop.f32.mrf.mxu1  ;;  %v5054_v12 = vpop.f32.mrf.mxu0 }
 0x625   : > { %v3653_v19 = vrot.slane %v3439_v23, 2  ;;  %v5268_v20 = vrot.slane %v5054_v12, 2 }
 0x626   : > { %v4803_v8 = vsel %vm1560_vm0, %v4801_v29, %v4802_v57 }
 0x627   : > { %v4898_v9 = vadd.f32 %v4803_v8, %v4472_v27  ;;  %v3654_v32 = vsel %vm2019_vm1, %v3651_v25, %v3653_v19  ;;  %v5269_v33 = vsel %vm2019_vm1, %v5266_v24, %v5268_v20  ;;  %3469 = vmatmul.bf16.gmra.mxu1 %v14945_v38  ;;  %5084 = vmatmul.bf16.gmra.mxu0 %v14473_v11  ;;  %v14474_v20 = vld [vmem:[#allocation2 + $0xd0] sm:$0xff] }
 0x628   : > { %v3774_v14 = vadd.f32 %v3654_v32, %v15965_v46  ;;  %4345 = vmatmul.bf16.gmra.mxu2 %v14473_v11  ;;  %4652 = vmatmul.bf16.gmra.mxu3 %v14473_v11  ;;  %v14946_v11 = vld [vmem:[#allocation2 + $0xb8] sm:$0xff] }
 0x629   : > { %v5388_v48 = vadd.f32 %v5267_v17, %v4898_v9 }
 0x62a   : > { %v4473_v42 = vadd.f32 %v4312_v5, %v3774_v14 }
 0x62b   : > { %v16213_v50 = vadd.f32 %v16149_v10, %v5388_v48  ;;  %v4315_v26 = vpop.f32.mrf.mxu2  ;;  %v4625_v30 = vpop.f32.mrf.mxu3 }
 0x62c   : > { %v4899_v29 = vadd.f32 %v4802_v57, %v4473_v42  ;;  %v3441_v27 = vpop.f32.mrf.mxu1  ;;  %v5056_v23 = vpop.f32.mrf.mxu0  ;;  %v14947_v30 = vld [vmem:[#allocation2 + $0xc0] sm:$0xff] }
 0x62e   : > { %v5389_v25 = vadd.f32 %v5269_v33, %v4899_v29  ;;  %v14475_v33 = vld [vmem:[#allocation2 + $0xd8] sm:$0xff] }
 0x630   : > { %v16216_v24 = vadd.f32 %v16149_v10, %v5389_v25 }
 0x633   : > { %v4316_v12 = vpop.f32.mrf.mxu2  ;;  %v4626_v19 = vpop.f32.mrf.mxu3 }
 0x634   : > { %v3443_v46 = vpop.f32.mrf.mxu1  ;;  %v5058_v8 = vpop.f32.mrf.mxu0 }
 0x637   : > { %3474 = vmatmul.bf16.gmra.mxu1 %v14946_v11  ;;  %5089 = vmatmul.bf16.gmra.mxu0 %v14474_v20 }
 0x638   : > { %4350 = vmatmul.bf16.gmra.mxu2 %v14474_v20  ;;  %4657 = vmatmul.bf16.gmra.mxu3 %v14474_v20 }
 0x63b   : > { %v4318_v17 = vpop.f32.mrf.mxu2  ;;  %v4628_v5 = vpop.f32.mrf.mxu3 }
 0x63c   : > { %v3444_v9 = vpop.f32.mrf.mxu1  ;;  %v5059_v57 = vpop.f32.mrf.mxu0 }
 0x643   : > { %v4319_v32 = vpop.f32.mrf.mxu2  ;;  %v4629_v38 = vpop.f32.mrf.mxu3 }
 0x644   : > { %v3446_v14 = vpop.f32.mrf.mxu1  ;;  %v5061_v48 = vpop.f32.mrf.mxu0 }
 0x645   : > { %v3655_v42 = vrot.slane %v3446_v14, 2  ;;  %v5270_v20 = vrot.slane %v5061_v48, 2  ;;  %v14476_v14 = vld [vmem:[#allocation2 + $0xe0] sm:$0xff] }
 0x647   : > { %v3775_v26 = vadd.f32 %v3655_v42, %v15974_v41  ;;  %3478 = vmatmul.bf16.gmra.mxu1 %v14947_v30  ;;  %5093 = vmatmul.bf16.gmra.mxu0 %v14475_v33 }
 0x648   : > { %4353 = vmatmul.bf16.gmra.mxu2 %v14475_v33  ;;  %4660 = vmatmul.bf16.gmra.mxu3 %v14475_v33 }
 0x649   : > { %v4474_v29 = vadd.f32 %v4319_v32, %v3775_v26 }
 0x64b   : > { %v4322_v27 = vpop.f32.mrf.mxu2  ;;  %v4631_v23 = vpop.f32.mrf.mxu3 }
 0x64c   : > { %v4804_v25 = vrot.slane %v4631_v23, 1  ;;  %v3448_v12 = vpop.f32.mrf.mxu1  ;;  %v5063_v19 = vpop.f32.mrf.mxu0 }
 0x64d   : > { %v3656_v46 = vrot.slane %v3448_v12, 2  ;;  %v5271_v8 = vrot.slane %v5063_v19, 2 }
 0x64e   : > { %v4900_v11 = vadd.f32 %v4804_v25, %v4474_v29 }
 0x64f   : > { %v3657_v17 = vsel %vm2019_vm1, %v3655_v42, %v3656_v46  ;;  %v5272_v5 = vsel %vm2019_vm1, %v5270_v20, %v5271_v8 }
 0x650   : > { %v5390_v41 = vadd.f32 %v5270_v20, %v4900_v11  ;;  %v3776_v9 = vadd.f32 %v3657_v17, %v15983_v43  ;;  %v14948_v43 = vld [vmem:[#allocation2 + $0xc8] sm:$0xff] }
 0x652   : > { %v16223_v57 = vadd.f32 %v16149_v10, %v5390_v41  ;;  %v4475_v32 = vadd.f32 %v4322_v27, %v3776_v9 }
 0x653   : > { %v4324_v38 = vpop.f32.mrf.mxu2  ;;  %v4633_v33 = vpop.f32.mrf.mxu3 }
 0x654   : > { %v4805_v26 = vrot.slane %v4633_v33, 1  ;;  %v3451_v30 = vpop.f32.mrf.mxu1  ;;  %v5066_v48 = vpop.f32.mrf.mxu0 }
 0x655   : > { %v3658_v23 = vrot.slane %v3451_v30, 2  ;;  %v5273_v12 = vrot.slane %v5066_v48, 2 }
 0x656   : > { %v4806_v29 = vsel %vm1560_vm0, %v4804_v25, %v4805_v26 }
 0x657   : > { %v4901_v42 = vadd.f32 %v4806_v29, %v4475_v32  ;;  %v3659_v19 = vsel %vm2019_vm1, %v3656_v46, %v3658_v23  ;;  %v5274_v20 = vsel %vm2019_vm1, %v5271_v8, %v5273_v12  ;;  %3481 = vmatmul.bf16.gmra.mxu1 %v14948_v43  ;;  %5096 = vmatmul.bf16.gmra.mxu0 %v14476_v14  ;;  %v14477_v12 = vld [vmem:[#allocation2 + $0xe8] sm:$0xff] }
 0x658   : > { %v3777_v27 = vadd.f32 %v3659_v19, %v15988_v7  ;;  %4357 = vmatmul.bf16.gmra.mxu2 %v14476_v14  ;;  %4663 = vmatmul.bf16.gmra.mxu3 %v14476_v14  ;;  %v14949_v14 = vld [vmem:[#allocation2 + $0xd0] sm:$0xff] }
 0x659   : > { %v5391_v11 = vadd.f32 %v5272_v5, %v4901_v42 }
 0x65a   : > { %v4476_v17 = vadd.f32 %v4324_v38, %v3777_v27 }
 0x65b   : > { %v16230_v41 = vadd.f32 %v16149_v10, %v5391_v11  ;;  %v4327_v9 = vpop.f32.mrf.mxu2  ;;  %v4636_v33 = vpop.f32.mrf.mxu3 }
 0x65c   : > { %v4902_v25 = vadd.f32 %v4805_v26, %v4476_v17  ;;  %v3453_v32 = vpop.f32.mrf.mxu1  ;;  %v5068_v30 = vpop.f32.mrf.mxu0  ;;  %v14950_v33 = vld [vmem:[#allocation2 + $0xd8] sm:$0xff] }
 0x65e   : > { %v5392_v46 = vadd.f32 %v5274_v20, %v4902_v25  ;;  %v14478_v20 = vld [vmem:[#allocation2 + $0xf0] sm:$0xff] }
 0x660   : > { %v16233_v8 = vadd.f32 %v16149_v10, %v5392_v46 }
 0x663   : > { %v4328_v48 = vpop.f32.mrf.mxu2  ;;  %v4637_v23 = vpop.f32.mrf.mxu3 }
 0x664   : > { %v3455_v7 = vpop.f32.mrf.mxu1  ;;  %v5070_v29 = vpop.f32.mrf.mxu0 }
 0x667   : > { %3486 = vmatmul.bf16.gmra.mxu1 %v14949_v14  ;;  %5101 = vmatmul.bf16.gmra.mxu0 %v14477_v12 }
 0x668   : > { %4362 = vmatmul.bf16.gmra.mxu2 %v14477_v12  ;;  %4668 = vmatmul.bf16.gmra.mxu3 %v14477_v12 }
 0x66b   : > { %v4330_v5 = vpop.f32.mrf.mxu2  ;;  %v4639_v38 = vpop.f32.mrf.mxu3 }
 0x66c   : > { %v3456_v42 = vpop.f32.mrf.mxu1  ;;  %v5071_v26 = vpop.f32.mrf.mxu0 }
 0x673   : > { %v4331_v19 = vpop.f32.mrf.mxu2  ;;  %v4640_v43 = vpop.f32.mrf.mxu3 }
 0x674   : > { %v3458_v27 = vpop.f32.mrf.mxu1  ;;  %v5073_v11 = vpop.f32.mrf.mxu0 }
 0x675   : > { %v3660_v17 = vrot.slane %v3458_v27, 2  ;;  %v5275_v12 = vrot.slane %v5073_v11, 2  ;;  %v14479_v27 = vld [vmem:[#allocation2 + $0xf8] sm:$0xff] }
 0x677   : > { %v3778_v9 = vadd.f32 %v3660_v17, %v15995_v28  ;;  %3490 = vmatmul.bf16.gmra.mxu1 %v14950_v33  ;;  %5105 = vmatmul.bf16.gmra.mxu0 %v14478_v20 }
 0x678   : > { %4365 = vmatmul.bf16.gmra.mxu2 %v14478_v20  ;;  %4671 = vmatmul.bf16.gmra.mxu3 %v14478_v20 }
 0x679   : > { %v4477_v25 = vadd.f32 %v4331_v19, %v3778_v9 }
 0x67b   : > { %v4334_v32 = vpop.f32.mrf.mxu2  ;;  %v4642_v30 = vpop.f32.mrf.mxu3 }
 0x67c   : > { %v4807_v46 = vrot.slane %v4642_v30, 1  ;;  %v3460_v48 = vpop.f32.mrf.mxu1  ;;  %v5075_v23 = vpop.f32.mrf.mxu0 }
 0x67d   : > { %v3661_v7 = vrot.slane %v3460_v48, 2  ;;  %v5276_v29 = vrot.slane %v5075_v23, 2 }
 0x67e   : > { %v4903_v14 = vadd.f32 %v4807_v46, %v4477_v25 }
 0x67f   : > { %v3662_v5 = vsel %vm2019_vm1, %v3660_v17, %v3661_v7  ;;  %v5277_v38 = vsel %vm2019_vm1, %v5275_v12, %v5276_v29 }
 0x680   : > { %v5393_v28 = vadd.f32 %v5275_v12, %v4903_v14  ;;  %v3779_v42 = vadd.f32 %v3662_v5, %v15999_v4  ;;  %v14951_v4 = vld [vmem:[#allocation2 + $0xe0] sm:$0xff] }
 0x682   : > { %v16240_v26 = vadd.f32 %v16149_v10, %v5393_v28  ;;  %v4478_v19 = vadd.f32 %v4334_v32, %v3779_v42 }
 0x683   : > { %v4336_v43 = vpop.f32.mrf.mxu2  ;;  %v4644_v20 = vpop.f32.mrf.mxu3 }
 0x684   : > { %v4808_v9 = vrot.slane %v4644_v20, 1  ;;  %v3463_v33 = vpop.f32.mrf.mxu1  ;;  %v5078_v11 = vpop.f32.mrf.mxu0 }
 0x685   : > { %v3663_v30 = vrot.slane %v3463_v33, 2  ;;  %v5278_v48 = vrot.slane %v5078_v11, 2 }
 0x686   : > { %v4809_v25 = vsel %vm1560_vm0, %v4807_v46, %v4808_v9 }
 0x687   : > { %v4904_v17 = vadd.f32 %v4809_v25, %v4478_v19  ;;  %v3664_v23 = vsel %vm2019_vm1, %v3661_v7, %v3663_v30  ;;  %v5279_v12 = vsel %vm2019_vm1, %v5276_v29, %v5278_v48  ;;  %3493 = vmatmul.bf16.gmra.mxu1 %v14951_v4  ;;  %5108 = vmatmul.bf16.gmra.mxu0 %v14479_v27  ;;  %v14480_v48 = vld [vmem:[#allocation2 + $0x100] sm:$0xff] }
 0x688   : > { %v3780_v32 = vadd.f32 %v3664_v23, %v16003_v18  ;;  %4369 = vmatmul.bf16.gmra.mxu2 %v14479_v27  ;;  %4674 = vmatmul.bf16.gmra.mxu3 %v14479_v27  ;;  %v14952_v27 = vld [vmem:[#allocation2 + $0xe8] sm:$0xff] }
 0x689   : > { %v5394_v14 = vadd.f32 %v5277_v38, %v4904_v17 }
 0x68a   : > { %v4479_v5 = vadd.f32 %v4336_v43, %v3780_v32 }
 0x68b   : > { %v16247_v28 = vadd.f32 %v16149_v10, %v5394_v14  ;;  %v4339_v42 = vpop.f32.mrf.mxu2  ;;  %v4647_v20 = vpop.f32.mrf.mxu3 }
 0x68c   : > { %v4905_v46 = vadd.f32 %v4808_v9, %v4479_v5  ;;  %v3465_v19 = vpop.f32.mrf.mxu1  ;;  %v5080_v33 = vpop.f32.mrf.mxu0  ;;  %v14953_v20 = vld [vmem:[#allocation2 + $0xf0] sm:$0xff] }
 0x68e   : > { %v5395_v7 = vadd.f32 %v5279_v12, %v4905_v46  ;;  %v14481_v12 = vld [vmem:[#allocation2 + $0x108] sm:$0xff] }
 0x690   : > { %v16250_v29 = vadd.f32 %v16149_v10, %v5395_v7 }
 0x693   : > { %v4340_v11 = vpop.f32.mrf.mxu2  ;;  %v4648_v30 = vpop.f32.mrf.mxu3 }
 0x694   : > { %v3467_v18 = vpop.f32.mrf.mxu1  ;;  %v5082_v25 = vpop.f32.mrf.mxu0 }
 0x697   : > { %3498 = vmatmul.bf16.gmra.mxu1 %v14952_v27  ;;  %5113 = vmatmul.bf16.gmra.mxu0 %v14480_v48 }
 0x698   : > { %4374 = vmatmul.bf16.gmra.mxu2 %v14480_v48  ;;  %4679 = vmatmul.bf16.gmra.mxu3 %v14480_v48 }
 0x69b   : > { %v4342_v38 = vpop.f32.mrf.mxu2  ;;  %v4650_v43 = vpop.f32.mrf.mxu3 }
 0x69c   : > { %v3468_v17 = vpop.f32.mrf.mxu1  ;;  %v5083_v9 = vpop.f32.mrf.mxu0 }
 0x6a3   : > { %v4343_v23 = vpop.f32.mrf.mxu2  ;;  %v4651_v4 = vpop.f32.mrf.mxu3 }
 0x6a4   : > { %v3470_v32 = vpop.f32.mrf.mxu1  ;;  %v5085_v14 = vpop.f32.mrf.mxu0 }
 0x6a5   : > { %v3665_v5 = vrot.slane %v3470_v32, 2  ;;  %v5280_v48 = vrot.slane %v5085_v14, 2  ;;  %v14482_v32 = vld [vmem:[#allocation2 + $0x110] sm:$0xff] }
 0x6a7   : > { %v3781_v42 = vadd.f32 %v3665_v5, %v16008_v44  ;;  %3502 = vmatmul.bf16.gmra.mxu1 %v14953_v20  ;;  %5117 = vmatmul.bf16.gmra.mxu0 %v14481_v12 }
 0x6a8   : > { %4377 = vmatmul.bf16.gmra.mxu2 %v14481_v12  ;;  %4682 = vmatmul.bf16.gmra.mxu3 %v14481_v12 }
 0x6a9   : > { %v4480_v46 = vadd.f32 %v4343_v23, %v3781_v42 }
 0x6ab   : > { %v4346_v19 = vpop.f32.mrf.mxu2  ;;  %v4653_v33 = vpop.f32.mrf.mxu3 }
 0x6ac   : > { %v4810_v7 = vrot.slane %v4653_v33, 1  ;;  %v3472_v11 = vpop.f32.mrf.mxu1  ;;  %v5087_v30 = vpop.f32.mrf.mxu0 }
 0x6ad   : > { %v3666_v18 = vrot.slane %v3472_v11, 2  ;;  %v5281_v25 = vrot.slane %v5087_v30, 2 }
 0x6ae   : > { %v4906_v27 = vadd.f32 %v4810_v7, %v4480_v46 }
 0x6af   : > { %v3667_v38 = vsel %vm2019_vm1, %v3665_v5, %v3666_v18  ;;  %v5282_v43 = vsel %vm2019_vm1, %v5280_v48, %v5281_v25 }
 0x6b0   : > { %v5396_v44 = vadd.f32 %v5280_v48, %v4906_v27  ;;  %v3782_v17 = vadd.f32 %v3667_v38, %v16015_v56  ;;  %v14954_v56 = vld [vmem:[#allocation2 + $0xf8] sm:$0xff] }
 0x6b2   : > { %v16257_v9 = vadd.f32 %v16149_v10, %v5396_v44  ;;  %v4481_v23 = vadd.f32 %v4346_v19, %v3782_v17 }
 0x6b3   : > { %v4348_v4 = vpop.f32.mrf.mxu2  ;;  %v4655_v12 = vpop.f32.mrf.mxu3 }
 0x6b4   : > { %v4811_v42 = vrot.slane %v4655_v12, 1  ;;  %v3475_v20 = vpop.f32.mrf.mxu1  ;;  %v5090_v14 = vpop.f32.mrf.mxu0 }
 0x6b5   : > { %v3668_v33 = vrot.slane %v3475_v20, 2  ;;  %v5283_v11 = vrot.slane %v5090_v14, 2 }
 0x6b6   : > { %v4812_v46 = vsel %vm1560_vm0, %v4810_v7, %v4811_v42 }
 0x6b7   : > { %v4907_v5 = vadd.f32 %v4812_v46, %v4481_v23  ;;  %v3669_v30 = vsel %vm2019_vm1, %v3666_v18, %v3668_v33  ;;  %v5284_v48 = vsel %vm2019_vm1, %v5281_v25, %v5283_v11  ;;  %3505 = vmatmul.bf16.gmra.mxu1 %v14954_v56  ;;  %5120 = vmatmul.bf16.gmra.mxu0 %v14482_v32  ;;  %v14483_v11 = vld [vmem:[#allocation2 + $0x118] sm:$0xff] }
 0x6b8   : > { %v3783_v19 = vadd.f32 %v3669_v30, %v16020_v16  ;;  %4381 = vmatmul.bf16.gmra.mxu2 %v14482_v32  ;;  %4685 = vmatmul.bf16.gmra.mxu3 %v14482_v32  ;;  %v14955_v32 = vld [vmem:[#allocation2 + $0x100] sm:$0xff] }
 0x6b9   : > { %v5397_v27 = vadd.f32 %v5282_v43, %v4907_v5 }
 0x6ba   : > { %v4482_v38 = vadd.f32 %v4348_v4, %v3783_v19 }
 0x6bb   : > { %v16264_v44 = vadd.f32 %v16149_v10, %v5397_v27  ;;  %v4351_v17 = vpop.f32.mrf.mxu2  ;;  %v4658_v12 = vpop.f32.mrf.mxu3 }
 0x6bc   : > { %v4908_v7 = vadd.f32 %v4811_v42, %v4482_v38  ;;  %v3477_v23 = vpop.f32.mrf.mxu1  ;;  %v5092_v20 = vpop.f32.mrf.mxu0  ;;  %v14956_v12 = vld [vmem:[#allocation2 + $0x108] sm:$0xff] }
 0x6be   : > { %v5398_v18 = vadd.f32 %v5284_v48, %v4908_v7  ;;  %v14484_v48 = vld [vmem:[#allocation2 + $0x120] sm:$0xff] }
 0x6c0   : > { %v16267_v25 = vadd.f32 %v16149_v10, %v5398_v18 }
 0x6c3   : > { %v4352_v14 = vpop.f32.mrf.mxu2  ;;  %v4659_v33 = vpop.f32.mrf.mxu3 }
 0x6c4   : > { %v3479_v16 = vpop.f32.mrf.mxu1  ;;  %v5094_v46 = vpop.f32.mrf.mxu0 }
 0x6c7   : > { %3510 = vmatmul.bf16.gmra.mxu1 %v14955_v32  ;;  %5125 = vmatmul.bf16.gmra.mxu0 %v14483_v11 }
 0x6c8   : > { %4386 = vmatmul.bf16.gmra.mxu2 %v14483_v11  ;;  %4690 = vmatmul.bf16.gmra.mxu3 %v14483_v11 }
 0x6cb   : > { %v4354_v43 = vpop.f32.mrf.mxu2  ;;  %v4661_v4 = vpop.f32.mrf.mxu3 }
 0x6cc   : > { %v3480_v5 = vpop.f32.mrf.mxu1  ;;  %v5095_v42 = vpop.f32.mrf.mxu0 }
 0x6d3   : > { %v4355_v30 = vpop.f32.mrf.mxu2  ;;  %v4662_v56 = vpop.f32.mrf.mxu3 }
 0x6d4   : > { %v3482_v19 = vpop.f32.mrf.mxu1  ;;  %v5097_v27 = vpop.f32.mrf.mxu0 }
 0x6d5   : > { %v3670_v38 = vrot.slane %v3482_v19, 2  ;;  %v5285_v11 = vrot.slane %v5097_v27, 2  ;;  %v14485_v19 = vld [vmem:[#allocation2 + $0x128] sm:$0xff] }
 0x6d7   : > { %v3784_v17 = vadd.f32 %v3670_v38, %v16025_v13  ;;  %3514 = vmatmul.bf16.gmra.mxu1 %v14956_v12  ;;  %5129 = vmatmul.bf16.gmra.mxu0 %v14484_v48 }
 0x6d8   : > { %4389 = vmatmul.bf16.gmra.mxu2 %v14484_v48  ;;  %4693 = vmatmul.bf16.gmra.mxu3 %v14484_v48 }
 0x6d9   : > { %v4483_v7 = vadd.f32 %v4355_v30, %v3784_v17 }
 0x6db   : > { %v4358_v23 = vpop.f32.mrf.mxu2  ;;  %v4664_v20 = vpop.f32.mrf.mxu3 }
 0x6dc   : > { %v4813_v18 = vrot.slane %v4664_v20, 1  ;;  %v3484_v14 = vpop.f32.mrf.mxu1  ;;  %v5099_v33 = vpop.f32.mrf.mxu0 }
 0x6dd   : > { %v3671_v16 = vrot.slane %v3484_v14, 2  ;;  %v5286_v46 = vrot.slane %v5099_v33, 2 }
 0x6de   : > { %v4909_v32 = vadd.f32 %v4813_v18, %v4483_v7 }
 0x6df   : > { %v3672_v43 = vsel %vm2019_vm1, %v3670_v38, %v3671_v16  ;;  %v5287_v4 = vsel %vm2019_vm1, %v5285_v11, %v5286_v46 }
 0x6e0   : > { %v5399_v13 = vadd.f32 %v5285_v11, %v4909_v32  ;;  %v3785_v5 = vadd.f32 %v3672_v43, %v16029_v1  ;;  %v14957_v1 = vld [vmem:[#allocation2 + $0x110] sm:$0xff] }
 0x6e2   : > { %v16274_v42 = vadd.f32 %v16149_v10, %v5399_v13  ;;  %v4484_v30 = vadd.f32 %v4358_v23, %v3785_v5 }
 0x6e3   : > { %v4360_v56 = vpop.f32.mrf.mxu2  ;;  %v4666_v48 = vpop.f32.mrf.mxu3 }
 0x6e4   : > { %v4814_v17 = vrot.slane %v4666_v48, 1  ;;  %v3487_v12 = vpop.f32.mrf.mxu1  ;;  %v5102_v27 = vpop.f32.mrf.mxu0 }
 0x6e5   : > { %v3673_v20 = vrot.slane %v3487_v12, 2  ;;  %v5288_v14 = vrot.slane %v5102_v27, 2 }
 0x6e6   : > { %v4815_v7 = vsel %vm1560_vm0, %v4813_v18, %v4814_v17 }
 0x6e7   : > { %v4910_v38 = vadd.f32 %v4815_v7, %v4484_v30  ;;  %v3674_v33 = vsel %vm2019_vm1, %v3671_v16, %v3673_v20  ;;  %v5289_v11 = vsel %vm2019_vm1, %v5286_v46, %v5288_v14  ;;  %3517 = vmatmul.bf16.gmra.mxu1 %v14957_v1  ;;  %5132 = vmatmul.bf16.gmra.mxu0 %v14485_v19  ;;  %v14486_v14 = vld [vmem:[#allocation2 + $0x130] sm:$0xff] }
 0x6e8   : > { %v3786_v23 = vadd.f32 %v3674_v33, %v16033_v31  ;;  %4393 = vmatmul.bf16.gmra.mxu2 %v14485_v19  ;;  %4696 = vmatmul.bf16.gmra.mxu3 %v14485_v19  ;;  %v14958_v19 = vld [vmem:[#allocation2 + $0x118] sm:$0xff] }
 0x6e9   : > { %v5400_v32 = vadd.f32 %v5287_v4, %v4910_v38 }
 0x6ea   : > { %v4485_v43 = vadd.f32 %v4360_v56, %v3786_v23 }
 0x6eb   : > { %v16281_v13 = vadd.f32 %v16149_v10, %v5400_v32  ;;  %v4363_v5 = vpop.f32.mrf.mxu2  ;;  %v4669_v48 = vpop.f32.mrf.mxu3 }
 0x6ec   : > { %v4911_v18 = vadd.f32 %v4814_v17, %v4485_v43  ;;  %v3489_v30 = vpop.f32.mrf.mxu1  ;;  %v5104_v12 = vpop.f32.mrf.mxu0  ;;  %v14959_v5 = vld [vmem:[#allocation2 + $0x120] sm:$0xff] }
 0x6ee   : > { %v5401_v16 = vadd.f32 %v5289_v11, %v4911_v18  ;;  %v14487_v11 = vld [vmem:[#allocation2 + $0x138] sm:$0xff] }
 0x6f0   : > { %v16284_v46 = vadd.f32 %v16149_v10, %v5401_v16 }
 0x6f3   : > { %v4364_v27 = vpop.f32.mrf.mxu2  ;;  %v4670_v20 = vpop.f32.mrf.mxu3 }
 0x6f4   : > { %v3491_v31 = vpop.f32.mrf.mxu1  ;;  %v5106_v7 = vpop.f32.mrf.mxu0 }
 0x6f7   : > { %3522 = vmatmul.bf16.gmra.mxu1 %v14958_v19  ;;  %5137 = vmatmul.bf16.gmra.mxu0 %v14486_v14 }
 0x6f8   : > { %4398 = vmatmul.bf16.gmra.mxu2 %v14486_v14  ;;  %4701 = vmatmul.bf16.gmra.mxu3 %v14486_v14 }
 0x6fb   : > { %v4366_v4 = vpop.f32.mrf.mxu2  ;;  %v4672_v56 = vpop.f32.mrf.mxu3 }
 0x6fc   : > { %v3492_v38 = vpop.f32.mrf.mxu1  ;;  %v5107_v17 = vpop.f32.mrf.mxu0 }
 0x6fd   : > { %v16291_v38 = vld [vmem:[%s15458_s5] ss:$0 sm:$0xff] }
 0x703   : > { %v4367_v33 = vpop.f32.mrf.mxu2  ;;  %v4673_v1 = vpop.f32.mrf.mxu3 }
 0x704   : > { %v3494_v23 = vpop.f32.mrf.mxu1  ;;  %v5109_v10 = vpop.f32.mrf.mxu0 }
 0x705   : > { %v3675_v32 = vrot.slane %v3494_v23, 2  ;;  %v5290_v20 = vrot.slane %v5109_v10, 2  ;;  %v14488_v23 = vld [vmem:[#allocation2 + $0x140] sm:$0xff] }
 0x707   : > { %v3787_v43 = vadd.f32 %v3675_v32, %v16038_v37  ;;  %3526 = vmatmul.bf16.gmra.mxu1 %v14959_v5  ;;  %5141 = vmatmul.bf16.gmra.mxu0 %v14487_v11 }
 0x708   : > { %4401 = vmatmul.bf16.gmra.mxu2 %v14487_v11  ;;  %4704 = vmatmul.bf16.gmra.mxu3 %v14487_v11 }
 0x709   : > { %v4486_v48 = vadd.f32 %v4367_v33, %v3787_v43 }
 0x70b   : > { %v4370_v18 = vpop.f32.mrf.mxu2  ;;  %v4675_v30 = vpop.f32.mrf.mxu3 }
 0x70c   : > { %v4816_v12 = vrot.slane %v4675_v30, 1  ;;  %v3496_v16 = vpop.f32.mrf.mxu1  ;;  %v5111_v27 = vpop.f32.mrf.mxu0 }
 0x70d   : > { %v3676_v14 = vrot.slane %v3496_v16, 2  ;;  %v5291_v31 = vrot.slane %v5111_v27, 2 }
 0x70e   : > { %v4912_v7 = vadd.f32 %v4816_v12, %v4486_v48 }
 0x70f   : > { %v3677_v19 = vsel %vm2019_vm1, %v3675_v32, %v3676_v14  ;;  %v5292_v37 = vsel %vm2019_vm1, %v5290_v20, %v5291_v31 }
 0x710   : > { %v5402_v4 = vadd.f32 %v5290_v20, %v4912_v7  ;;  %v3788_v56 = vadd.f32 %v3677_v19, %v16045_v6  ;;  %v14961_v20 = vld [vmem:[#allocation2 + $0x128] sm:$0xff] }
 0x712   : > { %v16294_v17 = vadd.f32 %v16291_v38, %v5402_v4  ;;  %v4487_v33 = vadd.f32 %v4370_v18, %v3788_v56 }
 0x713   : > { %v4372_v1 = vpop.f32.mrf.mxu2  ;;  %v4677_v11 = vpop.f32.mrf.mxu3 }
 0x714   : > { %v4817_v10 = vrot.slane %v4677_v11, 1  ;;  %v3499_v43 = vpop.f32.mrf.mxu1  ;;  %v5114_v5 = vpop.f32.mrf.mxu0 }
 0x715   : > { %v3678_v48 = vrot.slane %v3499_v43, 2  ;;  %v5293_v30 = vrot.slane %v5114_v5, 2 }
 0x716   : > { %v4818_v32 = vsel %vm1560_vm0, %v4816_v12, %v4817_v10 }
 0x717   : > { %v4913_v16 = vadd.f32 %v4818_v32, %v4487_v33  ;;  %v3679_v27 = vsel %vm2019_vm1, %v3676_v14, %v3678_v48  ;;  %v5294_v6 = vsel %vm2019_vm1, %v5291_v31, %v5293_v30  ;;  %3529 = vmatmul.bf16.gmra.mxu1 %v14961_v20  ;;  %5144 = vmatmul.bf16.gmra.mxu0 %v14488_v23  ;;  %v14489_v30 = vld [vmem:[#allocation2 + $0x148] sm:$0xff] }
 0x718   : > { %v3789_v18 = vadd.f32 %v3679_v27, %v16050_v53  ;;  %4405 = vmatmul.bf16.gmra.mxu2 %v14488_v23  ;;  %4707 = vmatmul.bf16.gmra.mxu3 %v14488_v23  ;;  %v14962_v23 = vld [vmem:[#allocation2 + $0x130] sm:$0xff] }
 0x719   : > { %v5403_v7 = vadd.f32 %v5292_v37, %v4913_v16 }
 0x71a   : > { %v4488_v19 = vadd.f32 %v4372_v1, %v3789_v18 }
 0x71b   : > { %v16301_v4 = vadd.f32 %v16291_v38, %v5403_v7  ;;  %v4375_v56 = vpop.f32.mrf.mxu2  ;;  %v4680_v11 = vpop.f32.mrf.mxu3 }
 0x71c   : > { %v4914_v12 = vadd.f32 %v4817_v10, %v4488_v19  ;;  %v3501_v33 = vpop.f32.mrf.mxu1  ;;  %v5116_v43 = vpop.f32.mrf.mxu0  ;;  %v14963_v11 = vld [vmem:[#allocation2 + $0x138] sm:$0xff] }
 0x71e   : > { %v5404_v14 = vadd.f32 %v5294_v6, %v4914_v12  ;;  %v14490_v6 = vld [vmem:[#allocation2 + $0x150] sm:$0xff] }
 0x720   : > { %v16304_v31 = vadd.f32 %v16291_v38, %v5404_v14 }
 0x723   : > { %v4376_v5 = vpop.f32.mrf.mxu2  ;;  %v4681_v48 = vpop.f32.mrf.mxu3 }
 0x724   : > { %v3503_v53 = vpop.f32.mrf.mxu1  ;;  %v5118_v32 = vpop.f32.mrf.mxu0 }
 0x727   : > { %3534 = vmatmul.bf16.gmra.mxu1 %v14962_v23  ;;  %5149 = vmatmul.bf16.gmra.mxu0 %v14489_v30 }
 0x728   : > { %4410 = vmatmul.bf16.gmra.mxu2 %v14489_v30  ;;  %4712 = vmatmul.bf16.gmra.mxu3 %v14489_v30 }
 0x72b   : > { %v4378_v37 = vpop.f32.mrf.mxu2  ;;  %v4683_v1 = vpop.f32.mrf.mxu3 }
 0x72c   : > { %v3504_v16 = vpop.f32.mrf.mxu1  ;;  %v5119_v10 = vpop.f32.mrf.mxu0 }
 0x733   : > { %v4379_v27 = vpop.f32.mrf.mxu2  ;;  %v4684_v20 = vpop.f32.mrf.mxu3 }
 0x734   : > { %v3506_v18 = vpop.f32.mrf.mxu1  ;;  %v5121_v7 = vpop.f32.mrf.mxu0 }
 0x735   : > { %v3680_v19 = vrot.slane %v3506_v18, 2  ;;  %v5295_v30 = vrot.slane %v5121_v7, 2  ;;  %v14491_v18 = vld [vmem:[#allocation2 + $0x158] sm:$0xff] }
 0x737   : > { %v3790_v56 = vadd.f32 %v3680_v19, %v16055_v60  ;;  %3538 = vmatmul.bf16.gmra.mxu1 %v14963_v11  ;;  %5153 = vmatmul.bf16.gmra.mxu0 %v14490_v6 }
 0x738   : > { %4413 = vmatmul.bf16.gmra.mxu2 %v14490_v6  ;;  %4715 = vmatmul.bf16.gmra.mxu3 %v14490_v6 }
 0x739   : > { %v4489_v12 = vadd.f32 %v4379_v27, %v3790_v56 }
 0x73b   : > { %v4382_v33 = vpop.f32.mrf.mxu2  ;;  %v4686_v43 = vpop.f32.mrf.mxu3 }
 0x73c   : > { %v4819_v14 = vrot.slane %v4686_v43, 1  ;;  %v3508_v5 = vpop.f32.mrf.mxu1  ;;  %v5123_v48 = vpop.f32.mrf.mxu0 }
 0x73d   : > { %v3681_v53 = vrot.slane %v3508_v5, 2  ;;  %v5296_v32 = vrot.slane %v5123_v48, 2 }
 0x73e   : > { %v4915_v23 = vadd.f32 %v4819_v14, %v4489_v12 }
 0x73f   : > { %v3682_v37 = vsel %vm2019_vm1, %v3680_v19, %v3681_v53  ;;  %v5297_v1 = vsel %vm2019_vm1, %v5295_v30, %v5296_v32 }
 0x740   : > { %v5405_v60 = vadd.f32 %v5295_v30, %v4915_v23  ;;  %v3791_v16 = vadd.f32 %v3682_v37, %v16059_v52  ;;  %v14964_v52 = vld [vmem:[#allocation2 + $0x140] sm:$0xff] }
 0x742   : > { %v16311_v10 = vadd.f32 %v16291_v38, %v5405_v60  ;;  %v4490_v27 = vadd.f32 %v4382_v33, %v3791_v16 }
 0x743   : > { %v4384_v20 = vpop.f32.mrf.mxu2  ;;  %v4688_v6 = vpop.f32.mrf.mxu3 }
 0x744   : > { %v4820_v56 = vrot.slane %v4688_v6, 1  ;;  %v3511_v11 = vpop.f32.mrf.mxu1  ;;  %v5126_v7 = vpop.f32.mrf.mxu0 }
 0x745   : > { %v3683_v43 = vrot.slane %v3511_v11, 2  ;;  %v5298_v5 = vrot.slane %v5126_v7, 2 }
 0x746   : > { %v4821_v12 = vsel %vm1560_vm0, %v4819_v14, %v4820_v56 }
 0x747   : > { %v4916_v19 = vadd.f32 %v4821_v12, %v4490_v27  ;;  %v3684_v48 = vsel %vm2019_vm1, %v3681_v53, %v3683_v43  ;;  %v5299_v30 = vsel %vm2019_vm1, %v5296_v32, %v5298_v5  ;;  %3541 = vmatmul.bf16.gmra.mxu1 %v14964_v52  ;;  %5156 = vmatmul.bf16.gmra.mxu0 %v14491_v18  ;;  %v14492_v5 = vld [vmem:[#allocation2 + $0x160] sm:$0xff] }
 0x748   : > { %v3792_v33 = vadd.f32 %v3684_v48, %v16063_v21  ;;  %4417 = vmatmul.bf16.gmra.mxu2 %v14491_v18  ;;  %4718 = vmatmul.bf16.gmra.mxu3 %v14491_v18  ;;  %v14965_v18 = vld [vmem:[#allocation2 + $0x148] sm:$0xff] }
 0x749   : > { %v5406_v23 = vadd.f32 %v5297_v1, %v4916_v19 }
 0x74a   : > { %v4491_v37 = vadd.f32 %v4384_v20, %v3792_v33 }
 0x74b   : > { %v16318_v60 = vadd.f32 %v16291_v38, %v5406_v23  ;;  %v4387_v16 = vpop.f32.mrf.mxu2  ;;  %v4691_v6 = vpop.f32.mrf.mxu3 }
 0x74c   : > { %v4917_v14 = vadd.f32 %v4820_v56, %v4491_v37  ;;  %v3513_v27 = vpop.f32.mrf.mxu1  ;;  %v5128_v11 = vpop.f32.mrf.mxu0  ;;  %v14966_v6 = vld [vmem:[#allocation2 + $0x150] sm:$0xff] }
 0x74e   : > { %v5407_v53 = vadd.f32 %v5299_v30, %v4917_v14  ;;  %v14493_v30 = vld [vmem:[#allocation2 + $0x168] sm:$0xff] }
 0x750   : > { %v16321_v32 = vadd.f32 %v16291_v38, %v5407_v53 }
 0x753   : > { %v4388_v7 = vpop.f32.mrf.mxu2  ;;  %v4692_v43 = vpop.f32.mrf.mxu3 }
 0x754   : > { %v3515_v21 = vpop.f32.mrf.mxu1  ;;  %v5130_v12 = vpop.f32.mrf.mxu0 }
 0x757   : > { %3546 = vmatmul.bf16.gmra.mxu1 %v14965_v18  ;;  %5161 = vmatmul.bf16.gmra.mxu0 %v14492_v5 }
 0x758   : > { %4422 = vmatmul.bf16.gmra.mxu2 %v14492_v5  ;;  %4723 = vmatmul.bf16.gmra.mxu3 %v14492_v5 }
 0x75b   : > { %v4390_v1 = vpop.f32.mrf.mxu2  ;;  %v4694_v20 = vpop.f32.mrf.mxu3 }
 0x75c   : > { %v3516_v19 = vpop.f32.mrf.mxu1  ;;  %v5131_v56 = vpop.f32.mrf.mxu0 }
 0x763   : > { %v4391_v48 = vpop.f32.mrf.mxu2  ;;  %v4695_v52 = vpop.f32.mrf.mxu3 }
 0x764   : > { %v3518_v33 = vpop.f32.mrf.mxu1  ;;  %v5133_v23 = vpop.f32.mrf.mxu0 }
 0x765   : > { %v3685_v37 = vrot.slane %v3518_v33, 2  ;;  %v5300_v5 = vrot.slane %v5133_v23, 2  ;;  %v14494_v33 = vld [vmem:[#allocation2 + $0x170] sm:$0xff] }
 0x767   : > { %v3793_v16 = vadd.f32 %v3685_v37, %v16068_v34  ;;  %3550 = vmatmul.bf16.gmra.mxu1 %v14966_v6  ;;  %5165 = vmatmul.bf16.gmra.mxu0 %v14493_v30 }
 0x768   : > { %4425 = vmatmul.bf16.gmra.mxu2 %v14493_v30  ;;  %4726 = vmatmul.bf16.gmra.mxu3 %v14493_v30 }
 0x769   : > { %v4492_v14 = vadd.f32 %v4391_v48, %v3793_v16 }
 0x76b   : > { %v4394_v27 = vpop.f32.mrf.mxu2  ;;  %v4697_v11 = vpop.f32.mrf.mxu3 }
 0x76c   : > { %v4822_v53 = vrot.slane %v4697_v11, 1  ;;  %v3520_v7 = vpop.f32.mrf.mxu1  ;;  %v5135_v43 = vpop.f32.mrf.mxu0 }
 0x76d   : > { %v3686_v21 = vrot.slane %v3520_v7, 2  ;;  %v5301_v12 = vrot.slane %v5135_v43, 2 }
 0x76e   : > { %v4918_v18 = vadd.f32 %v4822_v53, %v4492_v14 }
 0x76f   : > { %v3687_v1 = vsel %vm2019_vm1, %v3685_v37, %v3686_v21  ;;  %v5302_v20 = vsel %vm2019_vm1, %v5300_v5, %v5301_v12 }
 0x770   : > { %v5408_v34 = vadd.f32 %v5300_v5, %v4918_v18  ;;  %v3794_v19 = vadd.f32 %v3687_v1, %v16075_v3  ;;  %v14967_v3 = vld [vmem:[#allocation2 + $0x158] sm:$0xff] }
 0x772   : > { %v16328_v56 = vadd.f32 %v16291_v38, %v5408_v34  ;;  %v4493_v48 = vadd.f32 %v4394_v27, %v3794_v19 }
 0x773   : > { %v4396_v52 = vpop.f32.mrf.mxu2  ;;  %v4699_v30 = vpop.f32.mrf.mxu3 }
 0x774   : > { %v4823_v16 = vrot.slane %v4699_v30, 1  ;;  %v3523_v6 = vpop.f32.mrf.mxu1  ;;  %v5138_v23 = vpop.f32.mrf.mxu0 }
 0x775   : > { %v3688_v11 = vrot.slane %v3523_v6, 2  ;;  %v5303_v7 = vrot.slane %v5138_v23, 2 }
 0x776   : > { %v4824_v14 = vsel %vm1560_vm0, %v4822_v53, %v4823_v16 }
 0x777   : > { %v4919_v37 = vadd.f32 %v4824_v14, %v4493_v48  ;;  %v3689_v43 = vsel %vm2019_vm1, %v3686_v21, %v3688_v11  ;;  %v5304_v5 = vsel %vm2019_vm1, %v5301_v12, %v5303_v7  ;;  %3553 = vmatmul.bf16.gmra.mxu1 %v14967_v3  ;;  %5168 = vmatmul.bf16.gmra.mxu0 %v14494_v33  ;;  %v14495_v7 = vld [vmem:[#allocation2 + $0x178] sm:$0xff] }
 0x778   : > { %v3795_v27 = vadd.f32 %v3689_v43, %v16080_v36  ;;  %4429 = vmatmul.bf16.gmra.mxu2 %v14494_v33  ;;  %4729 = vmatmul.bf16.gmra.mxu3 %v14494_v33  ;;  %v14968_v33 = vld [vmem:[#allocation2 + $0x160] sm:$0xff] }
 0x779   : > { %v5409_v18 = vadd.f32 %v5302_v20, %v4919_v37 }
 0x77a   : > { %v4494_v1 = vadd.f32 %v4396_v52, %v3795_v27 }
 0x77b   : > { %v16335_v34 = vadd.f32 %v16291_v38, %v5409_v18  ;;  %v4399_v19 = vpop.f32.mrf.mxu2  ;;  %v4702_v30 = vpop.f32.mrf.mxu3 }
 0x77c   : > { %v4920_v53 = vadd.f32 %v4823_v16, %v4494_v1  ;;  %v3525_v48 = vpop.f32.mrf.mxu1  ;;  %v5140_v6 = vpop.f32.mrf.mxu0  ;;  %v14969_v30 = vld [vmem:[#allocation2 + $0x168] sm:$0xff] }
 0x77e   : > { %v5410_v21 = vadd.f32 %v5304_v5, %v4920_v53  ;;  %v14496_v5 = vld [vmem:[#allocation2 + $0x180] sm:$0xff] }
 0x780   : > { %v16338_v12 = vadd.f32 %v16291_v38, %v5410_v21 }
 0x783   : > { %v4400_v23 = vpop.f32.mrf.mxu2  ;;  %v4703_v11 = vpop.f32.mrf.mxu3 }
 0x784   : > { %v3527_v36 = vpop.f32.mrf.mxu1  ;;  %v5142_v14 = vpop.f32.mrf.mxu0 }
 0x787   : > { %3558 = vmatmul.bf16.gmra.mxu1 %v14968_v33  ;;  %5173 = vmatmul.bf16.gmra.mxu0 %v14495_v7 }
 0x788   : > { %4434 = vmatmul.bf16.gmra.mxu2 %v14495_v7  ;;  %4734 = vmatmul.bf16.gmra.mxu3 %v14495_v7 }
 0x78b   : > { %v4402_v20 = vpop.f32.mrf.mxu2  ;;  %v4705_v52 = vpop.f32.mrf.mxu3 }
 0x78c   : > { %v3528_v37 = vpop.f32.mrf.mxu1  ;;  %v5143_v16 = vpop.f32.mrf.mxu0 }
 0x793   : > { %v4403_v43 = vpop.f32.mrf.mxu2  ;;  %v4706_v3 = vpop.f32.mrf.mxu3 }
 0x794   : > { %v3530_v27 = vpop.f32.mrf.mxu1  ;;  %v5145_v18 = vpop.f32.mrf.mxu0 }
 0x795   : > { %v3690_v1 = vrot.slane %v3530_v27, 2  ;;  %v5305_v7 = vrot.slane %v5145_v18, 2  ;;  %v14497_v27 = vld [vmem:[#allocation2 + $0x188] sm:$0xff] }
 0x797   : > { %v3796_v19 = vadd.f32 %v3690_v1, %v16085_v15  ;;  %3562 = vmatmul.bf16.gmra.mxu1 %v14969_v30  ;;  %5177 = vmatmul.bf16.gmra.mxu0 %v14496_v5 }
 0x798   : > { %4437 = vmatmul.bf16.gmra.mxu2 %v14496_v5  ;;  %4737 = vmatmul.bf16.gmra.mxu3 %v14496_v5 }
 0x799   : > { %v4495_v53 = vadd.f32 %v4403_v43, %v3796_v19 }
 0x79b   : > { %v4406_v48 = vpop.f32.mrf.mxu2  ;;  %v4708_v6 = vpop.f32.mrf.mxu3 }
 0x79c   : > { %v4825_v21 = vrot.slane %v4708_v6, 1  ;;  %v3532_v23 = vpop.f32.mrf.mxu1  ;;  %v5147_v11 = vpop.f32.mrf.mxu0 }
 0x79d   : > { %v3691_v36 = vrot.slane %v3532_v23, 2  ;;  %v5306_v14 = vrot.slane %v5147_v11, 2 }
 0x79e   : > { %v4921_v33 = vadd.f32 %v4825_v21, %v4495_v53 }
 0x79f   : > { %v3692_v20 = vsel %vm2019_vm1, %v3690_v1, %v3691_v36  ;;  %v5307_v52 = vsel %vm2019_vm1, %v5305_v7, %v5306_v14 }
 0x7a0   : > { %v5411_v15 = vadd.f32 %v5305_v7, %v4921_v33  ;;  %v3797_v37 = vadd.f32 %v3692_v20, %v16089_v40  ;;  %v14970_v40 = vld [vmem:[#allocation2 + $0x170] sm:$0xff] }
 0x7a2   : > { %v16345_v16 = vadd.f32 %v16291_v38, %v5411_v15  ;;  %v4496_v43 = vadd.f32 %v4406_v48, %v3797_v37 }
 0x7a3   : > { %v4408_v3 = vpop.f32.mrf.mxu2  ;;  %v4710_v5 = vpop.f32.mrf.mxu3 }
 0x7a4   : > { %v4826_v19 = vrot.slane %v4710_v5, 1  ;;  %v3535_v30 = vpop.f32.mrf.mxu1  ;;  %v5150_v18 = vpop.f32.mrf.mxu0 }
 0x7a5   : > { %v3693_v6 = vrot.slane %v3535_v30, 2  ;;  %v5308_v23 = vrot.slane %v5150_v18, 2 }
 0x7a6   : > { %v4827_v53 = vsel %vm1560_vm0, %v4825_v21, %v4826_v19 }
 0x7a7   : > { %v4922_v1 = vadd.f32 %v4827_v53, %v4496_v43  ;;  %v3694_v11 = vsel %vm2019_vm1, %v3691_v36, %v3693_v6  ;;  %v5309_v7 = vsel %vm2019_vm1, %v5306_v14, %v5308_v23  ;;  %3565 = vmatmul.bf16.gmra.mxu1 %v14970_v40  ;;  %5180 = vmatmul.bf16.gmra.mxu0 %v14497_v27  ;;  %v14498_v23 = vld [vmem:[#allocation2 + $0x190] sm:$0xff] }
 0x7a8   : > { %v3798_v48 = vadd.f32 %v3694_v11, %v16093_v45  ;;  %4441 = vmatmul.bf16.gmra.mxu2 %v14497_v27  ;;  %4740 = vmatmul.bf16.gmra.mxu3 %v14497_v27  ;;  %v14971_v27 = vld [vmem:[#allocation2 + $0x178] sm:$0xff] }
 0x7a9   : > { %v5412_v33 = vadd.f32 %v5307_v52, %v4922_v1 }
 0x7aa   : > { %v4497_v20 = vadd.f32 %v4408_v3, %v3798_v48 }
 0x7ab   : > { %v16352_v15 = vadd.f32 %v16291_v38, %v5412_v33  ;;  %v4411_v37 = vpop.f32.mrf.mxu2  ;;  %v4713_v5 = vpop.f32.mrf.mxu3 }
 0x7ac   : > { %v4923_v21 = vadd.f32 %v4826_v19, %v4497_v20  ;;  %v3537_v43 = vpop.f32.mrf.mxu1  ;;  %v5152_v30 = vpop.f32.mrf.mxu0  ;;  %v14972_v5 = vld [vmem:[#allocation2 + $0x180] sm:$0xff] }
 0x7ae   : > { %v5413_v36 = vadd.f32 %v5309_v7, %v4923_v21  ;;  %v14499_v7 = vld [vmem:[#allocation2 + $0x198] sm:$0xff] }
 0x7b0   : > { %v16355_v14 = vadd.f32 %v16291_v38, %v5413_v36 }
 0x7b3   : > { %v4412_v18 = vpop.f32.mrf.mxu2  ;;  %v4714_v6 = vpop.f32.mrf.mxu3 }
 0x7b4   : > { %v3539_v45 = vpop.f32.mrf.mxu1  ;;  %v5154_v53 = vpop.f32.mrf.mxu0 }
 0x7b7   : > { %3570 = vmatmul.bf16.gmra.mxu1 %v14971_v27  ;;  %5185 = vmatmul.bf16.gmra.mxu0 %v14498_v23 }
 0x7b8   : > { %4446 = vmatmul.bf16.gmra.mxu2 %v14498_v23  ;;  %4745 = vmatmul.bf16.gmra.mxu3 %v14498_v23 }
 0x7bb   : > { %v4414_v52 = vpop.f32.mrf.mxu2  ;;  %v4716_v3 = vpop.f32.mrf.mxu3 }
 0x7bc   : > { %v3540_v1 = vpop.f32.mrf.mxu1  ;;  %v5155_v19 = vpop.f32.mrf.mxu0 }
 0x7c3   : > { %v4415_v11 = vpop.f32.mrf.mxu2  ;;  %v4717_v40 = vpop.f32.mrf.mxu3 }
 0x7c4   : > { %v3542_v48 = vpop.f32.mrf.mxu1  ;;  %v5157_v33 = vpop.f32.mrf.mxu0 }
 0x7c5   : > { %v3695_v20 = vrot.slane %v3542_v48, 2  ;;  %v5310_v23 = vrot.slane %v5157_v33, 2  ;;  %v14500_v48 = vld [vmem:[#allocation2 + $0x1a0] sm:$0xff] }
 0x7c7   : > { %v3799_v37 = vadd.f32 %v3695_v20, %v16098_v22  ;;  %3574 = vmatmul.bf16.gmra.mxu1 %v14972_v5  ;;  %5189 = vmatmul.bf16.gmra.mxu0 %v14499_v7 }
 0x7c8   : > { %4449 = vmatmul.bf16.gmra.mxu2 %v14499_v7  ;;  %4748 = vmatmul.bf16.gmra.mxu3 %v14499_v7 }
 0x7c9   : > { %v4498_v21 = vadd.f32 %v4415_v11, %v3799_v37 }
 0x7cb   : > { %v4418_v43 = vpop.f32.mrf.mxu2  ;;  %v4719_v30 = vpop.f32.mrf.mxu3 }
 0x7cc   : > { %v4828_v36 = vrot.slane %v4719_v30, 1  ;;  %v3544_v18 = vpop.f32.mrf.mxu1  ;;  %v5159_v6 = vpop.f32.mrf.mxu0 }
 0x7cd   : > { %v3696_v45 = vrot.slane %v3544_v18, 2  ;;  %v5311_v53 = vrot.slane %v5159_v6, 2 }
 0x7ce   : > { %v4924_v27 = vadd.f32 %v4828_v36, %v4498_v21 }
 0x7cf   : > { %v3697_v52 = vsel %vm2019_vm1, %v3695_v20, %v3696_v45  ;;  %v5312_v3 = vsel %vm2019_vm1, %v5310_v23, %v5311_v53 }
 0x7d0   : > { %v5414_v22 = vadd.f32 %v5310_v23, %v4924_v27  ;;  %v3800_v1 = vadd.f32 %v3697_v52, %v16102_v61  ;;  %v14973_v61 = vld [vmem:[#allocation2 + $0x188] sm:$0xff] }
 0x7d2   : > { %v16362_v19 = vadd.f32 %v16291_v38, %v5414_v22  ;;  %v4499_v11 = vadd.f32 %v4418_v43, %v3800_v1 }
 0x7d3   : > { %v4420_v40 = vpop.f32.mrf.mxu2  ;;  %v4721_v7 = vpop.f32.mrf.mxu3 }
 0x7d4   : > { %v4829_v37 = vrot.slane %v4721_v7, 1  ;;  %v3547_v5 = vpop.f32.mrf.mxu1  ;;  %v5162_v33 = vpop.f32.mrf.mxu0 }
 0x7d5   : > { %v3698_v30 = vrot.slane %v3547_v5, 2  ;;  %v5313_v18 = vrot.slane %v5162_v33, 2 }
 0x7d6   : > { %v4830_v21 = vsel %vm1560_vm0, %v4828_v36, %v4829_v37 }
 0x7d7   : > { %v4925_v20 = vadd.f32 %v4830_v21, %v4499_v11  ;;  %v3699_v6 = vsel %vm2019_vm1, %v3696_v45, %v3698_v30  ;;  %v5314_v23 = vsel %vm2019_vm1, %v5311_v53, %v5313_v18  ;;  %3577 = vmatmul.bf16.gmra.mxu1 %v14973_v61  ;;  %5192 = vmatmul.bf16.gmra.mxu0 %v14500_v48  ;;  %v14501_v18 = vld [vmem:[#allocation2 + $0x1a8] sm:$0xff] }
 0x7d8   : > { %v3801_v43 = vadd.f32 %v3699_v6, %v16106_v47  ;;  %4453 = vmatmul.bf16.gmra.mxu2 %v14500_v48  ;;  %4751 = vmatmul.bf16.gmra.mxu3 %v14500_v48  ;;  %v14974_v48 = vld [vmem:[#allocation2 + $0x190] sm:$0xff] }
 0x7d9   : > { %v5415_v27 = vadd.f32 %v5312_v3, %v4925_v20 }
 0x7da   : > { %v4500_v52 = vadd.f32 %v4420_v40, %v3801_v43 }
 0x7db   : > { %v16369_v22 = vadd.f32 %v16291_v38, %v5415_v27  ;;  %v4423_v1 = vpop.f32.mrf.mxu2  ;;  %v4724_v7 = vpop.f32.mrf.mxu3 }
 0x7dc   : > { %v4926_v36 = vadd.f32 %v4829_v37, %v4500_v52  ;;  %v3549_v11 = vpop.f32.mrf.mxu1  ;;  %v5164_v5 = vpop.f32.mrf.mxu0 }
 0x7dd   : > { %18205 = vst [vmem:[#allocation16_spill] sm:$0xff] %v16369_v22 }
 0x7de   : > { %v5416_v45 = vadd.f32 %v5314_v23, %v4926_v36 }
 0x7e0   : > { %v16372_v53 = vadd.f32 %v16291_v38, %v5416_v45 }
 0x7e2   : > { %18206 = vst [vmem:[#allocation17_spill] sm:$0xff] %v16372_v53 }
 0x7e3   : > { %v4424_v33 = vpop.f32.mrf.mxu2  ;;  %v4725_v30 = vpop.f32.mrf.mxu3 }
 0x7e4   : > { %v3551_v47 = vpop.f32.mrf.mxu1  ;;  %v5166_v21 = vpop.f32.mrf.mxu0 }
 0x7e7   : > { %3582 = vmatmul.bf16.gmra.mxu1 %v14974_v48  ;;  %5197 = vmatmul.bf16.gmra.mxu0 %v14501_v18 }
 0x7e8   : > { %4458 = vmatmul.bf16.gmra.mxu2 %v14501_v18  ;;  %4756 = vmatmul.bf16.gmra.mxu3 %v14501_v18 }
 0x7eb   : > { %v4426_v3 = vpop.f32.mrf.mxu2  ;;  %v4727_v40 = vpop.f32.mrf.mxu3 }
 0x7ec   : > { %v3552_v20 = vpop.f32.mrf.mxu1  ;;  %v5167_v37 = vpop.f32.mrf.mxu0 }
 0x7f3   : > { %v4427_v6 = vpop.f32.mrf.mxu2  ;;  %v4728_v61 = vpop.f32.mrf.mxu3 }
 0x7f4   : > { %v3554_v23 = vpop.f32.mrf.mxu1  ;;  %v5169_v43 = vpop.f32.mrf.mxu0 }
 0x7f5   : > { %v3700_v27 = vrot.slane %v3554_v23, 2  ;;  %v5315_v33 = vrot.slane %v5169_v43, 2 }
 0x7f7   : > { %v3802_v52 = vadd.f32 %v3700_v27, %v16111_v35 }
 0x7f9   : > { %v4501_v1 = vadd.f32 %v4427_v6, %v3802_v52 }
 0x7fb   : > { %v4430_v7 = vpop.f32.mrf.mxu2  ;;  %v4730_v36 = vpop.f32.mrf.mxu3 }
 0x7fc   : > { %v4831_v11 = vrot.slane %v4730_v36, 1  ;;  %v3556_v5 = vpop.f32.mrf.mxu1  ;;  %v5171_v45 = vpop.f32.mrf.mxu0 }
 0x7fd   : > { %v3701_v30 = vrot.slane %v3556_v5, 2  ;;  %v5316_v18 = vrot.slane %v5171_v45, 2 }
 0x7fe   : > { %v4927_v47 = vadd.f32 %v4831_v11, %v4501_v1 }
 0x7ff   : > { %v3702_v21 = vsel %vm2019_vm1, %v3700_v27, %v3701_v30  ;;  %v5317_v48 = vsel %vm2019_vm1, %v5315_v33, %v5316_v18 }
 0x800   : > { %v5417_v3 = vadd.f32 %v5315_v33, %v4927_v47  ;;  %v3803_v40 = vadd.f32 %v3702_v21, %v16115_v58  ;;  %v18208_v33 = vld [vmem:[#allocation21_spill] sm:$0xff] }
 0x802   : > { %v16379_v20 = vadd.f32 %v16291_v38, %v5417_v3  ;;  %v4502_v35 = vadd.f32 %v4430_v7, %v3803_v40 }
 0x803   : > { %v4432_v37 = vpop.f32.mrf.mxu2  ;;  %v4732_v6 = vpop.f32.mrf.mxu3 }
 0x804   : > { %18207 = vst [vmem:[#allocation18_spill] sm:$0xff] %v16379_v20  ;;  %v4832_v61 = vrot.slane %v4732_v6, 1  ;;  %v3559_v23 = vpop.f32.mrf.mxu1  ;;  %v5174_v52 = vpop.f32.mrf.mxu0 }
 0x805   : > { %v3703_v43 = vrot.slane %v3559_v23, 2  ;;  %v5318_v36 = vrot.slane %v5174_v52, 2 }
 0x806   : > { %v4833_v1 = vsel %vm1560_vm0, %v4831_v11, %v4832_v61 }
 0x807   : > { %v4928_v5 = vadd.f32 %v4833_v1, %v4502_v35  ;;  %v3704_v27 = vsel %vm2019_vm1, %v3701_v30, %v3703_v43  ;;  %v5319_v45 = vsel %vm2019_vm1, %v5316_v18, %v5318_v36 }
 0x808   : > { %v3804_v58 = vadd.f32 %v3704_v27, %v18208_v33 }
 0x809   : > { %v5418_v47 = vadd.f32 %v5317_v48, %v4928_v5 }
 0x80a   : > { %v4503_v21 = vadd.f32 %v4432_v37, %v3804_v58 }
 0x80b   : > { %v16386_v7 = vadd.f32 %v16291_v38, %v5418_v47  ;;  %v4435_v3 = vpop.f32.mrf.mxu2  ;;  %v4735_v40 = vpop.f32.mrf.mxu3 }
 0x80c   : > { %v4929_v6 = vadd.f32 %v4832_v61, %v4503_v21  ;;  %v3561_v20 = vpop.f32.mrf.mxu1  ;;  %v5176_v23 = vpop.f32.mrf.mxu0  ;;  %v18211_v61 = vld [vmem:[#allocation23_spill] sm:$0xff] }
 0x80d   : > { %18209 = vst [vmem:[#allocation19_spill] sm:$0xff] %v16386_v7 }
 0x80e   : > { %v5419_v52 = vadd.f32 %v5319_v45, %v4929_v6 }
 0x810   : > { %v16389_v11 = vadd.f32 %v16291_v38, %v5419_v52 }
 0x812   : > { %18210 = vst [vmem:[#allocation20_spill] sm:$0xff] %v16389_v11 }
 0x813   : > { %v4436_v35 = vpop.f32.mrf.mxu2  ;;  %v4736_v30 = vpop.f32.mrf.mxu3 }
 0x814   : > { %v3563_v43 = vpop.f32.mrf.mxu1  ;;  %v5178_v18 = vpop.f32.mrf.mxu0 }
 0x81b   : > { %v4438_v36 = vpop.f32.mrf.mxu2  ;;  %v4738_v1 = vpop.f32.mrf.mxu3 }
 0x81c   : > { %v3564_v48 = vpop.f32.mrf.mxu1  ;;  %v5179_v37 = vpop.f32.mrf.mxu0 }
 0x81d   : > { %v18212_v48 = vld [vmem:[#allocation25_spill] sm:$0xff] }
 0x823   : > { %v4439_v5 = vpop.f32.mrf.mxu2  ;;  %v4739_v27 = vpop.f32.mrf.mxu3 }
 0x824   : > { %v3566_v33 = vpop.f32.mrf.mxu1  ;;  %v5181_v58 = vpop.f32.mrf.mxu0 }
 0x825   : > { %v3705_v47 = vrot.slane %v3566_v33, 2  ;;  %v5320_v52 = vrot.slane %v5181_v58, 2 }
 0x827   : > { %v3805_v20 = vadd.f32 %v3705_v47, %v18211_v61 }
 0x829   : > { %v4504_v21 = vadd.f32 %v4439_v5, %v3805_v20 }
 0x82b   : > { %v4442_v45 = vpop.f32.mrf.mxu2  ;;  %v4741_v3 = vpop.f32.mrf.mxu3 }
 0x82c   : > { %v4834_v40 = vrot.slane %v4741_v3, 1  ;;  %v3568_v6 = vpop.f32.mrf.mxu1  ;;  %v5183_v23 = vpop.f32.mrf.mxu0 }
 0x82d   : > { %v3706_v35 = vrot.slane %v3568_v6, 2  ;;  %v5321_v30 = vrot.slane %v5183_v23, 2  ;;  %v18214_v23 = vld [vmem:[#allocation27_spill] sm:$0xff] }
 0x82e   : > { %v4930_v43 = vadd.f32 %v4834_v40, %v4504_v21 }
 0x82f   : > { %v3707_v18 = vsel %vm2019_vm1, %v3705_v47, %v3706_v35  ;;  %v5322_v36 = vsel %vm2019_vm1, %v5320_v52, %v5321_v30 }
 0x830   : > { %v5420_v1 = vadd.f32 %v5320_v52, %v4930_v43  ;;  %v3806_v37 = vadd.f32 %v3707_v18, %v18212_v48 }
 0x832   : > { %v16396_v27 = vadd.f32 %v16291_v38, %v5420_v1  ;;  %v4505_v5 = vadd.f32 %v4442_v45, %v3806_v37 }
 0x833   : > { %v4444_v33 = vpop.f32.mrf.mxu2  ;;  %v4743_v61 = vpop.f32.mrf.mxu3 }
 0x834   : > { %18213 = vst [vmem:[#allocation22_spill] sm:$0xff] %v16396_v27  ;;  %v4835_v20 = vrot.slane %v4743_v61, 1  ;;  %v3571_v3 = vpop.f32.mrf.mxu1  ;;  %v5186_v11 = vpop.f32.mrf.mxu0 }
 0x835   : > { %v3708_v58 = vrot.slane %v3571_v3, 2  ;;  %v5323_v43 = vrot.slane %v5186_v11, 2 }
 0x836   : > { %v4836_v6 = vsel %vm1560_vm0, %v4834_v40, %v4835_v20 }
 0x837   : > { %v4931_v21 = vadd.f32 %v4836_v6, %v4505_v5  ;;  %v3709_v47 = vsel %vm2019_vm1, %v3706_v35, %v3708_v58  ;;  %v5324_v3 = vsel %vm2019_vm1, %v5321_v30, %v5323_v43 }
 0x838   : > { %v3807_v7 = vadd.f32 %v3709_v47, %v18214_v23 }
 0x839   : > { %v5421_v52 = vadd.f32 %v5322_v36, %v4931_v21 }
 0x83a   : > { %v4506_v18 = vadd.f32 %v4444_v33, %v3807_v7 }
 0x83b   : > { %v16402_v1 = vadd.f32 %v16291_v38, %v5421_v52  ;;  %v4447_v45 = vpop.f32.mrf.mxu2  ;;  %v4746_v48 = vpop.f32.mrf.mxu3 }
 0x83c   : > { %v4932_v37 = vadd.f32 %v4835_v20, %v4506_v18  ;;  %v3573_v61 = vpop.f32.mrf.mxu1  ;;  %v5188_v27 = vpop.f32.mrf.mxu0 }
 0x83d   : > { %18215 = vst [vmem:[#allocation24_spill] sm:$0xff] %v16402_v1  ;;  %v18217_v27 = vld [vmem:[#allocation29_spill] sm:$0xff] }
 0x83e   : > { %v5422_v53 = vadd.f32 %v5324_v3, %v4932_v37 }
 0x840   : > { %v16406_v40 = vadd.f32 %v16291_v38, %v5422_v53 }
 0x842   : > { %18216 = vst [vmem:[#allocation26_spill] sm:$0xff] %v16406_v40 }
 0x843   : > { %v4448_v35 = vpop.f32.mrf.mxu2  ;;  %v4747_v5 = vpop.f32.mrf.mxu3 }
 0x844   : > { %v3575_v58 = vpop.f32.mrf.mxu1  ;;  %v5190_v36 = vpop.f32.mrf.mxu0 }
 0x845   : > { %v18218_v36 = vld [vmem:[#allocation31_spill] sm:$0xff] }
 0x84b   : > { %v4450_v11 = vpop.f32.mrf.mxu2  ;;  %v4749_v7 = vpop.f32.mrf.mxu3 }
 0x84c   : > { %v3576_v33 = vpop.f32.mrf.mxu1  ;;  %v5191_v6 = vpop.f32.mrf.mxu0 }
 0x853   : > { %v4451_v21 = vpop.f32.mrf.mxu2  ;;  %v4750_v47 = vpop.f32.mrf.mxu3 }
 0x854   : > { %v3578_v23 = vpop.f32.mrf.mxu1  ;;  %v5193_v20 = vpop.f32.mrf.mxu0 }
 0x855   : > { %v3710_v52 = vrot.slane %v3578_v23, 2  ;;  %v5325_v3 = vrot.slane %v5193_v20, 2 }
 0x857   : > { %v3808_v18 = vadd.f32 %v3710_v52, %v18217_v27 }
 0x859   : > { %v4507_v45 = vadd.f32 %v4451_v21, %v3808_v18 }
 0x85b   : > { %v4454_v30 = vpop.f32.mrf.mxu2  ;;  %v4752_v43 = vpop.f32.mrf.mxu3 }
 0x85c   : > { %v4837_v53 = vrot.slane %v4752_v43, 1  ;;  %v3580_v48 = vpop.f32.mrf.mxu1  ;;  %v5195_v37 = vpop.f32.mrf.mxu0 }
 0x85d   : > { %v3711_v61 = vrot.slane %v3580_v48, 2  ;;  %v5326_v47 = vrot.slane %v5195_v37, 2 }
 0x85e   : > { %v4933_v35 = vadd.f32 %v4837_v53, %v4507_v45 }
 0x85f   : > { %v3712_v5 = vsel %vm2019_vm1, %v3710_v52, %v3711_v61  ;;  %v5327_v52 = vsel %vm2019_vm1, %v5325_v3, %v5326_v47 }
 0x860   : > { %v5423_v58 = vadd.f32 %v5325_v3, %v4933_v35  ;;  %v3809_v11 = vadd.f32 %v3712_v5, %v18218_v36  ;;  %v18220_v35 = vld [vmem:[#allocation15_spill] sm:$0xff] }
 0x862   : > { %v16412_v7 = vadd.f32 %v16291_v38, %v5423_v58  ;;  %v4508_v18 = vadd.f32 %v4454_v30, %v3809_v11 }
 0x863   : > { %v4456_v33 = vpop.f32.mrf.mxu2  ;;  %v4754_v6 = vpop.f32.mrf.mxu3 }
 0x864   : > { %18219 = vst [vmem:[#allocation28_spill] sm:$0xff] %v16412_v7  ;;  %v4838_v23 = vrot.slane %v4754_v6, 1  ;;  %v3583_v27 = vpop.f32.mrf.mxu1  ;;  %v5198_v21 = vpop.f32.mrf.mxu0 }
 0x865   : > { %v3713_v43 = vrot.slane %v3583_v27, 2  ;;  %v5328_v58 = vrot.slane %v5198_v21, 2 }
 0x866   : > { %v4839_v48 = vsel %vm1560_vm0, %v4837_v53, %v4838_v23 }
 0x867   : > { %v4934_v20 = vadd.f32 %v4839_v48, %v4508_v18  ;;  %v3714_v45 = vsel %vm2019_vm1, %v3711_v61, %v3713_v43  ;;  %v5329_v53 = vsel %vm2019_vm1, %v5326_v47, %v5328_v58 }
 0x868   : > { %v3810_v5 = vadd.f32 %v3714_v45, %v18220_v35 }
 0x869   : > { %v5424_v36 = vadd.f32 %v5327_v52, %v4934_v20 }
 0x86a   : > { %v4509_v7 = vadd.f32 %v4456_v33, %v3810_v5 }
 0x86b   : > { %v16419_v40 = vadd.f32 %v16291_v38, %v5424_v36  ;;  %v4459_v37 = vpop.f32.mrf.mxu2  ;;  %v4757_v6 = vpop.f32.mrf.mxu3 }
 0x86c   : > { %v4935_v1 = vadd.f32 %v4838_v23, %v4509_v7  ;;  %v3585_v30 = vpop.f32.mrf.mxu1  ;;  %v5200_v11 = vpop.f32.mrf.mxu0 }
 0x86e   : > { %v5425_v27 = vadd.f32 %v5329_v53, %v4935_v1 }
 0x86f   : > { %5481 = sbr.rel (%p13276_p11) target bundleno = 2273 (0x8e1), region = 60 }
 0x870   : > { %v16423_v61 = vadd.f32 %v16291_v38, %v5425_v27 }
 0x873   : > { %v4460_v3 = vpop.f32.mrf.mxu2  ;;  %v4758_v18 = vpop.f32.mrf.mxu3 }
 0x874   : > { %vm5482_vm2 = vcmp.ge.f32.partialorder %v16155_v55, 0.0  ;;  %vm5483_vm3 = vcmp.ge.f32.partialorder %v16162_v59, 0.0  ;;  %v5530_v33 = vmul.f32 0.2, %v16155_v55  ;;  %v5531_v7 = vmul.f32 0.2, %v16162_v59 }
 0x875   : > { %vm5674_vm4 = vsmask.f32 256  ;;  %vm5675_vm5 = vsmask.f32 4368  ;;  %vm5484_vm6 = vcmp.ge.f32.partialorder %v16165_v2, 0.0  ;;  %vm5485_vm7 = vcmp.ge.f32.partialorder %v16172_v49, 0.0 }
 0x876   : > { %v5578_v38 = vsel %vm5482_vm2, %v16155_v55, %v5530_v33  ;;  %v5579_v1 = vsel %vm5483_vm3, %v16162_v59, %v5531_v7  ;;  %v5532_v47 = vmul.f32 0.2, %v16165_v2  ;;  %vm5486_vm8 = vcmp.ge.f32.partialorder %v16179_v51, 0.0  ;;  %vm16450_vm12 = vmor %vm5674_vm4, %vm5675_vm5 }
 0x877   : > { %v5626_v23 = vpack.c.bf16 %v5578_v38, %v5578_v38  ;;  %v5627_v21 = vpack.c.bf16 %v5579_v1, %v5579_v1  ;;  %v5533_v43 = vmul.f32 0.2, %v16172_v49  ;;  %v5534_v48 = vmul.f32 0.2, %v16179_v51 }
 0x878   : > { %v5580_v20 = vsel %vm5484_vm6, %v16165_v2, %v5532_v47  ;;  %vm5487_vm9 = vcmp.ge.f32.partialorder %v16182_v62, 0.0  ;;  %v5535_v45 = vmul.f32 0.2, %v16182_v62  ;;  %vm5488_vm10 = vcmp.ge.f32.partialorder %v16189_v39, 0.0 }
 0x879   : > { %v5678_v52 = vshrl.u32 %v5626_v23, 16  ;;  %v5683_v35 = vshrl.u32 %v5627_v21, 16  ;;  %v5686_v5 = vshll.u32 %v5627_v21, 16  ;;  %v5628_v36 = vpack.c.bf16 %v5580_v20, %v5580_v20 }
 0x87a   : > { %v5581_v58 = vsel %vm5485_vm7, %v16172_v49, %v5533_v43  ;;  %v5582_v37 = vsel %vm5486_vm8, %v16179_v51, %v5534_v48  ;;  %v5583_v6 = vsel %vm5487_vm9, %v16182_v62, %v5535_v45  ;;  %vm5489_vm11 = vcmp.ge.f32.partialorder %v16196_v54, 0.0 }
 0x87b   : > { %v13277_v30 = vrot.slane %v5678_v52, 11  ;;  %v5685_v11 = vrot.slane %v5683_v35, 7  ;;  %v5692_v53 = vshrl.u32 %v5628_v36, 16  ;;  %v5695_v27 = vshll.u32 %v5628_v36, 16 }
 0x87c   : > { %v5629_v18 = vpack.c.bf16 %v5581_v58, %v5581_v58  ;;  %v5630_v33 = vpack.c.bf16 %v5582_v37, %v5582_v37  ;;  %v5631_v7 = vpack.c.bf16 %v5583_v6, %v5583_v6  ;;  %v5536_v38 = vmul.f32 0.2, %v16189_v39 }
 0x87d   : > { %v5688_v1 = vor.u32 %v5686_v5, %v5685_v11  ;;  %v5690_v47 = vrot.slane %v5685_v11, 4  ;;  %v5694_v23 = vrot.slane %v5692_v53, 7  ;;  %v5537_v21 = vmul.f32 0.2, %v16196_v54 }
 0x87e   : > { %v5700_v43 = vshrl.u32 %v5629_v18, 16  ;;  %v5705_v48 = vshrl.u32 %v5630_v33, 16  ;;  %v5708_v20 = vshll.u32 %v5630_v33, 16  ;;  %v5714_v45 = vshrl.u32 %v5631_v7, 16 }
 0x87f   : > { %v5689_v52 = vsel %vm16450_vm12, %v13277_v30, %v5688_v1  ;;  %v5697_v35 = vor.u32 %v5695_v27, %v5694_v23  ;;  %v5717_v36 = vshll.u32 %v5631_v7, 16  ;;  %v5584_v58 = vsel %vm5488_vm10, %v16189_v39, %v5536_v38 }
 0x880   : > { %6062 = vst [vmem:[#allocation2 + $0x1d0] sm:$0xf] %v5689_v52  ;;  %v13278_v37 = vrot.slane %v5700_v43, 11  ;;  %v5707_v5 = vrot.slane %v5705_v48, 7  ;;  %v5716_v6 = vrot.slane %v5714_v45, 7  ;;  %v5585_v11 = vsel %vm5489_vm11, %v16196_v54, %v5537_v21 }
 0x881   : > { %v5698_v53 = vsel %vm16450_vm12, %v5690_v47, %v5697_v35  ;;  %v5632_v18 = vpack.c.bf16 %v5584_v58, %v5584_v58  ;;  %v5633_v33 = vpack.c.bf16 %v5585_v11, %v5585_v11  ;;  %vm5490_vm13 = vcmp.ge.f32.partialorder %v16199_v0, 0.0 }
 0x882   : > { %6063 = vst [vmem:[#allocation2 + $0x1d4] sm:$0xf] %v5698_v53  ;;  %v5710_v30 = vor.u32 %v5708_v20, %v5707_v5  ;;  %v5712_v27 = vrot.slane %v5707_v5, 4  ;;  %v5719_v7 = vor.u32 %v5717_v36, %v5716_v6  ;;  %v5538_v38 = vmul.f32 0.2, %v16199_v0 }
 0x883   : > { %v5722_v1 = vshrl.u32 %v5632_v18, 16  ;;  %v5727_v23 = vshrl.u32 %v5633_v33, 16  ;;  %v5730_v43 = vshll.u32 %v5633_v33, 16  ;;  %vm5491_vm14 = vcmp.ge.f32.partialorder %v16206_v63, 0.0 }
 0x884   : > { %v5711_v21 = vsel %vm16450_vm12, %v13278_v37, %v5710_v30  ;;  %v5720_v47 = vsel %vm16450_vm12, %v5712_v27, %v5719_v7  ;;  %v5586_v48 = vsel %vm5490_vm13, %v16199_v0, %v5538_v38  ;;  %vm5492_vm15 = vcmp.ge.f32.partialorder %v16213_v50, 0.0 }
 0x885   : > { %6064 = vst [vmem:[#allocation2 + $0x1e8] sm:$0xf] %v5711_v21  ;;  %v13279_v20 = vrot.slane %v5722_v1, 11  ;;  %v5729_v45 = vrot.slane %v5727_v23, 7  ;;  %v5634_v52 = vpack.c.bf16 %v5586_v48, %v5586_v48  ;;  %v5539_v35 = vmul.f32 0.2, %v16206_v63 }
 0x886   : > { %6065 = vst [vmem:[#allocation2 + $0x1ec] sm:$0xf] %v5720_v47  ;;  %v5540_v36 = vmul.f32 0.2, %v16213_v50  ;;  %vm5493_vm0 = vcmp.ge.f32.partialorder %v16216_v24, 0.0  ;;  %vm5494_vm1 = vcmp.ge.f32.partialorder %v16223_v57, 0.0 }
 0x887   : > { %v5732_v58 = vor.u32 %v5730_v43, %v5729_v45  ;;  %v5734_v37 = vrot.slane %v5729_v45, 4  ;;  %v5736_v5 = vshrl.u32 %v5634_v52, 16  ;;  %v5739_v6 = vshll.u32 %v5634_v52, 16 }
 0x888   : > { %v5587_v11 = vsel %vm5491_vm14, %v16206_v63, %v5539_v35  ;;  %v5588_v53 = vsel %vm5492_vm15, %v16213_v50, %v5540_v36  ;;  %v5541_v18 = vmul.f32 0.2, %v16216_v24  ;;  %vm5495_vm2 = vcmp.ge.f32.partialorder %v16230_v41, 0.0 }
 0x889   : > { %v5733_v33 = vsel %vm16450_vm12, %v13279_v20, %v5732_v58  ;;  %v5738_v30 = vrot.slane %v5736_v5, 7  ;;  %v5635_v27 = vpack.c.bf16 %v5587_v11, %v5587_v11  ;;  %v5636_v7 = vpack.c.bf16 %v5588_v53, %v5588_v53 }
 0x88a   : > { %6066 = vst [vmem:[#allocation2 + $0x200] sm:$0xf] %v5733_v33  ;;  %v5589_v38 = vsel %vm5493_vm0, %v16216_v24, %v5541_v18  ;;  %v5542_v1 = vmul.f32 0.2, %v16223_v57  ;;  %v5543_v23 = vmul.f32 0.2, %v16230_v41 }
 0x88b   : > { %v5741_v43 = vor.u32 %v5739_v6, %v5738_v30  ;;  %v5744_v21 = vshrl.u32 %v5635_v27, 16  ;;  %v5749_v47 = vshrl.u32 %v5636_v7, 16  ;;  %v5752_v48 = vshll.u32 %v5636_v7, 16 }
 0x88c   : > { %v5637_v45 = vpack.c.bf16 %v5589_v38, %v5589_v38  ;;  %v5590_v52 = vsel %vm5494_vm1, %v16223_v57, %v5542_v1  ;;  %v5591_v20 = vsel %vm5495_vm2, %v16230_v41, %v5543_v23  ;;  %vm5496_vm3 = vcmp.ge.f32.partialorder %v16233_v8, 0.0 }
 0x88d   : > { %v5742_v35 = vsel %vm16450_vm12, %v5734_v37, %v5741_v43  ;;  %v13280_v36 = vrot.slane %v5744_v21, 11  ;;  %v5751_v58 = vrot.slane %v5749_v47, 7  ;;  %v5638_v5 = vpack.c.bf16 %v5590_v52, %v5590_v52 }
 0x88e   : > { %6067 = vst [vmem:[#allocation2 + $0x204] sm:$0xf] %v5742_v35  ;;  %v5758_v6 = vshrl.u32 %v5637_v45, 16  ;;  %v5761_v11 = vshll.u32 %v5637_v45, 16  ;;  %v5639_v53 = vpack.c.bf16 %v5591_v20, %v5591_v20  ;;  %v5544_v18 = vmul.f32 0.2, %v16233_v8 }
 0x88f   : > { %v5754_v33 = vor.u32 %v5752_v48, %v5751_v58  ;;  %v5756_v30 = vrot.slane %v5751_v58, 4  ;;  %v5766_v27 = vshrl.u32 %v5638_v5, 16  ;;  %vm5497_vm4 = vcmp.ge.f32.partialorder %v16240_v26, 0.0 }
 0x890   : > { %v5760_v7 = vrot.slane %v5758_v6, 7  ;;  %v5771_v38 = vshrl.u32 %v5639_v53, 16  ;;  %v5774_v1 = vshll.u32 %v5639_v53, 16  ;;  %v5592_v37 = vsel %vm5496_vm3, %v16233_v8, %v5544_v18 }
 0x891   : > { %v5755_v23 = vsel %vm16450_vm12, %v13280_v36, %v5754_v33  ;;  %v13281_v43 = vrot.slane %v5766_v27, 11  ;;  %v5640_v21 = vpack.c.bf16 %v5592_v37, %v5592_v37  ;;  %vm5498_vm5 = vcmp.ge.f32.partialorder %v16247_v28, 0.0 }
 0x892   : > { %6068 = vst [vmem:[#allocation2 + $0x218] sm:$0xf] %v5755_v23  ;;  %v5763_v47 = vor.u32 %v5761_v11, %v5760_v7  ;;  %v5773_v48 = vrot.slane %v5771_v38, 7  ;;  %v5545_v45 = vmul.f32 0.2, %v16240_v26  ;;  %vm5499_vm6 = vcmp.ge.f32.partialorder %v16250_v29, 0.0 }
 0x893   : > { %v5780_v52 = vshrl.u32 %v5640_v21, 16  ;;  %v5783_v20 = vshll.u32 %v5640_v21, 16  ;;  %v5546_v35 = vmul.f32 0.2, %v16247_v28  ;;  %v5547_v58 = vmul.f32 0.2, %v16250_v29 }
 0x894   : > { %v5764_v36 = vsel %vm16450_vm12, %v5756_v30, %v5763_v47  ;;  %v5776_v5 = vor.u32 %v5774_v1, %v5773_v48  ;;  %v5778_v6 = vrot.slane %v5773_v48, 4  ;;  %v5593_v11 = vsel %vm5497_vm4, %v16240_v26, %v5545_v45 }
 0x895   : > { %6069 = vst [vmem:[#allocation2 + $0x21c] sm:$0xf] %v5764_v36  ;;  %v5782_v53 = vrot.slane %v5780_v52, 7  ;;  %v5594_v18 = vsel %vm5498_vm5, %v16247_v28, %v5546_v35  ;;  %v5641_v33 = vpack.c.bf16 %v5593_v11, %v5593_v11  ;;  %v5595_v27 = vsel %vm5499_vm6, %v16250_v29, %v5547_v58 }
 0x896   : > { %v5777_v7 = vsel %vm16450_vm12, %v13281_v43, %v5776_v5  ;;  %v5642_v38 = vpack.c.bf16 %v5594_v18, %v5594_v18  ;;  %v5643_v30 = vpack.c.bf16 %v5595_v27, %v5595_v27  ;;  %vm5500_vm7 = vcmp.ge.f32.partialorder %v16257_v9, 0.0 }
 0x897   : > { %6070 = vst [vmem:[#allocation2 + $0x230] sm:$0xf] %v5777_v7  ;;  %v5785_v1 = vor.u32 %v5783_v20, %v5782_v53  ;;  %v5788_v37 = vshrl.u32 %v5641_v33, 16  ;;  %vm5501_vm8 = vcmp.ge.f32.partialorder %v16264_v44, 0.0  ;;  %v5548_v23 = vmul.f32 0.2, %v16257_v9 }
 0x898   : > { %v5793_v21 = vshrl.u32 %v5642_v38, 16  ;;  %v5796_v47 = vshll.u32 %v5642_v38, 16  ;;  %v5802_v48 = vshrl.u32 %v5643_v30, 16  ;;  %v5805_v45 = vshll.u32 %v5643_v30, 16 }
 0x899   : > { %v5786_v52 = vsel %vm16450_vm12, %v5778_v6, %v5785_v1  ;;  %v13282_v35 = vrot.slane %v5788_v37, 11  ;;  %v5549_v43 = vmul.f32 0.2, %v16264_v44  ;;  %v5596_v58 = vsel %vm5500_vm7, %v16257_v9, %v5548_v23 }
 0x89a   : > { %6071 = vst [vmem:[#allocation2 + $0x234] sm:$0xf] %v5786_v52  ;;  %v5795_v36 = vrot.slane %v5793_v21, 7  ;;  %v5804_v20 = vrot.slane %v5802_v48, 7  ;;  %v5644_v5 = vpack.c.bf16 %v5596_v58, %v5596_v58  ;;  %vm5502_vm9 = vcmp.ge.f32.partialorder %v16267_v25, 0.0 }
 0x89b   : > { %v5597_v11 = vsel %vm5501_vm8, %v16264_v44, %v5549_v43  ;;  %v5550_v53 = vmul.f32 0.2, %v16267_v25  ;;  %vm5503_vm10 = vcmp.ge.f32.partialorder %v16274_v42, 0.0  ;;  %vm5504_vm11 = vcmp.ge.f32.partialorder %v16281_v13, 0.0 }
 0x89c   : > { %v5798_v6 = vor.u32 %v5796_v47, %v5795_v36  ;;  %v5800_v18 = vrot.slane %v5795_v36, 4  ;;  %v5807_v33 = vor.u32 %v5805_v45, %v5804_v20  ;;  %v5645_v27 = vpack.c.bf16 %v5597_v11, %v5597_v11 }
 0x89d   : > { %v5810_v7 = vshrl.u32 %v5644_v5, 16  ;;  %v5598_v38 = vsel %vm5502_vm9, %v16267_v25, %v5550_v53  ;;  %v5551_v30 = vmul.f32 0.2, %v16274_v42  ;;  %v5552_v1 = vmul.f32 0.2, %v16281_v13 }
 0x89e   : > { %v5799_v37 = vsel %vm16450_vm12, %v13282_v35, %v5798_v6  ;;  %v5808_v23 = vsel %vm16450_vm12, %v5800_v18, %v5807_v33  ;;  %v5815_v21 = vshrl.u32 %v5645_v27, 16  ;;  %v5818_v48 = vshll.u32 %v5645_v27, 16 }
 0x89f   : > { %6072 = vst [vmem:[#allocation2 + $0x248] sm:$0xf] %v5799_v37  ;;  %v13283_v47 = vrot.slane %v5810_v7, 11  ;;  %v5646_v52 = vpack.c.bf16 %v5598_v38, %v5598_v38  ;;  %v5599_v45 = vsel %vm5503_vm10, %v16274_v42, %v5551_v30  ;;  %v5600_v43 = vsel %vm5504_vm11, %v16281_v13, %v5552_v1 }
 0x8a0   : > { %6073 = vst [vmem:[#allocation2 + $0x24c] sm:$0xf] %v5808_v23  ;;  %v5817_v58 = vrot.slane %v5815_v21, 7  ;;  %v5647_v36 = vpack.c.bf16 %v5599_v45, %v5599_v45  ;;  %v5648_v35 = vpack.c.bf16 %v5600_v43, %v5600_v43  ;;  %vm5505_vm13 = vcmp.ge.f32.partialorder %v16284_v46, 0.0 }
 0x8a1   : > { %v5824_v20 = vshrl.u32 %v5646_v52, 16  ;;  %v5827_v5 = vshll.u32 %v5646_v52, 16  ;;  %v5553_v11 = vmul.f32 0.2, %v16284_v46  ;;  %vm5506_vm14 = vcmp.ge.f32.partialorder %v16294_v17, 0.0 }
 0x8a2   : > { %v5820_v53 = vor.u32 %v5818_v48, %v5817_v58  ;;  %v5822_v6 = vrot.slane %v5817_v58, 4  ;;  %v5832_v18 = vshrl.u32 %v5647_v36, 16  ;;  %v5837_v33 = vshrl.u32 %v5648_v35, 16 }
 0x8a3   : > { %v5826_v27 = vrot.slane %v5824_v20, 7  ;;  %v5840_v7 = vshll.u32 %v5648_v35, 16  ;;  %v5601_v38 = vsel %vm5505_vm13, %v16284_v46, %v5553_v11  ;;  %vm5507_vm15 = vcmp.ge.f32.partialorder %v16301_v4, 0.0 }
 0x8a4   : > { %v5821_v30 = vsel %vm16450_vm12, %v13283_v47, %v5820_v53  ;;  %v13284_v1 = vrot.slane %v5832_v18, 11  ;;  %v5839_v37 = vrot.slane %v5837_v33, 7  ;;  %v5649_v23 = vpack.c.bf16 %v5601_v38, %v5601_v38 }
 0x8a5   : > { %6074 = vst [vmem:[#allocation2 + $0x260] sm:$0xf] %v5821_v30  ;;  %v5829_v21 = vor.u32 %v5827_v5, %v5826_v27  ;;  %v5554_v52 = vmul.f32 0.2, %v16294_v17  ;;  %v5555_v48 = vmul.f32 0.2, %v16301_v4 }
 0x8a6   : > { %v5842_v45 = vor.u32 %v5840_v7, %v5839_v37  ;;  %v5844_v43 = vrot.slane %v5839_v37, 4  ;;  %v5846_v58 = vshrl.u32 %v5649_v23, 16  ;;  %v5849_v36 = vshll.u32 %v5649_v23, 16 }
 0x8a7   : > { %v5830_v35 = vsel %vm16450_vm12, %v5822_v6, %v5829_v21  ;;  %v5602_v47 = vsel %vm5506_vm14, %v16294_v17, %v5554_v52  ;;  %v5603_v20 = vsel %vm5507_vm15, %v16301_v4, %v5555_v48  ;;  %vm5508_vm0 = vcmp.ge.f32.partialorder %v16304_v31, 0.0 }
 0x8a8   : > { %6075 = vst [vmem:[#allocation2 + $0x264] sm:$0xf] %v5830_v35  ;;  %v5843_v5 = vsel %vm16450_vm12, %v13284_v1, %v5842_v45  ;;  %v5848_v11 = vrot.slane %v5846_v58, 7  ;;  %v5650_v53 = vpack.c.bf16 %v5602_v47, %v5602_v47  ;;  %v5651_v18 = vpack.c.bf16 %v5603_v20, %v5603_v20 }
 0x8a9   : > { %6076 = vst [vmem:[#allocation2 + $0x278] sm:$0xf] %v5843_v5  ;;  %v5556_v33 = vmul.f32 0.2, %v16304_v31  ;;  %vm5509_vm1 = vcmp.ge.f32.partialorder %v16311_v10, 0.0  ;;  %vm5510_vm2 = vcmp.ge.f32.partialorder %v16318_v60, 0.0 }
 0x8aa   : > { %v5851_v6 = vor.u32 %v5849_v36, %v5848_v11  ;;  %v5854_v27 = vshrl.u32 %v5650_v53, 16  ;;  %v5859_v7 = vshrl.u32 %v5651_v18, 16  ;;  %v5862_v38 = vshll.u32 %v5651_v18, 16 }
 0x8ab   : > { %v5604_v30 = vsel %vm5508_vm0, %v16304_v31, %v5556_v33  ;;  %v5557_v37 = vmul.f32 0.2, %v16311_v10  ;;  %v5558_v1 = vmul.f32 0.2, %v16318_v60  ;;  %vm5511_vm3 = vcmp.ge.f32.partialorder %v16321_v32, 0.0 }
 0x8ac   : > { %v5852_v23 = vsel %vm16450_vm12, %v5844_v43, %v5851_v6  ;;  %v13285_v21 = vrot.slane %v5854_v27, 11  ;;  %v5861_v52 = vrot.slane %v5859_v7, 7  ;;  %v5652_v48 = vpack.c.bf16 %v5604_v30, %v5604_v30 }
 0x8ad   : > { %6077 = vst [vmem:[#allocation2 + $0x27c] sm:$0xf] %v5852_v23  ;;  %v5605_v45 = vsel %vm5509_vm1, %v16311_v10, %v5557_v37  ;;  %v5606_v58 = vsel %vm5510_vm2, %v16318_v60, %v5558_v1  ;;  %v5559_v36 = vmul.f32 0.2, %v16321_v32  ;;  %vm5512_vm4 = vcmp.ge.f32.partialorder %v16328_v56, 0.0 }
 0x8ae   : > { %v5864_v35 = vor.u32 %v5862_v38, %v5861_v52  ;;  %v5866_v47 = vrot.slane %v5861_v52, 4  ;;  %v5868_v20 = vshrl.u32 %v5652_v48, 16  ;;  %v5871_v5 = vshll.u32 %v5652_v48, 16 }
 0x8af   : > { %v5653_v11 = vpack.c.bf16 %v5605_v45, %v5605_v45  ;;  %v5654_v53 = vpack.c.bf16 %v5606_v58, %v5606_v58  ;;  %v5607_v43 = vsel %vm5511_vm3, %v16321_v32, %v5559_v36  ;;  %vm5513_vm5 = vcmp.ge.f32.partialorder %v16335_v34, 0.0 }
 0x8b0   : > { %v5865_v18 = vsel %vm16450_vm12, %v13285_v21, %v5864_v35  ;;  %v5870_v33 = vrot.slane %v5868_v20, 7  ;;  %v5655_v6 = vpack.c.bf16 %v5607_v43, %v5607_v43  ;;  %v5560_v27 = vmul.f32 0.2, %v16328_v56 }
 0x8b1   : > { %6078 = vst [vmem:[#allocation2 + $0x290] sm:$0xf] %v5865_v18  ;;  %v5876_v7 = vshrl.u32 %v5653_v11, 16  ;;  %v5881_v38 = vshrl.u32 %v5654_v53, 16  ;;  %v5884_v30 = vshll.u32 %v5654_v53, 16  ;;  %vm5514_vm6 = vcmp.ge.f32.partialorder %v16338_v12, 0.0 }
 0x8b2   : > { %v5873_v37 = vor.u32 %v5871_v5, %v5870_v33  ;;  %v5890_v1 = vshrl.u32 %v5655_v6, 16  ;;  %v5893_v23 = vshll.u32 %v5655_v6, 16  ;;  %v5561_v52 = vmul.f32 0.2, %v16335_v34 }
 0x8b3   : > { %v13286_v48 = vrot.slane %v5876_v7, 11  ;;  %v5883_v45 = vrot.slane %v5881_v38, 7  ;;  %v5608_v21 = vsel %vm5512_vm4, %v16328_v56, %v5560_v27  ;;  %v5562_v58 = vmul.f32 0.2, %v16338_v12 }
 0x8b4   : > { %v5874_v36 = vsel %vm16450_vm12, %v5866_v47, %v5873_v37  ;;  %v5892_v35 = vrot.slane %v5890_v1, 7  ;;  %v5609_v20 = vsel %vm5513_vm5, %v16335_v34, %v5561_v52  ;;  %v5656_v5 = vpack.c.bf16 %v5608_v21, %v5608_v21 }
 0x8b5   : > { %6079 = vst [vmem:[#allocation2 + $0x294] sm:$0xf] %v5874_v36  ;;  %v5886_v11 = vor.u32 %v5884_v30, %v5883_v45  ;;  %v5888_v53 = vrot.slane %v5883_v45, 4  ;;  %v5657_v43 = vpack.c.bf16 %v5609_v20, %v5609_v20  ;;  %v5610_v18 = vsel %vm5514_vm6, %v16338_v12, %v5562_v58 }
 0x8b6   : > { %v5895_v33 = vor.u32 %v5893_v23, %v5892_v35  ;;  %v5898_v6 = vshrl.u32 %v5656_v5, 16  ;;  %v5658_v27 = vpack.c.bf16 %v5610_v18, %v5610_v18  ;;  %vm5515_vm7 = vcmp.ge.f32.partialorder %v16345_v16, 0.0 }
 0x8b7   : > { %v5887_v47 = vsel %vm16450_vm12, %v13286_v48, %v5886_v11  ;;  %v5903_v7 = vshrl.u32 %v5657_v43, 16  ;;  %v5906_v38 = vshll.u32 %v5657_v43, 16  ;;  %vm5516_vm8 = vcmp.ge.f32.partialorder %v16352_v15, 0.0 }
 0x8b8   : > { %6080 = vst [vmem:[#allocation2 + $0x2a8] sm:$0xf] %v5887_v47  ;;  %v5896_v30 = vsel %vm16450_vm12, %v5888_v53, %v5895_v33  ;;  %v13287_v37 = vrot.slane %v5898_v6, 11  ;;  %v5912_v1 = vshrl.u32 %v5658_v27, 16  ;;  %v5915_v52 = vshll.u32 %v5658_v27, 16 }
 0x8b9   : > { %6081 = vst [vmem:[#allocation2 + $0x2ac] sm:$0xf] %v5896_v30  ;;  %v5905_v23 = vrot.slane %v5903_v7, 7  ;;  %v5563_v45 = vmul.f32 0.2, %v16345_v16  ;;  %vm5517_vm9 = vcmp.ge.f32.partialorder %v16355_v14, 0.0 }
 0x8ba   : > { %v5914_v21 = vrot.slane %v5912_v1, 7  ;;  %v5564_v48 = vmul.f32 0.2, %v16352_v15  ;;  %v5565_v58 = vmul.f32 0.2, %v16355_v14  ;;  %vm5518_vm10 = vcmp.ge.f32.partialorder %v16362_v19, 0.0 }
 0x8bb   : > { %v5908_v36 = vor.u32 %v5906_v38, %v5905_v23  ;;  %v5910_v35 = vrot.slane %v5905_v23, 4  ;;  %v5611_v20 = vsel %vm5515_vm7, %v16345_v16, %v5563_v45  ;;  %vm5519_vm11 = vcmp.ge.f32.partialorder %v16369_v22, 0.0  ;;  %v18224_v30 = vld [vmem:[#allocation17_spill] sm:$0xff] }
 0x8bc   : > { %v5917_v5 = vor.u32 %v5915_v52, %v5914_v21  ;;  %v5612_v11 = vsel %vm5516_vm8, %v16352_v15, %v5564_v48  ;;  %v5659_v53 = vpack.c.bf16 %v5611_v20, %v5611_v20  ;;  %v5613_v43 = vsel %vm5517_vm9, %v16355_v14, %v5565_v58 }
 0x8bd   : > { %v5909_v18 = vsel %vm16450_vm12, %v13287_v37, %v5908_v36  ;;  %v5660_v33 = vpack.c.bf16 %v5612_v11, %v5612_v11  ;;  %v5661_v6 = vpack.c.bf16 %v5613_v43, %v5613_v43  ;;  %v5566_v27 = vmul.f32 0.2, %v16362_v19  ;;  %v18226_v43 = vld [vmem:[#allocation19_spill] sm:$0xff] }
 0x8be   : > { %6082 = vst [vmem:[#allocation2 + $0x2c0] sm:$0xf] %v5909_v18  ;;  %v5918_v47 = vsel %vm16450_vm12, %v5910_v35, %v5917_v5  ;;  %v5920_v7 = vshrl.u32 %v5659_v53, 16  ;;  %v5567_v38 = vmul.f32 0.2, %v16369_v22  ;;  %vm5520_vm13 = vcmp.ge.f32.partialorder %v18224_v30, 0.0 }
 0x8bf   : > { %6083 = vst [vmem:[#allocation2 + $0x2c4] sm:$0xf] %v5918_v47  ;;  %v5925_v1 = vshrl.u32 %v5660_v33, 16  ;;  %v5928_v52 = vshll.u32 %v5660_v33, 16  ;;  %v5934_v23 = vshrl.u32 %v5661_v6, 16  ;;  %v5937_v45 = vshll.u32 %v5661_v6, 16 }
 0x8c0   : > { %v13288_v21 = vrot.slane %v5920_v7, 11  ;;  %v5614_v37 = vsel %vm5518_vm10, %v16362_v19, %v5566_v27  ;;  %v5615_v48 = vsel %vm5519_vm11, %v16369_v22, %v5567_v38  ;;  %v5568_v58 = vmul.f32 0.2, %v18224_v30  ;;  %v18225_v53 = vld [vmem:[#allocation18_spill] sm:$0xff] }
 0x8c1   : > { %v5927_v36 = vrot.slane %v5925_v1, 7  ;;  %v5936_v35 = vrot.slane %v5934_v23, 7  ;;  %v5662_v20 = vpack.c.bf16 %v5614_v37, %v5614_v37  ;;  %v5663_v5 = vpack.c.bf16 %v5615_v48, %v5615_v48 }
 0x8c2   : > { %v5616_v11 = vsel %vm5520_vm13, %v18224_v30, %v5568_v58  ;;  %vm5521_vm14 = vcmp.ge.f32.partialorder %v18225_v53, 0.0  ;;  %vm5522_vm15 = vcmp.ge.f32.partialorder %v18226_v43, 0.0  ;;  %v5569_v18 = vmul.f32 0.2, %v18225_v53 }
 0x8c3   : > { %v5930_v33 = vor.u32 %v5928_v52, %v5927_v36  ;;  %v5932_v6 = vrot.slane %v5927_v36, 4  ;;  %v5939_v27 = vor.u32 %v5937_v45, %v5936_v35  ;;  %v5942_v47 = vshrl.u32 %v5662_v20, 16 }
 0x8c4   : > { %v5947_v7 = vshrl.u32 %v5663_v5, 16  ;;  %v5950_v38 = vshll.u32 %v5663_v5, 16  ;;  %v5664_v22 = vpack.c.bf16 %v5616_v11, %v5616_v11  ;;  %v5570_v1 = vmul.f32 0.2, %v18226_v43  ;;  %v18227_v5 = vld [vmem:[#allocation20_spill] sm:$0xff] }
 0x8c5   : > { %v5931_v23 = vsel %vm16450_vm12, %v13288_v21, %v5930_v33  ;;  %v5940_v30 = vsel %vm16450_vm12, %v5932_v6, %v5939_v27  ;;  %v13289_v37 = vrot.slane %v5942_v47, 11  ;;  %v5617_v48 = vsel %vm5521_vm14, %v18225_v53, %v5569_v18  ;;  %v18228_v27 = vld [vmem:[#allocation22_spill] sm:$0xff] }
 0x8c6   : > { %6084 = vst [vmem:[#allocation2 + $0x2d8] sm:$0xf] %v5931_v23  ;;  %v5949_v58 = vrot.slane %v5947_v7, 7  ;;  %v5956_v52 = vshrl.u32 %v5664_v22, 16  ;;  %v5959_v36 = vshll.u32 %v5664_v22, 16  ;;  %v5618_v45 = vsel %vm5522_vm15, %v18226_v43, %v5570_v1  ;;  %v18229_v23 = vld [vmem:[#allocation24_spill] sm:$0xff] }
 0x8c7   : > { %6085 = vst [vmem:[#allocation2 + $0x2dc] sm:$0xf] %v5940_v30  ;;  %v5665_v35 = vpack.c.bf16 %v5617_v48, %v5617_v48  ;;  %v5666_v20 = vpack.c.bf16 %v5618_v45, %v5618_v45  ;;  %vm5523_vm0 = vcmp.ge.f32.partialorder %v18227_v5, 0.0  ;;  %v5571_v21 = vmul.f32 0.2, %v18227_v5 }
 0x8c8   : > { %v5952_v11 = vor.u32 %v5950_v38, %v5949_v58  ;;  %v5954_v33 = vrot.slane %v5949_v58, 4  ;;  %v5958_v6 = vrot.slane %v5956_v52, 7  ;;  %vm5524_vm1 = vcmp.ge.f32.partialorder %v18228_v27, 0.0 }
 0x8c9   : > { %v5964_v53 = vshrl.u32 %v5665_v35, 16  ;;  %v5969_v18 = vshrl.u32 %v5666_v20, 16  ;;  %v5972_v47 = vshll.u32 %v5666_v20, 16  ;;  %v5619_v22 = vsel %vm5523_vm0, %v18227_v5, %v5571_v21 }
 0x8ca   : > { %v5953_v43 = vsel %vm16450_vm12, %v13289_v37, %v5952_v11  ;;  %v5961_v7 = vor.u32 %v5959_v36, %v5958_v6  ;;  %v5667_v1 = vpack.c.bf16 %v5619_v22, %v5619_v22  ;;  %vm5525_vm2 = vcmp.ge.f32.partialorder %v18229_v23, 0.0  ;;  %v18230_v36 = vld [vmem:[#allocation26_spill] sm:$0xff]  ;;  %v18231_v22 = vld [vmem:[#allocation28_spill] sm:$0xff] }
 0x8cb   : > { %6086 = vst [vmem:[#allocation2 + $0x2f0] sm:$0xf] %v5953_v43  ;;  %v13290_v30 = vrot.slane %v5964_v53, 11  ;;  %v5971_v48 = vrot.slane %v5969_v18, 7  ;;  %v5572_v38 = vmul.f32 0.2, %v18228_v27 }
 0x8cc   : > { %v5962_v58 = vsel %vm16450_vm12, %v5954_v33, %v5961_v7  ;;  %v5978_v52 = vshrl.u32 %v5667_v1, 16  ;;  %v5981_v45 = vshll.u32 %v5667_v1, 16  ;;  %v5573_v35 = vmul.f32 0.2, %v18229_v23 }
 0x8cd   : > { %6087 = vst [vmem:[#allocation2 + $0x2f4] sm:$0xf] %v5962_v58  ;;  %v5974_v20 = vor.u32 %v5972_v47, %v5971_v48  ;;  %v5976_v5 = vrot.slane %v5971_v48, 4  ;;  %v5620_v37 = vsel %vm5524_vm1, %v18228_v27, %v5572_v38  ;;  %vm5526_vm3 = vcmp.ge.f32.partialorder %v18230_v36, 0.0 }
 0x8ce   : > { %v5980_v21 = vrot.slane %v5978_v52, 7  ;;  %v5621_v11 = vsel %vm5525_vm2, %v18229_v23, %v5573_v35  ;;  %v5668_v6 = vpack.c.bf16 %v5620_v37, %v5620_v37  ;;  %v5574_v53 = vmul.f32 0.2, %v18230_v36 }
 0x8cf   : > { %v5975_v33 = vsel %vm16450_vm12, %v13290_v30, %v5974_v20  ;;  %v5669_v18 = vpack.c.bf16 %v5621_v11, %v5621_v11  ;;  %vm5527_vm4 = vcmp.ge.f32.partialorder %v18231_v22, 0.0  ;;  %vm5528_vm5 = vcmp.ge.f32.partialorder %v16419_v40, 0.0 }
 0x8d0   : > { %6088 = vst [vmem:[#allocation2 + $0x308] sm:$0xf] %v5975_v33  ;;  %v5983_v47 = vor.u32 %v5981_v45, %v5980_v21  ;;  %v5986_v43 = vshrl.u32 %v5668_v6, 16  ;;  %v5622_v27 = vsel %vm5526_vm3, %v18230_v36, %v5574_v53  ;;  %v5575_v7 = vmul.f32 0.2, %v18231_v22 }
 0x8d1   : > { %v5991_v1 = vshrl.u32 %v5669_v18, 16  ;;  %v5994_v23 = vshll.u32 %v5669_v18, 16  ;;  %v5670_v48 = vpack.c.bf16 %v5622_v27, %v5622_v27  ;;  %v5576_v38 = vmul.f32 0.2, %v16419_v40 }
 0x8d2   : > { %v5984_v30 = vsel %vm16450_vm12, %v5976_v5, %v5983_v47  ;;  %v13291_v58 = vrot.slane %v5986_v43, 11  ;;  %v5623_v52 = vsel %vm5527_vm4, %v18231_v22, %v5575_v7  ;;  %vm5529_vm6 = vcmp.ge.f32.partialorder %v16423_v61, 0.0 }
 0x8d3   : > { %6089 = vst [vmem:[#allocation2 + $0x30c] sm:$0xf] %v5984_v30  ;;  %v5993_v45 = vrot.slane %v5991_v1, 7  ;;  %v6000_v35 = vshrl.u32 %v5670_v48, 16  ;;  %v6003_v20 = vshll.u32 %v5670_v48, 16  ;;  %v5624_v37 = vsel %vm5528_vm5, %v16419_v40, %v5576_v38 }
 0x8d4   : > { %v5671_v36 = vpack.c.bf16 %v5623_v52, %v5623_v52  ;;  %v5672_v21 = vpack.c.bf16 %v5624_v37, %v5624_v37  ;;  %v5577_v11 = vmul.f32 0.2, %v16423_v61 }
 0x8d5   : > { %v5996_v6 = vor.u32 %v5994_v23, %v5993_v45  ;;  %v5998_v53 = vrot.slane %v5993_v45, 4  ;;  %v6002_v5 = vrot.slane %v6000_v35, 7 }
 0x8d6   : > { %v6008_v33 = vshrl.u32 %v5671_v36, 16  ;;  %v6013_v18 = vshrl.u32 %v5672_v21, 16  ;;  %v6016_v22 = vshll.u32 %v5672_v21, 16  ;;  %v5625_v47 = vsel %vm5529_vm6, %v16423_v61, %v5577_v11 }
 0x8d7   : > { %v5997_v43 = vsel %vm16450_vm12, %v13291_v58, %v5996_v6  ;;  %v6005_v27 = vor.u32 %v6003_v20, %v6002_v5  ;;  %v5673_v7 = vpack.c.bf16 %v5625_v47, %v5625_v47 }
 0x8d8   : > { %6090 = vst [vmem:[#allocation2 + $0x320] sm:$0xf] %v5997_v43  ;;  %v13292_v1 = vrot.slane %v6008_v33, 11  ;;  %v6015_v48 = vrot.slane %v6013_v18, 7 }
 0x8d9   : > { %v6006_v38 = vsel %vm16450_vm12, %v5998_v53, %v6005_v27  ;;  %v6022_v30 = vshrl.u32 %v5673_v7, 16  ;;  %v6025_v23 = vshll.u32 %v5673_v7, 16 }
 0x8da   : > { %6091 = vst [vmem:[#allocation2 + $0x324] sm:$0xf] %v6006_v38  ;;  %v6018_v52 = vor.u32 %v6016_v22, %v6015_v48  ;;  %v6020_v45 = vrot.slane %v6015_v48, 4 }
 0x8db   : > { %v6024_v35 = vrot.slane %v6022_v30, 7 }
 0x8dc   : > { %v6019_v37 = vsel %vm16450_vm12, %v13292_v1, %v6018_v52 }
 0x8dd   : > { %6092 = vst [vmem:[#allocation2 + $0x338] sm:$0xf] %v6019_v37  ;;  %v6027_v36 = vor.u32 %v6025_v23, %v6024_v35 }
 0x8df   : > { %v6028_v58 = vsel %vm16450_vm12, %v6020_v45, %v6027_v36 }
 0x8e0   : > { %6093 = vst [vmem:[#allocation2 + $0x33c] sm:$0xf] %v6028_v58 }
 0x8e1 PF: > { %s18232_s24 = sld [smem:[#allocation10_spill]] }
 0x8e7   : > { %p13293_p12 = scmp.ne.s32.totalorder %s18232_s24, 3 }
 0x8e9   : > { %6097 = sbr.rel (%p13293_p12) target bundleno = 2323 (0x913), region = 64 }
 0x8ee   : > { %v6098_v20 = vld [vmem:[%s15451_s18] sm:$0xff]  ;;  %vm6178_vm7 = vcmask 1040384   ;;  %v6179_v21 = vrot.slane %v16155_v55, 7  ;;  %v6180_v11 = vrot.slane %v16162_v59, 7  ;;  %vm6323_vm8 = vcmask 31744   ;;  %v6099_v6 = vld [vmem:[%s15451_s18 + $0x8] sm:$0xff] }
 0x8ef   : > { %v6182_v3 = vrot.slane %v16165_v2, 7  ;;  %v6100_v53 = vld [vmem:[%s15451_s18 + $0x10] sm:$0xff]  ;;  %v6184_v5 = vrot.slane %v16172_v49, 7  ;;  %v6185_v33 = vrot.slane %v16179_v51, 7  ;;  %v6101_v18 = vld [vmem:[%s15451_s18 + $0x18] sm:$0xff]  ;;  %v6187_v22 = vrot.slane %v16182_v62, 7 }
 0x8f0   : > { %v6181_v47 = vsel %vm6178_vm7, %v6179_v21, %v6180_v11  ;;  %v6102_v43 = vld [vmem:[%s15451_s18 + $0x20] sm:$0xff]  ;;  %v6189_v55 = vrot.slane %v16189_v39, 7  ;;  %v6190_v59 = vrot.slane %v16196_v54, 7  ;;  %v6192_v27 = vrot.slane %v16199_v0, 7  ;;  %v6103_v62 = vld [vmem:[%s15451_s18 + $0x28] sm:$0xff]  ;;  %v6104_v30 = vld [vmem:[%s15451_s18 + $0x30] sm:$0xff] }
 0x8f1   : > { %v6291_v2 = vsub.f32 %v6098_v20, %v6181_v47  ;;  %v6183_v49 = vsel %vm6178_vm7, %v6180_v11, %v6182_v3  ;;  %v6186_v51 = vsel %vm6178_vm7, %v6184_v5, %v6185_v33  ;;  %v6188_v7 = vsel %vm6178_vm7, %v6185_v33, %v6187_v22  ;;  %v6105_v35 = vld [vmem:[%s15451_s18 + $0x38] sm:$0xff]  ;;  %v6106_v36 = vld [vmem:[%s15451_s18 + $0x40] sm:$0xff]  ;;  %v6107_v21 = vld [vmem:[%s15451_s18 + $0x48] sm:$0xff] }
 0x8f2   : > { %v6292_v1 = vsub.f32 %v6099_v6, %v6183_v49  ;;  %v6293_v48 = vsub.f32 %v6100_v53, %v6186_v51  ;;  %v6294_v38 = vsub.f32 %v6101_v18, %v6188_v7  ;;  %v6191_v39 = vsel %vm6178_vm7, %v6189_v55, %v6190_v59  ;;  %v6108_v11 = vld [vmem:[%s15451_s18 + $0x50] sm:$0xff]  ;;  %v6109_v53 = vld [vmem:[%s15451_s18 + $0x58] sm:$0xff] }
 0x8f3   : > { %6324 = vst.msk [vmem:[%s15456_s13] sm:$0xff] %vm6323_vm8, %v6291_v2  ;;  %v6295_v54 = vsub.f32 %v6102_v43, %v6191_v39  ;;  %v6193_v0 = vsel %vm6178_vm7, %v6190_v59, %v6192_v27  ;;  %v6194_v23 = vrot.slane %v16206_v63, 7  ;;  %v6195_v52 = vrot.slane %v16213_v50, 7  ;;  %v6110_v43 = vld [vmem:[%s15451_s18 + $0x60] sm:$0xff]  ;;  %v6111_v27 = vld [vmem:[%s15451_s18 + $0x68] sm:$0xff]  ;;  %v6112_v49 = vld [vmem:[%s15451_s18 + $0x70] sm:$0xff] }
 0x8f4   : > { %6325 = vst.msk [vmem:[%s15456_s13 + $0x8] sm:$0xff] %vm6323_vm8, %v6292_v1  ;;  %v6296_v45 = vsub.f32 %v6103_v62, %v6193_v0  ;;  %v6197_v37 = vrot.slane %v16216_v24, 7  ;;  %v6199_v58 = vrot.slane %v16223_v57, 7  ;;  %v6200_v20 = vrot.slane %v16230_v41, 7  ;;  %v6113_v62 = vld [vmem:[%s15451_s18 + $0x78] sm:$0xff] }
 0x8f5   : > { %6326 = vst.msk [vmem:[%s15456_s13 + $0x10] sm:$0xff] %vm6323_vm8, %v6293_v48  ;;  %v6196_v63 = vsel %vm6178_vm7, %v6194_v23, %v6195_v52  ;;  %v6202_v50 = vrot.slane %v16233_v8, 7  ;;  %v6204_v6 = vrot.slane %v16240_v26, 7  ;;  %v6205_v3 = vrot.slane %v16247_v28, 7 }
 0x8f6   : > { %6327 = vst.msk [vmem:[%s15456_s13 + $0x18] sm:$0xff] %vm6323_vm8, %v6294_v38  ;;  %v6297_v24 = vsub.f32 %v6104_v30, %v6196_v63  ;;  %v6198_v57 = vsel %vm6178_vm7, %v6195_v52, %v6197_v37  ;;  %v6201_v41 = vsel %vm6178_vm7, %v6199_v58, %v6200_v20  ;;  %v6207_v5 = vrot.slane %v16250_v29, 7  ;;  %v6115_v38 = vld [vmem:[%s15451_s18 + $0x88] sm:$0xff]  ;;  %v6117_v37 = vld [vmem:[%s15451_s18 + $0x98] sm:$0xff]  ;;  %v6118_v58 = vld [vmem:[%s15451_s18 + $0xa0] sm:$0xff] }
 0x8f7   : > { %6328 = vst.msk [vmem:[%s15456_s13 + $0x20] sm:$0xff] %vm6323_vm8, %v6295_v54  ;;  %v6298_v8 = vsub.f32 %v6105_v35, %v6198_v57  ;;  %v6299_v26 = vsub.f32 %v6106_v36, %v6201_v41  ;;  %v6203_v28 = vsel %vm6178_vm7, %v6200_v20, %v6202_v50  ;;  %v6206_v33 = vsel %vm6178_vm7, %v6204_v6, %v6205_v3  ;;  %v6120_v6 = vld [vmem:[%s15451_s18 + $0xb0] sm:$0xff] }
 0x8f8   : > { %6329 = vst.msk [vmem:[%s15456_s13 + $0x28] sm:$0xff] %vm6323_vm8, %v6296_v45  ;;  %v6300_v18 = vsub.f32 %v6107_v21, %v6203_v28  ;;  %v6301_v22 = vsub.f32 %v6108_v11, %v6206_v33  ;;  %v6208_v47 = vsel %vm6178_vm7, %v6205_v3, %v6207_v5  ;;  %v6209_v29 = vrot.slane %v16257_v9, 7  ;;  %v6116_v45 = vld [vmem:[%s15451_s18 + $0x90] sm:$0xff]  ;;  %v6119_v21 = vld [vmem:[%s15451_s18 + $0xa8] sm:$0xff]  ;;  %v6122_v33 = vld [vmem:[%s15451_s18 + $0xc0] sm:$0xff] }
 0x8f9   : > { %6330 = vst.msk [vmem:[%s15456_s13 + $0x30] sm:$0xff] %vm6323_vm8, %v6297_v24  ;;  %v6302_v55 = vsub.f32 %v6109_v53, %v6208_v47  ;;  %v6210_v59 = vrot.slane %v16264_v44, 7  ;;  %v6212_v2 = vrot.slane %v16267_v25, 7  ;;  %v6214_v51 = vrot.slane %v16274_v42, 7  ;;  %v6114_v42 = vld [vmem:[%s15451_s18 + $0x80] sm:$0xff]  ;;  %v6121_v53 = vld [vmem:[%s15451_s18 + $0xb8] sm:$0xff] }
 0x8fa   : > { %6331 = vst.msk [vmem:[%s15456_s13 + $0x38] sm:$0xff] %vm6323_vm8, %v6298_v8  ;;  %v6215_v7 = vrot.slane %v16281_v13, 7  ;;  %v6217_v9 = vrot.slane %v16284_v46, 7  ;;  %v6219_v1 = vrot.slane %v16294_v17, 7  ;;  %v6220_v48 = vrot.slane %v16301_v4, 7  ;;  %v18235_v47 = vld [vmem:[#allocation18_spill] sm:$0xff] }
 0x8fb   : > { %6332 = vst.msk [vmem:[%s15456_s13 + $0x40] sm:$0xff] %vm6323_vm8, %v6299_v26  ;;  %v6211_v44 = vsel %vm6178_vm7, %v6209_v29, %v6210_v59  ;;  %v6213_v25 = vsel %vm6178_vm7, %v6210_v59, %v6212_v2  ;;  %v6222_v13 = vrot.slane %v16304_v31, 7  ;;  %v6224_v39 = vrot.slane %v16311_v10, 7  ;;  %v18233_v26 = vld [vmem:[#allocation16_spill] sm:$0xff]  ;;  %v18236_v29 = vld [vmem:[#allocation19_spill] sm:$0xff] }
 0x8fc   : > { %6333 = vst.msk [vmem:[%s15456_s13 + $0x48] sm:$0xff] %vm6323_vm8, %v6300_v18  ;;  %v6303_v46 = vsub.f32 %v6110_v43, %v6211_v44  ;;  %v6304_v17 = vsub.f32 %v6111_v27, %v6213_v25  ;;  %v6216_v4 = vsel %vm6178_vm7, %v6214_v51, %v6215_v7  ;;  %v6218_v54 = vsel %vm6178_vm7, %v6215_v7, %v6217_v9  ;;  %v18234_v18 = vld [vmem:[#allocation17_spill] sm:$0xff]  ;;  %v18237_v59 = vld [vmem:[#allocation20_spill] sm:$0xff]  ;;  %v18240_v9 = vld [vmem:[#allocation26_spill] sm:$0xff] }
 0x8fd   : > { %6334 = vst.msk [vmem:[%s15456_s13 + $0x50] sm:$0xff] %vm6323_vm8, %v6301_v22  ;;  %v6305_v0 = vsub.f32 %v6112_v49, %v6216_v4  ;;  %v6306_v30 = vsub.f32 %v6113_v62, %v6218_v54  ;;  %v6221_v31 = vsel %vm6178_vm7, %v6219_v1, %v6220_v48  ;;  %v6223_v10 = vsel %vm6178_vm7, %v6220_v48, %v6222_v13  ;;  %v6123_v2 = vld [vmem:[%s15451_s18 + $0xc8] sm:$0xff]  ;;  %v18238_v49 = vld [vmem:[#allocation22_spill] sm:$0xff]  ;;  %v6124_v25 = vld [vmem:[%s15451_s18 + $0xd0] sm:$0xff] }
 0x8fe   : > { %6335 = vst.msk [vmem:[%s15456_s13 + $0x58] sm:$0xff] %vm6323_vm8, %v6302_v55  ;;  %v6307_v23 = vsub.f32 %v6114_v42, %v6221_v31  ;;  %v6308_v52 = vsub.f32 %v6115_v38, %v6223_v10  ;;  %v6225_v35 = vrot.slane %v16318_v60, 7  ;;  %v6227_v36 = vrot.slane %v16321_v32, 7  ;;  %v18239_v7 = vld [vmem:[#allocation24_spill] sm:$0xff]  ;;  %v6125_v13 = vld [vmem:[%s15451_s18 + $0xd8] sm:$0xff] }
 0x8ff   : > { %6336 = vst.msk [vmem:[%s15456_s13 + $0x60] sm:$0xff] %vm6323_vm8, %v6303_v46  ;;  %v6229_v20 = vrot.slane %v16328_v56, 7  ;;  %v6230_v63 = vrot.slane %v16335_v34, 7  ;;  %v6232_v50 = vrot.slane %v16338_v12, 7  ;;  %v6234_v11 = vrot.slane %v16345_v16, 7  ;;  %v18241_v54 = vld [vmem:[#allocation28_spill] sm:$0xff] }
 0x900   : > { %6337 = vst.msk [vmem:[%s15456_s13 + $0x68] sm:$0xff] %vm6323_vm8, %v6304_v17  ;;  %v6226_v60 = vsel %vm6178_vm7, %v6224_v39, %v6225_v35  ;;  %v6228_v32 = vsel %vm6178_vm7, %v6225_v35, %v6227_v36  ;;  %v6235_v3 = vrot.slane %v16352_v15, 7  ;;  %v6237_v56 = vrot.slane %v16355_v14, 7  ;;  %v6126_v17 = vld [vmem:[%s15451_s18 + $0xe0] sm:$0xff]  ;;  %v6127_v10 = vld [vmem:[%s15451_s18 + $0xe8] sm:$0xff]  ;;  %v6128_v35 = vld [vmem:[%s15451_s18 + $0xf0] sm:$0xff] }
 0x901   : > { %6338 = vst.msk [vmem:[%s15456_s13 + $0x70] sm:$0xff] %vm6323_vm8, %v6305_v0  ;;  %v6309_v34 = vsub.f32 %v6116_v45, %v6226_v60  ;;  %v6231_v12 = vsel %vm6178_vm7, %v6229_v20, %v6230_v63  ;;  %v6233_v16 = vsel %vm6178_vm7, %v6230_v63, %v6232_v50  ;;  %v6310_v24 = vsub.f32 %v6117_v37, %v6228_v32  ;;  %v6129_v36 = vld [vmem:[%s15451_s18 + $0xf8] sm:$0xff] }
 0x902   : > { %6339 = vst.msk [vmem:[%s15456_s13 + $0x78] sm:$0xff] %vm6323_vm8, %v6306_v30  ;;  %v6311_v57 = vsub.f32 %v6118_v58, %v6231_v12  ;;  %v6312_v41 = vsub.f32 %v6119_v21, %v6233_v16  ;;  %v6236_v15 = vsel %vm6178_vm7, %v6234_v11, %v6235_v3  ;;  %v6238_v5 = vsel %vm6178_vm7, %v6235_v3, %v6237_v56 }
 0x903   : > { %6340 = vst.msk [vmem:[%s15456_s13 + $0x80] sm:$0xff] %vm6323_vm8, %v6307_v23  ;;  %v6313_v14 = vsub.f32 %v6120_v6, %v6236_v15  ;;  %v6239_v8 = vrot.slane %v16362_v19, 7  ;;  %v6240_v28 = vrot.slane %v18233_v26, 7  ;;  %v6242_v22 = vrot.slane %v18234_v18, 7 }
 0x904   : > { %6341 = vst.msk [vmem:[%s15456_s13 + $0x88] sm:$0xff] %vm6323_vm8, %v6308_v52  ;;  %v6244_v43 = vrot.slane %v18235_v47, 7  ;;  %v6245_v55 = vrot.slane %v18236_v29, 7  ;;  %v6247_v27 = vrot.slane %v18237_v59, 7  ;;  %v6249_v51 = vrot.slane %v18238_v49, 7 }
 0x905   : > { %6342 = vst.msk [vmem:[%s15456_s13 + $0x90] sm:$0xff] %vm6323_vm8, %v6309_v34  ;;  %v6241_v19 = vsel %vm6178_vm7, %v6239_v8, %v6240_v28  ;;  %v6250_v62 = vrot.slane %v18239_v7, 7  ;;  %v6252_v1 = vrot.slane %v18240_v9, 7  ;;  %v6314_v48 = vsub.f32 %v6121_v53, %v6238_v5 }
 0x906   : > { %6343 = vst.msk [vmem:[%s15456_s13 + $0x98] sm:$0xff] %vm6323_vm8, %v6310_v24  ;;  %v6243_v44 = vsel %vm6178_vm7, %v6240_v28, %v6242_v22  ;;  %v6246_v42 = vsel %vm6178_vm7, %v6244_v43, %v6245_v55  ;;  %v6315_v38 = vsub.f32 %v6122_v33, %v6241_v19  ;;  %v6248_v39 = vsel %vm6178_vm7, %v6245_v55, %v6247_v27 }
 0x907   : > { %6344 = vst.msk [vmem:[%s15456_s13 + $0xa0] sm:$0xff] %vm6323_vm8, %v6311_v57  ;;  %v6316_v46 = vsub.f32 %v6123_v2, %v6243_v44  ;;  %v6251_v4 = vsel %vm6178_vm7, %v6249_v51, %v6250_v62  ;;  %v6254_v0 = vrot.slane %v18241_v54, 7  ;;  %v6255_v30 = vrot.slane %v16419_v40, 7 }
 0x908   : > { %6345 = vst.msk [vmem:[%s15456_s13 + $0xa8] sm:$0xff] %vm6323_vm8, %v6312_v41  ;;  %v6317_v31 = vsub.f32 %v6124_v25, %v6246_v42  ;;  %v6253_v23 = vsel %vm6178_vm7, %v6250_v62, %v6252_v1  ;;  %v6257_v52 = vrot.slane %v16423_v61, 7  ;;  %v6318_v45 = vsub.f32 %v6125_v13, %v6248_v39 }
 0x909   : > { %6346 = vst.msk [vmem:[%s15456_s13 + $0xb0] sm:$0xff] %vm6323_vm8, %v6313_v14  ;;  %v6256_v40 = vsel %vm6178_vm7, %v6254_v0, %v6255_v30  ;;  %v6319_v37 = vsub.f32 %v6126_v17, %v6251_v4  ;;  %v6320_v20 = vsub.f32 %v6127_v10, %v6253_v23 }
 0x90a   : > { %6347 = vst.msk [vmem:[%s15456_s13 + $0xb8] sm:$0xff] %vm6323_vm8, %v6314_v48  ;;  %v6258_v58 = vsel %vm6178_vm7, %v6255_v30, %v6257_v52  ;;  %v6321_v61 = vsub.f32 %v6128_v35, %v6256_v40 }
 0x90b   : > { %6348 = vst.msk [vmem:[%s15456_s13 + $0xc0] sm:$0xff] %vm6323_vm8, %v6315_v38  ;;  %v6322_v63 = vsub.f32 %v6129_v36, %v6258_v58 }
 0x90c   : > { %6349 = vst.msk [vmem:[%s15456_s13 + $0xc8] sm:$0xff] %vm6323_vm8, %v6316_v46 }
 0x90d   : > { %6350 = vst.msk [vmem:[%s15456_s13 + $0xd0] sm:$0xff] %vm6323_vm8, %v6317_v31 }
 0x90e   : > { %6351 = vst.msk [vmem:[%s15456_s13 + $0xd8] sm:$0xff] %vm6323_vm8, %v6318_v45 }
 0x90f   : > { %6352 = vst.msk [vmem:[%s15456_s13 + $0xe0] sm:$0xff] %vm6323_vm8, %v6319_v37 }
 0x910   : > { %6353 = vst.msk [vmem:[%s15456_s13 + $0xe8] sm:$0xff] %vm6323_vm8, %v6320_v20 }
 0x911   : > { %6354 = vst.msk [vmem:[%s15456_s13 + $0xf0] sm:$0xff] %vm6323_vm8, %v6321_v61 }
 0x912   : > { %6355 = vst.msk [vmem:[%s15456_s13 + $0xf8] sm:$0xff] %vm6323_vm8, %v6322_v63 }
 0x913 PF: > { %p13294_p13 = scmp.ne.s32.totalorder %s18347_s21, 1 }
 0x915   : > { %6359 = sbr.rel (%p13294_p13) target bundleno = 4374 (0x1116), region = 68 }
 0x91a   : > { %v14581_v21 = vld [vmem:[%s15440_s12 + $0x38] sm:$0xff]  ;;  %v14580_v50 = vld [vmem:[%s15440_s12 + $0x30] sm:$0xff]  ;;  %v14579_v11 = vld [vmem:[%s15440_s12 + $0x28] sm:$0xff]  ;;  %vm7340_vm12 = vcmask 1046528   ;;  %vm7799_vm9 = vcmask 1045504   ;;  %s18303_s7 = sld [smem:[#allocation10_spill]] }
 0x91b   : > { %6809 = vmatpush.bf16.msra.mxu0 %v14581_v21  ;;  %14766 = vmatpush.bf16.msra.mxu1 %v14581_v21  ;;  %v14578_v60 = vld [vmem:[%s15440_s12 + $0x20] sm:$0xff]  ;;  %v14577_v32 = vld [vmem:[%s15440_s12 + $0x18] sm:$0xff]  ;;  %v14576_v6 = vld [vmem:[%s15440_s12 + $0x10] sm:$0xff] }
 0x91c   : > { %14767 = vmatpush.bf16.msra.mxu2 %v14581_v21  ;;  %14768 = vmatpush.bf16.msra.mxu3 %v14581_v21  ;;  %v14575_v3 = vld [vmem:[%s15440_s12 + $0x8] sm:$0xff]  ;;  %v14574_v56 = vld [vmem:[%s15440_s12] sm:$0xff]  ;;  %v14597_v34 = vld [vmem:[%s15440_s12 + $0xb8] sm:$0xff] }
 0x91d   : > { %v14653_v12 = vld [vmem:[%s15440_s12 + $0xf8] sm:$0xff]  ;;  %v16872_v16 = vld [vmem:[#allocation2 + $0x1b0] sm:$0xff]  ;;  %v14595_v47 = vld [vmem:[%s15440_s12 + $0xa8] sm:$0xff] }
 0x91e   : > { %v16874_v24 = vld [vmem:[#allocation2 + $0x210] sm:$0xff]  ;;  %v14589_v15 = vld [vmem:[%s15440_s12 + $0x78] sm:$0xff]  ;;  %v14651_v43 = vld [vmem:[%s15440_s12 + $0xe8] sm:$0xff] }
 0x91f   : > { %6810 = vmatpush.bf16.msra.mxu0 %v14580_v50  ;;  %14769 = vmatpush.bf16.msra.mxu1 %v14580_v50  ;;  %v14550_v57 = vld [vmem:[#allocation2 + $0x270] sm:$0xff]  ;;  %v14661_v14 = vld [vmem:[%s15440_s12 + $0x138] sm:$0xff]  ;;  %v14587_v29 = vld [vmem:[%s15440_s12 + $0x68] sm:$0xff] }
 0x920   : > { %14770 = vmatpush.bf16.msra.mxu2 %v14580_v50  ;;  %14771 = vmatpush.bf16.msra.mxu3 %v14580_v50  ;;  %v14562_v41 = vld [vmem:[#allocation2 + $0x2d0] sm:$0xff]  ;;  %v16884_v28 = vld [vmem:[#allocation2 + $0x1b8] sm:$0xff]  ;;  %v14659_v55 = vld [vmem:[%s15440_s12 + $0x128] sm:$0xff]  ;;  %p14287_p3 = scmp.ge.s32.totalorder %s18303_s7, 3 }
 0x921   : > { %v14596_v53 = vld [vmem:[%s15440_s12 + $0xb0] sm:$0xff]  ;;  %v16886_v33 = vld [vmem:[#allocation2 + $0x218] sm:$0xff]  ;;  %v16894_v59 = vld [vmem:[#allocation2 + $0x1c0] sm:$0xff] }
 0x922   : > { %v14652_v5 = vld [vmem:[%s15440_s12 + $0xf0] sm:$0xff]  ;;  %v14551_v18 = vld [vmem:[#allocation2 + $0x278] sm:$0xff]  ;;  %v16896_v27 = vld [vmem:[#allocation2 + $0x220] sm:$0xff] }
 0x923   : > { %6811 = vmatpush.bf16.msra.mxu0 %v14579_v11  ;;  %14772 = vmatpush.bf16.msra.mxu1 %v14579_v11  ;;  %v14588_v8 = vld [vmem:[%s15440_s12 + $0x70] sm:$0xff]  ;;  %v14563_v22 = vld [vmem:[#allocation2 + $0x2d8] sm:$0xff]  ;;  %v14552_v19 = vld [vmem:[#allocation2 + $0x280] sm:$0xff] }
 0x924   : > { %14773 = vmatpush.bf16.msra.mxu2 %v14579_v11  ;;  %14774 = vmatpush.bf16.msra.mxu3 %v14579_v11  ;;  %v14660_v26 = vld [vmem:[%s15440_s12 + $0x130] sm:$0xff]  ;;  %v14564_v2 = vld [vmem:[#allocation2 + $0x2e0] sm:$0xff]  ;;  %v16904_v9 = vld [vmem:[#allocation2 + $0x1c8] sm:$0xff] }
 0x925   : > { %v14594_v49 = vld [vmem:[%s15440_s12 + $0xa0] sm:$0xff]  ;;  %v16906_v1 = vld [vmem:[#allocation2 + $0x228] sm:$0xff]  ;;  %v16910_v25 = vld [vmem:[#allocation2 + $0x1d0] sm:$0xff] }
 0x926   : > { %v14650_v51 = vld [vmem:[%s15440_s12 + $0xe0] sm:$0xff]  ;;  %v14553_v48 = vld [vmem:[#allocation2 + $0x288] sm:$0xff]  ;;  %v16912_v42 = vld [vmem:[#allocation2 + $0x230] sm:$0xff] }
 0x927   : > { %6812 = vmatpush.bf16.msra.mxu0 %v14578_v60  ;;  %14775 = vmatpush.bf16.msra.mxu1 %v14578_v60  ;;  %v14586_v7 = vld [vmem:[%s15440_s12 + $0x60] sm:$0xff]  ;;  %v14565_v44 = vld [vmem:[#allocation2 + $0x2e8] sm:$0xff]  ;;  %v14554_v38 = vld [vmem:[#allocation2 + $0x290] sm:$0xff] }
 0x928   : > { %14776 = vmatpush.bf16.msra.mxu2 %v14578_v60  ;;  %14777 = vmatpush.bf16.msra.mxu3 %v14578_v60  ;;  %v14658_v62 = vld [vmem:[%s15440_s12 + $0x120] sm:$0xff]  ;;  %v14566_v13 = vld [vmem:[#allocation2 + $0x2f0] sm:$0xff]  ;;  %v14593_v39 = vld [vmem:[%s15440_s12 + $0x98] sm:$0xff] }
 0x929   : > { %v14649_v46 = vld [vmem:[%s15440_s12 + $0xd8] sm:$0xff]  ;;  %v14592_v10 = vld [vmem:[%s15440_s12 + $0x90] sm:$0xff]  ;;  %v16929_v45 = vld [vmem:[#allocation2 + $0x1e0] sm:$0xff] }
 0x92a   : > { %v14585_v17 = vld [vmem:[%s15440_s12 + $0x58] sm:$0xff]  ;;  %v14648_v23 = vld [vmem:[%s15440_s12 + $0xd0] sm:$0xff]  ;;  %v16931_v35 = vld [vmem:[#allocation2 + $0x240] sm:$0xff] }
 0x92b   : > { %6813 = vmatpush.bf16.msra.mxu0 %v14577_v32  ;;  %14778 = vmatpush.bf16.msra.mxu1 %v14577_v32  ;;  %v14657_v4 = vld [vmem:[%s15440_s12 + $0x118] sm:$0xff]  ;;  %v14584_v52 = vld [vmem:[%s15440_s12 + $0x50] sm:$0xff]  ;;  %v14556_v40 = vld [vmem:[#allocation2 + $0x2a0] sm:$0xff] }
 0x92c   : > { %14779 = vmatpush.bf16.msra.mxu2 %v14577_v32  ;;  %14780 = vmatpush.bf16.msra.mxu3 %v14577_v32  ;;  %v16920_v54 = vld [vmem:[#allocation2 + $0x1d8] sm:$0xff]  ;;  %v14568_v37 = vld [vmem:[#allocation2 + $0x300] sm:$0xff]  ;;  %v14656_v36 = vld [vmem:[%s15440_s12 + $0x110] sm:$0xff] }
 0x92d   : > { %v16922_v0 = vld [vmem:[#allocation2 + $0x238] sm:$0xff]  ;;  %v16936_v58 = vld [vmem:[#allocation2 + $0x1e8] sm:$0xff]  ;;  %v16946_v32 = vld [vmem:[#allocation2 + $0x1f0] sm:$0xff] }
 0x92e   : > { %v14555_v30 = vld [vmem:[#allocation2 + $0x298] sm:$0xff]  ;;  %v16938_v20 = vld [vmem:[#allocation2 + $0x248] sm:$0xff] }
 0x92f   : > { %6814 = vmatpush.bf16.msra.mxu0 %v14576_v6  ;;  %14781 = vmatpush.bf16.msra.mxu1 %v14576_v6  ;;  %v14567_v31 = vld [vmem:[#allocation2 + $0x2f8] sm:$0xff]  ;;  %v14557_v61 = vld [vmem:[#allocation2 + $0x2a8] sm:$0xff] }
 0x930   : > { %14782 = vmatpush.bf16.msra.mxu2 %v14576_v6  ;;  %14783 = vmatpush.bf16.msra.mxu3 %v14576_v6  ;;  %v14569_v63 = vld [vmem:[#allocation2 + $0x308] sm:$0xff]  ;;  %v16948_v6 = vld [vmem:[#allocation2 + $0x250] sm:$0xff] }
 0x931   : > { %v14591_v21 = vld [vmem:[%s15440_s12 + $0x88] sm:$0xff] }
 0x932   : > { %v14647_v50 = vld [vmem:[%s15440_s12 + $0xc8] sm:$0xff] }
 0x933   : > { %6815 = vmatpush.bf16.msra.mxu0 %v14575_v3  ;;  %14784 = vmatpush.bf16.msra.mxu1 %v14575_v3  ;;  %v14583_v11 = vld [vmem:[%s15440_s12 + $0x48] sm:$0xff] }
 0x934   : > { %14785 = vmatpush.bf16.msra.mxu2 %v14575_v3  ;;  %14786 = vmatpush.bf16.msra.mxu3 %v14575_v3  ;;  %v14655_v60 = vld [vmem:[%s15440_s12 + $0x108] sm:$0xff] }
 0x937   : > { %6816 = vmatpush.bf16.msra.mxu0 %v14574_v56  ;;  %14787 = vmatpush.bf16.msra.mxu1 %v14574_v56 }
 0x938   : > { %14788 = vmatpush.bf16.msra.mxu2 %v14574_v56  ;;  %14789 = vmatpush.bf16.msra.mxu3 %v14574_v56 }
 0x93a   : > { %6817 = vmatmul.bf16.vlgmr.msra.gmra.mxu0 %v16872_v16  ;;  %6865 = vmatmul.bf16.vlgmr.msra.gmra.mxu1 %v16874_v24 }
 0x93b   : > { %6913 = vmatmul.bf16.vlgmr.msra.gmra.mxu2 %v14550_v57  ;;  %6961 = vmatmul.bf16.vlgmr.msra.gmra.mxu3 %v14562_v41 }
 0x93c   : > { %7550 = vmatpush.bf16.msrb.mxu2 %v14597_v34  ;;  %8426 = vmatpush.bf16.msrb.mxu3 %v14653_v12  ;;  %v14558_v34 = vld [vmem:[#allocation2 + $0x2b0] sm:$0xff] }
 0x93d   : > { %7123 = vmatpush.bf16.msrb.mxu1 %v14589_v15  ;;  %8740 = vmatpush.bf16.msrb.mxu0 %v14661_v14  ;;  %v14570_v12 = vld [vmem:[#allocation2 + $0x310] sm:$0xff] }
 0x940   : > { %7551 = vmatpush.bf16.msrb.mxu2 %v14596_v53  ;;  %8427 = vmatpush.bf16.msrb.mxu3 %v14652_v5  ;;  %v14590_v53 = vld [vmem:[%s15440_s12 + $0x80] sm:$0xff] }
 0x941   : > { %7124 = vmatpush.bf16.msrb.mxu1 %v14588_v8  ;;  %8741 = vmatpush.bf16.msrb.mxu0 %v14660_v26  ;;  %v14646_v5 = vld [vmem:[%s15440_s12 + $0xc0] sm:$0xff] }
 0x942   : > { %v14582_v8 = vld [vmem:[%s15440_s12 + $0x40] sm:$0xff] }
 0x944   : > { %7552 = vmatpush.bf16.msrb.mxu2 %v14595_v47  ;;  %8428 = vmatpush.bf16.msrb.mxu3 %v14651_v43  ;;  %v16965_v47 = vld [vmem:[#allocation2 + $0x258] sm:$0xff] }
 0x945   : > { %7125 = vmatpush.bf16.msrb.mxu1 %v14587_v29  ;;  %8742 = vmatpush.bf16.msrb.mxu0 %v14659_v55  ;;  %v14559_v55 = vld [vmem:[#allocation2 + $0x2b8] sm:$0xff] }
 0x948   : > { %7553 = vmatpush.bf16.msrb.mxu2 %v14594_v49  ;;  %8429 = vmatpush.bf16.msrb.mxu3 %v14650_v51 }
 0x949   : > { %7126 = vmatpush.bf16.msrb.mxu1 %v14586_v7  ;;  %8743 = vmatpush.bf16.msrb.mxu0 %v14658_v62 }
 0x94a   : > { %6821 = vmatmul.bf16.gmra.mxu0 %v16884_v28  ;;  %6869 = vmatmul.bf16.gmra.mxu1 %v16886_v33 }
 0x94b   : > { %6917 = vmatmul.bf16.gmra.mxu2 %v14551_v18  ;;  %6965 = vmatmul.bf16.gmra.mxu3 %v14563_v22  ;;  %v16963_v22 = vld [vmem:[#allocation2 + $0x1f8] sm:$0xff] }
 0x94c   : > { %7554 = vmatpush.bf16.msrb.mxu2 %v14593_v39  ;;  %8430 = vmatpush.bf16.msrb.mxu3 %v14649_v46 }
 0x94d   : > { %7127 = vmatpush.bf16.msrb.mxu1 %v14585_v17  ;;  %8744 = vmatpush.bf16.msrb.mxu0 %v14657_v4  ;;  %v14560_v17 = vld [vmem:[#allocation2 + $0x2c0] sm:$0xff] }
 0x94e   : > { %v14572_v4 = vld [vmem:[#allocation2 + $0x320] sm:$0xff] }
 0x950   : > { %7555 = vmatpush.bf16.msrb.mxu2 %v14592_v10  ;;  %8431 = vmatpush.bf16.msrb.mxu3 %v14648_v23  ;;  %v14669_v10 = vld [vmem:[%s15440_s12 + $0x178] sm:$0xff] }
 0x951   : > { %7128 = vmatpush.bf16.msrb.mxu1 %v14584_v52  ;;  %8745 = vmatpush.bf16.msrb.mxu0 %v14656_v36  ;;  %v14741_v36 = vld [vmem:[%s15440_s12 + $0x238] sm:$0xff] }
 0x954   : > { %7556 = vmatpush.bf16.msrb.mxu2 %v14591_v21  ;;  %8432 = vmatpush.bf16.msrb.mxu3 %v14647_v50  ;;  %v16996_v21 = vld [vmem:[#allocation2 + $0x208] sm:$0xff] }
 0x955   : > { %7129 = vmatpush.bf16.msrb.mxu1 %v14583_v11  ;;  %8746 = vmatpush.bf16.msrb.mxu0 %v14655_v60  ;;  %v16998_v50 = vld [vmem:[#allocation2 + $0x268] sm:$0xff] }
 0x958   : > { %7557 = vmatpush.bf16.msrb.mxu2 %v14590_v53  ;;  %8433 = vmatpush.bf16.msrb.mxu3 %v14646_v5 }
 0x959   : > { %7130 = vmatpush.bf16.msrb.mxu1 %v14582_v8  ;;  %v14598_v8 = vld [vmem:[#allocation2 + $0x1c8] sm:$0xff] }
 0x95a   : > { %6826 = vmatmul.bf16.gmra.mxu0 %v16894_v59  ;;  %6874 = vmatmul.bf16.gmra.mxu1 %v16896_v27 }
 0x95b   : > { %6922 = vmatmul.bf16.gmra.mxu2 %v14552_v19  ;;  %6970 = vmatmul.bf16.gmra.mxu3 %v14564_v2  ;;  %v14571_v19 = vld [vmem:[#allocation2 + $0x318] sm:$0xff]  ;;  %v14654_v2 = vld [vmem:[%s15440_s12 + $0x100] sm:$0xff] }
 0x95c   : > { %8747 = vmatpush.bf16.msrb.mxu0 %v14654_v2 }
 0x95d   : > { %9166 = vmatpush.bf16.msra.mxu1 %v14669_v10 }
 0x960   : > { %10781 = vmatpush.bf16.msra.mxu0 %v14741_v36 }
 0x96a   : > { %6829 = vmatmul.bf16.gmra.mxu0 %v16904_v9  ;;  %6877 = vmatmul.bf16.gmra.mxu1 %v16906_v1 }
 0x96b   : > { %6925 = vmatmul.bf16.gmra.mxu2 %v14553_v48  ;;  %6973 = vmatmul.bf16.gmra.mxu3 %v14565_v44 }
 0x97a   : > { %6833 = vmatmul.bf16.gmra.mxu0 %v16910_v25  ;;  %6881 = vmatmul.bf16.gmra.mxu1 %v16912_v42 }
 0x97b   : > { %6929 = vmatmul.bf16.gmra.mxu2 %v14554_v38  ;;  %6977 = vmatmul.bf16.gmra.mxu3 %v14566_v13  ;;  %v16986_v38 = vld [vmem:[#allocation2 + $0x200] sm:$0xff] }
 0x97c   : > { %v16988_v13 = vld [vmem:[#allocation2 + $0x260] sm:$0xff] }
 0x98a   : > { %6838 = vmatmul.bf16.gmra.mxu0 %v16920_v54  ;;  %6886 = vmatmul.bf16.gmra.mxu1 %v16922_v0 }
 0x98b   : > { %6934 = vmatmul.bf16.gmra.mxu2 %v14555_v30  ;;  %6982 = vmatmul.bf16.gmra.mxu3 %v14567_v31  ;;  %v14725_v30 = vld [vmem:[%s15440_s12 + $0x1b8] sm:$0xff] }
 0x98c   : > { %v14733_v31 = vld [vmem:[%s15440_s12 + $0x1f8] sm:$0xff]  ;;  %10041 = vmatpush.bf16.msra.mxu2 %v14725_v30 }
 0x98d   : > { %10355 = vmatpush.bf16.msra.mxu3 %v14733_v31  ;;  %v14599_v31 = vld [vmem:[#allocation2 + $0x1d0] sm:$0xff] }
 0x99a   : > { %6841 = vmatmul.bf16.gmra.mxu0 %v16929_v45  ;;  %6889 = vmatmul.bf16.gmra.mxu1 %v16931_v35 }
 0x99b   : > { %6937 = vmatmul.bf16.gmra.mxu2 %v14556_v40  ;;  %6985 = vmatmul.bf16.gmra.mxu3 %v14568_v37 }
 0x9aa   : > { %6845 = vmatmul.bf16.gmra.mxu0 %v16936_v58  ;;  %6893 = vmatmul.bf16.gmra.mxu1 %v16938_v20 }
 0x9ab   : > { %6941 = vmatmul.bf16.gmra.mxu2 %v14557_v61  ;;  %6989 = vmatmul.bf16.gmra.mxu3 %v14569_v63 }
 0x9b7   : > { %v6818_v3 = vpop.f32.mrf.mxu0  ;;  %v6866_v56 = vpop.f32.mrf.mxu1 }
 0x9b8   : > { %v14561_v3 = vld [vmem:[#allocation2 + $0x2c8] sm:$0xff] }
 0x9b9   : > { %v14573_v56 = vld [vmem:[#allocation2 + $0x328] sm:$0xff] }
 0x9ba   : > { %6850 = vmatmul.bf16.gmra.mxu0 %v16946_v32  ;;  %6898 = vmatmul.bf16.gmra.mxu1 %v16948_v6 }
 0x9bb   : > { %6946 = vmatmul.bf16.gmra.mxu2 %v14558_v34  ;;  %6994 = vmatmul.bf16.gmra.mxu3 %v14570_v12 }
 0x9be   : > { %v6914_v57 = vpop.f32.mrf.mxu2  ;;  %v6962_v41 = vpop.f32.mrf.mxu3 }
 0x9bf   : > { %v16952_v15 = vpop.f32.mrf.mxu0  ;;  %v16954_v14 = vpop.f32.mrf.mxu1 }
 0x9c6   : > { %v16959_v26 = vpop.f32.mrf.mxu2  ;;  %v16961_v18 = vpop.f32.mrf.mxu3 }
 0x9c7   : > { %18242 = vst [vmem:[#allocation34_spill] sm:$0xff] %v16961_v18  ;;  %v16967_v43 = vpop.f32.mrf.mxu0  ;;  %v16969_v29 = vpop.f32.mrf.mxu1  ;;  %v14606_v18 = vld [vmem:[#allocation2 + $0x208] sm:$0xff] }
 0x9ca   : > { %6853 = vmatmul.bf16.gmra.mxu0 %v16963_v22  ;;  %6901 = vmatmul.bf16.gmra.mxu1 %v16965_v47 }
 0x9cb   : > { %6949 = vmatmul.bf16.gmra.mxu2 %v14559_v55  ;;  %6997 = vmatmul.bf16.gmra.mxu3 %v14571_v19 }
 0x9ce   : > { %v16974_v49 = vpop.f32.mrf.mxu2  ;;  %v16976_v51 = vpop.f32.mrf.mxu3 }
 0x9cf   : > { %18243 = vst [vmem:[#allocation35_spill] sm:$0xff] %v16976_v51  ;;  %v16978_v7 = vpop.f32.mrf.mxu0  ;;  %v16980_v62 = vpop.f32.mrf.mxu1 }
 0x9d6   : > { %v16982_v48 = vpop.f32.mrf.mxu2  ;;  %v16984_v44 = vpop.f32.mrf.mxu3 }
 0x9d7   : > { %18244 = vst [vmem:[#allocation36_spill] sm:$0xff] %v16984_v44  ;;  %v6827_v39 = vpop.f32.mrf.mxu0  ;;  %v6875_v46 = vpop.f32.mrf.mxu1 }
 0x9da   : > { %6857 = vmatmul.bf16.gmra.mxu0 %v16986_v38  ;;  %6905 = vmatmul.bf16.gmra.mxu1 %v16988_v13 }
 0x9db   : > { %6953 = vmatmul.bf16.gmra.mxu2 %v14560_v17  ;;  %7001 = vmatmul.bf16.gmra.mxu3 %v14572_v4 }
 0x9de   : > { %v6923_v23 = vpop.f32.mrf.mxu2  ;;  %v6971_v52 = vpop.f32.mrf.mxu3 }
 0x9df   : > { %v6828_v40 = vpop.f32.mrf.mxu0  ;;  %v6876_v37 = vpop.f32.mrf.mxu1 }
 0x9e6   : > { %v6924_v61 = vpop.f32.mrf.mxu2  ;;  %v6972_v63 = vpop.f32.mrf.mxu3 }
 0x9e7   : > { %v6830_v11 = vpop.f32.mrf.mxu0  ;;  %v6878_v60 = vpop.f32.mrf.mxu1  ;;  %v14600_v63 = vld [vmem:[#allocation2 + $0x1d8] sm:$0xff] }
 0x9ea   : > { %6862 = vmatmul.bf16.gmra.mxu0 %v16996_v21  ;;  %6910 = vmatmul.bf16.gmra.mxu1 %v16998_v50 }
 0x9eb   : > { %6958 = vmatmul.bf16.gmra.mxu2 %v14561_v3  ;;  %7006 = vmatmul.bf16.gmra.mxu3 %v14573_v56 }
 0x9ee   : > { %v6926_v34 = vpop.f32.mrf.mxu2  ;;  %v6974_v12 = vpop.f32.mrf.mxu3 }
 0x9ef   : > { %v17002_v57 = vpop.f32.mrf.mxu0  ;;  %v17004_v41 = vpop.f32.mrf.mxu1 }
 0x9f6   : > { %v17006_v53 = vpop.f32.mrf.mxu2  ;;  %v17008_v5 = vpop.f32.mrf.mxu3 }
 0x9f7   : > { %18245 = vst [vmem:[#allocation37_spill] sm:$0xff] %v17008_v5  ;;  %v17010_v55 = vpop.f32.mrf.mxu0  ;;  %v17012_v19 = vpop.f32.mrf.mxu1 }
 0x9fa   : > { %7131 = vmatmul.bf16.vlgmr.msrb.gmra.mxu1 %v16872_v16  ;;  %8748 = vmatmul.bf16.vlgmr.msrb.gmra.mxu0 %v14598_v8 }
 0x9fb   : > { %7558 = vmatmul.bf16.vlgmr.msrb.gmra.mxu2 %v16872_v16  ;;  %8434 = vmatmul.bf16.vlgmr.msrb.gmra.mxu3 %v14598_v8 }
 0x9fe   : > { %v17016_v2 = vpop.f32.mrf.mxu2  ;;  %v17018_v39 = vpop.f32.mrf.mxu3 }
 0x9ff   : > { %18246 = vst [vmem:[#allocation38_spill] sm:$0xff] %v17018_v39  ;;  %v17020_v46 = vpop.f32.mrf.mxu0  ;;  %v17022_v17 = vpop.f32.mrf.mxu1 }
 0xa06   : > { %v17024_v4 = vpop.f32.mrf.mxu2  ;;  %v17026_v30 = vpop.f32.mrf.mxu3 }
 0xa07   : > { %18247 = vst [vmem:[#allocation39_spill] sm:$0xff] %v17026_v30  ;;  %v6839_v10 = vpop.f32.mrf.mxu0  ;;  %v6887_v23 = vpop.f32.mrf.mxu1  ;;  %v14603_v30 = vld [vmem:[#allocation2 + $0x1f0] sm:$0xff] }
 0xa0a   : > { %7134 = vmatmul.bf16.gmra.mxu1 %v16884_v28  ;;  %8751 = vmatmul.bf16.gmra.mxu0 %v14599_v31 }
 0xa0b   : > { %7561 = vmatmul.bf16.gmra.mxu2 %v16884_v28  ;;  %8438 = vmatmul.bf16.gmra.mxu3 %v14599_v31  ;;  %v14601_v31 = vld [vmem:[#allocation2 + $0x1e0] sm:$0xff] }
 0xa0e   : > { %v6935_v16 = vpop.f32.mrf.mxu2  ;;  %v6983_v52 = vpop.f32.mrf.mxu3 }
 0xa0f   : > { %v6840_v40 = vpop.f32.mrf.mxu0  ;;  %v6888_v37 = vpop.f32.mrf.mxu1 }
 0xa16   : > { %v6936_v36 = vpop.f32.mrf.mxu2  ;;  %v6984_v61 = vpop.f32.mrf.mxu3 }
 0xa17   : > { %v6842_v11 = vpop.f32.mrf.mxu0  ;;  %v6890_v60 = vpop.f32.mrf.mxu1  ;;  %v14602_v61 = vld [vmem:[#allocation2 + $0x1e8] sm:$0xff] }
 0xa18   : > { %v14732_v60 = vld [vmem:[%s15440_s12 + $0x1f0] sm:$0xff] }
 0xa19   : > { %10356 = vmatpush.bf16.msra.mxu3 %v14732_v60 }
 0xa1a   : > { %7139 = vmatmul.bf16.gmra.mxu1 %v16894_v59  ;;  %8756 = vmatmul.bf16.gmra.mxu0 %v14600_v63 }
 0xa1b   : > { %7566 = vmatmul.bf16.gmra.mxu2 %v16894_v59  ;;  %8443 = vmatmul.bf16.gmra.mxu3 %v14600_v63 }
 0xa1e   : > { %v6938_v3 = vpop.f32.mrf.mxu2  ;;  %v6986_v56 = vpop.f32.mrf.mxu3 }
 0xa1f   : > { %v17032_v34 = vpop.f32.mrf.mxu0  ;;  %v17034_v28 = vpop.f32.mrf.mxu1  ;;  %v14668_v3 = vld [vmem:[%s15440_s12 + $0x170] sm:$0xff] }
 0xa20   : > { %9167 = vmatpush.bf16.msra.mxu1 %v14668_v3 }
 0xa26   : > { %v17036_v12 = vpop.f32.mrf.mxu2  ;;  %v17038_v8 = vpop.f32.mrf.mxu3 }
 0xa27   : > { %18248 = vst [vmem:[#allocation40_spill] sm:$0xff] %v17036_v12  ;;  %v17040_v10 = vpop.f32.mrf.mxu0  ;;  %v17042_v23 = vpop.f32.mrf.mxu1 }
 0xa28   : > { %18249 = vst [vmem:[#allocation41_spill] sm:$0xff] %v17038_v8  ;;  %v14740_v8 = vld [vmem:[%s15440_s12 + $0x230] sm:$0xff] }
 0xa29   : > { %10782 = vmatpush.bf16.msra.mxu0 %v14740_v8 }
 0xa2a   : > { %7142 = vmatmul.bf16.gmra.mxu1 %v16904_v9  ;;  %8759 = vmatmul.bf16.gmra.mxu0 %v14601_v31 }
 0xa2b   : > { %7570 = vmatmul.bf16.gmra.mxu2 %v16904_v9  ;;  %8446 = vmatmul.bf16.gmra.mxu3 %v14601_v31  ;;  %v14724_v9 = vld [vmem:[%s15440_s12 + $0x1b0] sm:$0xff] }
 0xa2c   : > { %10042 = vmatpush.bf16.msra.mxu2 %v14724_v9 }
 0xa2e   : > { %v17046_v59 = vpop.f32.mrf.mxu2  ;;  %v17048_v16 = vpop.f32.mrf.mxu3 }
 0xa2f   : > { %18250 = vst [vmem:[#allocation42_spill] sm:$0xff] %v17046_v59  ;;  %v17050_v52 = vpop.f32.mrf.mxu0  ;;  %v17052_v40 = vpop.f32.mrf.mxu1 }
 0xa30   : > { %18251 = vst [vmem:[#allocation43_spill] sm:$0xff] %v17048_v16 }
 0xa36   : > { %v17054_v37 = vpop.f32.mrf.mxu2  ;;  %v17056_v36 = vpop.f32.mrf.mxu3 }
 0xa37   : > { %18252 = vst [vmem:[#allocation44_spill] sm:$0xff] %v17054_v37  ;;  %v6851_v63 = vpop.f32.mrf.mxu0  ;;  %v6899_v11 = vpop.f32.mrf.mxu1 }
 0xa38   : > { %18253 = vst [vmem:[#allocation45_spill] sm:$0xff] %v17056_v36 }
 0xa3a   : > { %7145 = vmatmul.bf16.gmra.mxu1 %v16910_v25  ;;  %8762 = vmatmul.bf16.gmra.mxu0 %v14602_v61 }
 0xa3b   : > { %7573 = vmatmul.bf16.gmra.mxu2 %v16910_v25  ;;  %8450 = vmatmul.bf16.gmra.mxu3 %v14602_v61 }
 0xa3e   : > { %v6947_v56 = vpop.f32.mrf.mxu2  ;;  %v6995_v31 = vpop.f32.mrf.mxu3 }
 0xa3f   : > { %v6852_v16 = vpop.f32.mrf.mxu0  ;;  %v6900_v36 = vpop.f32.mrf.mxu1 }
 0xa40   : > { %v14604_v36 = vld [vmem:[#allocation2 + $0x1f8] sm:$0xff] }
 0xa46   : > { %v6948_v63 = vpop.f32.mrf.mxu2  ;;  %v6996_v11 = vpop.f32.mrf.mxu3 }
 0xa47   : > { %v6854_v39 = vpop.f32.mrf.mxu0  ;;  %v6902_v5 = vpop.f32.mrf.mxu1  ;;  %v14605_v11 = vld [vmem:[#allocation2 + $0x200] sm:$0xff] }
 0xa4a   : > { %7150 = vmatmul.bf16.gmra.mxu1 %v16920_v54  ;;  %8767 = vmatmul.bf16.gmra.mxu0 %v14603_v30 }
 0xa4b   : > { %7578 = vmatmul.bf16.gmra.mxu2 %v16920_v54  ;;  %8455 = vmatmul.bf16.gmra.mxu3 %v14603_v30 }
 0xa4e   : > { %v6950_v25 = vpop.f32.mrf.mxu2  ;;  %v6998_v61 = vpop.f32.mrf.mxu3 }
 0xa4f   : > { %v17066_v9 = vpop.f32.mrf.mxu0  ;;  %v17068_v60 = vpop.f32.mrf.mxu1 }
 0xa56   : > { %v17070_v16 = vpop.f32.mrf.mxu2  ;;  %v17072_v8 = vpop.f32.mrf.mxu3 }
 0xa57   : > { %18254 = vst [vmem:[#allocation46_spill] sm:$0xff] %v17070_v16  ;;  %v17074_v3 = vpop.f32.mrf.mxu0  ;;  %v17076_v5 = vpop.f32.mrf.mxu1 }
 0xa58   : > { %18255 = vst [vmem:[#allocation47_spill] sm:$0xff] %v17072_v8 }
 0xa5a   : > { %7153 = vmatmul.bf16.gmra.mxu1 %v16929_v45  ;;  %8770 = vmatmul.bf16.gmra.mxu0 %v14604_v36 }
 0xa5b   : > { %7582 = vmatmul.bf16.gmra.mxu2 %v16929_v45  ;;  %8458 = vmatmul.bf16.gmra.mxu3 %v14604_v36 }
 0xa5e   : > { %v17080_v54 = vpop.f32.mrf.mxu2  ;;  %v17082_v39 = vpop.f32.mrf.mxu3 }
 0xa5f   : > { %18256 = vst [vmem:[#allocation48_spill] sm:$0xff] %v17080_v54  ;;  %v17084_v30 = vpop.f32.mrf.mxu0  ;;  %v17086_v56 = vpop.f32.mrf.mxu1 }
 0xa60   : > { %18257 = vst [vmem:[#allocation49_spill] sm:$0xff] %v17082_v39 }
 0xa66   : > { %v17088_v31 = vpop.f32.mrf.mxu2  ;;  %v17090_v63 = vpop.f32.mrf.mxu3 }
 0xa67   : > { %18258 = vst [vmem:[#allocation50_spill] sm:$0xff] %v17088_v31  ;;  %v6863_v25 = vpop.f32.mrf.mxu0  ;;  %v6911_v61 = vpop.f32.mrf.mxu1 }
 0xa68   : > { %18259 = vst [vmem:[#allocation51_spill] sm:$0xff] %v17090_v63 }
 0xa6a   : > { %7156 = vmatmul.bf16.gmra.mxu1 %v16936_v58  ;;  %8773 = vmatmul.bf16.gmra.mxu0 %v14605_v11 }
 0xa6b   : > { %7585 = vmatmul.bf16.gmra.mxu2 %v16936_v58  ;;  %8462 = vmatmul.bf16.gmra.mxu3 %v14605_v11 }
 0xa6e   : > { %v6959_v45 = vpop.f32.mrf.mxu2  ;;  %v7007_v36 = vpop.f32.mrf.mxu3 }
 0xa6f   : > { %v6864_v39 = vpop.f32.mrf.mxu0  ;;  %v6912_v8 = vpop.f32.mrf.mxu1  ;;  %v14607_v36 = vld [vmem:[#allocation2 + $0x210] sm:$0xff] }
 0xa76   : > { %v6960_v44 = vpop.f32.mrf.mxu2  ;;  %v7008_v51 = vpop.f32.mrf.mxu3 }
 0xa77   : > { %v7132_v54 = vpop.f32.mrf.mxu1  ;;  %v8749_v31 = vpop.f32.mrf.mxu0 }
 0xa7a   : > { %7161 = vmatmul.bf16.gmra.mxu1 %v16946_v32  ;;  %8778 = vmatmul.bf16.gmra.mxu0 %v14606_v18 }
 0xa7b   : > { %7590 = vmatmul.bf16.gmra.mxu2 %v16946_v32  ;;  %8467 = vmatmul.bf16.gmra.mxu3 %v14606_v18 }
 0xa7e   : > { %v7559_v25 = vpop.f32.mrf.mxu2  ;;  %v8435_v61 = vpop.f32.mrf.mxu3 }
 0xa7f   : > { %v7133_v63 = vpop.f32.mrf.mxu1  ;;  %v8750_v58 = vpop.f32.mrf.mxu0 }
 0xa86   : > { %v7560_v11 = vpop.f32.mrf.mxu2  ;;  %v8436_v45 = vpop.f32.mrf.mxu3 }
 0xa87   : > { %v7135_v39 = vpop.f32.mrf.mxu1  ;;  %v8752_v8 = vpop.f32.mrf.mxu0 }
 0xa88   : > { %v7341_v51 = vrot.slane %v7135_v39, 1  ;;  %v8957_v25 = vrot.slane %v8752_v8, 1 }
 0xa8a   : > { %7164 = vmatmul.bf16.gmra.mxu1 %v16963_v22  ;;  %8781 = vmatmul.bf16.gmra.mxu0 %v14607_v36  ;;  %v7437_v32 = vadd.f32 %v7341_v51, %v16952_v15 }
 0xa8b   : > { %7594 = vmatmul.bf16.gmra.mxu2 %v16963_v22  ;;  %8470 = vmatmul.bf16.gmra.mxu3 %v14607_v36 }
 0xa8e   : > { %v7562_v44 = vpop.f32.mrf.mxu2  ;;  %v8439_v54 = vpop.f32.mrf.mxu3 }
 0xa8f   : > { %v7800_v18 = vrot.slane %v7562_v44, 2  ;;  %v7137_v31 = vpop.f32.mrf.mxu1  ;;  %v8754_v63 = vpop.f32.mrf.mxu0  ;;  %v14608_v44 = vld [vmem:[#allocation2 + $0x218] sm:$0xff] }
 0xa90   : > { %v7342_v61 = vrot.slane %v7137_v31, 1  ;;  %v8958_v58 = vrot.slane %v8754_v63, 1  ;;  %v14731_v63 = vld [vmem:[%s15440_s12 + $0x1e8] sm:$0xff] }
 0xa91   : > { %v7928_v11 = vadd.f32 %v7800_v18, %v7437_v32  ;;  %10357 = vmatpush.bf16.msra.mxu3 %v14731_v63 }
 0xa92   : > { %v7343_v16 = vsel %vm7340_vm12, %v7341_v51, %v7342_v61  ;;  %v8959_v37 = vsel %vm7340_vm12, %v8957_v25, %v8958_v58 }
 0xa93   : > { %v8627_v39 = vadd.f32 %v8436_v45, %v7928_v11  ;;  %v7438_v31 = vadd.f32 %v7343_v16, %v16967_v43  ;;  %v14723_v45 = vld [vmem:[%s15440_s12 + $0x1a8] sm:$0xff] }
 0xa94   : > { %10043 = vmatpush.bf16.msra.mxu2 %v14723_v45 }
 0xa95   : > { %v17101_v22 = vadd.f32 %v8957_v25, %v8627_v39  ;;  %v14667_v25 = vld [vmem:[%s15440_s12 + $0x168] sm:$0xff] }
 0xa96   : > { %v7564_v36 = vpop.f32.mrf.mxu2  ;;  %v8441_v15 = vpop.f32.mrf.mxu3  ;;  %9168 = vmatpush.bf16.msra.mxu1 %v14667_v25 }
 0xa97   : > { %18260 = vst [vmem:[#allocation52_spill] sm:$0xff] %v17101_v22  ;;  %v7801_v59 = vrot.slane %v7564_v36, 2  ;;  %v7140_v12 = vpop.f32.mrf.mxu1  ;;  %v8757_v8 = vpop.f32.mrf.mxu0 }
 0xa98   : > { %v7439_v8 = vadd.f32 %v7342_v61, %v16978_v7 }
 0xa99   : > { %v7802_v32 = vsel %vm7799_vm9, %v7800_v18, %v7801_v59 }
 0xa9a   : > { %v7929_v51 = vadd.f32 %v7802_v32, %v7438_v31  ;;  %7167 = vmatmul.bf16.gmra.mxu1 %v16986_v38  ;;  %8784 = vmatmul.bf16.gmra.mxu0 %v14608_v44  ;;  %v14739_v31 = vld [vmem:[%s15440_s12 + $0x228] sm:$0xff] }
 0xa9b   : > { %7597 = vmatmul.bf16.gmra.mxu2 %v16986_v38  ;;  %8474 = vmatmul.bf16.gmra.mxu3 %v14608_v44 }
 0xa9c   : > { %v8628_v11 = vadd.f32 %v8439_v54, %v7929_v51  ;;  %10783 = vmatpush.bf16.msra.mxu0 %v14739_v31  ;;  %v14609_v51 = vld [vmem:[#allocation2 + $0x220] sm:$0xff] }
 0xa9e   : > { %v7567_v12 = vpop.f32.mrf.mxu2  ;;  %v8444_v39 = vpop.f32.mrf.mxu3  ;;  %v17110_v43 = vadd.f32 %v8959_v37, %v8628_v11 }
 0xa9f   : > { %v7803_v16 = vrot.slane %v7567_v12, 2  ;;  %v7141_v18 = vpop.f32.mrf.mxu1  ;;  %v8758_v36 = vpop.f32.mrf.mxu0  ;;  %v14610_v12 = vld [vmem:[#allocation2 + $0x228] sm:$0xff] }
 0xaa1   : > { %v7804_v38 = vsel %vm7799_vm9, %v7801_v59, %v7803_v16 }
 0xaa2   : > { %v7930_v44 = vadd.f32 %v7804_v38, %v7439_v8 }
 0xaa4   : > { %v8629_v32 = vadd.f32 %v8441_v15, %v7930_v44 }
 0xaa6   : > { %v7569_v22 = vpop.f32.mrf.mxu2  ;;  %v8445_v54 = vpop.f32.mrf.mxu3  ;;  %v17115_v45 = vadd.f32 %v8958_v58, %v8629_v32 }
 0xaa7   : > { %v7143_v63 = vpop.f32.mrf.mxu1  ;;  %v8760_v25 = vpop.f32.mrf.mxu0 }
 0xaaa   : > { %7172 = vmatmul.bf16.gmra.mxu1 %v16996_v21  ;;  %8789 = vmatmul.bf16.gmra.mxu0 %v14609_v51 }
 0xaab   : > { %7602 = vmatmul.bf16.gmra.mxu2 %v16996_v21  ;;  %8479 = vmatmul.bf16.gmra.mxu3 %v14609_v51 }
 0xaae   : > { %v7571_v7 = vpop.f32.mrf.mxu2  ;;  %v8447_v37 = vpop.f32.mrf.mxu3 }
 0xaaf   : > { %v7144_v59 = vpop.f32.mrf.mxu1  ;;  %v8761_v61 = vpop.f32.mrf.mxu0 }
 0xab0   : > { %v14611_v59 = vld [vmem:[#allocation2 + $0x230] sm:$0xff] }
 0xab6   : > { %v7572_v11 = vpop.f32.mrf.mxu2  ;;  %v8448_v15 = vpop.f32.mrf.mxu3 }
 0xab7   : > { %v7146_v22 = vpop.f32.mrf.mxu1  ;;  %v8763_v39 = vpop.f32.mrf.mxu0 }
 0xab8   : > { %v7344_v58 = vrot.slane %v7146_v22, 1  ;;  %v8960_v44 = vrot.slane %v8763_v39, 1 }
 0xaba   : > { %7175 = vmatmul.bf16.gmra.mxu1 %v16874_v24  ;;  %8792 = vmatmul.bf16.gmra.mxu0 %v14610_v12  ;;  %v7440_v21 = vadd.f32 %v7344_v58, %v17002_v57 }
 0xabb   : > { %7606 = vmatmul.bf16.gmra.mxu2 %v16874_v24  ;;  %8482 = vmatmul.bf16.gmra.mxu3 %v14610_v12 }
 0xabe   : > { %v7574_v16 = vpop.f32.mrf.mxu2  ;;  %v8451_v18 = vpop.f32.mrf.mxu3 }
 0xabf   : > { %v7805_v36 = vrot.slane %v7574_v16, 2  ;;  %v7148_v8 = vpop.f32.mrf.mxu1  ;;  %v8765_v38 = vpop.f32.mrf.mxu0 }
 0xac0   : > { %v7345_v31 = vrot.slane %v7148_v8, 1  ;;  %v8961_v32 = vrot.slane %v8765_v38, 1 }
 0xac1   : > { %v7931_v54 = vadd.f32 %v7805_v36, %v7440_v21 }
 0xac2   : > { %v7346_v51 = vsel %vm7340_vm12, %v7344_v58, %v7345_v31  ;;  %v8962_v63 = vsel %vm7340_vm12, %v8960_v44, %v8961_v32 }
 0xac3   : > { %v8630_v25 = vadd.f32 %v8448_v15, %v7931_v54  ;;  %v7441_v12 = vadd.f32 %v7346_v51, %v17010_v55  ;;  %v7442_v54 = vadd.f32 %v7345_v31, %v17020_v46 }
 0xac5   : > { %v17124_v7 = vadd.f32 %v8960_v44, %v8630_v25 }
 0xac6   : > { %v7576_v24 = vpop.f32.mrf.mxu2  ;;  %v8453_v37 = vpop.f32.mrf.mxu3 }
 0xac7   : > { %v7806_v61 = vrot.slane %v7576_v24, 2  ;;  %v7151_v11 = vpop.f32.mrf.mxu1  ;;  %v8768_v57 = vpop.f32.mrf.mxu0 }
 0xac8   : > { %v14612_v11 = vld [vmem:[#allocation2 + $0x238] sm:$0xff] }
 0xac9   : > { %v7807_v22 = vsel %vm7799_vm9, %v7805_v36, %v7806_v61 }
 0xaca   : > { %v7932_v39 = vadd.f32 %v7807_v22, %v7441_v12  ;;  %7178 = vmatmul.bf16.gmra.mxu1 %v16886_v33  ;;  %8795 = vmatmul.bf16.gmra.mxu0 %v14611_v59 }
 0xacb   : > { %7609 = vmatmul.bf16.gmra.mxu2 %v16886_v33  ;;  %8486 = vmatmul.bf16.gmra.mxu3 %v14611_v59 }
 0xacc   : > { %v8631_v15 = vadd.f32 %v8451_v18, %v7932_v39 }
 0xace   : > { %v7579_v58 = vpop.f32.mrf.mxu2  ;;  %v8456_v16 = vpop.f32.mrf.mxu3  ;;  %v17130_v21 = vadd.f32 %v8962_v63, %v8631_v15 }
 0xacf   : > { %v7808_v8 = vrot.slane %v7579_v58, 2  ;;  %v7152_v38 = vpop.f32.mrf.mxu1  ;;  %v8769_v44 = vpop.f32.mrf.mxu0 }
 0xad1   : > { %v7809_v55 = vsel %vm7799_vm9, %v7806_v61, %v7808_v8 }
 0xad2   : > { %v7933_v36 = vadd.f32 %v7809_v55, %v7442_v54 }
 0xad4   : > { %v8632_v51 = vadd.f32 %v8453_v37, %v7933_v36  ;;  %v14613_v37 = vld [vmem:[#allocation2 + $0x240] sm:$0xff] }
 0xad6   : > { %v7581_v25 = vpop.f32.mrf.mxu2  ;;  %v8457_v24 = vpop.f32.mrf.mxu3  ;;  %v17134_v57 = vadd.f32 %v8961_v32, %v8632_v51 }
 0xad7   : > { %v7154_v33 = vpop.f32.mrf.mxu1  ;;  %v8771_v18 = vpop.f32.mrf.mxu0 }
 0xada   : > { %7183 = vmatmul.bf16.gmra.mxu1 %v16896_v27  ;;  %8800 = vmatmul.bf16.gmra.mxu0 %v14612_v11 }
 0xadb   : > { %7614 = vmatmul.bf16.gmra.mxu2 %v16896_v27  ;;  %8491 = vmatmul.bf16.gmra.mxu3 %v14612_v11 }
 0xade   : > { %v7583_v63 = vpop.f32.mrf.mxu2  ;;  %v8459_v59 = vpop.f32.mrf.mxu3 }
 0xadf   : > { %v7155_v46 = vpop.f32.mrf.mxu1  ;;  %v8772_v31 = vpop.f32.mrf.mxu0 }
 0xae6   : > { %v7584_v61 = vpop.f32.mrf.mxu2  ;;  %v8460_v12 = vpop.f32.mrf.mxu3 }
 0xae7   : > { %v7157_v22 = vpop.f32.mrf.mxu1  ;;  %v8774_v39 = vpop.f32.mrf.mxu0 }
 0xae8   : > { %v7347_v32 = vrot.slane %v7157_v22, 1  ;;  %v8963_v44 = vrot.slane %v8774_v39, 1  ;;  %v14666_v22 = vld [vmem:[%s15440_s12 + $0x160] sm:$0xff] }
 0xae9   : > { %9169 = vmatpush.bf16.msra.mxu1 %v14666_v22 }
 0xaea   : > { %7186 = vmatmul.bf16.gmra.mxu1 %v16906_v1  ;;  %8803 = vmatmul.bf16.gmra.mxu0 %v14613_v37  ;;  %v7443_v27 = vadd.f32 %v7347_v32, %v17032_v34  ;;  %v14614_v34 = vld [vmem:[#allocation2 + $0x248] sm:$0xff] }
 0xaeb   : > { %7618 = vmatmul.bf16.gmra.mxu2 %v16906_v1  ;;  %8494 = vmatmul.bf16.gmra.mxu3 %v14613_v37  ;;  %v14730_v37 = vld [vmem:[%s15440_s12 + $0x1e0] sm:$0xff] }
 0xaec   : > { %10358 = vmatpush.bf16.msra.mxu3 %v14730_v37 }
 0xaee   : > { %v7586_v15 = vpop.f32.mrf.mxu2  ;;  %v8463_v58 = vpop.f32.mrf.mxu3 }
 0xaef   : > { %v7810_v16 = vrot.slane %v7586_v15, 2  ;;  %v7159_v8 = vpop.f32.mrf.mxu1  ;;  %v8776_v38 = vpop.f32.mrf.mxu0 }
 0xaf0   : > { %v7348_v54 = vrot.slane %v7159_v8, 1  ;;  %v8964_v55 = vrot.slane %v8776_v38, 1 }
 0xaf1   : > { %v7934_v36 = vadd.f32 %v7810_v16, %v7443_v27 }
 0xaf2   : > { %v7349_v51 = vsel %vm7340_vm12, %v7347_v32, %v7348_v54  ;;  %v8965_v25 = vsel %vm7340_vm12, %v8963_v44, %v8964_v55  ;;  %v7445_v38 = vadd.f32 %v7348_v54, %v17050_v52 }
 0xaf3   : > { %v8633_v24 = vadd.f32 %v8460_v12, %v7934_v36  ;;  %v7444_v46 = vadd.f32 %v7349_v51, %v17040_v10  ;;  %v14722_v12 = vld [vmem:[%s15440_s12 + $0x1a0] sm:$0xff] }
 0xaf4   : > { %10044 = vmatpush.bf16.msra.mxu2 %v14722_v12  ;;  %v14738_v36 = vld [vmem:[%s15440_s12 + $0x220] sm:$0xff] }
 0xaf5   : > { %v17143_v1 = vadd.f32 %v8963_v44, %v8633_v24  ;;  %10784 = vmatpush.bf16.msra.mxu0 %v14738_v36 }
 0xaf6   : > { %v7588_v11 = vpop.f32.mrf.mxu2  ;;  %v8465_v33 = vpop.f32.mrf.mxu3 }
 0xaf7   : > { %v7811_v18 = vrot.slane %v7588_v11, 2  ;;  %v7162_v63 = vpop.f32.mrf.mxu1  ;;  %v8779_v59 = vpop.f32.mrf.mxu0  ;;  %v14615_v11 = vld [vmem:[#allocation2 + $0x250] sm:$0xff] }
 0xaf9   : > { %v7812_v31 = vsel %vm7799_vm9, %v7810_v16, %v7811_v18 }
 0xafa   : > { %v7935_v61 = vadd.f32 %v7812_v31, %v7444_v46  ;;  %7189 = vmatmul.bf16.gmra.mxu1 %v16912_v42  ;;  %8806 = vmatmul.bf16.gmra.mxu0 %v14614_v34  ;;  %v14616_v31 = vld [vmem:[#allocation2 + $0x258] sm:$0xff] }
 0xafb   : > { %7621 = vmatmul.bf16.gmra.mxu2 %v16912_v42  ;;  %8498 = vmatmul.bf16.gmra.mxu3 %v14614_v34 }
 0xafc   : > { %v8634_v39 = vadd.f32 %v8463_v58, %v7935_v61 }
 0xafe   : > { %v7591_v32 = vpop.f32.mrf.mxu2  ;;  %v8468_v15 = vpop.f32.mrf.mxu3  ;;  %v17152_v10 = vadd.f32 %v8965_v25, %v8634_v39 }
 0xaff   : > { %v7813_v27 = vrot.slane %v7591_v32, 2  ;;  %v7163_v16 = vpop.f32.mrf.mxu1  ;;  %v8780_v8 = vpop.f32.mrf.mxu0 }
 0xb01   : > { %v7814_v42 = vsel %vm7799_vm9, %v7811_v18, %v7813_v27 }
 0xb02   : > { %v7936_v44 = vadd.f32 %v7814_v42, %v7445_v38 }
 0xb04   : > { %v8635_v51 = vadd.f32 %v8465_v33, %v7936_v44 }
 0xb06   : > { %v7593_v24 = vpop.f32.mrf.mxu2  ;;  %v8469_v58 = vpop.f32.mrf.mxu3  ;;  %v17157_v34 = vadd.f32 %v8964_v55, %v8635_v51 }
 0xb07   : > { %v7165_v63 = vpop.f32.mrf.mxu1  ;;  %v8782_v59 = vpop.f32.mrf.mxu0  ;;  %v14617_v58 = vld [vmem:[#allocation2 + $0x260] sm:$0xff] }
 0xb0a   : > { %7194 = vmatmul.bf16.gmra.mxu1 %v16922_v0  ;;  %8811 = vmatmul.bf16.gmra.mxu0 %v14615_v11 }
 0xb0b   : > { %7626 = vmatmul.bf16.gmra.mxu2 %v16922_v0  ;;  %8503 = vmatmul.bf16.gmra.mxu3 %v14615_v11 }
 0xb0e   : > { %v7595_v52 = vpop.f32.mrf.mxu2  ;;  %v8471_v54 = vpop.f32.mrf.mxu3 }
 0xb0f   : > { %v7166_v25 = vpop.f32.mrf.mxu1  ;;  %v8783_v18 = vpop.f32.mrf.mxu0 }
 0xb16   : > { %v7596_v46 = vpop.f32.mrf.mxu2  ;;  %v8472_v33 = vpop.f32.mrf.mxu3 }
 0xb17   : > { %v7168_v61 = vpop.f32.mrf.mxu1  ;;  %v8785_v12 = vpop.f32.mrf.mxu0 }
 0xb18   : > { %v7350_v55 = vrot.slane %v7168_v61, 1  ;;  %v8966_v27 = vrot.slane %v8785_v12, 1 }
 0xb1a   : > { %7197 = vmatmul.bf16.gmra.mxu1 %v16931_v35  ;;  %8814 = vmatmul.bf16.gmra.mxu0 %v14616_v31  ;;  %v7446_v0 = vadd.f32 %v7350_v55, %v17066_v9 }
 0xb1b   : > { %7630 = vmatmul.bf16.gmra.mxu2 %v16931_v35  ;;  %8506 = vmatmul.bf16.gmra.mxu3 %v14616_v31 }
 0xb1e   : > { %v7598_v37 = vpop.f32.mrf.mxu2  ;;  %v8475_v22 = vpop.f32.mrf.mxu3 }
 0xb1f   : > { %v7815_v39 = vrot.slane %v7598_v37, 2  ;;  %v7170_v32 = vpop.f32.mrf.mxu1  ;;  %v8787_v15 = vpop.f32.mrf.mxu0 }
 0xb20   : > { %v7351_v16 = vrot.slane %v7170_v32, 1  ;;  %v8967_v8 = vrot.slane %v8787_v15, 1  ;;  %v14618_v15 = vld [vmem:[#allocation2 + $0x268] sm:$0xff] }
 0xb21   : > { %v7937_v38 = vadd.f32 %v7815_v39, %v7446_v0 }
 0xb22   : > { %v7352_v42 = vsel %vm7340_vm12, %v7350_v55, %v7351_v16  ;;  %v8968_v44 = vsel %vm7340_vm12, %v8966_v27, %v8967_v8  ;;  %v7448_v55 = vadd.f32 %v7351_v16, %v17084_v30 }
 0xb23   : > { %v8636_v36 = vadd.f32 %v8472_v33, %v7937_v38  ;;  %v7447_v59 = vadd.f32 %v7352_v42, %v17074_v3 }
 0xb25   : > { %v17166_v51 = vadd.f32 %v8966_v27, %v8636_v36 }
 0xb26   : > { %v7600_v35 = vpop.f32.mrf.mxu2  ;;  %v8477_v24 = vpop.f32.mrf.mxu3 }
 0xb27   : > { %v7816_v11 = vrot.slane %v7600_v35, 2  ;;  %v7173_v63 = vpop.f32.mrf.mxu1  ;;  %v8790_v9 = vpop.f32.mrf.mxu0  ;;  %v14619_v35 = vld [vmem:[#allocation2 + $0x270] sm:$0xff] }
 0xb29   : > { %v7817_v52 = vsel %vm7799_vm9, %v7815_v39, %v7816_v11 }
 0xb2a   : > { %v7938_v54 = vadd.f32 %v7817_v52, %v7447_v59  ;;  %7200 = vmatmul.bf16.gmra.mxu1 %v16938_v20  ;;  %8817 = vmatmul.bf16.gmra.mxu0 %v14617_v58 }
 0xb2b   : > { %7633 = vmatmul.bf16.gmra.mxu2 %v16938_v20  ;;  %8510 = vmatmul.bf16.gmra.mxu3 %v14617_v58 }
 0xb2c   : > { %v8637_v25 = vadd.f32 %v8475_v22, %v7938_v54 }
 0xb2e   : > { %v7603_v18 = vpop.f32.mrf.mxu2  ;;  %v8480_v46 = vpop.f32.mrf.mxu3  ;;  %v17172_v33 = vadd.f32 %v8968_v44, %v8637_v25 }
 0xb2f   : > { %v7818_v31 = vrot.slane %v7603_v18, 2  ;;  %v7174_v61 = vpop.f32.mrf.mxu1  ;;  %v8791_v12 = vpop.f32.mrf.mxu0 }
 0xb31   : > { %v7819_v3 = vsel %vm7799_vm9, %v7816_v11, %v7818_v31 }
 0xb32   : > { %v7939_v37 = vadd.f32 %v7819_v3, %v7448_v55 }
 0xb34   : > { %v8638_v0 = vadd.f32 %v8477_v24, %v7939_v37 }
 0xb36   : > { %v7605_v39 = vpop.f32.mrf.mxu2  ;;  %v8481_v32 = vpop.f32.mrf.mxu3  ;;  %v17176_v27 = vadd.f32 %v8967_v8, %v8638_v0 }
 0xb37   : > { %v7176_v20 = vpop.f32.mrf.mxu1  ;;  %v8793_v22 = vpop.f32.mrf.mxu0 }
 0xb38   : > { %v14721_v22 = vld [vmem:[%s15440_s12 + $0x198] sm:$0xff] }
 0xb39   : > { %10045 = vmatpush.bf16.msra.mxu2 %v14721_v22 }
 0xb3a   : > { %7205 = vmatmul.bf16.gmra.mxu1 %v16948_v6  ;;  %8822 = vmatmul.bf16.gmra.mxu0 %v14618_v15 }
 0xb3b   : > { %7638 = vmatmul.bf16.gmra.mxu2 %v16948_v6  ;;  %8515 = vmatmul.bf16.gmra.mxu3 %v14618_v15 }
 0xb3e   : > { %v7607_v38 = vpop.f32.mrf.mxu2  ;;  %v8483_v42 = vpop.f32.mrf.mxu3 }
 0xb3f   : > { %v7177_v30 = vpop.f32.mrf.mxu1  ;;  %v8794_v16 = vpop.f32.mrf.mxu0  ;;  %v14729_v38 = vld [vmem:[%s15440_s12 + $0x1d8] sm:$0xff] }
 0xb40   : > { %v14665_v42 = vld [vmem:[%s15440_s12 + $0x158] sm:$0xff]  ;;  %10359 = vmatpush.bf16.msra.mxu3 %v14729_v38 }
 0xb41   : > { %9170 = vmatpush.bf16.msra.mxu1 %v14665_v42 }
 0xb46   : > { %v7608_v44 = vpop.f32.mrf.mxu2  ;;  %v8484_v36 = vpop.f32.mrf.mxu3 }
 0xb47   : > { %v7179_v24 = vpop.f32.mrf.mxu1  ;;  %v8796_v58 = vpop.f32.mrf.mxu0 }
 0xb48   : > { %v7353_v8 = vrot.slane %v7179_v24, 1  ;;  %v8969_v54 = vrot.slane %v8796_v58, 1 }
 0xb4a   : > { %7208 = vmatmul.bf16.gmra.mxu1 %v16965_v47  ;;  %8825 = vmatmul.bf16.gmra.mxu0 %v14619_v35  ;;  %v7449_v6 = vadd.f32 %v7353_v8, %v16954_v14  ;;  %v14620_v14 = vld [vmem:[#allocation2 + $0x278] sm:$0xff] }
 0xb4b   : > { %7642 = vmatmul.bf16.gmra.mxu2 %v16965_v47  ;;  %8518 = vmatmul.bf16.gmra.mxu3 %v14619_v35 }
 0xb4e   : > { %v7610_v11 = vpop.f32.mrf.mxu2  ;;  %v8487_v63 = vpop.f32.mrf.mxu3 }
 0xb4f   : > { %v7820_v9 = vrot.slane %v7610_v11, 2  ;;  %v7181_v59 = vpop.f32.mrf.mxu1  ;;  %v8798_v52 = vpop.f32.mrf.mxu0  ;;  %v14737_v11 = vld [vmem:[%s15440_s12 + $0x218] sm:$0xff] }
 0xb50   : > { %v7354_v25 = vrot.slane %v7181_v59, 1  ;;  %v8970_v18 = vrot.slane %v8798_v52, 1  ;;  %10785 = vmatpush.bf16.msra.mxu0 %v14737_v11  ;;  %v14621_v59 = vld [vmem:[#allocation2 + $0x280] sm:$0xff] }
 0xb51   : > { %v7940_v46 = vadd.f32 %v7820_v9, %v7449_v6 }
 0xb52   : > { %v7355_v31 = vsel %vm7340_vm12, %v7353_v8, %v7354_v25  ;;  %v8971_v61 = vsel %vm7340_vm12, %v8969_v54, %v8970_v18  ;;  %v7451_v58 = vadd.f32 %v7354_v25, %v16980_v62 }
 0xb53   : > { %v8639_v12 = vadd.f32 %v8484_v36, %v7940_v46  ;;  %v7450_v32 = vadd.f32 %v7355_v31, %v16969_v29 }
 0xb55   : > { %v17185_v47 = vadd.f32 %v8969_v54, %v8639_v12 }
 0xb56   : > { %v7612_v55 = vpop.f32.mrf.mxu2  ;;  %v8489_v3 = vpop.f32.mrf.mxu3 }
 0xb57   : > { %v7821_v37 = vrot.slane %v7612_v55, 2  ;;  %v7184_v0 = vpop.f32.mrf.mxu1  ;;  %v8801_v39 = vpop.f32.mrf.mxu0 }
 0xb58   : > { %v14976_v0 = vld [vmem:[#allocation2 + $0x270] sm:$0xff] }
 0xb59   : > { %v7822_v15 = vsel %vm7799_vm9, %v7820_v9, %v7821_v37 }
 0xb5a   : > { %v7941_v20 = vadd.f32 %v7822_v15, %v7450_v32  ;;  %7211 = vmatmul.bf16.gmra.mxu1 %v16988_v13  ;;  %8828 = vmatmul.bf16.gmra.mxu0 %v14620_v14 }
 0xb5b   : > { %7645 = vmatmul.bf16.gmra.mxu2 %v16988_v13  ;;  %8522 = vmatmul.bf16.gmra.mxu3 %v14620_v14 }
 0xb5c   : > { %v8640_v30 = vadd.f32 %v8487_v63, %v7941_v20 }
 0xb5e   : > { %v7615_v16 = vpop.f32.mrf.mxu2  ;;  %v8492_v44 = vpop.f32.mrf.mxu3  ;;  %v17194_v29 = vadd.f32 %v8971_v61, %v8640_v30 }
 0xb5f   : > { %v7823_v36 = vrot.slane %v7615_v16, 2  ;;  %v7185_v35 = vpop.f32.mrf.mxu1  ;;  %v8802_v24 = vpop.f32.mrf.mxu0 }
 0xb61   : > { %v7824_v13 = vsel %vm7799_vm9, %v7821_v37, %v7823_v36 }
 0xb62   : > { %v7942_v8 = vadd.f32 %v7824_v13, %v7451_v58 }
 0xb64   : > { %v8641_v6 = vadd.f32 %v8489_v3, %v7942_v8  ;;  %v14622_v3 = vld [vmem:[#allocation2 + $0x288] sm:$0xff]  ;;  %v14623_v8 = vld [vmem:[#allocation2 + $0x290] sm:$0xff] }
 0xb66   : > { %v7617_v9 = vpop.f32.mrf.mxu2  ;;  %v8493_v63 = vpop.f32.mrf.mxu3  ;;  %v17199_v52 = vadd.f32 %v8970_v18, %v8641_v6 }
 0xb67   : > { %v7187_v54 = vpop.f32.mrf.mxu1  ;;  %v8804_v46 = vpop.f32.mrf.mxu0 }
 0xb68   : > { %v14977_v54 = vld [vmem:[#allocation2 + $0x278] sm:$0xff] }
 0xb6a   : > { %7216 = vmatmul.bf16.gmra.mxu1 %v16998_v50  ;;  %8833 = vmatmul.bf16.gmra.mxu0 %v14621_v59 }
 0xb6b   : > { %7650 = vmatmul.bf16.gmra.mxu2 %v16998_v50  ;;  %8527 = vmatmul.bf16.gmra.mxu3 %v14621_v59 }
 0xb6e   : > { %v7619_v62 = vpop.f32.mrf.mxu2  ;;  %v8495_v25 = vpop.f32.mrf.mxu3 }
 0xb6f   : > { %v7188_v31 = vpop.f32.mrf.mxu1  ;;  %v8805_v61 = vpop.f32.mrf.mxu0 }
 0xb76   : > { %v7620_v12 = vpop.f32.mrf.mxu2  ;;  %v8496_v55 = vpop.f32.mrf.mxu3 }
 0xb77   : > { %v7190_v14 = vpop.f32.mrf.mxu1  ;;  %v8807_v37 = vpop.f32.mrf.mxu0 }
 0xb78   : > { %v7356_v18 = vrot.slane %v7190_v14, 1  ;;  %v8972_v38 = vrot.slane %v8807_v37, 1 }
 0xb7a   : > { %7219 = vmatmul.bf16.gmra.mxu1 %v14976_v0  ;;  %8836 = vmatmul.bf16.gmra.mxu0 %v14622_v3  ;;  %v7452_v50 = vadd.f32 %v7356_v18, %v17004_v41 }
 0xb7b   : > { %7654 = vmatmul.bf16.gmra.mxu2 %v14976_v0  ;;  %8530 = vmatmul.bf16.gmra.mxu3 %v14622_v3 }
 0xb7e   : > { %v7622_v39 = vpop.f32.mrf.mxu2  ;;  %v8499_v32 = vpop.f32.mrf.mxu3 }
 0xb7f   : > { %v7825_v15 = vrot.slane %v7622_v39, 2  ;;  %v7192_v20 = vpop.f32.mrf.mxu1  ;;  %v8809_v22 = vpop.f32.mrf.mxu0  ;;  %v14624_v39 = vld [vmem:[#allocation2 + $0x298] sm:$0xff] }
 0xb80   : > { %v7357_v42 = vrot.slane %v7192_v20, 1  ;;  %v8973_v30 = vrot.slane %v8809_v22, 1  ;;  %v14978_v20 = vld [vmem:[#allocation2 + $0x280] sm:$0xff] }
 0xb81   : > { %v7943_v16 = vadd.f32 %v7825_v15, %v7452_v50 }
 0xb82   : > { %v7358_v44 = vsel %vm7340_vm12, %v7356_v18, %v7357_v42  ;;  %v8974_v36 = vsel %vm7340_vm12, %v8972_v38, %v8973_v30  ;;  %v7454_v3 = vadd.f32 %v7357_v42, %v17022_v17 }
 0xb83   : > { %v8642_v35 = vadd.f32 %v8496_v55, %v7943_v16  ;;  %v7453_v9 = vadd.f32 %v7358_v44, %v17012_v19 }
 0xb85   : > { %v17206_v24 = vadd.f32 %v8972_v38, %v8642_v35 }
 0xb86   : > { %v7624_v58 = vpop.f32.mrf.mxu2  ;;  %v8501_v13 = vpop.f32.mrf.mxu3 }
 0xb87   : > { %v7826_v11 = vrot.slane %v7624_v58, 2  ;;  %v7195_v6 = vpop.f32.mrf.mxu1  ;;  %v8812_v41 = vpop.f32.mrf.mxu0 }
 0xb89   : > { %v7827_v63 = vsel %vm7799_vm9, %v7825_v15, %v7826_v11 }
 0xb8a   : > { %v7944_v59 = vadd.f32 %v7827_v63, %v7453_v9  ;;  %7222 = vmatmul.bf16.gmra.mxu1 %v14977_v54  ;;  %8839 = vmatmul.bf16.gmra.mxu0 %v14623_v8 }
 0xb8b   : > { %7657 = vmatmul.bf16.gmra.mxu2 %v14977_v54  ;;  %8534 = vmatmul.bf16.gmra.mxu3 %v14623_v8 }
 0xb8c   : > { %v8643_v46 = vadd.f32 %v8499_v32, %v7944_v59 }
 0xb8e   : > { %v7627_v62 = vpop.f32.mrf.mxu2  ;;  %v8504_v25 = vpop.f32.mrf.mxu3  ;;  %v17210_v31 = vadd.f32 %v8974_v36, %v8643_v46  ;;  %v14625_v36 = vld [vmem:[#allocation2 + $0x2a0] sm:$0xff] }
 0xb8f   : > { %v7828_v61 = vrot.slane %v7627_v62, 2  ;;  %v7196_v12 = vpop.f32.mrf.mxu1  ;;  %v8813_v55 = vpop.f32.mrf.mxu0 }
 0xb91   : > { %v7829_v19 = vsel %vm7799_vm9, %v7826_v11, %v7828_v61 }
 0xb92   : > { %v7945_v14 = vadd.f32 %v7829_v19, %v7454_v3 }
 0xb94   : > { %v8644_v37 = vadd.f32 %v8501_v13, %v7945_v14  ;;  %v14979_v13 = vld [vmem:[#allocation2 + $0x288] sm:$0xff] }
 0xb96   : > { %v7629_v0 = vpop.f32.mrf.mxu2  ;;  %v8505_v18 = vpop.f32.mrf.mxu3  ;;  %v17214_v50 = vadd.f32 %v8973_v30, %v8644_v37 }
 0xb97   : > { %v7198_v15 = vpop.f32.mrf.mxu1  ;;  %v8815_v32 = vpop.f32.mrf.mxu0 }
 0xb98   : > { %v14980_v32 = vld [vmem:[#allocation2 + $0x290] sm:$0xff] }
 0xb9a   : > { %7227 = vmatmul.bf16.gmra.mxu1 %v14978_v20  ;;  %8844 = vmatmul.bf16.gmra.mxu0 %v14624_v39 }
 0xb9b   : > { %7662 = vmatmul.bf16.gmra.mxu2 %v14978_v20  ;;  %8539 = vmatmul.bf16.gmra.mxu3 %v14624_v39  ;;  %v14720_v20 = vld [vmem:[%s15440_s12 + $0x190] sm:$0xff] }
 0xb9c   : > { %10046 = vmatpush.bf16.msra.mxu2 %v14720_v20 }
 0xb9e   : > { %v7631_v22 = vpop.f32.mrf.mxu2  ;;  %v8507_v38 = vpop.f32.mrf.mxu3 }
 0xb9f   : > { %v7199_v16 = vpop.f32.mrf.mxu1  ;;  %v8816_v17 = vpop.f32.mrf.mxu0  ;;  %v14728_v22 = vld [vmem:[%s15440_s12 + $0x1d0] sm:$0xff] }
 0xba0   : > { %v14664_v38 = vld [vmem:[%s15440_s12 + $0x150] sm:$0xff]  ;;  %10360 = vmatpush.bf16.msra.mxu3 %v14728_v22 }
 0xba1   : > { %9171 = vmatpush.bf16.msra.mxu1 %v14664_v38 }
 0xba6   : > { %v7632_v42 = vpop.f32.mrf.mxu2  ;;  %v8508_v44 = vpop.f32.mrf.mxu3 }
 0xba7   : > { %v7201_v35 = vpop.f32.mrf.mxu1  ;;  %v8818_v58 = vpop.f32.mrf.mxu0 }
 0xba8   : > { %v7359_v30 = vrot.slane %v7201_v35, 1  ;;  %v8975_v59 = vrot.slane %v8818_v58, 1 }
 0xbaa   : > { %7230 = vmatmul.bf16.gmra.mxu1 %v14979_v13  ;;  %8847 = vmatmul.bf16.gmra.mxu0 %v14625_v36  ;;  %v7455_v6 = vadd.f32 %v7359_v30, %v17034_v28  ;;  %v14626_v28 = vld [vmem:[#allocation2 + $0x2a8] sm:$0xff] }
 0xbab   : > { %7666 = vmatmul.bf16.gmra.mxu2 %v14979_v13  ;;  %8542 = vmatmul.bf16.gmra.mxu3 %v14625_v36 }
 0xbae   : > { %v7634_v8 = vpop.f32.mrf.mxu2  ;;  %v8511_v11 = vpop.f32.mrf.mxu3 }
 0xbaf   : > { %v7830_v41 = vrot.slane %v7634_v8, 2  ;;  %v7203_v9 = vpop.f32.mrf.mxu1  ;;  %v8820_v63 = vpop.f32.mrf.mxu0  ;;  %v14736_v8 = vld [vmem:[%s15440_s12 + $0x210] sm:$0xff] }
 0xbb0   : > { %v7360_v54 = vrot.slane %v7203_v9, 1  ;;  %v8976_v46 = vrot.slane %v8820_v63, 1  ;;  %10786 = vmatpush.bf16.msra.mxu0 %v14736_v8  ;;  %v14627_v9 = vld [vmem:[#allocation2 + $0x2b0] sm:$0xff]  ;;  %v14629_v8 = vld [vmem:[#allocation2 + $0x2c0] sm:$0xff] }
 0xbb1   : > { %v7946_v62 = vadd.f32 %v7830_v41, %v7455_v6 }
 0xbb2   : > { %v7361_v25 = vsel %vm7340_vm12, %v7359_v30, %v7360_v54  ;;  %v8977_v61 = vsel %vm7340_vm12, %v8975_v59, %v8976_v46  ;;  %v7457_v58 = vadd.f32 %v7360_v54, %v17052_v40 }
 0xbb3   : > { %v8645_v12 = vadd.f32 %v8508_v44, %v7946_v62  ;;  %v7456_v18 = vadd.f32 %v7361_v25, %v17042_v23  ;;  %v14981_v25 = vld [vmem:[#allocation2 + $0x298] sm:$0xff] }
 0xbb5   : > { %v17219_v55 = vadd.f32 %v8975_v59, %v8645_v12 }
 0xbb6   : > { %v7636_v3 = vpop.f32.mrf.mxu2  ;;  %v8513_v19 = vpop.f32.mrf.mxu3 }
 0xbb7   : > { %v7831_v14 = vrot.slane %v7636_v3, 2  ;;  %v7206_v37 = vpop.f32.mrf.mxu1  ;;  %v8823_v0 = vpop.f32.mrf.mxu0 }
 0xbb8   : > { %v14982_v0 = vld [vmem:[#allocation2 + $0x2a0] sm:$0xff] }
 0xbb9   : > { %v7832_v39 = vsel %vm7799_vm9, %v7830_v41, %v7831_v14 }
 0xbba   : > { %v7947_v15 = vadd.f32 %v7832_v39, %v7456_v18  ;;  %7233 = vmatmul.bf16.gmra.mxu1 %v14980_v32  ;;  %8850 = vmatmul.bf16.gmra.mxu0 %v14626_v28 }
 0xbbb   : > { %7669 = vmatmul.bf16.gmra.mxu2 %v14980_v32  ;;  %8546 = vmatmul.bf16.gmra.mxu3 %v14626_v28 }
 0xbbc   : > { %v8646_v16 = vadd.f32 %v8511_v11, %v7947_v15 }
 0xbbe   : > { %v7639_v17 = vpop.f32.mrf.mxu2  ;;  %v8516_v42 = vpop.f32.mrf.mxu3  ;;  %v17226_v44 = vadd.f32 %v8977_v61, %v8646_v16 }
 0xbbf   : > { %v7833_v23 = vrot.slane %v7639_v17, 2  ;;  %v7207_v36 = vpop.f32.mrf.mxu1  ;;  %v8824_v35 = vpop.f32.mrf.mxu0 }
 0xbc1   : > { %v7834_v13 = vsel %vm7799_vm9, %v7831_v14, %v7833_v23 }
 0xbc2   : > { %v7948_v30 = vadd.f32 %v7834_v13, %v7457_v58 }
 0xbc4   : > { %v8647_v6 = vadd.f32 %v8513_v19, %v7948_v30  ;;  %v14628_v19 = vld [vmem:[#allocation2 + $0x2b8] sm:$0xff] }
 0xbc6   : > { %v7641_v41 = vpop.f32.mrf.mxu2  ;;  %v8517_v11 = vpop.f32.mrf.mxu3  ;;  %v17231_v63 = vadd.f32 %v8976_v46, %v8647_v6 }
 0xbc7   : > { %v7209_v59 = vpop.f32.mrf.mxu1  ;;  %v8826_v62 = vpop.f32.mrf.mxu0 }
 0xbc8   : > { %v14983_v62 = vld [vmem:[#allocation2 + $0x2a8] sm:$0xff] }
 0xbca   : > { %7238 = vmatmul.bf16.gmra.mxu1 %v14981_v25  ;;  %8855 = vmatmul.bf16.gmra.mxu0 %v14627_v9 }
 0xbcb   : > { %7674 = vmatmul.bf16.gmra.mxu2 %v14981_v25  ;;  %8551 = vmatmul.bf16.gmra.mxu3 %v14627_v9 }
 0xbce   : > { %v7643_v61 = vpop.f32.mrf.mxu2  ;;  %v8519_v40 = vpop.f32.mrf.mxu3 }
 0xbcf   : > { %v7210_v54 = vpop.f32.mrf.mxu1  ;;  %v8827_v12 = vpop.f32.mrf.mxu0 }
 0xbd6   : > { %v7644_v3 = vpop.f32.mrf.mxu2  ;;  %v8520_v28 = vpop.f32.mrf.mxu3 }
 0xbd7   : > { %v7212_v14 = vpop.f32.mrf.mxu1  ;;  %v8829_v37 = vpop.f32.mrf.mxu0 }
 0xbd8   : > { %v7362_v46 = vrot.slane %v7212_v14, 1  ;;  %v8978_v38 = vrot.slane %v8829_v37, 1 }
 0xbda   : > { %7241 = vmatmul.bf16.gmra.mxu1 %v14982_v0  ;;  %8858 = vmatmul.bf16.gmra.mxu0 %v14628_v19  ;;  %v7458_v15 = vadd.f32 %v7362_v46, %v17068_v60 }
 0xbdb   : > { %7678 = vmatmul.bf16.gmra.mxu2 %v14982_v0  ;;  %8554 = vmatmul.bf16.gmra.mxu3 %v14628_v19 }
 0xbde   : > { %v7646_v18 = vpop.f32.mrf.mxu2  ;;  %v8523_v39 = vpop.f32.mrf.mxu3 }
 0xbdf   : > { %v7835_v32 = vrot.slane %v7646_v18, 2  ;;  %v7214_v20 = vpop.f32.mrf.mxu1  ;;  %v8831_v22 = vpop.f32.mrf.mxu0  ;;  %v14630_v18 = vld [vmem:[#allocation2 + $0x2c8] sm:$0xff] }
 0xbe0   : > { %v7363_v16 = vrot.slane %v7214_v20, 1  ;;  %v8979_v17 = vrot.slane %v8831_v22, 1  ;;  %v14984_v20 = vld [vmem:[#allocation2 + $0x2b0] sm:$0xff] }
 0xbe1   : > { %v7949_v42 = vadd.f32 %v7835_v32, %v7458_v15 }
 0xbe2   : > { %v7364_v23 = vsel %vm7340_vm12, %v7362_v46, %v7363_v16  ;;  %v8980_v36 = vsel %vm7340_vm12, %v8978_v38, %v8979_v17  ;;  %v7460_v19 = vadd.f32 %v7363_v16, %v17086_v56 }
 0xbe3   : > { %v8648_v35 = vadd.f32 %v8520_v28, %v7949_v42  ;;  %v7459_v11 = vadd.f32 %v7364_v23, %v17076_v5 }
 0xbe5   : > { %v17236_v58 = vadd.f32 %v8978_v38, %v8648_v35 }
 0xbe6   : > { %v7648_v13 = vpop.f32.mrf.mxu2  ;;  %v8525_v30 = vpop.f32.mrf.mxu3 }
 0xbe7   : > { %v7836_v6 = vrot.slane %v7648_v13, 2  ;;  %v7217_v41 = vpop.f32.mrf.mxu1  ;;  %v8834_v60 = vpop.f32.mrf.mxu0 }
 0xbe9   : > { %v7837_v9 = vsel %vm7799_vm9, %v7835_v32, %v7836_v6 }
 0xbea   : > { %v7950_v59 = vadd.f32 %v7837_v9, %v7459_v11  ;;  %7244 = vmatmul.bf16.gmra.mxu1 %v14983_v62  ;;  %8861 = vmatmul.bf16.gmra.mxu0 %v14629_v8 }
 0xbeb   : > { %7681 = vmatmul.bf16.gmra.mxu2 %v14983_v62  ;;  %8558 = vmatmul.bf16.gmra.mxu3 %v14629_v8 }
 0xbec   : > { %v8649_v25 = vadd.f32 %v8523_v39, %v7950_v59 }
 0xbee   : > { %v7651_v61 = vpop.f32.mrf.mxu2  ;;  %v8528_v40 = vpop.f32.mrf.mxu3  ;;  %v17240_v54 = vadd.f32 %v8980_v36, %v8649_v25  ;;  %v14631_v36 = vld [vmem:[#allocation2 + $0x2d0] sm:$0xff] }
 0xbef   : > { %v7838_v12 = vrot.slane %v7651_v61, 2  ;;  %v7218_v3 = vpop.f32.mrf.mxu1  ;;  %v8835_v28 = vpop.f32.mrf.mxu0 }
 0xbf1   : > { %v7839_v5 = vsel %vm7799_vm9, %v7836_v6, %v7838_v12 }
 0xbf2   : > { %v7951_v14 = vadd.f32 %v7839_v5, %v7460_v19 }
 0xbf4   : > { %v8650_v37 = vadd.f32 %v8525_v30, %v7951_v14  ;;  %v14985_v30 = vld [vmem:[#allocation2 + $0x2b8] sm:$0xff] }
 0xbf6   : > { %v7653_v0 = vpop.f32.mrf.mxu2  ;;  %v8529_v46 = vpop.f32.mrf.mxu3  ;;  %v17244_v15 = vadd.f32 %v8979_v17, %v8650_v37 }
 0xbf7   : > { %v7220_v32 = vpop.f32.mrf.mxu1  ;;  %v8837_v39 = vpop.f32.mrf.mxu0 }
 0xbf8   : > { %v14986_v39 = vld [vmem:[#allocation2 + $0x2c0] sm:$0xff] }
 0xbfa   : > { %7249 = vmatmul.bf16.gmra.mxu1 %v14984_v20  ;;  %8866 = vmatmul.bf16.gmra.mxu0 %v14630_v18 }
 0xbfb   : > { %7686 = vmatmul.bf16.gmra.mxu2 %v14984_v20  ;;  %8563 = vmatmul.bf16.gmra.mxu3 %v14630_v18  ;;  %v14719_v20 = vld [vmem:[%s15440_s12 + $0x188] sm:$0xff] }
 0xbfc   : > { %10047 = vmatpush.bf16.msra.mxu2 %v14719_v20 }
 0xbfe   : > { %v7655_v22 = vpop.f32.mrf.mxu2  ;;  %v8531_v38 = vpop.f32.mrf.mxu3 }
 0xbff   : > { %v7221_v42 = vpop.f32.mrf.mxu1  ;;  %v8838_v56 = vpop.f32.mrf.mxu0  ;;  %v14727_v22 = vld [vmem:[%s15440_s12 + $0x1c8] sm:$0xff] }
 0xc00   : > { %v14663_v38 = vld [vmem:[%s15440_s12 + $0x148] sm:$0xff]  ;;  %10361 = vmatpush.bf16.msra.mxu3 %v14727_v22 }
 0xc01   : > { %9172 = vmatpush.bf16.msra.mxu1 %v14663_v38 }
 0xc06   : > { %v7656_v16 = vpop.f32.mrf.mxu2  ;;  %v8532_v23 = vpop.f32.mrf.mxu3 }
 0xc07   : > { %v7223_v35 = vpop.f32.mrf.mxu1  ;;  %v8840_v13 = vpop.f32.mrf.mxu0 }
 0xc08   : > { %v7365_v17 = vrot.slane %v7223_v35, 1  ;;  %v8981_v59 = vrot.slane %v8840_v13, 1 }
 0xc0a   : > { %7252 = vmatmul.bf16.gmra.mxu1 %v14985_v30  ;;  %8869 = vmatmul.bf16.gmra.mxu0 %v14631_v36  ;;  %v7461_v41 = vadd.f32 %v7365_v17, %v16959_v26  ;;  %v14632_v26 = vld [vmem:[#allocation2 + $0x2d8] sm:$0xff] }
 0xc0b   : > { %7690 = vmatmul.bf16.gmra.mxu2 %v14985_v30  ;;  %8566 = vmatmul.bf16.gmra.mxu3 %v14631_v36 }
 0xc0e   : > { %v7658_v8 = vpop.f32.mrf.mxu2  ;;  %v8535_v6 = vpop.f32.mrf.mxu3 }
 0xc0f   : > { %v7840_v60 = vrot.slane %v7658_v8, 2  ;;  %v7225_v11 = vpop.f32.mrf.mxu1  ;;  %v8842_v9 = vpop.f32.mrf.mxu0  ;;  %v14735_v8 = vld [vmem:[%s15440_s12 + $0x208] sm:$0xff] }
 0xc10   : > { %v7366_v62 = vrot.slane %v7225_v11, 1  ;;  %v8982_v25 = vrot.slane %v8842_v9, 1  ;;  %10787 = vmatpush.bf16.msra.mxu0 %v14735_v8  ;;  %v14633_v11 = vld [vmem:[#allocation2 + $0x2e0] sm:$0xff]  ;;  %v14635_v8 = vld [vmem:[#allocation2 + $0x2f0] sm:$0xff] }
 0xc11   : > { %v7952_v61 = vadd.f32 %v7840_v60, %v7461_v41 }
 0xc12   : > { %v7367_v40 = vsel %vm7340_vm12, %v7365_v17, %v7366_v62  ;;  %v8983_v12 = vsel %vm7340_vm12, %v8981_v59, %v8982_v25  ;;  %v7463_v13 = vadd.f32 %v7366_v62, %v16982_v48 }
 0xc13   : > { %v8651_v3 = vadd.f32 %v8532_v23, %v7952_v61  ;;  %v7462_v46 = vadd.f32 %v7367_v40, %v16974_v49  ;;  %v14987_v40 = vld [vmem:[#allocation2 + $0x2c8] sm:$0xff] }
 0xc15   : > { %v17249_v28 = vadd.f32 %v8981_v59, %v8651_v3 }
 0xc16   : > { %v7660_v19 = vpop.f32.mrf.mxu2  ;;  %v8537_v5 = vpop.f32.mrf.mxu3 }
 0xc17   : > { %v7841_v14 = vrot.slane %v7660_v19, 2  ;;  %v7228_v37 = vpop.f32.mrf.mxu1  ;;  %v8845_v0 = vpop.f32.mrf.mxu0 }
 0xc18   : > { %v14988_v0 = vld [vmem:[#allocation2 + $0x2d0] sm:$0xff] }
 0xc19   : > { %v7842_v18 = vsel %vm7799_vm9, %v7840_v60, %v7841_v14 }
 0xc1a   : > { %v7953_v32 = vadd.f32 %v7842_v18, %v7462_v46  ;;  %7255 = vmatmul.bf16.gmra.mxu1 %v14986_v39  ;;  %8872 = vmatmul.bf16.gmra.mxu0 %v14632_v26 }
 0xc1b   : > { %7693 = vmatmul.bf16.gmra.mxu2 %v14986_v39  ;;  %8570 = vmatmul.bf16.gmra.mxu3 %v14632_v26 }
 0xc1c   : > { %v8652_v42 = vadd.f32 %v8535_v6, %v7953_v32 }
 0xc1e   : > { %v7663_v56 = vpop.f32.mrf.mxu2  ;;  %v8540_v16 = vpop.f32.mrf.mxu3  ;;  %v17256_v23 = vadd.f32 %v8983_v12, %v8652_v42 }
 0xc1f   : > { %v7843_v49 = vrot.slane %v7663_v56, 2  ;;  %v7229_v36 = vpop.f32.mrf.mxu1  ;;  %v8846_v35 = vpop.f32.mrf.mxu0 }
 0xc21   : > { %v7844_v30 = vsel %vm7799_vm9, %v7841_v14, %v7843_v49 }
 0xc22   : > { %v7954_v17 = vadd.f32 %v7844_v30, %v7463_v13 }
 0xc24   : > { %v8653_v41 = vadd.f32 %v8537_v5, %v7954_v17  ;;  %v14634_v5 = vld [vmem:[#allocation2 + $0x2e8] sm:$0xff] }
 0xc26   : > { %v7665_v60 = vpop.f32.mrf.mxu2  ;;  %v8541_v6 = vpop.f32.mrf.mxu3  ;;  %v17261_v9 = vadd.f32 %v8982_v25, %v8653_v41 }
 0xc27   : > { %v7231_v59 = vpop.f32.mrf.mxu1  ;;  %v8848_v61 = vpop.f32.mrf.mxu0 }
 0xc28   : > { %v14989_v61 = vld [vmem:[#allocation2 + $0x2d8] sm:$0xff] }
 0xc2a   : > { %7260 = vmatmul.bf16.gmra.mxu1 %v14987_v40  ;;  %8877 = vmatmul.bf16.gmra.mxu0 %v14633_v11 }
 0xc2b   : > { %7698 = vmatmul.bf16.gmra.mxu2 %v14987_v40  ;;  %8575 = vmatmul.bf16.gmra.mxu3 %v14633_v11 }
 0xc2e   : > { %v7667_v12 = vpop.f32.mrf.mxu2  ;;  %v8543_v48 = vpop.f32.mrf.mxu3 }
 0xc2f   : > { %v7232_v62 = vpop.f32.mrf.mxu1  ;;  %v8849_v3 = vpop.f32.mrf.mxu0 }
 0xc36   : > { %v7668_v19 = vpop.f32.mrf.mxu2  ;;  %v8544_v26 = vpop.f32.mrf.mxu3 }
 0xc37   : > { %v7234_v14 = vpop.f32.mrf.mxu1  ;;  %v8851_v37 = vpop.f32.mrf.mxu0 }
 0xc38   : > { %v7368_v25 = vrot.slane %v7234_v14, 1  ;;  %v8984_v38 = vrot.slane %v8851_v37, 1 }
 0xc3a   : > { %7263 = vmatmul.bf16.gmra.mxu1 %v14988_v0  ;;  %8880 = vmatmul.bf16.gmra.mxu0 %v14634_v5  ;;  %v7464_v32 = vadd.f32 %v7368_v25, %v17006_v53 }
 0xc3b   : > { %7702 = vmatmul.bf16.gmra.mxu2 %v14988_v0  ;;  %8578 = vmatmul.bf16.gmra.mxu3 %v14634_v5 }
 0xc3e   : > { %v7670_v46 = vpop.f32.mrf.mxu2  ;;  %v8547_v18 = vpop.f32.mrf.mxu3 }
 0xc3f   : > { %v7845_v39 = vrot.slane %v7670_v46, 2  ;;  %v7236_v20 = vpop.f32.mrf.mxu1  ;;  %v8853_v22 = vpop.f32.mrf.mxu0  ;;  %v14636_v46 = vld [vmem:[#allocation2 + $0x2f8] sm:$0xff] }
 0xc40   : > { %v7369_v42 = vrot.slane %v7236_v20, 1  ;;  %v8985_v56 = vrot.slane %v8853_v22, 1  ;;  %v14990_v20 = vld [vmem:[#allocation2 + $0x2e0] sm:$0xff] }
 0xc41   : > { %v7955_v16 = vadd.f32 %v7845_v39, %v7464_v32 }
 0xc42   : > { %v7370_v49 = vsel %vm7340_vm12, %v7368_v25, %v7369_v42  ;;  %v8986_v36 = vsel %vm7340_vm12, %v8984_v38, %v8985_v56  ;;  %v7466_v5 = vadd.f32 %v7369_v42, %v17024_v4 }
 0xc43   : > { %v8654_v35 = vadd.f32 %v8544_v26, %v7955_v16  ;;  %v7465_v6 = vadd.f32 %v7370_v49, %v17016_v2 }
 0xc45   : > { %v17266_v13 = vadd.f32 %v8984_v38, %v8654_v35 }
 0xc46   : > { %v7672_v30 = vpop.f32.mrf.mxu2  ;;  %v8549_v17 = vpop.f32.mrf.mxu3 }
 0xc47   : > { %v7846_v41 = vrot.slane %v7672_v30, 2  ;;  %v7239_v60 = vpop.f32.mrf.mxu1  ;;  %v8856_v53 = vpop.f32.mrf.mxu0 }
 0xc48   : > { %v18261_v60 = vld [vmem:[#allocation40_spill] sm:$0xff] }
 0xc49   : > { %v7847_v11 = vsel %vm7799_vm9, %v7845_v39, %v7846_v41 }
 0xc4a   : > { %v7956_v59 = vadd.f32 %v7847_v11, %v7465_v6  ;;  %7266 = vmatmul.bf16.gmra.mxu1 %v14989_v61  ;;  %8883 = vmatmul.bf16.gmra.mxu0 %v14635_v8 }
 0xc4b   : > { %7705 = vmatmul.bf16.gmra.mxu2 %v14989_v61  ;;  %8582 = vmatmul.bf16.gmra.mxu3 %v14635_v8 }
 0xc4c   : > { %v8655_v40 = vadd.f32 %v8547_v18, %v7956_v59 }
 0xc4e   : > { %v7675_v12 = vpop.f32.mrf.mxu2  ;;  %v8552_v48 = vpop.f32.mrf.mxu3  ;;  %v17270_v62 = vadd.f32 %v8986_v36, %v8655_v40  ;;  %v14637_v36 = vld [vmem:[#allocation2 + $0x300] sm:$0xff] }
 0xc4f   : > { %v7848_v3 = vrot.slane %v7675_v12, 2  ;;  %v7240_v19 = vpop.f32.mrf.mxu1  ;;  %v8857_v26 = vpop.f32.mrf.mxu0 }
 0xc51   : > { %v7849_v2 = vsel %vm7799_vm9, %v7846_v41, %v7848_v3 }
 0xc52   : > { %v7957_v14 = vadd.f32 %v7849_v2, %v7466_v5 }
 0xc54   : > { %v8656_v37 = vadd.f32 %v8549_v17, %v7957_v14  ;;  %v14991_v17 = vld [vmem:[#allocation2 + $0x2e8] sm:$0xff] }
 0xc56   : > { %v7677_v0 = vpop.f32.mrf.mxu2  ;;  %v8553_v25 = vpop.f32.mrf.mxu3  ;;  %v17274_v32 = vadd.f32 %v8985_v56, %v8656_v37  ;;  %v14638_v37 = vld [vmem:[#allocation2 + $0x308] sm:$0xff] }
 0xc57   : > { %v7242_v39 = vpop.f32.mrf.mxu1  ;;  %v8859_v18 = vpop.f32.mrf.mxu0 }
 0xc58   : > { %v18262_v39 = vld [vmem:[#allocation42_spill] sm:$0xff] }
 0xc5a   : > { %7271 = vmatmul.bf16.gmra.mxu1 %v14990_v20  ;;  %8888 = vmatmul.bf16.gmra.mxu0 %v14636_v46 }
 0xc5b   : > { %7710 = vmatmul.bf16.gmra.mxu2 %v14990_v20  ;;  %8587 = vmatmul.bf16.gmra.mxu3 %v14636_v46 }
 0xc5e   : > { %v7679_v22 = vpop.f32.mrf.mxu2  ;;  %v8555_v38 = vpop.f32.mrf.mxu3 }
 0xc5f   : > { %v7243_v16 = vpop.f32.mrf.mxu1  ;;  %v8860_v4 = vpop.f32.mrf.mxu0  ;;  %v14992_v38 = vld [vmem:[#allocation2 + $0x2f0] sm:$0xff] }
 0xc60   : > { %v14718_v16 = vld [vmem:[%s15440_s12 + $0x180] sm:$0xff] }
 0xc61   : > { %v14726_v4 = vld [vmem:[%s15440_s12 + $0x1c0] sm:$0xff]  ;;  %10048 = vmatpush.bf16.msra.mxu2 %v14718_v16 }
 0xc62   : > { %10362 = vmatpush.bf16.msra.mxu3 %v14726_v4 }
 0xc66   : > { %v7680_v42 = vpop.f32.mrf.mxu2  ;;  %v8556_v49 = vpop.f32.mrf.mxu3 }
 0xc67   : > { %v7245_v35 = vpop.f32.mrf.mxu1  ;;  %v8862_v30 = vpop.f32.mrf.mxu0  ;;  %v14662_v42 = vld [vmem:[%s15440_s12 + $0x140] sm:$0xff] }
 0xc68   : > { %v7371_v56 = vrot.slane %v7245_v35, 1  ;;  %v8987_v61 = vrot.slane %v8862_v30, 1  ;;  %9173 = vmatpush.bf16.msra.mxu1 %v14662_v42  ;;  %v18264_v42 = vld [vmem:[#allocation46_spill] sm:$0xff] }
 0xc6a   : > { %7274 = vmatmul.bf16.gmra.mxu1 %v14991_v17  ;;  %8891 = vmatmul.bf16.gmra.mxu0 %v14637_v36  ;;  %v7467_v53 = vadd.f32 %v7371_v56, %v18261_v60  ;;  %v18263_v60 = vld [vmem:[#allocation44_spill] sm:$0xff] }
 0xc6b   : > { %7714 = vmatmul.bf16.gmra.mxu2 %v14991_v17  ;;  %8590 = vmatmul.bf16.gmra.mxu3 %v14637_v36 }
 0xc6e   : > { %v7682_v8 = vpop.f32.mrf.mxu2  ;;  %v8559_v41 = vpop.f32.mrf.mxu3 }
 0xc6f   : > { %v7850_v6 = vrot.slane %v7682_v8, 2  ;;  %v7247_v11 = vpop.f32.mrf.mxu1  ;;  %v8864_v59 = vpop.f32.mrf.mxu0 }
 0xc70   : > { %v7372_v40 = vrot.slane %v7247_v11, 1  ;;  %v8988_v12 = vrot.slane %v8864_v59, 1  ;;  %v14734_v59 = vld [vmem:[%s15440_s12 + $0x200] sm:$0xff] }
 0xc71   : > { %v7958_v48 = vadd.f32 %v7850_v6, %v7467_v53  ;;  %10788 = vmatpush.bf16.msra.mxu0 %v14734_v59 }
 0xc72   : > { %v7373_v3 = vsel %vm7340_vm12, %v7371_v56, %v7372_v40  ;;  %v8989_v19 = vsel %vm7340_vm12, %v8987_v61, %v8988_v12  ;;  %v7469_v53 = vadd.f32 %v7372_v40, %v18263_v60 }
 0xc73   : > { %v8657_v26 = vadd.f32 %v8556_v49, %v7958_v48  ;;  %v7468_v18 = vadd.f32 %v7373_v3, %v18262_v39  ;;  %v14639_v3 = vld [vmem:[#allocation2 + $0x310] sm:$0xff] }
 0xc75   : > { %v17279_v5 = vadd.f32 %v8987_v61, %v8657_v26 }
 0xc76   : > { %v7684_v2 = vpop.f32.mrf.mxu2  ;;  %v8561_v14 = vpop.f32.mrf.mxu3 }
 0xc77   : > { %v7851_v0 = vrot.slane %v7684_v2, 2  ;;  %v7250_v25 = vpop.f32.mrf.mxu1  ;;  %v8867_v46 = vpop.f32.mrf.mxu0 }
 0xc79   : > { %v7852_v20 = vsel %vm7799_vm9, %v7850_v6, %v7851_v0 }
 0xc7a   : > { %v7959_v22 = vadd.f32 %v7852_v20, %v7468_v18  ;;  %7277 = vmatmul.bf16.gmra.mxu1 %v14992_v38  ;;  %8894 = vmatmul.bf16.gmra.mxu0 %v14638_v37 }
 0xc7b   : > { %7717 = vmatmul.bf16.gmra.mxu2 %v14992_v38  ;;  %8594 = vmatmul.bf16.gmra.mxu3 %v14638_v37  ;;  %v14994_v38 = vld [vmem:[#allocation2 + $0x300] sm:$0xff] }
 0xc7c   : > { %v8658_v49 = vadd.f32 %v8559_v41, %v7959_v22 }
 0xc7e   : > { %v7687_v36 = vpop.f32.mrf.mxu2  ;;  %v8564_v35 = vpop.f32.mrf.mxu3  ;;  %v17286_v30 = vadd.f32 %v8989_v19, %v8658_v49  ;;  %v14993_v19 = vld [vmem:[#allocation2 + $0x2f8] sm:$0xff] }
 0xc7f   : > { %v7853_v17 = vrot.slane %v7687_v36, 2  ;;  %v7251_v56 = vpop.f32.mrf.mxu1  ;;  %v8868_v8 = vpop.f32.mrf.mxu0 }
 0xc81   : > { %v7854_v6 = vsel %vm7799_vm9, %v7851_v0, %v7853_v17 }
 0xc82   : > { %v7960_v11 = vadd.f32 %v7854_v6, %v7469_v53 }
 0xc84   : > { %v8659_v61 = vadd.f32 %v8561_v14, %v7960_v11  ;;  %v14640_v14 = vld [vmem:[#allocation2 + $0x318] sm:$0xff] }
 0xc86   : > { %v7689_v48 = vpop.f32.mrf.mxu2  ;;  %v8565_v41 = vpop.f32.mrf.mxu3  ;;  %v17291_v26 = vadd.f32 %v8988_v12, %v8659_v61 }
 0xc87   : > { %v7253_v2 = vpop.f32.mrf.mxu1  ;;  %v8870_v37 = vpop.f32.mrf.mxu0 }
 0xc8a   : > { %7282 = vmatmul.bf16.gmra.mxu1 %v14993_v19  ;;  %8899 = vmatmul.bf16.gmra.mxu0 %v14639_v3 }
 0xc8b   : > { %7722 = vmatmul.bf16.gmra.mxu2 %v14993_v19  ;;  %8599 = vmatmul.bf16.gmra.mxu3 %v14639_v3  ;;  %v14641_v3 = vld [vmem:[#allocation2 + $0x320] sm:$0xff] }
 0xc8e   : > { %v7691_v25 = vpop.f32.mrf.mxu2  ;;  %v8567_v40 = vpop.f32.mrf.mxu3 }
 0xc8f   : > { %v7254_v46 = vpop.f32.mrf.mxu1  ;;  %v8871_v0 = vpop.f32.mrf.mxu0  ;;  %v18265_v25 = vld [vmem:[#allocation48_spill] sm:$0xff] }
 0xc96   : > { %v7692_v39 = vpop.f32.mrf.mxu2  ;;  %v8568_v18 = vpop.f32.mrf.mxu3 }
 0xc97   : > { %v7256_v20 = vpop.f32.mrf.mxu1  ;;  %v8873_v22 = vpop.f32.mrf.mxu0  ;;  %v14995_v39 = vld [vmem:[#allocation2 + $0x308] sm:$0xff] }
 0xc98   : > { %v7374_v12 = vrot.slane %v7256_v20, 1  ;;  %v8990_v56 = vrot.slane %v8873_v22, 1 }
 0xc9a   : > { %7285 = vmatmul.bf16.gmra.mxu1 %v14994_v38  ;;  %8902 = vmatmul.bf16.gmra.mxu0 %v14640_v14  ;;  %v7470_v49 = vadd.f32 %v7374_v12, %v18264_v42  ;;  %v18266_v42 = vld [vmem:[#allocation50_spill] sm:$0xff] }
 0xc9b   : > { %7726 = vmatmul.bf16.gmra.mxu2 %v14994_v38  ;;  %8602 = vmatmul.bf16.gmra.mxu3 %v14640_v14 }
 0xc9e   : > { %v7694_v16 = vpop.f32.mrf.mxu2  ;;  %v8571_v4 = vpop.f32.mrf.mxu3 }
 0xc9f   : > { %v7855_v36 = vrot.slane %v7694_v16, 2  ;;  %v7258_v35 = vpop.f32.mrf.mxu1  ;;  %v8875_v17 = vpop.f32.mrf.mxu0 }
 0xca0   : > { %v7375_v8 = vrot.slane %v7258_v35, 1  ;;  %v8991_v60 = vrot.slane %v8875_v17, 1 }
 0xca1   : > { %v7961_v53 = vadd.f32 %v7855_v36, %v7470_v49 }
 0xca2   : > { %v7376_v6 = vsel %vm7340_vm12, %v7374_v12, %v7375_v8  ;;  %v8992_v11 = vsel %vm7340_vm12, %v8990_v56, %v8991_v60  ;;  %v7472_v49 = vadd.f32 %v7375_v8, %v18266_v42 }
 0xca3   : > { %v8660_v59 = vadd.f32 %v8568_v18, %v7961_v53  ;;  %v7471_v40 = vadd.f32 %v7376_v6, %v18265_v25  ;;  %v14642_v6 = vld [vmem:[#allocation2 + $0x328] sm:$0xff] }
 0xca5   : > { %v17296_v61 = vadd.f32 %v8990_v56, %v8660_v59 }
 0xca6   : > { %v7696_v48 = vpop.f32.mrf.mxu2  ;;  %v8573_v41 = vpop.f32.mrf.mxu3 }
 0xca7   : > { %v7856_v2 = vrot.slane %v7696_v48, 2  ;;  %v7261_v37 = vpop.f32.mrf.mxu1  ;;  %v8878_v19 = vpop.f32.mrf.mxu0 }
 0xca9   : > { %v7857_v46 = vsel %vm7799_vm9, %v7855_v36, %v7856_v2 }
 0xcaa   : > { %v7962_v0 = vadd.f32 %v7857_v46, %v7471_v40  ;;  %7288 = vmatmul.bf16.gmra.mxu1 %v14995_v39  ;;  %8905 = vmatmul.bf16.gmra.mxu0 %v14641_v3  ;;  %v14643_v40 = vld [vmem:[#allocation2 + $0x330] sm:$0xff] }
 0xcab   : > { %7729 = vmatmul.bf16.gmra.mxu2 %v14995_v39  ;;  %8606 = vmatmul.bf16.gmra.mxu3 %v14641_v3  ;;  %v14996_v3 = vld [vmem:[#allocation2 + $0x310] sm:$0xff] }
 0xcac   : > { %v8661_v14 = vadd.f32 %v8571_v4, %v7962_v0  ;;  %v14997_v0 = vld [vmem:[#allocation2 + $0x318] sm:$0xff] }
 0xcae   : > { %v7699_v18 = vpop.f32.mrf.mxu2  ;;  %v8576_v20 = vpop.f32.mrf.mxu3  ;;  %v17300_v22 = vadd.f32 %v8992_v11, %v8661_v14 }
 0xcaf   : > { %v7858_v38 = vrot.slane %v7699_v18, 2  ;;  %v7262_v12 = vpop.f32.mrf.mxu1  ;;  %v8879_v16 = vpop.f32.mrf.mxu0  ;;  %v18267_v18 = vld [vmem:[#allocation34_spill] sm:$0xff] }
 0xcb1   : > { %v7859_v35 = vsel %vm7799_vm9, %v7856_v2, %v7858_v38 }
 0xcb2   : > { %v7963_v17 = vadd.f32 %v7859_v35, %v7472_v49 }
 0xcb4   : > { %v8662_v36 = vadd.f32 %v8573_v41, %v7963_v17 }
 0xcb6   : > { %v7701_v56 = vpop.f32.mrf.mxu2  ;;  %v8577_v53 = vpop.f32.mrf.mxu3  ;;  %v17304_v59 = vadd.f32 %v8991_v60, %v8662_v36 }
 0xcb7   : > { %v7264_v48 = vpop.f32.mrf.mxu1  ;;  %v8881_v4 = vpop.f32.mrf.mxu0 }
 0xcba   : > { %7293 = vmatmul.bf16.gmra.mxu1 %v14996_v3  ;;  %8910 = vmatmul.bf16.gmra.mxu0 %v14642_v6 }
 0xcbb   : > { %7734 = vmatmul.bf16.gmra.mxu2 %v14996_v3  ;;  %8611 = vmatmul.bf16.gmra.mxu3 %v14642_v6  ;;  %v14644_v3 = vld [vmem:[#allocation2 + $0x338] sm:$0xff] }
 0xcbe   : > { %v7703_v11 = vpop.f32.mrf.mxu2  ;;  %v8579_v37 = vpop.f32.mrf.mxu3 }
 0xcbf   : > { %v7265_v19 = vpop.f32.mrf.mxu1  ;;  %v8882_v8 = vpop.f32.mrf.mxu0 }
 0xcc0   : > { %v18268_v8 = vld [vmem:[#allocation35_spill] sm:$0xff] }
 0xcc6   : > { %v7704_v25 = vpop.f32.mrf.mxu2  ;;  %v8580_v2 = vpop.f32.mrf.mxu3 }
 0xcc7   : > { %v7267_v41 = vpop.f32.mrf.mxu1  ;;  %v8884_v46 = vpop.f32.mrf.mxu0 }
 0xcc8   : > { %v7377_v60 = vrot.slane %v7267_v41, 1  ;;  %v8993_v42 = vrot.slane %v8884_v46, 1  ;;  %v14998_v46 = vld [vmem:[#allocation2 + $0x320] sm:$0xff] }
 0xcca   : > { %7296 = vmatmul.bf16.gmra.mxu1 %v14997_v0  ;;  %8913 = vmatmul.bf16.gmra.mxu0 %v14643_v40  ;;  %v7473_v20 = vadd.f32 %v7377_v60, %v18267_v18 }
 0xccb   : > { %7738 = vmatmul.bf16.gmra.mxu2 %v14997_v0  ;;  %8614 = vmatmul.bf16.gmra.mxu3 %v14643_v40 }
 0xcce   : > { %v7706_v39 = vpop.f32.mrf.mxu2  ;;  %v8583_v14 = vpop.f32.mrf.mxu3 }
 0xccf   : > { %v7860_v38 = vrot.slane %v7706_v39, 2  ;;  %v7269_v12 = vpop.f32.mrf.mxu1  ;;  %v8886_v16 = vpop.f32.mrf.mxu0 }
 0xcd0   : > { %v7378_v49 = vrot.slane %v7269_v12, 1  ;;  %v8994_v35 = vrot.slane %v8886_v16, 1  ;;  %v18269_v16 = vld [vmem:[#allocation36_spill] sm:$0xff] }
 0xcd1   : > { %v7964_v17 = vadd.f32 %v7860_v38, %v7473_v20 }
 0xcd2   : > { %v7379_v36 = vsel %vm7340_vm12, %v7377_v60, %v7378_v49  ;;  %v8995_v56 = vsel %vm7340_vm12, %v8993_v42, %v8994_v35 }
 0xcd3   : > { %v8663_v53 = vadd.f32 %v8580_v2, %v7964_v17  ;;  %v7474_v25 = vadd.f32 %v7379_v36, %v18268_v8  ;;  %v14999_v8 = vld [vmem:[#allocation2 + $0x328] sm:$0xff] }
 0xcd5   : > { %v17309_v6 = vadd.f32 %v8993_v42, %v8663_v53  ;;  %v7475_v42 = vadd.f32 %v7378_v49, %v18269_v16 }
 0xcd6   : > { %v7708_v48 = vpop.f32.mrf.mxu2  ;;  %v8585_v4 = vpop.f32.mrf.mxu3 }
 0xcd7   : > { %v7861_v11 = vrot.slane %v7708_v48, 2  ;;  %v7272_v37 = vpop.f32.mrf.mxu1  ;;  %v8889_v19 = vpop.f32.mrf.mxu0 }
 0xcd8   : > { %v14645_v37 = vld [vmem:[#allocation2 + $0x340] sm:$0xff] }
 0xcd9   : > { %v7862_v40 = vsel %vm7799_vm9, %v7860_v38, %v7861_v11 }
 0xcda   : > { %v7965_v41 = vadd.f32 %v7862_v40, %v7474_v25  ;;  %7299 = vmatmul.bf16.gmra.mxu1 %v14998_v46  ;;  %8916 = vmatmul.bf16.gmra.mxu0 %v14644_v3 }
 0xcdb   : > { %7741 = vmatmul.bf16.gmra.mxu2 %v14998_v46  ;;  %8618 = vmatmul.bf16.gmra.mxu3 %v14644_v3  ;;  %v14670_v46 = vld [vmem:[#allocation2 + $0x1e0] sm:$0xff] }
 0xcdc   : > { %v8664_v0 = vadd.f32 %v8583_v14, %v7965_v41 }
 0xcde   : > { %v7711_v2 = vpop.f32.mrf.mxu2  ;;  %v8588_v60 = vpop.f32.mrf.mxu3  ;;  %v17313_v39 = vadd.f32 %v8995_v56, %v8664_v0 }
 0xcdf   : > { %v7863_v18 = vrot.slane %v7711_v2, 2  ;;  %v7273_v20 = vpop.f32.mrf.mxu1  ;;  %v8890_v12 = vpop.f32.mrf.mxu0  ;;  %v15000_v2 = vld [vmem:[#allocation2 + $0x1c8] sm:$0xff] }
 0xce0   : > { %v18270_v20 = vld [vmem:[#allocation37_spill] sm:$0xff] }
 0xce1   : > { %v7864_v17 = vsel %vm7799_vm9, %v7861_v11, %v7863_v18 }
 0xce2   : > { %v7966_v36 = vadd.f32 %v7864_v17, %v7475_v42 }
 0xce4   : > { %v8665_v38 = vadd.f32 %v8585_v4, %v7966_v36 }
 0xce6   : > { %v7713_v53 = vpop.f32.mrf.mxu2  ;;  %v8589_v48 = vpop.f32.mrf.mxu3  ;;  %v17317_v19 = vadd.f32 %v8994_v35, %v8665_v38 }
 0xce7   : > { %v7275_v3 = vpop.f32.mrf.mxu1  ;;  %v8892_v14 = vpop.f32.mrf.mxu0 }
 0xcea   : > { %7304 = vmatmul.bf16.gmra.mxu1 %v14999_v8  ;;  %8921 = vmatmul.bf16.gmra.mxu0 %v14645_v37 }
 0xceb   : > { %7746 = vmatmul.bf16.gmra.mxu2 %v14999_v8  ;;  %8623 = vmatmul.bf16.gmra.mxu3 %v14645_v37 }
 0xcee   : > { %v7715_v56 = vpop.f32.mrf.mxu2  ;;  %v8591_v25 = vpop.f32.mrf.mxu3 }
 0xcef   : > { %v7276_v40 = vpop.f32.mrf.mxu1  ;;  %v8893_v49 = vpop.f32.mrf.mxu0 }
 0xcf0   : > { %v14671_v40 = vld [vmem:[#allocation2 + $0x1e8] sm:$0xff] }
 0xcf6   : > { %v7716_v41 = vpop.f32.mrf.mxu2  ;;  %v8592_v11 = vpop.f32.mrf.mxu3 }
 0xcf7   : > { %v7278_v4 = vpop.f32.mrf.mxu1  ;;  %v8895_v0 = vpop.f32.mrf.mxu0 }
 0xcf8   : > { %v7380_v35 = vrot.slane %v7278_v4, 1  ;;  %v8996_v36 = vrot.slane %v8895_v0, 1  ;;  %v18271_v4 = vld [vmem:[#allocation38_spill] sm:$0xff] }
 0xcfa   : > { %9174 = vmatmul.bf16.vlgmr.msra.gmra.mxu1 %v15000_v2  ;;  %10789 = vmatmul.bf16.vlgmr.msra.gmra.mxu0 %v14670_v46  ;;  %v7476_v12 = vadd.f32 %v7380_v35, %v18270_v20  ;;  %v15001_v20 = vld [vmem:[#allocation2 + $0x1d0] sm:$0xff] }
 0xcfb   : > { %10049 = vmatmul.bf16.vlgmr.msra.gmra.mxu2 %v14670_v46  ;;  %10363 = vmatmul.bf16.vlgmr.msra.gmra.mxu3 %v14670_v46 }
 0xcfe   : > { %v7718_v60 = vpop.f32.mrf.mxu2  ;;  %v8595_v18 = vpop.f32.mrf.mxu3 }
 0xcff   : > { %v7865_v16 = vrot.slane %v7718_v60, 2  ;;  %v7280_v42 = vpop.f32.mrf.mxu1  ;;  %v8897_v17 = vpop.f32.mrf.mxu0 }
 0xd00   : > { %v7381_v38 = vrot.slane %v7280_v42, 1  ;;  %v8997_v53 = vrot.slane %v8897_v17, 1 }
 0xd01   : > { %v7967_v48 = vadd.f32 %v7865_v16, %v7476_v12 }
 0xd02   : > { %v7382_v37 = vsel %vm7340_vm12, %v7380_v35, %v7381_v38  ;;  %v8998_v3 = vsel %vm7340_vm12, %v8996_v36, %v8997_v53 }
 0xd03   : > { %v8666_v14 = vadd.f32 %v8592_v11, %v7967_v48  ;;  %v7477_v2 = vadd.f32 %v7382_v37, %v18271_v4 }
 0xd05   : > { %v17322_v8 = vadd.f32 %v8996_v36, %v8666_v14  ;;  %v18272_v14 = vld [vmem:[#allocation39_spill] sm:$0xff] }
 0xd06   : > { %v7720_v56 = vpop.f32.mrf.mxu2  ;;  %v8597_v25 = vpop.f32.mrf.mxu3 }
 0xd07   : > { %v7866_v49 = vrot.slane %v7720_v56, 2  ;;  %v7283_v41 = vpop.f32.mrf.mxu1  ;;  %v8900_v46 = vpop.f32.mrf.mxu0  ;;  %v7478_v56 = vadd.f32 %v7381_v38, %v18272_v14 }
 0xd09   : > { %v7867_v0 = vsel %vm7799_vm9, %v7865_v16, %v7866_v49 }
 0xd0a   : > { %v7968_v60 = vadd.f32 %v7867_v0, %v7477_v2  ;;  %9177 = vmatmul.bf16.gmra.mxu1 %v15001_v20  ;;  %10792 = vmatmul.bf16.gmra.mxu0 %v14671_v40  ;;  %v14672_v2 = vld [vmem:[#allocation2 + $0x1f0] sm:$0xff] }
 0xd0b   : > { %10053 = vmatmul.bf16.gmra.mxu2 %v14671_v40  ;;  %10366 = vmatmul.bf16.gmra.mxu3 %v14671_v40 }
 0xd0c   : > { %v8667_v35 = vadd.f32 %v8595_v18, %v7968_v60  ;;  %v15002_v60 = vld [vmem:[#allocation2 + $0x1d8] sm:$0xff] }
 0xd0e   : > { %v7723_v11 = vpop.f32.mrf.mxu2  ;;  %v8600_v12 = vpop.f32.mrf.mxu3  ;;  %v17326_v42 = vadd.f32 %v8998_v3, %v8667_v35 }
 0xd0f   : > { %v7868_v17 = vrot.slane %v7723_v11, 2  ;;  %v7284_v36 = vpop.f32.mrf.mxu1  ;;  %v8901_v48 = vpop.f32.mrf.mxu0  ;;  %v14673_v12 = vld [vmem:[#allocation2 + $0x1f8] sm:$0xff] }
 0xd10   : > { %v15003_v36 = vld [vmem:[#allocation2 + $0x1e0] sm:$0xff] }
 0xd11   : > { %v7869_v37 = vsel %vm7799_vm9, %v7866_v49, %v7868_v17 }
 0xd12   : > { %v7969_v41 = vadd.f32 %v7869_v37, %v7478_v56  ;;  %v18274_v56 = vld [vmem:[#allocation41_spill] sm:$0xff] }
 0xd14   : > { %v8668_v16 = vadd.f32 %v8597_v25, %v7969_v41 }
 0xd16   : > { %v7725_v46 = vpop.f32.mrf.mxu2  ;;  %v8601_v4 = vpop.f32.mrf.mxu3  ;;  %v17330_v0 = vadd.f32 %v8997_v53, %v8668_v16 }
 0xd17   : > { %v7286_v40 = vpop.f32.mrf.mxu1  ;;  %v8903_v18 = vpop.f32.mrf.mxu0 }
 0xd18   : > { %18273 = vst [vmem:[#allocation40_spill] sm:$0xff] %v17330_v0 }
 0xd1a   : > { %9182 = vmatmul.bf16.gmra.mxu1 %v15002_v60  ;;  %10797 = vmatmul.bf16.gmra.mxu0 %v14672_v2 }
 0xd1b   : > { %10058 = vmatmul.bf16.gmra.mxu2 %v14672_v2  ;;  %10371 = vmatmul.bf16.gmra.mxu3 %v14672_v2 }
 0xd1e   : > { %v7727_v3 = vpop.f32.mrf.mxu2  ;;  %v8603_v20 = vpop.f32.mrf.mxu3 }
 0xd1f   : > { %v7287_v35 = vpop.f32.mrf.mxu1  ;;  %v8904_v38 = vpop.f32.mrf.mxu0 }
 0xd26   : > { %v7728_v11 = vpop.f32.mrf.mxu2  ;;  %v8604_v49 = vpop.f32.mrf.mxu3 }
 0xd27   : > { %v7289_v25 = vpop.f32.mrf.mxu1  ;;  %v8906_v17 = vpop.f32.mrf.mxu0 }
 0xd28   : > { %v7383_v53 = vrot.slane %v7289_v25, 1  ;;  %v8999_v4 = vrot.slane %v8906_v17, 1 }
 0xd2a   : > { %9186 = vmatmul.bf16.gmra.mxu1 %v15003_v36  ;;  %10801 = vmatmul.bf16.gmra.mxu0 %v14673_v12  ;;  %v7479_v37 = vadd.f32 %v7383_v53, %v18274_v56 }
 0xd2b   : > { %10061 = vmatmul.bf16.gmra.mxu2 %v14673_v12  ;;  %10374 = vmatmul.bf16.gmra.mxu3 %v14673_v12  ;;  %v14674_v12 = vld [vmem:[#allocation2 + $0x200] sm:$0xff] }
 0xd2e   : > { %v7730_v48 = vpop.f32.mrf.mxu2  ;;  %v8607_v14 = vpop.f32.mrf.mxu3 }
 0xd2f   : > { %v7870_v41 = vrot.slane %v7730_v48, 2  ;;  %v7291_v16 = vpop.f32.mrf.mxu1  ;;  %v8908_v46 = vpop.f32.mrf.mxu0  ;;  %v18276_v48 = vld [vmem:[#allocation43_spill] sm:$0xff] }
 0xd30   : > { %v7384_v2 = vrot.slane %v7291_v16, 1  ;;  %v9000_v40 = vrot.slane %v8908_v46, 1  ;;  %v15004_v46 = vld [vmem:[#allocation2 + $0x1e8] sm:$0xff] }
 0xd31   : > { %v7970_v18 = vadd.f32 %v7870_v41, %v7479_v37 }
 0xd32   : > { %v7385_v60 = vsel %vm7340_vm12, %v7383_v53, %v7384_v2  ;;  %v9001_v3 = vsel %vm7340_vm12, %v8999_v4, %v9000_v40 }
 0xd33   : > { %v8669_v20 = vadd.f32 %v8604_v49, %v7970_v18  ;;  %v7480_v0 = vadd.f32 %v7385_v60, %v18276_v48 }
 0xd35   : > { %v17335_v35 = vadd.f32 %v8999_v4, %v8669_v20 }
 0xd36   : > { %v7732_v38 = vpop.f32.mrf.mxu2  ;;  %v8609_v11 = vpop.f32.mrf.mxu3 }
 0xd37   : > { %18275 = vst [vmem:[#allocation42_spill] sm:$0xff] %v17335_v35  ;;  %v7871_v25 = vrot.slane %v7732_v38, 2  ;;  %v7294_v36 = vpop.f32.mrf.mxu1  ;;  %v8911_v56 = vpop.f32.mrf.mxu0 }
 0xd38   : > { %v18278_v36 = vld [vmem:[#allocation45_spill] sm:$0xff] }
 0xd39   : > { %v7872_v17 = vsel %vm7799_vm9, %v7870_v41, %v7871_v25  ;;  %v7481_v56 = vadd.f32 %v7384_v2, %v18278_v36 }
 0xd3a   : > { %v7971_v16 = vadd.f32 %v7872_v17, %v7480_v0  ;;  %9189 = vmatmul.bf16.gmra.mxu1 %v15004_v46  ;;  %10804 = vmatmul.bf16.gmra.mxu0 %v14674_v12  ;;  %v14675_v46 = vld [vmem:[#allocation2 + $0x208] sm:$0xff] }
 0xd3b   : > { %10065 = vmatmul.bf16.gmra.mxu2 %v14674_v12  ;;  %10377 = vmatmul.bf16.gmra.mxu3 %v14674_v12 }
 0xd3c   : > { %v8670_v53 = vadd.f32 %v8607_v14, %v7971_v16  ;;  %v15005_v16 = vld [vmem:[#allocation2 + $0x1f0] sm:$0xff] }
 0xd3e   : > { %v7735_v49 = vpop.f32.mrf.mxu2  ;;  %v8612_v37 = vpop.f32.mrf.mxu3  ;;  %v17339_v4 = vadd.f32 %v9001_v3, %v8670_v53 }
 0xd3f   : > { %v7873_v18 = vrot.slane %v7735_v49, 2  ;;  %v7295_v20 = vpop.f32.mrf.mxu1  ;;  %v8912_v38 = vpop.f32.mrf.mxu0 }
 0xd40   : > { %18277 = vst [vmem:[#allocation44_spill] sm:$0xff] %v17339_v4  ;;  %v15006_v38 = vld [vmem:[#allocation2 + $0x1f8] sm:$0xff] }
 0xd41   : > { %v7874_v60 = vsel %vm7799_vm9, %v7871_v25, %v7873_v18  ;;  %v14676_v18 = vld [vmem:[#allocation2 + $0x210] sm:$0xff] }
 0xd42   : > { %v7972_v48 = vadd.f32 %v7874_v60, %v7481_v56  ;;  %v18280_v60 = vld [vmem:[#allocation47_spill] sm:$0xff] }
 0xd44   : > { %v8671_v41 = vadd.f32 %v8609_v11, %v7972_v48 }
 0xd46   : > { %v7737_v0 = vpop.f32.mrf.mxu2  ;;  %v8613_v17 = vpop.f32.mrf.mxu3  ;;  %v17343_v35 = vadd.f32 %v9000_v40, %v8671_v41 }
 0xd47   : > { %v7297_v12 = vpop.f32.mrf.mxu1  ;;  %v8914_v14 = vpop.f32.mrf.mxu0 }
 0xd48   : > { %18279 = vst [vmem:[#allocation46_spill] sm:$0xff] %v17343_v35 }
 0xd4a   : > { %9194 = vmatmul.bf16.gmra.mxu1 %v15005_v16  ;;  %10809 = vmatmul.bf16.gmra.mxu0 %v14675_v46 }
 0xd4b   : > { %10070 = vmatmul.bf16.gmra.mxu2 %v14675_v46  ;;  %10382 = vmatmul.bf16.gmra.mxu3 %v14675_v46 }
 0xd4e   : > { %v7739_v3 = vpop.f32.mrf.mxu2  ;;  %v8615_v53 = vpop.f32.mrf.mxu3 }
 0xd4f   : > { %v7298_v49 = vpop.f32.mrf.mxu1  ;;  %v8915_v2 = vpop.f32.mrf.mxu0 }
 0xd56   : > { %v7740_v37 = vpop.f32.mrf.mxu2  ;;  %v8616_v25 = vpop.f32.mrf.mxu3 }
 0xd57   : > { %v7300_v11 = vpop.f32.mrf.mxu1  ;;  %v8917_v20 = vpop.f32.mrf.mxu0 }
 0xd58   : > { %v7386_v40 = vrot.slane %v7300_v11, 1  ;;  %v9002_v46 = vrot.slane %v8917_v20, 1  ;;  %v14677_v11 = vld [vmem:[#allocation2 + $0x218] sm:$0xff] }
 0xd5a   : > { %9198 = vmatmul.bf16.gmra.mxu1 %v15006_v38  ;;  %10813 = vmatmul.bf16.gmra.mxu0 %v14676_v18  ;;  %v7482_v48 = vadd.f32 %v7386_v40, %v18280_v60 }
 0xd5b   : > { %10073 = vmatmul.bf16.gmra.mxu2 %v14676_v18  ;;  %10385 = vmatmul.bf16.gmra.mxu3 %v14676_v18 }
 0xd5e   : > { %v7742_v36 = vpop.f32.mrf.mxu2  ;;  %v8619_v56 = vpop.f32.mrf.mxu3 }
 0xd5f   : > { %v7875_v41 = vrot.slane %v7742_v36, 2  ;;  %v7302_v0 = vpop.f32.mrf.mxu1  ;;  %v8919_v17 = vpop.f32.mrf.mxu0  ;;  %v18282_v36 = vld [vmem:[#allocation49_spill] sm:$0xff] }
 0xd60   : > { %v7387_v12 = vrot.slane %v7302_v0, 1  ;;  %v9003_v14 = vrot.slane %v8919_v17, 1  ;;  %v15007_v17 = vld [vmem:[#allocation2 + $0x200] sm:$0xff] }
 0xd61   : > { %v7973_v16 = vadd.f32 %v7875_v41, %v7482_v48 }
 0xd62   : > { %v7388_v3 = vsel %vm7340_vm12, %v7386_v40, %v7387_v12  ;;  %v9004_v53 = vsel %vm7340_vm12, %v9002_v46, %v9003_v14 }
 0xd63   : > { %v8672_v49 = vadd.f32 %v8616_v25, %v7973_v16  ;;  %v7483_v4 = vadd.f32 %v7388_v3, %v18282_v36 }
 0xd65   : > { %v17348_v2 = vadd.f32 %v9002_v46, %v8672_v49 }
 0xd66   : > { %v7744_v37 = vpop.f32.mrf.mxu2  ;;  %v8621_v18 = vpop.f32.mrf.mxu3 }
 0xd67   : > { %18281 = vst [vmem:[#allocation48_spill] sm:$0xff] %v17348_v2  ;;  %v7876_v38 = vrot.slane %v7744_v37, 2  ;;  %v7305_v35 = vpop.f32.mrf.mxu1  ;;  %v8922_v60 = vpop.f32.mrf.mxu0 }
 0xd68   : > { %v18284_v35 = vld [vmem:[#allocation51_spill] sm:$0xff] }
 0xd69   : > { %v7877_v20 = vsel %vm7799_vm9, %v7875_v41, %v7876_v38  ;;  %v7484_v60 = vadd.f32 %v7387_v12, %v18284_v35  ;;  %v18286_v35 = vld [vmem:[#allocation52_spill] sm:$0xff] }
 0xd6a   : > { %v7974_v0 = vadd.f32 %v7877_v20, %v7483_v4  ;;  %9201 = vmatmul.bf16.gmra.mxu1 %v15007_v17  ;;  %10816 = vmatmul.bf16.gmra.mxu0 %v14677_v11  ;;  %v14678_v17 = vld [vmem:[#allocation2 + $0x220] sm:$0xff] }
 0xd6b   : > { %10077 = vmatmul.bf16.gmra.mxu2 %v14677_v11  ;;  %10388 = vmatmul.bf16.gmra.mxu3 %v14677_v11 }
 0xd6c   : > { %v8673_v40 = vadd.f32 %v8619_v56, %v7974_v0  ;;  %v15008_v0 = vld [vmem:[#allocation2 + $0x208] sm:$0xff] }
 0xd6e   : > { %v7747_v25 = vpop.f32.mrf.mxu2  ;;  %v8624_v48 = vpop.f32.mrf.mxu3  ;;  %v17352_v46 = vadd.f32 %v9004_v53, %v8673_v40 }
 0xd6f   : > { %v7878_v16 = vrot.slane %v7747_v25, 2  ;;  %v7306_v49 = vpop.f32.mrf.mxu1  ;;  %v8923_v37 = vpop.f32.mrf.mxu0 }
 0xd70   : > { %18283 = vst [vmem:[#allocation50_spill] sm:$0xff] %v17352_v46 }
 0xd71   : > { %v7879_v3 = vsel %vm7799_vm9, %v7876_v38, %v7878_v16  ;;  %v14679_v16 = vld [vmem:[#allocation2 + $0x228] sm:$0xff] }
 0xd72   : > { %v7975_v36 = vadd.f32 %v7879_v3, %v7484_v60  ;;  %v15009_v60 = vld [vmem:[#allocation2 + $0x210] sm:$0xff] }
 0xd74   : > { %v8674_v41 = vadd.f32 %v8621_v18, %v7975_v36 }
 0xd76   : > { %v7749_v4 = vpop.f32.mrf.mxu2  ;;  %v8625_v20 = vpop.f32.mrf.mxu3  ;;  %v17356_v2 = vadd.f32 %v9003_v14, %v8674_v41 }
 0xd77   : > { %v9175_v11 = vpop.f32.mrf.mxu1  ;;  %v10790_v56 = vpop.f32.mrf.mxu0 }
 0xd78   : > { %18285 = vst [vmem:[#allocation34_spill] sm:$0xff] %v17356_v2 }
 0xd7a   : > { %9206 = vmatmul.bf16.gmra.mxu1 %v15008_v0  ;;  %10821 = vmatmul.bf16.gmra.mxu0 %v14678_v17 }
 0xd7b   : > { %10082 = vmatmul.bf16.gmra.mxu2 %v14678_v17  ;;  %10393 = vmatmul.bf16.gmra.mxu3 %v14678_v17 }
 0xd7e   : > { %v10050_v53 = vpop.f32.mrf.mxu2  ;;  %v10364_v40 = vpop.f32.mrf.mxu3 }
 0xd7f   : > { %v9176_v25 = vpop.f32.mrf.mxu1  ;;  %v10791_v12 = vpop.f32.mrf.mxu0  ;;  %v17360_v40 = vld [vmem:[%s15458_s5] ss:$0 sm:$0xff] }
 0xd86   : > { %v10051_v48 = vpop.f32.mrf.mxu2  ;;  %v10365_v38 = vpop.f32.mrf.mxu3 }
 0xd87   : > { %v9178_v18 = vpop.f32.mrf.mxu1  ;;  %v10793_v49 = vpop.f32.mrf.mxu0 }
 0xd88   : > { %v9415_v37 = vrot.slane %v9178_v18, 2  ;;  %v11030_v11 = vrot.slane %v10793_v49, 2 }
 0xd8a   : > { %v9543_v14 = vadd.f32 %v9415_v37, %v18286_v35  ;;  %9210 = vmatmul.bf16.gmra.mxu1 %v15009_v60  ;;  %10825 = vmatmul.bf16.gmra.mxu0 %v14679_v16  ;;  %v14680_v60 = vld [vmem:[#allocation2 + $0x230] sm:$0xff] }
 0xd8b   : > { %10085 = vmatmul.bf16.gmra.mxu2 %v14679_v16  ;;  %10396 = vmatmul.bf16.gmra.mxu3 %v14679_v16 }
 0xd8c   : > { %v10242_v3 = vadd.f32 %v10051_v48, %v9543_v14 }
 0xd8e   : > { %v10054_v36 = vpop.f32.mrf.mxu2  ;;  %v10367_v41 = vpop.f32.mrf.mxu3 }
 0xd8f   : > { %v10572_v4 = vrot.slane %v10367_v41, 1  ;;  %v9180_v20 = vpop.f32.mrf.mxu1  ;;  %v10795_v17 = vpop.f32.mrf.mxu0 }
 0xd90   : > { %v9416_v56 = vrot.slane %v9180_v20, 2  ;;  %v11031_v0 = vrot.slane %v10795_v17, 2 }
 0xd91   : > { %v10668_v53 = vadd.f32 %v10572_v4, %v10242_v3 }
 0xd92   : > { %v9417_v25 = vsel %vm7799_vm9, %v9415_v37, %v9416_v56  ;;  %v11032_v12 = vsel %vm7799_vm9, %v11030_v11, %v11031_v0 }
 0xd93   : > { %v11158_v38 = vadd.f32 %v11030_v11, %v10668_v53  ;;  %v9544_v18 = vadd.f32 %v9417_v25, %v17110_v43  ;;  %v15010_v43 = vld [vmem:[#allocation2 + $0x218] sm:$0xff] }
 0xd95   : > { %v17366_v48 = vadd.f32 %v17360_v40, %v11158_v38  ;;  %v10243_v16 = vadd.f32 %v10054_v36, %v9544_v18 }
 0xd96   : > { %v10056_v35 = vpop.f32.mrf.mxu2  ;;  %v10369_v14 = vpop.f32.mrf.mxu3 }
 0xd97   : > { %v10573_v49 = vrot.slane %v10369_v14, 1  ;;  %v9183_v41 = vpop.f32.mrf.mxu1  ;;  %v10798_v20 = vpop.f32.mrf.mxu0 }
 0xd98   : > { %v9418_v3 = vrot.slane %v9183_v41, 2  ;;  %v11033_v17 = vrot.slane %v10798_v20, 2 }
 0xd99   : > { %v10574_v2 = vsel %vm7340_vm12, %v10572_v4, %v10573_v49 }
 0xd9a   : > { %v10669_v37 = vadd.f32 %v10574_v2, %v10243_v16  ;;  %v9419_v46 = vsel %vm7799_vm9, %v9416_v56, %v9418_v3  ;;  %v11034_v11 = vsel %vm7799_vm9, %v11031_v0, %v11033_v17  ;;  %9213 = vmatmul.bf16.gmra.mxu1 %v15010_v43  ;;  %10828 = vmatmul.bf16.gmra.mxu0 %v14680_v60  ;;  %v14681_v3 = vld [vmem:[#allocation2 + $0x238] sm:$0xff] }
 0xd9b   : > { %v9545_v36 = vadd.f32 %v9419_v46, %v17115_v45  ;;  %10089 = vmatmul.bf16.gmra.mxu2 %v14680_v60  ;;  %10399 = vmatmul.bf16.gmra.mxu3 %v14680_v60  ;;  %v15011_v60 = vld [vmem:[#allocation2 + $0x220] sm:$0xff] }
 0xd9c   : > { %v11159_v53 = vadd.f32 %v11032_v12, %v10669_v37 }
 0xd9d   : > { %v10244_v25 = vadd.f32 %v10056_v35, %v9545_v36 }
 0xd9e   : > { %v17373_v38 = vadd.f32 %v17360_v40, %v11159_v53  ;;  %v10059_v18 = vpop.f32.mrf.mxu2  ;;  %v10372_v14 = vpop.f32.mrf.mxu3 }
 0xd9f   : > { %v10670_v4 = vadd.f32 %v10573_v49, %v10244_v25  ;;  %v9185_v2 = vpop.f32.mrf.mxu1  ;;  %v10800_v16 = vpop.f32.mrf.mxu0  ;;  %v15012_v14 = vld [vmem:[#allocation2 + $0x228] sm:$0xff] }
 0xda1   : > { %v11160_v56 = vadd.f32 %v11034_v11, %v10670_v4  ;;  %v14682_v11 = vld [vmem:[#allocation2 + $0x240] sm:$0xff] }
 0xda3   : > { %v17376_v0 = vadd.f32 %v17360_v40, %v11160_v56 }
 0xda6   : > { %v10060_v41 = vpop.f32.mrf.mxu2  ;;  %v10373_v20 = vpop.f32.mrf.mxu3 }
 0xda7   : > { %v9187_v45 = vpop.f32.mrf.mxu1  ;;  %v10802_v46 = vpop.f32.mrf.mxu0 }
 0xdaa   : > { %9218 = vmatmul.bf16.gmra.mxu1 %v15011_v60  ;;  %10833 = vmatmul.bf16.gmra.mxu0 %v14681_v3 }
 0xdab   : > { %10094 = vmatmul.bf16.gmra.mxu2 %v14681_v3  ;;  %10404 = vmatmul.bf16.gmra.mxu3 %v14681_v3 }
 0xdae   : > { %v10062_v12 = vpop.f32.mrf.mxu2  ;;  %v10375_v35 = vpop.f32.mrf.mxu3 }
 0xdaf   : > { %v9188_v17 = vpop.f32.mrf.mxu1  ;;  %v10803_v49 = vpop.f32.mrf.mxu0 }
 0xdb6   : > { %v10063_v37 = vpop.f32.mrf.mxu2  ;;  %v10376_v43 = vpop.f32.mrf.mxu3 }
 0xdb7   : > { %v9190_v36 = vpop.f32.mrf.mxu1  ;;  %v10805_v53 = vpop.f32.mrf.mxu0 }
 0xdb8   : > { %v9420_v25 = vrot.slane %v9190_v36, 2  ;;  %v11035_v3 = vrot.slane %v10805_v53, 2  ;;  %v14683_v36 = vld [vmem:[#allocation2 + $0x248] sm:$0xff] }
 0xdba   : > { %v9546_v18 = vadd.f32 %v9420_v25, %v17124_v7  ;;  %9222 = vmatmul.bf16.gmra.mxu1 %v15012_v14  ;;  %10837 = vmatmul.bf16.gmra.mxu0 %v14682_v11 }
 0xdbb   : > { %10097 = vmatmul.bf16.gmra.mxu2 %v14682_v11  ;;  %10407 = vmatmul.bf16.gmra.mxu3 %v14682_v11 }
 0xdbc   : > { %v10245_v4 = vadd.f32 %v10063_v37, %v9546_v18 }
 0xdbe   : > { %v10066_v2 = vpop.f32.mrf.mxu2  ;;  %v10378_v16 = vpop.f32.mrf.mxu3 }
 0xdbf   : > { %v10575_v56 = vrot.slane %v10378_v16, 1  ;;  %v9192_v41 = vpop.f32.mrf.mxu1  ;;  %v10807_v20 = vpop.f32.mrf.mxu0 }
 0xdc0   : > { %v9421_v45 = vrot.slane %v9192_v41, 2  ;;  %v11036_v46 = vrot.slane %v10807_v20, 2 }
 0xdc1   : > { %v10671_v60 = vadd.f32 %v10575_v56, %v10245_v4 }
 0xdc2   : > { %v9422_v12 = vsel %vm7799_vm9, %v9420_v25, %v9421_v45  ;;  %v11037_v35 = vsel %vm7799_vm9, %v11035_v3, %v11036_v46 }
 0xdc3   : > { %v11161_v7 = vadd.f32 %v11035_v3, %v10671_v60  ;;  %v9547_v17 = vadd.f32 %v9422_v12, %v17130_v21  ;;  %v15013_v21 = vld [vmem:[#allocation2 + $0x230] sm:$0xff] }
 0xdc5   : > { %v17383_v49 = vadd.f32 %v17360_v40, %v11161_v7  ;;  %v10246_v37 = vadd.f32 %v10066_v2, %v9547_v17 }
 0xdc6   : > { %v10068_v43 = vpop.f32.mrf.mxu2  ;;  %v10380_v11 = vpop.f32.mrf.mxu3 }
 0xdc7   : > { %v10576_v18 = vrot.slane %v10380_v11, 1  ;;  %v9195_v14 = vpop.f32.mrf.mxu1  ;;  %v10810_v53 = vpop.f32.mrf.mxu0 }
 0xdc8   : > { %v9423_v16 = vrot.slane %v9195_v14, 2  ;;  %v11038_v41 = vrot.slane %v10810_v53, 2 }
 0xdc9   : > { %v10577_v4 = vsel %vm7340_vm12, %v10575_v56, %v10576_v18 }
 0xdca   : > { %v10672_v25 = vadd.f32 %v10577_v4, %v10246_v37  ;;  %v9424_v20 = vsel %vm7799_vm9, %v9421_v45, %v9423_v16  ;;  %v11039_v3 = vsel %vm7799_vm9, %v11036_v46, %v11038_v41  ;;  %9225 = vmatmul.bf16.gmra.mxu1 %v15013_v21  ;;  %10840 = vmatmul.bf16.gmra.mxu0 %v14683_v36  ;;  %v14684_v41 = vld [vmem:[#allocation2 + $0x250] sm:$0xff] }
 0xdcb   : > { %v9548_v2 = vadd.f32 %v9424_v20, %v17134_v57  ;;  %10101 = vmatmul.bf16.gmra.mxu2 %v14683_v36  ;;  %10410 = vmatmul.bf16.gmra.mxu3 %v14683_v36  ;;  %v15014_v36 = vld [vmem:[#allocation2 + $0x238] sm:$0xff] }
 0xdcc   : > { %v11162_v60 = vadd.f32 %v11037_v35, %v10672_v25 }
 0xdcd   : > { %v10247_v12 = vadd.f32 %v10068_v43, %v9548_v2 }
 0xdce   : > { %v17390_v7 = vadd.f32 %v17360_v40, %v11162_v60  ;;  %v10071_v17 = vpop.f32.mrf.mxu2  ;;  %v10383_v11 = vpop.f32.mrf.mxu3 }
 0xdcf   : > { %v10673_v56 = vadd.f32 %v10576_v18, %v10247_v12  ;;  %v9197_v37 = vpop.f32.mrf.mxu1  ;;  %v10812_v14 = vpop.f32.mrf.mxu0  ;;  %v15015_v11 = vld [vmem:[#allocation2 + $0x240] sm:$0xff] }
 0xdd1   : > { %v11163_v45 = vadd.f32 %v11039_v3, %v10673_v56  ;;  %v14685_v3 = vld [vmem:[#allocation2 + $0x258] sm:$0xff] }
 0xdd3   : > { %v17393_v46 = vadd.f32 %v17360_v40, %v11163_v45 }
 0xdd6   : > { %v10072_v53 = vpop.f32.mrf.mxu2  ;;  %v10384_v16 = vpop.f32.mrf.mxu3 }
 0xdd7   : > { %v9199_v57 = vpop.f32.mrf.mxu1  ;;  %v10814_v4 = vpop.f32.mrf.mxu0 }
 0xdda   : > { %9230 = vmatmul.bf16.gmra.mxu1 %v15014_v36  ;;  %10845 = vmatmul.bf16.gmra.mxu0 %v14684_v41 }
 0xddb   : > { %10106 = vmatmul.bf16.gmra.mxu2 %v14684_v41  ;;  %10415 = vmatmul.bf16.gmra.mxu3 %v14684_v41 }
 0xdde   : > { %v10074_v35 = vpop.f32.mrf.mxu2  ;;  %v10386_v43 = vpop.f32.mrf.mxu3 }
 0xddf   : > { %v9200_v25 = vpop.f32.mrf.mxu1  ;;  %v10815_v18 = vpop.f32.mrf.mxu0 }
 0xde6   : > { %v10075_v20 = vpop.f32.mrf.mxu2  ;;  %v10387_v21 = vpop.f32.mrf.mxu3 }
 0xde7   : > { %v9202_v2 = vpop.f32.mrf.mxu1  ;;  %v10817_v60 = vpop.f32.mrf.mxu0 }
 0xde8   : > { %v9425_v12 = vrot.slane %v9202_v2, 2  ;;  %v11040_v41 = vrot.slane %v10817_v60, 2  ;;  %v14686_v2 = vld [vmem:[#allocation2 + $0x260] sm:$0xff] }
 0xdea   : > { %v9549_v17 = vadd.f32 %v9425_v12, %v17143_v1  ;;  %9234 = vmatmul.bf16.gmra.mxu1 %v15015_v11  ;;  %10849 = vmatmul.bf16.gmra.mxu0 %v14685_v3 }
 0xdeb   : > { %10109 = vmatmul.bf16.gmra.mxu2 %v14685_v3  ;;  %10418 = vmatmul.bf16.gmra.mxu3 %v14685_v3 }
 0xdec   : > { %v10248_v56 = vadd.f32 %v10075_v20, %v9549_v17 }
 0xdee   : > { %v10078_v37 = vpop.f32.mrf.mxu2  ;;  %v10389_v14 = vpop.f32.mrf.mxu3 }
 0xdef   : > { %v10578_v45 = vrot.slane %v10389_v14, 1  ;;  %v9204_v53 = vpop.f32.mrf.mxu1  ;;  %v10819_v16 = vpop.f32.mrf.mxu0 }
 0xdf0   : > { %v9426_v57 = vrot.slane %v9204_v53, 2  ;;  %v11041_v4 = vrot.slane %v10819_v16, 2 }
 0xdf1   : > { %v10674_v36 = vadd.f32 %v10578_v45, %v10248_v56 }
 0xdf2   : > { %v9427_v35 = vsel %vm7799_vm9, %v9425_v12, %v9426_v57  ;;  %v11042_v43 = vsel %vm7799_vm9, %v11040_v41, %v11041_v4 }
 0xdf3   : > { %v11164_v1 = vadd.f32 %v11040_v41, %v10674_v36  ;;  %v9550_v25 = vadd.f32 %v9427_v35, %v17152_v10  ;;  %v15016_v10 = vld [vmem:[#allocation2 + $0x248] sm:$0xff] }
 0xdf5   : > { %v17400_v18 = vadd.f32 %v17360_v40, %v11164_v1  ;;  %v10249_v20 = vadd.f32 %v10078_v37, %v9550_v25 }
 0xdf6   : > { %v10080_v21 = vpop.f32.mrf.mxu2  ;;  %v10391_v3 = vpop.f32.mrf.mxu3 }
 0xdf7   : > { %v10579_v17 = vrot.slane %v10391_v3, 1  ;;  %v9207_v11 = vpop.f32.mrf.mxu1  ;;  %v10822_v60 = vpop.f32.mrf.mxu0 }
 0xdf8   : > { %v9428_v14 = vrot.slane %v9207_v11, 2  ;;  %v11043_v53 = vrot.slane %v10822_v60, 2 }
 0xdf9   : > { %v10580_v56 = vsel %vm7340_vm12, %v10578_v45, %v10579_v17 }
 0xdfa   : > { %v10675_v12 = vadd.f32 %v10580_v56, %v10249_v20  ;;  %v9429_v16 = vsel %vm7799_vm9, %v9426_v57, %v9428_v14  ;;  %v11044_v41 = vsel %vm7799_vm9, %v11041_v4, %v11043_v53  ;;  %9237 = vmatmul.bf16.gmra.mxu1 %v15016_v10  ;;  %10852 = vmatmul.bf16.gmra.mxu0 %v14686_v2  ;;  %v14687_v53 = vld [vmem:[#allocation2 + $0x268] sm:$0xff] }
 0xdfb   : > { %v9551_v37 = vadd.f32 %v9429_v16, %v17157_v34  ;;  %10113 = vmatmul.bf16.gmra.mxu2 %v14686_v2  ;;  %10421 = vmatmul.bf16.gmra.mxu3 %v14686_v2  ;;  %v15017_v2 = vld [vmem:[#allocation2 + $0x250] sm:$0xff] }
 0xdfc   : > { %v11165_v36 = vadd.f32 %v11042_v43, %v10675_v12 }
 0xdfd   : > { %v10250_v35 = vadd.f32 %v10080_v21, %v9551_v37 }
 0xdfe   : > { %v17407_v1 = vadd.f32 %v17360_v40, %v11165_v36  ;;  %v10083_v25 = vpop.f32.mrf.mxu2  ;;  %v10394_v3 = vpop.f32.mrf.mxu3 }
 0xdff   : > { %v10676_v45 = vadd.f32 %v10579_v17, %v10250_v35  ;;  %v9209_v20 = vpop.f32.mrf.mxu1  ;;  %v10824_v11 = vpop.f32.mrf.mxu0  ;;  %v15018_v3 = vld [vmem:[#allocation2 + $0x258] sm:$0xff] }
 0xe01   : > { %v11166_v57 = vadd.f32 %v11044_v41, %v10676_v45  ;;  %v14688_v41 = vld [vmem:[#allocation2 + $0x270] sm:$0xff] }
 0xe03   : > { %v17410_v4 = vadd.f32 %v17360_v40, %v11166_v57 }
 0xe06   : > { %v10084_v60 = vpop.f32.mrf.mxu2  ;;  %v10395_v14 = vpop.f32.mrf.mxu3 }
 0xe07   : > { %v9211_v34 = vpop.f32.mrf.mxu1  ;;  %v10826_v56 = vpop.f32.mrf.mxu0 }
 0xe0a   : > { %9242 = vmatmul.bf16.gmra.mxu1 %v15017_v2  ;;  %10857 = vmatmul.bf16.gmra.mxu0 %v14687_v53 }
 0xe0b   : > { %10118 = vmatmul.bf16.gmra.mxu2 %v14687_v53  ;;  %10426 = vmatmul.bf16.gmra.mxu3 %v14687_v53 }
 0xe0e   : > { %v10086_v43 = vpop.f32.mrf.mxu2  ;;  %v10397_v21 = vpop.f32.mrf.mxu3 }
 0xe0f   : > { %v9212_v12 = vpop.f32.mrf.mxu1  ;;  %v10827_v17 = vpop.f32.mrf.mxu0 }
 0xe16   : > { %v10087_v16 = vpop.f32.mrf.mxu2  ;;  %v10398_v10 = vpop.f32.mrf.mxu3 }
 0xe17   : > { %v9214_v37 = vpop.f32.mrf.mxu1  ;;  %v10829_v36 = vpop.f32.mrf.mxu0 }
 0xe18   : > { %v9430_v35 = vrot.slane %v9214_v37, 2  ;;  %v11045_v53 = vrot.slane %v10829_v36, 2  ;;  %v14689_v37 = vld [vmem:[#allocation2 + $0x278] sm:$0xff] }
 0xe1a   : > { %v9552_v25 = vadd.f32 %v9430_v35, %v17166_v51  ;;  %9246 = vmatmul.bf16.gmra.mxu1 %v15018_v3  ;;  %10861 = vmatmul.bf16.gmra.mxu0 %v14688_v41 }
 0xe1b   : > { %10121 = vmatmul.bf16.gmra.mxu2 %v14688_v41  ;;  %10429 = vmatmul.bf16.gmra.mxu3 %v14688_v41 }
 0xe1c   : > { %v10251_v45 = vadd.f32 %v10087_v16, %v9552_v25 }
 0xe1e   : > { %v10090_v20 = vpop.f32.mrf.mxu2  ;;  %v10400_v11 = vpop.f32.mrf.mxu3 }
 0xe1f   : > { %v10581_v57 = vrot.slane %v10400_v11, 1  ;;  %v9216_v60 = vpop.f32.mrf.mxu1  ;;  %v10831_v14 = vpop.f32.mrf.mxu0 }
 0xe20   : > { %v9431_v34 = vrot.slane %v9216_v60, 2  ;;  %v11046_v56 = vrot.slane %v10831_v14, 2 }
 0xe21   : > { %v10677_v2 = vadd.f32 %v10581_v57, %v10251_v45 }
 0xe22   : > { %v9432_v43 = vsel %vm7799_vm9, %v9430_v35, %v9431_v34  ;;  %v11047_v21 = vsel %vm7799_vm9, %v11045_v53, %v11046_v56 }
 0xe23   : > { %v11167_v51 = vadd.f32 %v11045_v53, %v10677_v2  ;;  %v9553_v12 = vadd.f32 %v9432_v43, %v17172_v33  ;;  %v15019_v33 = vld [vmem:[#allocation2 + $0x260] sm:$0xff] }
 0xe25   : > { %v17417_v17 = vadd.f32 %v17360_v40, %v11167_v51  ;;  %v10252_v16 = vadd.f32 %v10090_v20, %v9553_v12 }
 0xe26   : > { %v10092_v10 = vpop.f32.mrf.mxu2  ;;  %v10402_v41 = vpop.f32.mrf.mxu3 }
 0xe27   : > { %v10582_v25 = vrot.slane %v10402_v41, 1  ;;  %v9219_v3 = vpop.f32.mrf.mxu1  ;;  %v10834_v36 = vpop.f32.mrf.mxu0 }
 0xe28   : > { %v9433_v11 = vrot.slane %v9219_v3, 2  ;;  %v11048_v60 = vrot.slane %v10834_v36, 2 }
 0xe29   : > { %v10583_v45 = vsel %vm7340_vm12, %v10581_v57, %v10582_v25 }
 0xe2a   : > { %v10678_v35 = vadd.f32 %v10583_v45, %v10252_v16  ;;  %v9434_v14 = vsel %vm7799_vm9, %v9431_v34, %v9433_v11  ;;  %v11049_v53 = vsel %vm7799_vm9, %v11046_v56, %v11048_v60  ;;  %9249 = vmatmul.bf16.gmra.mxu1 %v15019_v33  ;;  %10864 = vmatmul.bf16.gmra.mxu0 %v14689_v37  ;;  %v14690_v60 = vld [vmem:[#allocation2 + $0x280] sm:$0xff] }
 0xe2b   : > { %v9554_v20 = vadd.f32 %v9434_v14, %v17176_v27  ;;  %10125 = vmatmul.bf16.gmra.mxu2 %v14689_v37  ;;  %10432 = vmatmul.bf16.gmra.mxu3 %v14689_v37  ;;  %v15020_v37 = vld [vmem:[#allocation2 + $0x268] sm:$0xff] }
 0xe2c   : > { %v11168_v2 = vadd.f32 %v11047_v21, %v10678_v35 }
 0xe2d   : > { %v10253_v43 = vadd.f32 %v10092_v10, %v9554_v20 }
 0xe2e   : > { %v17424_v51 = vadd.f32 %v17360_v40, %v11168_v2  ;;  %v10095_v12 = vpop.f32.mrf.mxu2  ;;  %v10405_v41 = vpop.f32.mrf.mxu3 }
 0xe2f   : > { %v10679_v57 = vadd.f32 %v10582_v25, %v10253_v43  ;;  %v9221_v16 = vpop.f32.mrf.mxu1  ;;  %v10836_v3 = vpop.f32.mrf.mxu0  ;;  %v15021_v41 = vld [vmem:[#allocation2 + $0x270] sm:$0xff] }
 0xe31   : > { %v11169_v34 = vadd.f32 %v11049_v53, %v10679_v57  ;;  %v14691_v53 = vld [vmem:[#allocation2 + $0x288] sm:$0xff] }
 0xe33   : > { %v17427_v56 = vadd.f32 %v17360_v40, %v11169_v34 }
 0xe36   : > { %v10096_v36 = vpop.f32.mrf.mxu2  ;;  %v10406_v11 = vpop.f32.mrf.mxu3 }
 0xe37   : > { %v9223_v27 = vpop.f32.mrf.mxu1  ;;  %v10838_v45 = vpop.f32.mrf.mxu0 }
 0xe3a   : > { %9254 = vmatmul.bf16.gmra.mxu1 %v15020_v37  ;;  %10869 = vmatmul.bf16.gmra.mxu0 %v14690_v60 }
 0xe3b   : > { %10130 = vmatmul.bf16.gmra.mxu2 %v14690_v60  ;;  %10437 = vmatmul.bf16.gmra.mxu3 %v14690_v60 }
 0xe3e   : > { %v10098_v21 = vpop.f32.mrf.mxu2  ;;  %v10408_v10 = vpop.f32.mrf.mxu3 }
 0xe3f   : > { %v9224_v35 = vpop.f32.mrf.mxu1  ;;  %v10839_v25 = vpop.f32.mrf.mxu0 }
 0xe46   : > { %v10099_v14 = vpop.f32.mrf.mxu2  ;;  %v10409_v33 = vpop.f32.mrf.mxu3 }
 0xe47   : > { %v9226_v20 = vpop.f32.mrf.mxu1  ;;  %v10841_v2 = vpop.f32.mrf.mxu0 }
 0xe48   : > { %v9435_v43 = vrot.slane %v9226_v20, 2  ;;  %v11050_v60 = vrot.slane %v10841_v2, 2  ;;  %v14692_v20 = vld [vmem:[#allocation2 + $0x290] sm:$0xff] }
 0xe4a   : > { %v9555_v12 = vadd.f32 %v9435_v43, %v17185_v47  ;;  %9258 = vmatmul.bf16.gmra.mxu1 %v15021_v41  ;;  %10873 = vmatmul.bf16.gmra.mxu0 %v14691_v53 }
 0xe4b   : > { %10133 = vmatmul.bf16.gmra.mxu2 %v14691_v53  ;;  %10440 = vmatmul.bf16.gmra.mxu3 %v14691_v53 }
 0xe4c   : > { %v10254_v57 = vadd.f32 %v10099_v14, %v9555_v12 }
 0xe4e   : > { %v10102_v16 = vpop.f32.mrf.mxu2  ;;  %v10411_v3 = vpop.f32.mrf.mxu3 }
 0xe4f   : > { %v10584_v34 = vrot.slane %v10411_v3, 1  ;;  %v9228_v36 = vpop.f32.mrf.mxu1  ;;  %v10843_v11 = vpop.f32.mrf.mxu0 }
 0xe50   : > { %v9436_v27 = vrot.slane %v9228_v36, 2  ;;  %v11051_v45 = vrot.slane %v10843_v11, 2 }
 0xe51   : > { %v10680_v37 = vadd.f32 %v10584_v34, %v10254_v57 }
 0xe52   : > { %v9437_v21 = vsel %vm7799_vm9, %v9435_v43, %v9436_v27  ;;  %v11052_v10 = vsel %vm7799_vm9, %v11050_v60, %v11051_v45 }
 0xe53   : > { %v11170_v47 = vadd.f32 %v11050_v60, %v10680_v37  ;;  %v9556_v35 = vadd.f32 %v9437_v21, %v17194_v29  ;;  %v15022_v29 = vld [vmem:[#allocation2 + $0x278] sm:$0xff] }
 0xe55   : > { %v17434_v25 = vadd.f32 %v17360_v40, %v11170_v47  ;;  %v10255_v14 = vadd.f32 %v10102_v16, %v9556_v35 }
 0xe56   : > { %v10104_v33 = vpop.f32.mrf.mxu2  ;;  %v10413_v53 = vpop.f32.mrf.mxu3 }
 0xe57   : > { %v10585_v12 = vrot.slane %v10413_v53, 1  ;;  %v9231_v41 = vpop.f32.mrf.mxu1  ;;  %v10846_v2 = vpop.f32.mrf.mxu0 }
 0xe58   : > { %v9438_v3 = vrot.slane %v9231_v41, 2  ;;  %v11053_v36 = vrot.slane %v10846_v2, 2 }
 0xe59   : > { %v10586_v57 = vsel %vm7340_vm12, %v10584_v34, %v10585_v12 }
 0xe5a   : > { %v10681_v43 = vadd.f32 %v10586_v57, %v10255_v14  ;;  %v9439_v11 = vsel %vm7799_vm9, %v9436_v27, %v9438_v3  ;;  %v11054_v60 = vsel %vm7799_vm9, %v11051_v45, %v11053_v36  ;;  %9261 = vmatmul.bf16.gmra.mxu1 %v15022_v29  ;;  %10876 = vmatmul.bf16.gmra.mxu0 %v14692_v20  ;;  %v14693_v36 = vld [vmem:[#allocation2 + $0x298] sm:$0xff] }
 0xe5b   : > { %v9557_v16 = vadd.f32 %v9439_v11, %v17199_v52  ;;  %10137 = vmatmul.bf16.gmra.mxu2 %v14692_v20  ;;  %10443 = vmatmul.bf16.gmra.mxu3 %v14692_v20  ;;  %v15023_v20 = vld [vmem:[#allocation2 + $0x280] sm:$0xff] }
 0xe5c   : > { %v11171_v37 = vadd.f32 %v11052_v10, %v10681_v43 }
 0xe5d   : > { %v10256_v21 = vadd.f32 %v10104_v33, %v9557_v16 }
 0xe5e   : > { %v17441_v47 = vadd.f32 %v17360_v40, %v11171_v37  ;;  %v10107_v35 = vpop.f32.mrf.mxu2  ;;  %v10416_v53 = vpop.f32.mrf.mxu3 }
 0xe5f   : > { %v10682_v34 = vadd.f32 %v10585_v12, %v10256_v21  ;;  %v9233_v14 = vpop.f32.mrf.mxu1  ;;  %v10848_v41 = vpop.f32.mrf.mxu0  ;;  %v15024_v53 = vld [vmem:[#allocation2 + $0x288] sm:$0xff] }
 0xe61   : > { %v11172_v27 = vadd.f32 %v11054_v60, %v10682_v34  ;;  %v14694_v60 = vld [vmem:[#allocation2 + $0x2a0] sm:$0xff] }
 0xe63   : > { %v17444_v45 = vadd.f32 %v17360_v40, %v11172_v27 }
 0xe66   : > { %v10108_v2 = vpop.f32.mrf.mxu2  ;;  %v10417_v3 = vpop.f32.mrf.mxu3 }
 0xe67   : > { %v9235_v52 = vpop.f32.mrf.mxu1  ;;  %v10850_v57 = vpop.f32.mrf.mxu0 }
 0xe6a   : > { %9266 = vmatmul.bf16.gmra.mxu1 %v15023_v20  ;;  %10881 = vmatmul.bf16.gmra.mxu0 %v14693_v36 }
 0xe6b   : > { %10142 = vmatmul.bf16.gmra.mxu2 %v14693_v36  ;;  %10448 = vmatmul.bf16.gmra.mxu3 %v14693_v36 }
 0xe6e   : > { %v10110_v10 = vpop.f32.mrf.mxu2  ;;  %v10419_v33 = vpop.f32.mrf.mxu3 }
 0xe6f   : > { %v9236_v43 = vpop.f32.mrf.mxu1  ;;  %v10851_v12 = vpop.f32.mrf.mxu0 }
 0xe76   : > { %v10111_v11 = vpop.f32.mrf.mxu2  ;;  %v10420_v29 = vpop.f32.mrf.mxu3 }
 0xe77   : > { %v9238_v16 = vpop.f32.mrf.mxu1  ;;  %v10853_v37 = vpop.f32.mrf.mxu0 }
 0xe78   : > { %v9440_v21 = vrot.slane %v9238_v16, 2  ;;  %v11055_v36 = vrot.slane %v10853_v37, 2  ;;  %v14695_v16 = vld [vmem:[#allocation2 + $0x2a8] sm:$0xff] }
 0xe7a   : > { %v9558_v35 = vadd.f32 %v9440_v21, %v17206_v24  ;;  %9270 = vmatmul.bf16.gmra.mxu1 %v15024_v53  ;;  %10885 = vmatmul.bf16.gmra.mxu0 %v14694_v60 }
 0xe7b   : > { %10145 = vmatmul.bf16.gmra.mxu2 %v14694_v60  ;;  %10451 = vmatmul.bf16.gmra.mxu3 %v14694_v60 }
 0xe7c   : > { %v10257_v34 = vadd.f32 %v10111_v11, %v9558_v35 }
 0xe7e   : > { %v10114_v14 = vpop.f32.mrf.mxu2  ;;  %v10422_v41 = vpop.f32.mrf.mxu3 }
 0xe7f   : > { %v10587_v27 = vrot.slane %v10422_v41, 1  ;;  %v9240_v2 = vpop.f32.mrf.mxu1  ;;  %v10855_v3 = vpop.f32.mrf.mxu0 }
 0xe80   : > { %v9441_v52 = vrot.slane %v9240_v2, 2  ;;  %v11056_v57 = vrot.slane %v10855_v3, 2 }
 0xe81   : > { %v10683_v20 = vadd.f32 %v10587_v27, %v10257_v34 }
 0xe82   : > { %v9442_v10 = vsel %vm7799_vm9, %v9440_v21, %v9441_v52  ;;  %v11057_v33 = vsel %vm7799_vm9, %v11055_v36, %v11056_v57 }
 0xe83   : > { %v11173_v24 = vadd.f32 %v11055_v36, %v10683_v20  ;;  %v9559_v43 = vadd.f32 %v9442_v10, %v17210_v31  ;;  %v15025_v31 = vld [vmem:[#allocation2 + $0x290] sm:$0xff] }
 0xe85   : > { %v17451_v12 = vadd.f32 %v17360_v40, %v11173_v24  ;;  %v10258_v11 = vadd.f32 %v10114_v14, %v9559_v43 }
 0xe86   : > { %v10116_v29 = vpop.f32.mrf.mxu2  ;;  %v10424_v60 = vpop.f32.mrf.mxu3 }
 0xe87   : > { %v10588_v35 = vrot.slane %v10424_v60, 1  ;;  %v9243_v53 = vpop.f32.mrf.mxu1  ;;  %v10858_v37 = vpop.f32.mrf.mxu0 }
 0xe88   : > { %v9443_v41 = vrot.slane %v9243_v53, 2  ;;  %v11058_v2 = vrot.slane %v10858_v37, 2 }
 0xe89   : > { %v10589_v34 = vsel %vm7340_vm12, %v10587_v27, %v10588_v35 }
 0xe8a   : > { %v10684_v21 = vadd.f32 %v10589_v34, %v10258_v11  ;;  %v9444_v3 = vsel %vm7799_vm9, %v9441_v52, %v9443_v41  ;;  %v11059_v36 = vsel %vm7799_vm9, %v11056_v57, %v11058_v2  ;;  %9273 = vmatmul.bf16.gmra.mxu1 %v15025_v31  ;;  %10888 = vmatmul.bf16.gmra.mxu0 %v14695_v16  ;;  %v14696_v2 = vld [vmem:[#allocation2 + $0x2b0] sm:$0xff] }
 0xe8b   : > { %v9560_v14 = vadd.f32 %v9444_v3, %v17214_v50  ;;  %10149 = vmatmul.bf16.gmra.mxu2 %v14695_v16  ;;  %10454 = vmatmul.bf16.gmra.mxu3 %v14695_v16  ;;  %v15026_v16 = vld [vmem:[#allocation2 + $0x298] sm:$0xff] }
 0xe8c   : > { %v11174_v20 = vadd.f32 %v11057_v33, %v10684_v21 }
 0xe8d   : > { %v10259_v10 = vadd.f32 %v10116_v29, %v9560_v14 }
 0xe8e   : > { %v17458_v24 = vadd.f32 %v17360_v40, %v11174_v20  ;;  %v10119_v43 = vpop.f32.mrf.mxu2  ;;  %v10427_v60 = vpop.f32.mrf.mxu3 }
 0xe8f   : > { %v10685_v27 = vadd.f32 %v10588_v35, %v10259_v10  ;;  %v9245_v11 = vpop.f32.mrf.mxu1  ;;  %v10860_v53 = vpop.f32.mrf.mxu0  ;;  %v15027_v60 = vld [vmem:[#allocation2 + $0x2a0] sm:$0xff] }
 0xe91   : > { %v11175_v52 = vadd.f32 %v11059_v36, %v10685_v27  ;;  %v14697_v36 = vld [vmem:[#allocation2 + $0x2b8] sm:$0xff] }
 0xe93   : > { %v17461_v57 = vadd.f32 %v17360_v40, %v11175_v52 }
 0xe96   : > { %v10120_v37 = vpop.f32.mrf.mxu2  ;;  %v10428_v41 = vpop.f32.mrf.mxu3 }
 0xe97   : > { %v9247_v50 = vpop.f32.mrf.mxu1  ;;  %v10862_v34 = vpop.f32.mrf.mxu0 }
 0xe9a   : > { %9278 = vmatmul.bf16.gmra.mxu1 %v15026_v16  ;;  %10893 = vmatmul.bf16.gmra.mxu0 %v14696_v2 }
 0xe9b   : > { %10154 = vmatmul.bf16.gmra.mxu2 %v14696_v2  ;;  %10459 = vmatmul.bf16.gmra.mxu3 %v14696_v2 }
 0xe9e   : > { %v10122_v33 = vpop.f32.mrf.mxu2  ;;  %v10430_v29 = vpop.f32.mrf.mxu3 }
 0xe9f   : > { %v9248_v21 = vpop.f32.mrf.mxu1  ;;  %v10863_v35 = vpop.f32.mrf.mxu0 }
 0xea6   : > { %v10123_v3 = vpop.f32.mrf.mxu2  ;;  %v10431_v31 = vpop.f32.mrf.mxu3 }
 0xea7   : > { %v9250_v14 = vpop.f32.mrf.mxu1  ;;  %v10865_v20 = vpop.f32.mrf.mxu0 }
 0xea8   : > { %v9445_v10 = vrot.slane %v9250_v14, 2  ;;  %v11060_v2 = vrot.slane %v10865_v20, 2  ;;  %v14698_v14 = vld [vmem:[#allocation2 + $0x2c0] sm:$0xff] }
 0xeaa   : > { %v9561_v43 = vadd.f32 %v9445_v10, %v17219_v55  ;;  %9282 = vmatmul.bf16.gmra.mxu1 %v15027_v60  ;;  %10897 = vmatmul.bf16.gmra.mxu0 %v14697_v36 }
 0xeab   : > { %10157 = vmatmul.bf16.gmra.mxu2 %v14697_v36  ;;  %10462 = vmatmul.bf16.gmra.mxu3 %v14697_v36 }
 0xeac   : > { %v10260_v27 = vadd.f32 %v10123_v3, %v9561_v43 }
 0xeae   : > { %v10126_v11 = vpop.f32.mrf.mxu2  ;;  %v10433_v53 = vpop.f32.mrf.mxu3 }
 0xeaf   : > { %v10590_v52 = vrot.slane %v10433_v53, 1  ;;  %v9252_v37 = vpop.f32.mrf.mxu1  ;;  %v10867_v41 = vpop.f32.mrf.mxu0 }
 0xeb0   : > { %v9446_v50 = vrot.slane %v9252_v37, 2  ;;  %v11061_v34 = vrot.slane %v10867_v41, 2 }
 0xeb1   : > { %v10686_v16 = vadd.f32 %v10590_v52, %v10260_v27 }
 0xeb2   : > { %v9447_v33 = vsel %vm7799_vm9, %v9445_v10, %v9446_v50  ;;  %v11062_v29 = vsel %vm7799_vm9, %v11060_v2, %v11061_v34 }
 0xeb3   : > { %v11176_v55 = vadd.f32 %v11060_v2, %v10686_v16  ;;  %v9562_v21 = vadd.f32 %v9447_v33, %v17226_v44  ;;  %v15028_v44 = vld [vmem:[#allocation2 + $0x2a8] sm:$0xff] }
 0xeb5   : > { %v17468_v35 = vadd.f32 %v17360_v40, %v11176_v55  ;;  %v10261_v3 = vadd.f32 %v10126_v11, %v9562_v21 }
 0xeb6   : > { %v10128_v31 = vpop.f32.mrf.mxu2  ;;  %v10435_v36 = vpop.f32.mrf.mxu3 }
 0xeb7   : > { %v10591_v43 = vrot.slane %v10435_v36, 1  ;;  %v9255_v60 = vpop.f32.mrf.mxu1  ;;  %v10870_v20 = vpop.f32.mrf.mxu0 }
 0xeb8   : > { %v9448_v53 = vrot.slane %v9255_v60, 2  ;;  %v11063_v37 = vrot.slane %v10870_v20, 2 }
 0xeb9   : > { %v10592_v27 = vsel %vm7340_vm12, %v10590_v52, %v10591_v43 }
 0xeba   : > { %v10687_v10 = vadd.f32 %v10592_v27, %v10261_v3  ;;  %v9449_v41 = vsel %vm7799_vm9, %v9446_v50, %v9448_v53  ;;  %v11064_v2 = vsel %vm7799_vm9, %v11061_v34, %v11063_v37  ;;  %9285 = vmatmul.bf16.gmra.mxu1 %v15028_v44  ;;  %10900 = vmatmul.bf16.gmra.mxu0 %v14698_v14  ;;  %v14699_v37 = vld [vmem:[#allocation2 + $0x2c8] sm:$0xff] }
 0xebb   : > { %v9563_v11 = vadd.f32 %v9449_v41, %v17231_v63  ;;  %10161 = vmatmul.bf16.gmra.mxu2 %v14698_v14  ;;  %10465 = vmatmul.bf16.gmra.mxu3 %v14698_v14  ;;  %v15029_v14 = vld [vmem:[#allocation2 + $0x2b0] sm:$0xff] }
 0xebc   : > { %v11177_v16 = vadd.f32 %v11062_v29, %v10687_v10 }
 0xebd   : > { %v10262_v33 = vadd.f32 %v10128_v31, %v9563_v11 }
 0xebe   : > { %v17475_v55 = vadd.f32 %v17360_v40, %v11177_v16  ;;  %v10131_v21 = vpop.f32.mrf.mxu2  ;;  %v10438_v36 = vpop.f32.mrf.mxu3 }
 0xebf   : > { %v10688_v52 = vadd.f32 %v10591_v43, %v10262_v33  ;;  %v9257_v3 = vpop.f32.mrf.mxu1  ;;  %v10872_v60 = vpop.f32.mrf.mxu0  ;;  %v15030_v36 = vld [vmem:[#allocation2 + $0x2b8] sm:$0xff] }
 0xec1   : > { %v11178_v50 = vadd.f32 %v11064_v2, %v10688_v52  ;;  %v14700_v2 = vld [vmem:[#allocation2 + $0x2d0] sm:$0xff] }
 0xec3   : > { %v17478_v34 = vadd.f32 %v17360_v40, %v11178_v50 }
 0xec6   : > { %v10132_v20 = vpop.f32.mrf.mxu2  ;;  %v10439_v53 = vpop.f32.mrf.mxu3 }
 0xec7   : > { %v9259_v63 = vpop.f32.mrf.mxu1  ;;  %v10874_v27 = vpop.f32.mrf.mxu0 }
 0xeca   : > { %9290 = vmatmul.bf16.gmra.mxu1 %v15029_v14  ;;  %10905 = vmatmul.bf16.gmra.mxu0 %v14699_v37 }
 0xecb   : > { %10166 = vmatmul.bf16.gmra.mxu2 %v14699_v37  ;;  %10470 = vmatmul.bf16.gmra.mxu3 %v14699_v37 }
 0xece   : > { %v10134_v29 = vpop.f32.mrf.mxu2  ;;  %v10441_v31 = vpop.f32.mrf.mxu3 }
 0xecf   : > { %v9260_v10 = vpop.f32.mrf.mxu1  ;;  %v10875_v43 = vpop.f32.mrf.mxu0 }
 0xed6   : > { %v10135_v41 = vpop.f32.mrf.mxu2  ;;  %v10442_v44 = vpop.f32.mrf.mxu3 }
 0xed7   : > { %v9262_v11 = vpop.f32.mrf.mxu1  ;;  %v10877_v16 = vpop.f32.mrf.mxu0 }
 0xed8   : > { %v9450_v33 = vrot.slane %v9262_v11, 2  ;;  %v11065_v37 = vrot.slane %v10877_v16, 2  ;;  %v14701_v11 = vld [vmem:[#allocation2 + $0x2d8] sm:$0xff] }
 0xeda   : > { %v9564_v21 = vadd.f32 %v9450_v33, %v17236_v58  ;;  %9294 = vmatmul.bf16.gmra.mxu1 %v15030_v36  ;;  %10909 = vmatmul.bf16.gmra.mxu0 %v14700_v2 }
 0xedb   : > { %10169 = vmatmul.bf16.gmra.mxu2 %v14700_v2  ;;  %10473 = vmatmul.bf16.gmra.mxu3 %v14700_v2 }
 0xedc   : > { %v10263_v52 = vadd.f32 %v10135_v41, %v9564_v21 }
 0xede   : > { %v10138_v3 = vpop.f32.mrf.mxu2  ;;  %v10444_v60 = vpop.f32.mrf.mxu3 }
 0xedf   : > { %v10593_v50 = vrot.slane %v10444_v60, 1  ;;  %v9264_v20 = vpop.f32.mrf.mxu1  ;;  %v10879_v53 = vpop.f32.mrf.mxu0 }
 0xee0   : > { %v9451_v63 = vrot.slane %v9264_v20, 2  ;;  %v11066_v27 = vrot.slane %v10879_v53, 2 }
 0xee1   : > { %v10689_v14 = vadd.f32 %v10593_v50, %v10263_v52 }
 0xee2   : > { %v9452_v29 = vsel %vm7799_vm9, %v9450_v33, %v9451_v63  ;;  %v11067_v31 = vsel %vm7799_vm9, %v11065_v37, %v11066_v27 }
 0xee3   : > { %v11179_v58 = vadd.f32 %v11065_v37, %v10689_v14  ;;  %v9565_v10 = vadd.f32 %v9452_v29, %v17240_v54  ;;  %v15031_v54 = vld [vmem:[#allocation2 + $0x2c0] sm:$0xff] }
 0xee5   : > { %v17485_v43 = vadd.f32 %v17360_v40, %v11179_v58  ;;  %v10264_v41 = vadd.f32 %v10138_v3, %v9565_v10 }
 0xee6   : > { %v10140_v44 = vpop.f32.mrf.mxu2  ;;  %v10446_v2 = vpop.f32.mrf.mxu3 }
 0xee7   : > { %v10594_v21 = vrot.slane %v10446_v2, 1  ;;  %v9267_v36 = vpop.f32.mrf.mxu1  ;;  %v10882_v16 = vpop.f32.mrf.mxu0 }
 0xee8   : > { %v9453_v60 = vrot.slane %v9267_v36, 2  ;;  %v11068_v20 = vrot.slane %v10882_v16, 2 }
 0xee9   : > { %v10595_v52 = vsel %vm7340_vm12, %v10593_v50, %v10594_v21 }
 0xeea   : > { %v10690_v33 = vadd.f32 %v10595_v52, %v10264_v41  ;;  %v9454_v53 = vsel %vm7799_vm9, %v9451_v63, %v9453_v60  ;;  %v11069_v37 = vsel %vm7799_vm9, %v11066_v27, %v11068_v20  ;;  %9297 = vmatmul.bf16.gmra.mxu1 %v15031_v54  ;;  %10912 = vmatmul.bf16.gmra.mxu0 %v14701_v11  ;;  %v14702_v20 = vld [vmem:[#allocation2 + $0x2e0] sm:$0xff] }
 0xeeb   : > { %v9566_v3 = vadd.f32 %v9454_v53, %v17244_v15  ;;  %10173 = vmatmul.bf16.gmra.mxu2 %v14701_v11  ;;  %10476 = vmatmul.bf16.gmra.mxu3 %v14701_v11  ;;  %v15032_v11 = vld [vmem:[#allocation2 + $0x2c8] sm:$0xff] }
 0xeec   : > { %v11180_v14 = vadd.f32 %v11067_v31, %v10690_v33 }
 0xeed   : > { %v10265_v29 = vadd.f32 %v10140_v44, %v9566_v3 }
 0xeee   : > { %v17492_v58 = vadd.f32 %v17360_v40, %v11180_v14  ;;  %v10143_v10 = vpop.f32.mrf.mxu2  ;;  %v10449_v2 = vpop.f32.mrf.mxu3 }
 0xeef   : > { %v10691_v50 = vadd.f32 %v10594_v21, %v10265_v29  ;;  %v9269_v41 = vpop.f32.mrf.mxu1  ;;  %v10884_v36 = vpop.f32.mrf.mxu0  ;;  %v15033_v10 = vld [vmem:[#allocation2 + $0x2d0] sm:$0xff] }
 0xef1   : > { %v11181_v63 = vadd.f32 %v11069_v37, %v10691_v50  ;;  %v14703_v37 = vld [vmem:[#allocation2 + $0x2e8] sm:$0xff] }
 0xef3   : > { %v17495_v27 = vadd.f32 %v17360_v40, %v11181_v63 }
 0xef6   : > { %v10144_v16 = vpop.f32.mrf.mxu2  ;;  %v10450_v60 = vpop.f32.mrf.mxu3 }
 0xef7   : > { %v9271_v15 = vpop.f32.mrf.mxu1  ;;  %v10886_v52 = vpop.f32.mrf.mxu0 }
 0xefa   : > { %9302 = vmatmul.bf16.gmra.mxu1 %v15032_v11  ;;  %10917 = vmatmul.bf16.gmra.mxu0 %v14702_v20 }
 0xefb   : > { %10178 = vmatmul.bf16.gmra.mxu2 %v14702_v20  ;;  %10481 = vmatmul.bf16.gmra.mxu3 %v14702_v20 }
 0xefe   : > { %v10146_v31 = vpop.f32.mrf.mxu2  ;;  %v10452_v44 = vpop.f32.mrf.mxu3 }
 0xeff   : > { %v9272_v33 = vpop.f32.mrf.mxu1  ;;  %v10887_v21 = vpop.f32.mrf.mxu0 }
 0xf00   : > { %v17502_v33 = vld [vmem:[%s15458_s5] ss:$0 sm:$0xff] }
 0xf06   : > { %v10147_v53 = vpop.f32.mrf.mxu2  ;;  %v10453_v54 = vpop.f32.mrf.mxu3 }
 0xf07   : > { %v9274_v3 = vpop.f32.mrf.mxu1  ;;  %v10889_v40 = vpop.f32.mrf.mxu0 }
 0xf08   : > { %v9455_v14 = vrot.slane %v9274_v3, 2  ;;  %v11070_v60 = vrot.slane %v10889_v40, 2  ;;  %v14704_v3 = vld [vmem:[#allocation2 + $0x2f0] sm:$0xff] }
 0xf0a   : > { %v9567_v29 = vadd.f32 %v9455_v14, %v17249_v28  ;;  %9306 = vmatmul.bf16.gmra.mxu1 %v15033_v10  ;;  %10921 = vmatmul.bf16.gmra.mxu0 %v14703_v37 }
 0xf0b   : > { %10181 = vmatmul.bf16.gmra.mxu2 %v14703_v37  ;;  %10484 = vmatmul.bf16.gmra.mxu3 %v14703_v37 }
 0xf0c   : > { %v10266_v2 = vadd.f32 %v10147_v53, %v9567_v29 }
 0xf0e   : > { %v10150_v50 = vpop.f32.mrf.mxu2  ;;  %v10455_v41 = vpop.f32.mrf.mxu3 }
 0xf0f   : > { %v10596_v36 = vrot.slane %v10455_v41, 1  ;;  %v9276_v63 = vpop.f32.mrf.mxu1  ;;  %v10891_v16 = vpop.f32.mrf.mxu0 }
 0xf10   : > { %v9456_v20 = vrot.slane %v9276_v63, 2  ;;  %v11071_v15 = vrot.slane %v10891_v16, 2 }
 0xf11   : > { %v10692_v52 = vadd.f32 %v10596_v36, %v10266_v2 }
 0xf12   : > { %v9457_v11 = vsel %vm7799_vm9, %v9455_v14, %v9456_v20  ;;  %v11072_v28 = vsel %vm7799_vm9, %v11070_v60, %v11071_v15 }
 0xf13   : > { %v11182_v31 = vadd.f32 %v11070_v60, %v10692_v52  ;;  %v9568_v44 = vadd.f32 %v9457_v11, %v17256_v23  ;;  %v15035_v60 = vld [vmem:[#allocation2 + $0x2d8] sm:$0xff] }
 0xf15   : > { %v17505_v21 = vadd.f32 %v17502_v33, %v11182_v31  ;;  %v10267_v53 = vadd.f32 %v10150_v50, %v9568_v44 }
 0xf16   : > { %v10152_v54 = vpop.f32.mrf.mxu2  ;;  %v10457_v37 = vpop.f32.mrf.mxu3 }
 0xf17   : > { %v10597_v40 = vrot.slane %v10457_v37, 1  ;;  %v9279_v29 = vpop.f32.mrf.mxu1  ;;  %v10894_v10 = vpop.f32.mrf.mxu0 }
 0xf18   : > { %v9458_v2 = vrot.slane %v9279_v29, 2  ;;  %v11073_v41 = vrot.slane %v10894_v10, 2 }
 0xf19   : > { %v10598_v14 = vsel %vm7340_vm12, %v10596_v36, %v10597_v40 }
 0xf1a   : > { %v10693_v63 = vadd.f32 %v10598_v14, %v10267_v53  ;;  %v9459_v16 = vsel %vm7799_vm9, %v9456_v20, %v9458_v2  ;;  %v11074_v23 = vsel %vm7799_vm9, %v11071_v15, %v11073_v41  ;;  %9309 = vmatmul.bf16.gmra.mxu1 %v15035_v60  ;;  %10924 = vmatmul.bf16.gmra.mxu0 %v14704_v3  ;;  %v14705_v41 = vld [vmem:[#allocation2 + $0x2f8] sm:$0xff] }
 0xf1b   : > { %v9569_v50 = vadd.f32 %v9459_v16, %v17261_v9  ;;  %10185 = vmatmul.bf16.gmra.mxu2 %v14704_v3  ;;  %10487 = vmatmul.bf16.gmra.mxu3 %v14704_v3  ;;  %v15036_v3 = vld [vmem:[#allocation2 + $0x2e0] sm:$0xff] }
 0xf1c   : > { %v11183_v52 = vadd.f32 %v11072_v28, %v10693_v63 }
 0xf1d   : > { %v10268_v11 = vadd.f32 %v10152_v54, %v9569_v50 }
 0xf1e   : > { %v17512_v31 = vadd.f32 %v17502_v33, %v11183_v52  ;;  %v10155_v44 = vpop.f32.mrf.mxu2  ;;  %v10460_v37 = vpop.f32.mrf.mxu3 }
 0xf1f   : > { %v10694_v36 = vadd.f32 %v10597_v40, %v10268_v11  ;;  %v9281_v53 = vpop.f32.mrf.mxu1  ;;  %v10896_v29 = vpop.f32.mrf.mxu0  ;;  %v15037_v37 = vld [vmem:[#allocation2 + $0x2e8] sm:$0xff] }
 0xf21   : > { %v11184_v20 = vadd.f32 %v11074_v23, %v10694_v36  ;;  %v14706_v23 = vld [vmem:[#allocation2 + $0x300] sm:$0xff] }
 0xf23   : > { %v17515_v15 = vadd.f32 %v17502_v33, %v11184_v20 }
 0xf26   : > { %v10156_v10 = vpop.f32.mrf.mxu2  ;;  %v10461_v2 = vpop.f32.mrf.mxu3 }
 0xf27   : > { %v9283_v9 = vpop.f32.mrf.mxu1  ;;  %v10898_v14 = vpop.f32.mrf.mxu0 }
 0xf2a   : > { %9314 = vmatmul.bf16.gmra.mxu1 %v15036_v3  ;;  %10929 = vmatmul.bf16.gmra.mxu0 %v14705_v41 }
 0xf2b   : > { %10190 = vmatmul.bf16.gmra.mxu2 %v14705_v41  ;;  %10492 = vmatmul.bf16.gmra.mxu3 %v14705_v41 }
 0xf2e   : > { %v10158_v28 = vpop.f32.mrf.mxu2  ;;  %v10463_v54 = vpop.f32.mrf.mxu3 }
 0xf2f   : > { %v9284_v63 = vpop.f32.mrf.mxu1  ;;  %v10899_v40 = vpop.f32.mrf.mxu0 }
 0xf36   : > { %v10159_v16 = vpop.f32.mrf.mxu2  ;;  %v10464_v60 = vpop.f32.mrf.mxu3 }
 0xf37   : > { %v9286_v50 = vpop.f32.mrf.mxu1  ;;  %v10901_v52 = vpop.f32.mrf.mxu0 }
 0xf38   : > { %v9460_v11 = vrot.slane %v9286_v50, 2  ;;  %v11075_v41 = vrot.slane %v10901_v52, 2  ;;  %v14707_v50 = vld [vmem:[#allocation2 + $0x308] sm:$0xff] }
 0xf3a   : > { %v9570_v44 = vadd.f32 %v9460_v11, %v17266_v13  ;;  %9318 = vmatmul.bf16.gmra.mxu1 %v15037_v37  ;;  %10933 = vmatmul.bf16.gmra.mxu0 %v14706_v23 }
 0xf3b   : > { %10193 = vmatmul.bf16.gmra.mxu2 %v14706_v23  ;;  %10495 = vmatmul.bf16.gmra.mxu3 %v14706_v23 }
 0xf3c   : > { %v10269_v36 = vadd.f32 %v10159_v16, %v9570_v44 }
 0xf3e   : > { %v10162_v53 = vpop.f32.mrf.mxu2  ;;  %v10466_v29 = vpop.f32.mrf.mxu3 }
 0xf3f   : > { %v10599_v20 = vrot.slane %v10466_v29, 1  ;;  %v9288_v10 = vpop.f32.mrf.mxu1  ;;  %v10903_v2 = vpop.f32.mrf.mxu0 }
 0xf40   : > { %v9461_v9 = vrot.slane %v9288_v10, 2  ;;  %v11076_v14 = vrot.slane %v10903_v2, 2 }
 0xf41   : > { %v10695_v3 = vadd.f32 %v10599_v20, %v10269_v36 }
 0xf42   : > { %v9462_v28 = vsel %vm7799_vm9, %v9460_v11, %v9461_v9  ;;  %v11077_v54 = vsel %vm7799_vm9, %v11075_v41, %v11076_v14 }
 0xf43   : > { %v11185_v13 = vadd.f32 %v11075_v41, %v10695_v3  ;;  %v9571_v63 = vadd.f32 %v9462_v28, %v17270_v62  ;;  %v15038_v62 = vld [vmem:[#allocation2 + $0x2f0] sm:$0xff] }
 0xf45   : > { %v17522_v40 = vadd.f32 %v17502_v33, %v11185_v13  ;;  %v10270_v16 = vadd.f32 %v10162_v53, %v9571_v63 }
 0xf46   : > { %v10164_v60 = vpop.f32.mrf.mxu2  ;;  %v10468_v23 = vpop.f32.mrf.mxu3 }
 0xf47   : > { %v10600_v44 = vrot.slane %v10468_v23, 1  ;;  %v9291_v37 = vpop.f32.mrf.mxu1  ;;  %v10906_v52 = vpop.f32.mrf.mxu0 }
 0xf48   : > { %v9463_v29 = vrot.slane %v9291_v37, 2  ;;  %v11078_v10 = vrot.slane %v10906_v52, 2 }
 0xf49   : > { %v10601_v36 = vsel %vm7340_vm12, %v10599_v20, %v10600_v44 }
 0xf4a   : > { %v10696_v11 = vadd.f32 %v10601_v36, %v10270_v16  ;;  %v9464_v2 = vsel %vm7799_vm9, %v9461_v9, %v9463_v29  ;;  %v11079_v41 = vsel %vm7799_vm9, %v11076_v14, %v11078_v10  ;;  %9321 = vmatmul.bf16.gmra.mxu1 %v15038_v62  ;;  %10936 = vmatmul.bf16.gmra.mxu0 %v14707_v50  ;;  %v14708_v10 = vld [vmem:[#allocation2 + $0x310] sm:$0xff] }
 0xf4b   : > { %v9572_v53 = vadd.f32 %v9464_v2, %v17274_v32  ;;  %10197 = vmatmul.bf16.gmra.mxu2 %v14707_v50  ;;  %10498 = vmatmul.bf16.gmra.mxu3 %v14707_v50  ;;  %v15039_v50 = vld [vmem:[#allocation2 + $0x2f8] sm:$0xff] }
 0xf4c   : > { %v11186_v3 = vadd.f32 %v11077_v54, %v10696_v11 }
 0xf4d   : > { %v10271_v28 = vadd.f32 %v10164_v60, %v9572_v53 }
 0xf4e   : > { %v17529_v13 = vadd.f32 %v17502_v33, %v11186_v3  ;;  %v10167_v63 = vpop.f32.mrf.mxu2  ;;  %v10471_v23 = vpop.f32.mrf.mxu3 }
 0xf4f   : > { %v10697_v20 = vadd.f32 %v10600_v44, %v10271_v28  ;;  %v9293_v16 = vpop.f32.mrf.mxu1  ;;  %v10908_v37 = vpop.f32.mrf.mxu0  ;;  %v15040_v23 = vld [vmem:[#allocation2 + $0x300] sm:$0xff] }
 0xf51   : > { %v11187_v9 = vadd.f32 %v11079_v41, %v10697_v20  ;;  %v14709_v41 = vld [vmem:[#allocation2 + $0x318] sm:$0xff] }
 0xf53   : > { %v17532_v14 = vadd.f32 %v17502_v33, %v11187_v9 }
 0xf56   : > { %v10168_v52 = vpop.f32.mrf.mxu2  ;;  %v10472_v29 = vpop.f32.mrf.mxu3 }
 0xf57   : > { %v9295_v32 = vpop.f32.mrf.mxu1  ;;  %v10910_v36 = vpop.f32.mrf.mxu0 }
 0xf5a   : > { %9326 = vmatmul.bf16.gmra.mxu1 %v15039_v50  ;;  %10941 = vmatmul.bf16.gmra.mxu0 %v14708_v10 }
 0xf5b   : > { %10202 = vmatmul.bf16.gmra.mxu2 %v14708_v10  ;;  %10503 = vmatmul.bf16.gmra.mxu3 %v14708_v10 }
 0xf5e   : > { %v10170_v54 = vpop.f32.mrf.mxu2  ;;  %v10474_v60 = vpop.f32.mrf.mxu3 }
 0xf5f   : > { %v9296_v11 = vpop.f32.mrf.mxu1  ;;  %v10911_v44 = vpop.f32.mrf.mxu0 }
 0xf66   : > { %v10171_v2 = vpop.f32.mrf.mxu2  ;;  %v10475_v62 = vpop.f32.mrf.mxu3 }
 0xf67   : > { %v9298_v53 = vpop.f32.mrf.mxu1  ;;  %v10913_v3 = vpop.f32.mrf.mxu0 }
 0xf68   : > { %v9465_v28 = vrot.slane %v9298_v53, 2  ;;  %v11080_v10 = vrot.slane %v10913_v3, 2  ;;  %v14710_v53 = vld [vmem:[#allocation2 + $0x320] sm:$0xff] }
 0xf6a   : > { %v9573_v63 = vadd.f32 %v9465_v28, %v17279_v5  ;;  %9330 = vmatmul.bf16.gmra.mxu1 %v15040_v23  ;;  %10945 = vmatmul.bf16.gmra.mxu0 %v14709_v41 }
 0xf6b   : > { %10205 = vmatmul.bf16.gmra.mxu2 %v14709_v41  ;;  %10506 = vmatmul.bf16.gmra.mxu3 %v14709_v41 }
 0xf6c   : > { %v10272_v20 = vadd.f32 %v10171_v2, %v9573_v63 }
 0xf6e   : > { %v10174_v16 = vpop.f32.mrf.mxu2  ;;  %v10477_v37 = vpop.f32.mrf.mxu3 }
 0xf6f   : > { %v10602_v9 = vrot.slane %v10477_v37, 1  ;;  %v9300_v52 = vpop.f32.mrf.mxu1  ;;  %v10915_v29 = vpop.f32.mrf.mxu0 }
 0xf70   : > { %v9466_v32 = vrot.slane %v9300_v52, 2  ;;  %v11081_v36 = vrot.slane %v10915_v29, 2 }
 0xf71   : > { %v10698_v50 = vadd.f32 %v10602_v9, %v10272_v20 }
 0xf72   : > { %v9467_v54 = vsel %vm7799_vm9, %v9465_v28, %v9466_v32  ;;  %v11082_v60 = vsel %vm7799_vm9, %v11080_v10, %v11081_v36 }
 0xf73   : > { %v11188_v5 = vadd.f32 %v11080_v10, %v10698_v50  ;;  %v9574_v11 = vadd.f32 %v9467_v54, %v17286_v30  ;;  %v15041_v30 = vld [vmem:[#allocation2 + $0x308] sm:$0xff] }
 0xf75   : > { %v17539_v44 = vadd.f32 %v17502_v33, %v11188_v5  ;;  %v10273_v2 = vadd.f32 %v10174_v16, %v9574_v11 }
 0xf76   : > { %v10176_v62 = vpop.f32.mrf.mxu2  ;;  %v10479_v41 = vpop.f32.mrf.mxu3 }
 0xf77   : > { %v10603_v63 = vrot.slane %v10479_v41, 1  ;;  %v9303_v23 = vpop.f32.mrf.mxu1  ;;  %v10918_v3 = vpop.f32.mrf.mxu0 }
 0xf78   : > { %v9468_v37 = vrot.slane %v9303_v23, 2  ;;  %v11083_v52 = vrot.slane %v10918_v3, 2 }
 0xf79   : > { %v10604_v20 = vsel %vm7340_vm12, %v10602_v9, %v10603_v63 }
 0xf7a   : > { %v10699_v28 = vadd.f32 %v10604_v20, %v10273_v2  ;;  %v9469_v29 = vsel %vm7799_vm9, %v9466_v32, %v9468_v37  ;;  %v11084_v10 = vsel %vm7799_vm9, %v11081_v36, %v11083_v52  ;;  %9333 = vmatmul.bf16.gmra.mxu1 %v15041_v30  ;;  %10948 = vmatmul.bf16.gmra.mxu0 %v14710_v53  ;;  %v14711_v52 = vld [vmem:[#allocation2 + $0x328] sm:$0xff] }
 0xf7b   : > { %v9575_v16 = vadd.f32 %v9469_v29, %v17291_v26  ;;  %10209 = vmatmul.bf16.gmra.mxu2 %v14710_v53  ;;  %10509 = vmatmul.bf16.gmra.mxu3 %v14710_v53  ;;  %v15042_v53 = vld [vmem:[#allocation2 + $0x310] sm:$0xff] }
 0xf7c   : > { %v11189_v50 = vadd.f32 %v11082_v60, %v10699_v28 }
 0xf7d   : > { %v10274_v54 = vadd.f32 %v10176_v62, %v9575_v16 }
 0xf7e   : > { %v17546_v5 = vadd.f32 %v17502_v33, %v11189_v50  ;;  %v10179_v11 = vpop.f32.mrf.mxu2  ;;  %v10482_v41 = vpop.f32.mrf.mxu3 }
 0xf7f   : > { %v10700_v9 = vadd.f32 %v10603_v63, %v10274_v54  ;;  %v9305_v2 = vpop.f32.mrf.mxu1  ;;  %v10920_v23 = vpop.f32.mrf.mxu0  ;;  %v15043_v41 = vld [vmem:[#allocation2 + $0x318] sm:$0xff] }
 0xf81   : > { %v11190_v32 = vadd.f32 %v11084_v10, %v10700_v9  ;;  %v14712_v10 = vld [vmem:[#allocation2 + $0x330] sm:$0xff] }
 0xf83   : > { %v17549_v36 = vadd.f32 %v17502_v33, %v11190_v32 }
 0xf86   : > { %v10180_v3 = vpop.f32.mrf.mxu2  ;;  %v10483_v37 = vpop.f32.mrf.mxu3 }
 0xf87   : > { %v9307_v26 = vpop.f32.mrf.mxu1  ;;  %v10922_v20 = vpop.f32.mrf.mxu0 }
 0xf8a   : > { %9338 = vmatmul.bf16.gmra.mxu1 %v15042_v53  ;;  %10953 = vmatmul.bf16.gmra.mxu0 %v14711_v52 }
 0xf8b   : > { %10214 = vmatmul.bf16.gmra.mxu2 %v14711_v52  ;;  %10514 = vmatmul.bf16.gmra.mxu3 %v14711_v52 }
 0xf8e   : > { %v10182_v60 = vpop.f32.mrf.mxu2  ;;  %v10485_v62 = vpop.f32.mrf.mxu3 }
 0xf8f   : > { %v9308_v28 = vpop.f32.mrf.mxu1  ;;  %v10923_v63 = vpop.f32.mrf.mxu0 }
 0xf96   : > { %v10183_v29 = vpop.f32.mrf.mxu2  ;;  %v10486_v30 = vpop.f32.mrf.mxu3 }
 0xf97   : > { %v9310_v16 = vpop.f32.mrf.mxu1  ;;  %v10925_v50 = vpop.f32.mrf.mxu0 }
 0xf98   : > { %v9470_v54 = vrot.slane %v9310_v16, 2  ;;  %v11085_v52 = vrot.slane %v10925_v50, 2  ;;  %v14713_v16 = vld [vmem:[#allocation2 + $0x338] sm:$0xff] }
 0xf9a   : > { %v9576_v11 = vadd.f32 %v9470_v54, %v17296_v61  ;;  %9342 = vmatmul.bf16.gmra.mxu1 %v15043_v41  ;;  %10957 = vmatmul.bf16.gmra.mxu0 %v14712_v10 }
 0xf9b   : > { %10217 = vmatmul.bf16.gmra.mxu2 %v14712_v10  ;;  %10517 = vmatmul.bf16.gmra.mxu3 %v14712_v10 }
 0xf9c   : > { %v10275_v9 = vadd.f32 %v10183_v29, %v9576_v11 }
 0xf9e   : > { %v10186_v2 = vpop.f32.mrf.mxu2  ;;  %v10488_v23 = vpop.f32.mrf.mxu3 }
 0xf9f   : > { %v10605_v32 = vrot.slane %v10488_v23, 1  ;;  %v9312_v3 = vpop.f32.mrf.mxu1  ;;  %v10927_v37 = vpop.f32.mrf.mxu0 }
 0xfa0   : > { %v9471_v26 = vrot.slane %v9312_v3, 2  ;;  %v11086_v20 = vrot.slane %v10927_v37, 2 }
 0xfa1   : > { %v10701_v53 = vadd.f32 %v10605_v32, %v10275_v9 }
 0xfa2   : > { %v9472_v60 = vsel %vm7799_vm9, %v9470_v54, %v9471_v26  ;;  %v11087_v62 = vsel %vm7799_vm9, %v11085_v52, %v11086_v20 }
 0xfa3   : > { %v11191_v61 = vadd.f32 %v11085_v52, %v10701_v53  ;;  %v9577_v28 = vadd.f32 %v9472_v60, %v17300_v22  ;;  %v15044_v22 = vld [vmem:[#allocation2 + $0x320] sm:$0xff] }
 0xfa5   : > { %v17556_v63 = vadd.f32 %v17502_v33, %v11191_v61  ;;  %v10276_v29 = vadd.f32 %v10186_v2, %v9577_v28 }
 0xfa6   : > { %v10188_v30 = vpop.f32.mrf.mxu2  ;;  %v10490_v10 = vpop.f32.mrf.mxu3 }
 0xfa7   : > { %v10606_v11 = vrot.slane %v10490_v10, 1  ;;  %v9315_v41 = vpop.f32.mrf.mxu1  ;;  %v10930_v50 = vpop.f32.mrf.mxu0 }
 0xfa8   : > { %v9473_v23 = vrot.slane %v9315_v41, 2  ;;  %v11088_v3 = vrot.slane %v10930_v50, 2 }
 0xfa9   : > { %v10607_v9 = vsel %vm7340_vm12, %v10605_v32, %v10606_v11 }
 0xfaa   : > { %v10702_v54 = vadd.f32 %v10607_v9, %v10276_v29  ;;  %v9474_v37 = vsel %vm7799_vm9, %v9471_v26, %v9473_v23  ;;  %v11089_v52 = vsel %vm7799_vm9, %v11086_v20, %v11088_v3  ;;  %9345 = vmatmul.bf16.gmra.mxu1 %v15044_v22  ;;  %10960 = vmatmul.bf16.gmra.mxu0 %v14713_v16  ;;  %v14714_v3 = vld [vmem:[#allocation2 + $0x340] sm:$0xff] }
 0xfab   : > { %v9578_v2 = vadd.f32 %v9474_v37, %v17304_v59  ;;  %10221 = vmatmul.bf16.gmra.mxu2 %v14713_v16  ;;  %10520 = vmatmul.bf16.gmra.mxu3 %v14713_v16  ;;  %v15045_v16 = vld [vmem:[#allocation2 + $0x328] sm:$0xff] }
 0xfac   : > { %v11192_v53 = vadd.f32 %v11087_v62, %v10702_v54 }
 0xfad   : > { %v10277_v60 = vadd.f32 %v10188_v30, %v9578_v2 }
 0xfae   : > { %v17563_v61 = vadd.f32 %v17502_v33, %v11192_v53  ;;  %v10191_v28 = vpop.f32.mrf.mxu2  ;;  %v10493_v10 = vpop.f32.mrf.mxu3 }
 0xfaf   : > { %v10703_v32 = vadd.f32 %v10606_v11, %v10277_v60  ;;  %v9317_v29 = vpop.f32.mrf.mxu1  ;;  %v10932_v41 = vpop.f32.mrf.mxu0  ;;  %v15046_v10 = vld [vmem:[#allocation2 + $0x330] sm:$0xff] }
 0xfb1   : > { %v11193_v26 = vadd.f32 %v11089_v52, %v10703_v32  ;;  %v14715_v52 = vld [vmem:[#allocation2 + $0x348] sm:$0xff] }
 0xfb3   : > { %v17566_v20 = vadd.f32 %v17502_v33, %v11193_v26 }
 0xfb6   : > { %v10192_v50 = vpop.f32.mrf.mxu2  ;;  %v10494_v23 = vpop.f32.mrf.mxu3 }
 0xfb7   : > { %v9319_v59 = vpop.f32.mrf.mxu1  ;;  %v10934_v9 = vpop.f32.mrf.mxu0 }
 0xfba   : > { %9350 = vmatmul.bf16.gmra.mxu1 %v15045_v16  ;;  %10965 = vmatmul.bf16.gmra.mxu0 %v14714_v3 }
 0xfbb   : > { %10226 = vmatmul.bf16.gmra.mxu2 %v14714_v3  ;;  %10525 = vmatmul.bf16.gmra.mxu3 %v14714_v3 }
 0xfbe   : > { %v10194_v62 = vpop.f32.mrf.mxu2  ;;  %v10496_v30 = vpop.f32.mrf.mxu3 }
 0xfbf   : > { %v9320_v54 = vpop.f32.mrf.mxu1  ;;  %v10935_v11 = vpop.f32.mrf.mxu0 }
 0xfc6   : > { %v10195_v37 = vpop.f32.mrf.mxu2  ;;  %v10497_v22 = vpop.f32.mrf.mxu3 }
 0xfc7   : > { %v9322_v2 = vpop.f32.mrf.mxu1  ;;  %v10937_v53 = vpop.f32.mrf.mxu0 }
 0xfc8   : > { %v9475_v60 = vrot.slane %v9322_v2, 2  ;;  %v11090_v3 = vrot.slane %v10937_v53, 2  ;;  %v14716_v2 = vld [vmem:[#allocation2 + $0x350] sm:$0xff] }
 0xfca   : > { %v9579_v28 = vadd.f32 %v9475_v60, %v17309_v6  ;;  %9354 = vmatmul.bf16.gmra.mxu1 %v15046_v10  ;;  %10969 = vmatmul.bf16.gmra.mxu0 %v14715_v52 }
 0xfcb   : > { %10229 = vmatmul.bf16.gmra.mxu2 %v14715_v52  ;;  %10528 = vmatmul.bf16.gmra.mxu3 %v14715_v52 }
 0xfcc   : > { %v10278_v32 = vadd.f32 %v10195_v37, %v9579_v28 }
 0xfce   : > { %v10198_v29 = vpop.f32.mrf.mxu2  ;;  %v10499_v41 = vpop.f32.mrf.mxu3 }
 0xfcf   : > { %v10608_v26 = vrot.slane %v10499_v41, 1  ;;  %v9324_v50 = vpop.f32.mrf.mxu1  ;;  %v10939_v23 = vpop.f32.mrf.mxu0 }
 0xfd0   : > { %v9476_v59 = vrot.slane %v9324_v50, 2  ;;  %v11091_v9 = vrot.slane %v10939_v23, 2 }
 0xfd1   : > { %v10704_v16 = vadd.f32 %v10608_v26, %v10278_v32 }
 0xfd2   : > { %v9477_v62 = vsel %vm7799_vm9, %v9475_v60, %v9476_v59  ;;  %v11092_v30 = vsel %vm7799_vm9, %v11090_v3, %v11091_v9 }
 0xfd3   : > { %v11194_v6 = vadd.f32 %v11090_v3, %v10704_v16  ;;  %v9580_v54 = vadd.f32 %v9477_v62, %v17313_v39  ;;  %v15047_v39 = vld [vmem:[#allocation2 + $0x338] sm:$0xff] }
 0xfd5   : > { %v17573_v11 = vadd.f32 %v17502_v33, %v11194_v6  ;;  %v10279_v37 = vadd.f32 %v10198_v29, %v9580_v54 }
 0xfd6   : > { %v10200_v22 = vpop.f32.mrf.mxu2  ;;  %v10501_v52 = vpop.f32.mrf.mxu3 }
 0xfd7   : > { %v10609_v28 = vrot.slane %v10501_v52, 1  ;;  %v9327_v10 = vpop.f32.mrf.mxu1  ;;  %v10942_v53 = vpop.f32.mrf.mxu0 }
 0xfd8   : > { %v9478_v41 = vrot.slane %v9327_v10, 2  ;;  %v11093_v50 = vrot.slane %v10942_v53, 2 }
 0xfd9   : > { %v10610_v32 = vsel %vm7340_vm12, %v10608_v26, %v10609_v28 }
 0xfda   : > { %v10705_v60 = vadd.f32 %v10610_v32, %v10279_v37  ;;  %v9479_v23 = vsel %vm7799_vm9, %v9476_v59, %v9478_v41  ;;  %v11094_v3 = vsel %vm7799_vm9, %v11091_v9, %v11093_v50  ;;  %9357 = vmatmul.bf16.gmra.mxu1 %v15047_v39  ;;  %10972 = vmatmul.bf16.gmra.mxu0 %v14716_v2  ;;  %v14717_v50 = vld [vmem:[#allocation2 + $0x358] sm:$0xff] }
 0xfdb   : > { %v9581_v29 = vadd.f32 %v9479_v23, %v17317_v19  ;;  %10233 = vmatmul.bf16.gmra.mxu2 %v14716_v2  ;;  %10531 = vmatmul.bf16.gmra.mxu3 %v14716_v2  ;;  %v15048_v2 = vld [vmem:[#allocation2 + $0x340] sm:$0xff] }
 0xfdc   : > { %v11195_v16 = vadd.f32 %v11092_v30, %v10705_v60 }
 0xfdd   : > { %v10280_v62 = vadd.f32 %v10200_v22, %v9581_v29 }
 0xfde   : > { %v17580_v6 = vadd.f32 %v17502_v33, %v11195_v16  ;;  %v10203_v54 = vpop.f32.mrf.mxu2  ;;  %v10504_v52 = vpop.f32.mrf.mxu3 }
 0xfdf   : > { %v10706_v26 = vadd.f32 %v10609_v28, %v10280_v62  ;;  %v9329_v37 = vpop.f32.mrf.mxu1  ;;  %v10944_v10 = vpop.f32.mrf.mxu0 }
 0xfe0   : > { %18287 = vst [vmem:[#allocation35_spill] sm:$0xff] %v17580_v6 }
 0xfe1   : > { %v11196_v59 = vadd.f32 %v11094_v3, %v10706_v26 }
 0xfe3   : > { %v17583_v9 = vadd.f32 %v17502_v33, %v11196_v59 }
 0xfe5   : > { %18288 = vst [vmem:[#allocation36_spill] sm:$0xff] %v17583_v9 }
 0xfe6   : > { %v10204_v53 = vpop.f32.mrf.mxu2  ;;  %v10505_v41 = vpop.f32.mrf.mxu3 }
 0xfe7   : > { %v9331_v19 = vpop.f32.mrf.mxu1  ;;  %v10946_v32 = vpop.f32.mrf.mxu0 }
 0xfea   : > { %9362 = vmatmul.bf16.gmra.mxu1 %v15048_v2  ;;  %10977 = vmatmul.bf16.gmra.mxu0 %v14717_v50 }
 0xfeb   : > { %10238 = vmatmul.bf16.gmra.mxu2 %v14717_v50  ;;  %10536 = vmatmul.bf16.gmra.mxu3 %v14717_v50 }
 0xfee   : > { %v10206_v30 = vpop.f32.mrf.mxu2  ;;  %v10507_v22 = vpop.f32.mrf.mxu3 }
 0xfef   : > { %v9332_v60 = vpop.f32.mrf.mxu1  ;;  %v10947_v28 = vpop.f32.mrf.mxu0 }
 0xff6   : > { %v10207_v23 = vpop.f32.mrf.mxu2  ;;  %v10508_v39 = vpop.f32.mrf.mxu3 }
 0xff7   : > { %v9334_v3 = vpop.f32.mrf.mxu1  ;;  %v10949_v29 = vpop.f32.mrf.mxu0 }
 0xff8   : > { %v9480_v16 = vrot.slane %v9334_v3, 2  ;;  %v11095_v53 = vrot.slane %v10949_v29, 2 }
 0xffa   : > { %v9582_v62 = vadd.f32 %v9480_v16, %v17322_v8 }
 0xffc   : > { %v10281_v54 = vadd.f32 %v10207_v23, %v9582_v62 }
 0xffe   : > { %v10210_v52 = vpop.f32.mrf.mxu2  ;;  %v10510_v26 = vpop.f32.mrf.mxu3 }
 0xfff   : > { %v10611_v37 = vrot.slane %v10510_v26, 1  ;;  %v9336_v10 = vpop.f32.mrf.mxu1  ;;  %v10951_v59 = vpop.f32.mrf.mxu0 }
0x1000   : > { %v9481_v41 = vrot.slane %v9336_v10, 2  ;;  %v11096_v50 = vrot.slane %v10951_v59, 2 }
0x1001   : > { %v10707_v19 = vadd.f32 %v10611_v37, %v10281_v54 }
0x1002   : > { %v9482_v32 = vsel %vm7799_vm9, %v9480_v16, %v9481_v41  ;;  %v11097_v2 = vsel %vm7799_vm9, %v11095_v53, %v11096_v50 }
0x1003   : > { %v11197_v30 = vadd.f32 %v11095_v53, %v10707_v19  ;;  %v9583_v22 = vadd.f32 %v9482_v32, %v17326_v42  ;;  %v18290_v53 = vld [vmem:[#allocation40_spill] sm:$0xff] }
0x1005   : > { %v17590_v60 = vadd.f32 %v17502_v33, %v11197_v30  ;;  %v10282_v8 = vadd.f32 %v10210_v52, %v9583_v22 }
0x1006   : > { %v10212_v28 = vpop.f32.mrf.mxu2  ;;  %v10512_v23 = vpop.f32.mrf.mxu3 }
0x1007   : > { %18289 = vst [vmem:[#allocation37_spill] sm:$0xff] %v17590_v60  ;;  %v10612_v39 = vrot.slane %v10512_v23, 1  ;;  %v9339_v3 = vpop.f32.mrf.mxu1  ;;  %v10954_v62 = vpop.f32.mrf.mxu0 }
0x1008   : > { %v9483_v29 = vrot.slane %v9339_v3, 2  ;;  %v11098_v26 = vrot.slane %v10954_v62, 2 }
0x1009   : > { %v10613_v54 = vsel %vm7340_vm12, %v10611_v37, %v10612_v39 }
0x100a   : > { %v10708_v10 = vadd.f32 %v10613_v54, %v10282_v8  ;;  %v9484_v16 = vsel %vm7799_vm9, %v9481_v41, %v9483_v29  ;;  %v11099_v59 = vsel %vm7799_vm9, %v11096_v50, %v11098_v26 }
0x100b   : > { %v9584_v42 = vadd.f32 %v9484_v16, %v18290_v53 }
0x100c   : > { %v11198_v19 = vadd.f32 %v11097_v2, %v10708_v10 }
0x100d   : > { %v10283_v32 = vadd.f32 %v10212_v28, %v9584_v42 }
0x100e   : > { %v17597_v52 = vadd.f32 %v17502_v33, %v11198_v19  ;;  %v10215_v30 = vpop.f32.mrf.mxu2  ;;  %v10515_v22 = vpop.f32.mrf.mxu3 }
0x100f   : > { %v10709_v23 = vadd.f32 %v10612_v39, %v10283_v32  ;;  %v9341_v60 = vpop.f32.mrf.mxu1  ;;  %v10956_v3 = vpop.f32.mrf.mxu0  ;;  %v18293_v39 = vld [vmem:[#allocation42_spill] sm:$0xff] }
0x1010   : > { %18291 = vst [vmem:[#allocation38_spill] sm:$0xff] %v17597_v52 }
0x1011   : > { %v11199_v62 = vadd.f32 %v11099_v59, %v10709_v23 }
0x1013   : > { %v17600_v37 = vadd.f32 %v17502_v33, %v11199_v62 }
0x1015   : > { %18292 = vst [vmem:[#allocation39_spill] sm:$0xff] %v17600_v37 }
0x1016   : > { %v10216_v8 = vpop.f32.mrf.mxu2  ;;  %v10516_v41 = vpop.f32.mrf.mxu3 }
0x1017   : > { %v9343_v29 = vpop.f32.mrf.mxu1  ;;  %v10958_v50 = vpop.f32.mrf.mxu0 }
0x101e   : > { %v10218_v26 = vpop.f32.mrf.mxu2  ;;  %v10518_v54 = vpop.f32.mrf.mxu3 }
0x101f   : > { %v9344_v2 = vpop.f32.mrf.mxu1  ;;  %v10959_v28 = vpop.f32.mrf.mxu0 }
0x1020   : > { %v18294_v2 = vld [vmem:[#allocation44_spill] sm:$0xff] }
0x1026   : > { %v10219_v10 = vpop.f32.mrf.mxu2  ;;  %v10519_v16 = vpop.f32.mrf.mxu3 }
0x1027   : > { %v9346_v53 = vpop.f32.mrf.mxu1  ;;  %v10961_v42 = vpop.f32.mrf.mxu0 }
0x1028   : > { %v9485_v19 = vrot.slane %v9346_v53, 2  ;;  %v11100_v62 = vrot.slane %v10961_v42, 2 }
0x102a   : > { %v9585_v60 = vadd.f32 %v9485_v19, %v18293_v39 }
0x102c   : > { %v10284_v32 = vadd.f32 %v10219_v10, %v9585_v60 }
0x102e   : > { %v10222_v59 = vpop.f32.mrf.mxu2  ;;  %v10521_v30 = vpop.f32.mrf.mxu3 }
0x102f   : > { %v10614_v22 = vrot.slane %v10521_v30, 1  ;;  %v9348_v23 = vpop.f32.mrf.mxu1  ;;  %v10963_v3 = vpop.f32.mrf.mxu0 }
0x1030   : > { %v9486_v8 = vrot.slane %v9348_v23, 2  ;;  %v11101_v41 = vrot.slane %v10963_v3, 2  ;;  %v18296_v3 = vld [vmem:[#allocation46_spill] sm:$0xff] }
0x1031   : > { %v10710_v29 = vadd.f32 %v10614_v22, %v10284_v32 }
0x1032   : > { %v9487_v50 = vsel %vm7799_vm9, %v9485_v19, %v9486_v8  ;;  %v11102_v26 = vsel %vm7799_vm9, %v11100_v62, %v11101_v41 }
0x1033   : > { %v11200_v54 = vadd.f32 %v11100_v62, %v10710_v29  ;;  %v9586_v28 = vadd.f32 %v9487_v50, %v18294_v2 }
0x1035   : > { %v17607_v16 = vadd.f32 %v17502_v33, %v11200_v54  ;;  %v10285_v10 = vadd.f32 %v10222_v59, %v9586_v28 }
0x1036   : > { %v10224_v53 = vpop.f32.mrf.mxu2  ;;  %v10523_v39 = vpop.f32.mrf.mxu3 }
0x1037   : > { %18295 = vst [vmem:[#allocation41_spill] sm:$0xff] %v17607_v16  ;;  %v10615_v60 = vrot.slane %v10523_v39, 1  ;;  %v9351_v30 = vpop.f32.mrf.mxu1  ;;  %v10966_v37 = vpop.f32.mrf.mxu0 }
0x1038   : > { %v9488_v42 = vrot.slane %v9351_v30, 2  ;;  %v11103_v29 = vrot.slane %v10966_v37, 2 }
0x1039   : > { %v10616_v23 = vsel %vm7340_vm12, %v10614_v22, %v10615_v60 }
0x103a   : > { %v10711_v32 = vadd.f32 %v10616_v23, %v10285_v10  ;;  %v9489_v19 = vsel %vm7799_vm9, %v9486_v8, %v9488_v42  ;;  %v11104_v30 = vsel %vm7799_vm9, %v11101_v41, %v11103_v29 }
0x103b   : > { %v9587_v52 = vadd.f32 %v9489_v19, %v18296_v3 }
0x103c   : > { %v11201_v62 = vadd.f32 %v11102_v26, %v10711_v32 }
0x103d   : > { %v10286_v50 = vadd.f32 %v10224_v53, %v9587_v52 }
0x103e   : > { %v17613_v54 = vadd.f32 %v17502_v33, %v11201_v62  ;;  %v10227_v59 = vpop.f32.mrf.mxu2  ;;  %v10526_v2 = vpop.f32.mrf.mxu3 }
0x103f   : > { %v10712_v28 = vadd.f32 %v10615_v60, %v10286_v50  ;;  %v9353_v39 = vpop.f32.mrf.mxu1  ;;  %v10968_v16 = vpop.f32.mrf.mxu0 }
0x1040   : > { %18297 = vst [vmem:[#allocation43_spill] sm:$0xff] %v17613_v54  ;;  %v18299_v16 = vld [vmem:[#allocation48_spill] sm:$0xff] }
0x1041   : > { %v11202_v9 = vadd.f32 %v11104_v30, %v10712_v28 }
0x1043   : > { %v17617_v22 = vadd.f32 %v17502_v33, %v11202_v9 }
0x1045   : > { %18298 = vst [vmem:[#allocation45_spill] sm:$0xff] %v17617_v22 }
0x1046   : > { %v10228_v8 = vpop.f32.mrf.mxu2  ;;  %v10527_v10 = vpop.f32.mrf.mxu3 }
0x1047   : > { %v9355_v42 = vpop.f32.mrf.mxu1  ;;  %v10970_v26 = vpop.f32.mrf.mxu0 }
0x1048   : > { %v18300_v26 = vld [vmem:[#allocation50_spill] sm:$0xff] }
0x104e   : > { %v10230_v37 = vpop.f32.mrf.mxu2  ;;  %v10529_v52 = vpop.f32.mrf.mxu3 }
0x104f   : > { %v9356_v53 = vpop.f32.mrf.mxu1  ;;  %v10971_v23 = vpop.f32.mrf.mxu0 }
0x1056   : > { %v10231_v32 = vpop.f32.mrf.mxu2  ;;  %v10530_v19 = vpop.f32.mrf.mxu3 }
0x1057   : > { %v9358_v3 = vpop.f32.mrf.mxu1  ;;  %v10973_v60 = vpop.f32.mrf.mxu0 }
0x1058   : > { %v9490_v62 = vrot.slane %v9358_v3, 2  ;;  %v11105_v30 = vrot.slane %v10973_v60, 2 }
0x105a   : > { %v9588_v50 = vadd.f32 %v9490_v62, %v18299_v16 }
0x105c   : > { %v10287_v59 = vadd.f32 %v10231_v32, %v9588_v50 }
0x105e   : > { %v10234_v41 = vpop.f32.mrf.mxu2  ;;  %v10532_v29 = vpop.f32.mrf.mxu3 }
0x105f   : > { %v10617_v9 = vrot.slane %v10532_v29, 1  ;;  %v9360_v2 = vpop.f32.mrf.mxu1  ;;  %v10975_v28 = vpop.f32.mrf.mxu0 }
0x1060   : > { %v9491_v39 = vrot.slane %v9360_v2, 2  ;;  %v11106_v19 = vrot.slane %v10975_v28, 2 }
0x1061   : > { %v10713_v8 = vadd.f32 %v10617_v9, %v10287_v59 }
0x1062   : > { %v9492_v10 = vsel %vm7799_vm9, %v9490_v62, %v9491_v39  ;;  %v11107_v62 = vsel %vm7799_vm9, %v11105_v30, %v11106_v19 }
0x1063   : > { %v11203_v42 = vadd.f32 %v11105_v30, %v10713_v8  ;;  %v9589_v37 = vadd.f32 %v9492_v10, %v18300_v26  ;;  %v18302_v8 = vld [vmem:[#allocation34_spill] sm:$0xff] }
0x1065   : > { %v17623_v52 = vadd.f32 %v17502_v33, %v11203_v42  ;;  %v10288_v50 = vadd.f32 %v10234_v41, %v9589_v37 }
0x1066   : > { %v10236_v53 = vpop.f32.mrf.mxu2  ;;  %v10534_v23 = vpop.f32.mrf.mxu3 }
0x1067   : > { %18301 = vst [vmem:[#allocation47_spill] sm:$0xff] %v17623_v52  ;;  %v10618_v3 = vrot.slane %v10534_v23, 1  ;;  %v9363_v16 = vpop.f32.mrf.mxu1  ;;  %v10978_v32 = vpop.f32.mrf.mxu0 }
0x1068   : > { %v9493_v29 = vrot.slane %v9363_v16, 2  ;;  %v11108_v42 = vrot.slane %v10978_v32, 2 }
0x1069   : > { %v10619_v2 = vsel %vm7340_vm12, %v10617_v9, %v10618_v3 }
0x106a   : > { %v10714_v60 = vadd.f32 %v10619_v2, %v10288_v50  ;;  %v9494_v59 = vsel %vm7799_vm9, %v9491_v39, %v9493_v29  ;;  %v11109_v9 = vsel %vm7799_vm9, %v11106_v19, %v11108_v42 }
0x106b   : > { %v9590_v10 = vadd.f32 %v9494_v59, %v18302_v8 }
0x106c   : > { %v11204_v26 = vadd.f32 %v11107_v62, %v10714_v60 }
0x106d   : > { %v10289_v52 = vadd.f32 %v10236_v53, %v9590_v10 }
0x106e   : > { %v17630_v22 = vadd.f32 %v17502_v33, %v11204_v26  ;;  %v10239_v28 = vpop.f32.mrf.mxu2  ;;  %v10537_v23 = vpop.f32.mrf.mxu3 }
0x106f   : > { %v10715_v54 = vadd.f32 %v10618_v3, %v10289_v52  ;;  %v9365_v41 = vpop.f32.mrf.mxu1  ;;  %v10980_v37 = vpop.f32.mrf.mxu0 }
0x1071   : > { %v11205_v16 = vadd.f32 %v11109_v9, %v10715_v54 }
0x1072   : > { %11261 = sbr.rel (%p14287_p3) target bundleno = 4324 (0x10e4), region = 72 }
0x1073   : > { %v17634_v39 = vadd.f32 %v17502_v33, %v11205_v16 }
0x1076   : > { %v10240_v30 = vpop.f32.mrf.mxu2  ;;  %v10538_v50 = vpop.f32.mrf.mxu3 }
0x1077   : > { %vm11262_vm10 = vcmp.ge.f32.partialorder %v17366_v48, 0.0  ;;  %vm11263_vm11 = vcmp.ge.f32.partialorder %v17373_v38, 0.0  ;;  %v11310_v53 = vmul.f32 0.2, %v17366_v48  ;;  %v11311_v52 = vmul.f32 0.2, %v17373_v38 }
0x1078   : > { %vm11454_vm13 = vsmask.f32 256  ;;  %vm11455_vm14 = vsmask.f32 4368  ;;  %vm11264_vm15 = vcmp.ge.f32.partialorder %v17376_v0, 0.0  ;;  %vm11265_vm0 = vcmp.ge.f32.partialorder %v17383_v49, 0.0 }
0x1079   : > { %v11358_v33 = vsel %vm11262_vm10, %v17366_v48, %v11310_v53  ;;  %v11359_v54 = vsel %vm11263_vm11, %v17373_v38, %v11311_v52  ;;  %v11312_v19 = vmul.f32 0.2, %v17376_v0  ;;  %vm11266_vm1 = vcmp.ge.f32.partialorder %v17390_v7, 0.0  ;;  %vm17661_vm5 = vmor %vm11454_vm13, %vm11455_vm14 }
0x107a   : > { %v11406_v3 = vpack.c.bf16 %v11358_v33, %v11358_v33  ;;  %v11407_v32 = vpack.c.bf16 %v11359_v54, %v11359_v54  ;;  %v11313_v29 = vmul.f32 0.2, %v17383_v49  ;;  %v11314_v2 = vmul.f32 0.2, %v17390_v7 }
0x107b   : > { %v11360_v60 = vsel %vm11264_vm15, %v17376_v0, %v11312_v19  ;;  %vm11267_vm2 = vcmp.ge.f32.partialorder %v17393_v46, 0.0  ;;  %v11315_v59 = vmul.f32 0.2, %v17393_v46  ;;  %vm11268_vm3 = vcmp.ge.f32.partialorder %v17400_v18, 0.0 }
0x107c   : > { %v11458_v62 = vshrl.u32 %v11406_v3, 16  ;;  %v11463_v8 = vshrl.u32 %v11407_v32, 16  ;;  %v11466_v10 = vshll.u32 %v11407_v32, 16  ;;  %v11408_v26 = vpack.c.bf16 %v11360_v60, %v11360_v60 }
0x107d   : > { %v11361_v42 = vsel %vm11265_vm0, %v17383_v49, %v11313_v29  ;;  %v11362_v28 = vsel %vm11266_vm1, %v17390_v7, %v11314_v2  ;;  %v11363_v23 = vsel %vm11267_vm2, %v17393_v46, %v11315_v59  ;;  %vm11269_vm4 = vcmp.ge.f32.partialorder %v17407_v1, 0.0 }
0x107e   : > { %v14288_v41 = vrot.slane %v11458_v62, 11  ;;  %v11465_v37 = vrot.slane %v11463_v8, 7  ;;  %v11472_v9 = vshrl.u32 %v11408_v26, 16  ;;  %v11475_v16 = vshll.u32 %v11408_v26, 16 }
0x107f   : > { %v11409_v50 = vpack.c.bf16 %v11361_v42, %v11361_v42  ;;  %v11410_v53 = vpack.c.bf16 %v11362_v28, %v11362_v28  ;;  %v11411_v52 = vpack.c.bf16 %v11363_v23, %v11363_v23  ;;  %v11316_v33 = vmul.f32 0.2, %v17400_v18 }
0x1080   : > { %v11468_v54 = vor.u32 %v11466_v10, %v11465_v37  ;;  %v11470_v19 = vrot.slane %v11465_v37, 4  ;;  %v11474_v3 = vrot.slane %v11472_v9, 7  ;;  %v11317_v32 = vmul.f32 0.2, %v17407_v1 }
0x1081   : > { %v11480_v29 = vshrl.u32 %v11409_v50, 16  ;;  %v11485_v2 = vshrl.u32 %v11410_v53, 16  ;;  %v11488_v60 = vshll.u32 %v11410_v53, 16  ;;  %v11494_v59 = vshrl.u32 %v11411_v52, 16 }
0x1082   : > { %v11469_v62 = vsel %vm17661_vm5, %v14288_v41, %v11468_v54  ;;  %v11477_v8 = vor.u32 %v11475_v16, %v11474_v3  ;;  %v11497_v26 = vshll.u32 %v11411_v52, 16  ;;  %v11364_v42 = vsel %vm11268_vm3, %v17400_v18, %v11316_v33 }
0x1083   : > { %11842 = vst [vmem:[#allocation2 + $0x20] sm:$0xf] %v11469_v62  ;;  %v14289_v28 = vrot.slane %v11480_v29, 11  ;;  %v11487_v10 = vrot.slane %v11485_v2, 7  ;;  %v11496_v23 = vrot.slane %v11494_v59, 7  ;;  %v11365_v37 = vsel %vm11269_vm4, %v17407_v1, %v11317_v32 }
0x1084   : > { %v11478_v9 = vsel %vm17661_vm5, %v11470_v19, %v11477_v8  ;;  %v11412_v50 = vpack.c.bf16 %v11364_v42, %v11364_v42  ;;  %v11413_v53 = vpack.c.bf16 %v11365_v37, %v11365_v37  ;;  %vm11270_vm6 = vcmp.ge.f32.partialorder %v17410_v4, 0.0 }
0x1085   : > { %11843 = vst [vmem:[#allocation2 + $0x24] sm:$0xf] %v11478_v9  ;;  %v11490_v41 = vor.u32 %v11488_v60, %v11487_v10  ;;  %v11492_v16 = vrot.slane %v11487_v10, 4  ;;  %v11499_v52 = vor.u32 %v11497_v26, %v11496_v23  ;;  %v11318_v33 = vmul.f32 0.2, %v17410_v4 }
0x1086   : > { %v11502_v54 = vshrl.u32 %v11412_v50, 16  ;;  %v11507_v3 = vshrl.u32 %v11413_v53, 16  ;;  %v11510_v29 = vshll.u32 %v11413_v53, 16  ;;  %vm11271_vm7 = vcmp.ge.f32.partialorder %v17417_v17, 0.0 }
0x1087   : > { %v11491_v32 = vsel %vm17661_vm5, %v14289_v28, %v11490_v41  ;;  %v11500_v19 = vsel %vm17661_vm5, %v11492_v16, %v11499_v52  ;;  %v11366_v2 = vsel %vm11270_vm6, %v17410_v4, %v11318_v33  ;;  %vm11272_vm8 = vcmp.ge.f32.partialorder %v17424_v51, 0.0 }
0x1088   : > { %11844 = vst [vmem:[#allocation2 + $0x38] sm:$0xf] %v11491_v32  ;;  %v14290_v60 = vrot.slane %v11502_v54, 11  ;;  %v11509_v59 = vrot.slane %v11507_v3, 7  ;;  %v11414_v62 = vpack.c.bf16 %v11366_v2, %v11366_v2  ;;  %v11319_v8 = vmul.f32 0.2, %v17417_v17 }
0x1089   : > { %11845 = vst [vmem:[#allocation2 + $0x3c] sm:$0xf] %v11500_v19  ;;  %v11320_v26 = vmul.f32 0.2, %v17424_v51  ;;  %vm11273_vm12 = vcmp.ge.f32.partialorder %v17427_v56, 0.0  ;;  %vm11274_vm9 = vcmp.ge.f32.partialorder %v17434_v25, 0.0 }
0x108a   : > { %v11512_v42 = vor.u32 %v11510_v29, %v11509_v59  ;;  %v11514_v28 = vrot.slane %v11509_v59, 4  ;;  %v11516_v10 = vshrl.u32 %v11414_v62, 16  ;;  %v11519_v23 = vshll.u32 %v11414_v62, 16 }
0x108b   : > { %v11367_v37 = vsel %vm11271_vm7, %v17417_v17, %v11319_v8  ;;  %v11368_v9 = vsel %vm11272_vm8, %v17424_v51, %v11320_v26  ;;  %v11321_v50 = vmul.f32 0.2, %v17427_v56  ;;  %vm11275_vm10 = vcmp.ge.f32.partialorder %v17441_v47, 0.0 }
0x108c   : > { %v11513_v53 = vsel %vm17661_vm5, %v14290_v60, %v11512_v42  ;;  %v11518_v41 = vrot.slane %v11516_v10, 7  ;;  %v11415_v16 = vpack.c.bf16 %v11367_v37, %v11367_v37  ;;  %v11416_v52 = vpack.c.bf16 %v11368_v9, %v11368_v9 }
0x108d   : > { %11846 = vst [vmem:[#allocation2 + $0x50] sm:$0xf] %v11513_v53  ;;  %v11369_v33 = vsel %vm11273_vm12, %v17427_v56, %v11321_v50  ;;  %v11322_v54 = vmul.f32 0.2, %v17434_v25  ;;  %v11323_v3 = vmul.f32 0.2, %v17441_v47 }
0x108e   : > { %v11521_v29 = vor.u32 %v11519_v23, %v11518_v41  ;;  %v11524_v32 = vshrl.u32 %v11415_v16, 16  ;;  %v11529_v19 = vshrl.u32 %v11416_v52, 16  ;;  %v11532_v2 = vshll.u32 %v11416_v52, 16 }
0x108f   : > { %v11417_v59 = vpack.c.bf16 %v11369_v33, %v11369_v33  ;;  %v11370_v62 = vsel %vm11274_vm9, %v17434_v25, %v11322_v54  ;;  %v11371_v60 = vsel %vm11275_vm10, %v17441_v47, %v11323_v3  ;;  %vm11276_vm11 = vcmp.ge.f32.partialorder %v17444_v45, 0.0 }
0x1090   : > { %v11522_v8 = vsel %vm17661_vm5, %v11514_v28, %v11521_v29  ;;  %v14291_v26 = vrot.slane %v11524_v32, 11  ;;  %v11531_v42 = vrot.slane %v11529_v19, 7  ;;  %v11418_v10 = vpack.c.bf16 %v11370_v62, %v11370_v62 }
0x1091   : > { %11847 = vst [vmem:[#allocation2 + $0x54] sm:$0xf] %v11522_v8  ;;  %v11538_v23 = vshrl.u32 %v11417_v59, 16  ;;  %v11541_v37 = vshll.u32 %v11417_v59, 16  ;;  %v11419_v9 = vpack.c.bf16 %v11371_v60, %v11371_v60  ;;  %v11324_v50 = vmul.f32 0.2, %v17444_v45 }
0x1092   : > { %v11534_v53 = vor.u32 %v11532_v2, %v11531_v42  ;;  %v11536_v41 = vrot.slane %v11531_v42, 4  ;;  %v11546_v16 = vshrl.u32 %v11418_v10, 16  ;;  %vm11277_vm13 = vcmp.ge.f32.partialorder %v17451_v12, 0.0 }
0x1093   : > { %v11540_v52 = vrot.slane %v11538_v23, 7  ;;  %v11551_v33 = vshrl.u32 %v11419_v9, 16  ;;  %v11554_v54 = vshll.u32 %v11419_v9, 16  ;;  %v11372_v28 = vsel %vm11276_vm11, %v17444_v45, %v11324_v50 }
0x1094   : > { %v11535_v3 = vsel %vm17661_vm5, %v14291_v26, %v11534_v53  ;;  %v14292_v29 = vrot.slane %v11546_v16, 11  ;;  %v11420_v32 = vpack.c.bf16 %v11372_v28, %v11372_v28  ;;  %vm11278_vm14 = vcmp.ge.f32.partialorder %v17458_v24, 0.0 }
0x1095   : > { %11848 = vst [vmem:[#allocation2 + $0x68] sm:$0xf] %v11535_v3  ;;  %v11543_v19 = vor.u32 %v11541_v37, %v11540_v52  ;;  %v11553_v2 = vrot.slane %v11551_v33, 7  ;;  %v11325_v59 = vmul.f32 0.2, %v17451_v12  ;;  %vm11279_vm15 = vcmp.ge.f32.partialorder %v17461_v57, 0.0 }
0x1096   : > { %v11560_v62 = vshrl.u32 %v11420_v32, 16  ;;  %v11563_v60 = vshll.u32 %v11420_v32, 16  ;;  %v11326_v8 = vmul.f32 0.2, %v17458_v24  ;;  %v11327_v42 = vmul.f32 0.2, %v17461_v57 }
0x1097   : > { %v11544_v26 = vsel %vm17661_vm5, %v11536_v41, %v11543_v19  ;;  %v11556_v10 = vor.u32 %v11554_v54, %v11553_v2  ;;  %v11558_v23 = vrot.slane %v11553_v2, 4  ;;  %v11373_v37 = vsel %vm11277_vm13, %v17451_v12, %v11325_v59 }
0x1098   : > { %11849 = vst [vmem:[#allocation2 + $0x6c] sm:$0xf] %v11544_v26  ;;  %v11562_v9 = vrot.slane %v11560_v62, 7  ;;  %v11374_v50 = vsel %vm11278_vm14, %v17458_v24, %v11326_v8  ;;  %v11421_v53 = vpack.c.bf16 %v11373_v37, %v11373_v37  ;;  %v11375_v16 = vsel %vm11279_vm15, %v17461_v57, %v11327_v42 }
0x1099   : > { %v11557_v52 = vsel %vm17661_vm5, %v14292_v29, %v11556_v10  ;;  %v11422_v33 = vpack.c.bf16 %v11374_v50, %v11374_v50  ;;  %v11423_v41 = vpack.c.bf16 %v11375_v16, %v11375_v16  ;;  %vm11280_vm0 = vcmp.ge.f32.partialorder %v17468_v35, 0.0 }
0x109a   : > { %11850 = vst [vmem:[#allocation2 + $0x80] sm:$0xf] %v11557_v52  ;;  %v11565_v54 = vor.u32 %v11563_v60, %v11562_v9  ;;  %v11568_v28 = vshrl.u32 %v11421_v53, 16  ;;  %vm11281_vm1 = vcmp.ge.f32.partialorder %v17475_v55, 0.0  ;;  %v11328_v3 = vmul.f32 0.2, %v17468_v35 }
0x109b   : > { %v11573_v32 = vshrl.u32 %v11422_v33, 16  ;;  %v11576_v19 = vshll.u32 %v11422_v33, 16  ;;  %v11582_v2 = vshrl.u32 %v11423_v41, 16  ;;  %v11585_v59 = vshll.u32 %v11423_v41, 16 }
0x109c   : > { %v11566_v62 = vsel %vm17661_vm5, %v11558_v23, %v11565_v54  ;;  %v14293_v8 = vrot.slane %v11568_v28, 11  ;;  %v11329_v29 = vmul.f32 0.2, %v17475_v55  ;;  %v11376_v42 = vsel %vm11280_vm0, %v17468_v35, %v11328_v3 }
0x109d   : > { %11851 = vst [vmem:[#allocation2 + $0x84] sm:$0xf] %v11566_v62  ;;  %v11575_v26 = vrot.slane %v11573_v32, 7  ;;  %v11584_v60 = vrot.slane %v11582_v2, 7  ;;  %v11424_v10 = vpack.c.bf16 %v11376_v42, %v11376_v42  ;;  %vm11282_vm2 = vcmp.ge.f32.partialorder %v17478_v34, 0.0 }
0x109e   : > { %v11377_v37 = vsel %vm11281_vm1, %v17475_v55, %v11329_v29  ;;  %v11330_v9 = vmul.f32 0.2, %v17478_v34  ;;  %vm11283_vm3 = vcmp.ge.f32.partialorder %v17485_v43, 0.0  ;;  %vm11284_vm4 = vcmp.ge.f32.partialorder %v17492_v58, 0.0 }
0x109f   : > { %v11578_v23 = vor.u32 %v11576_v19, %v11575_v26  ;;  %v11580_v50 = vrot.slane %v11575_v26, 4  ;;  %v11587_v53 = vor.u32 %v11585_v59, %v11584_v60  ;;  %v11425_v16 = vpack.c.bf16 %v11377_v37, %v11377_v37 }
0x10a0   : > { %v11590_v52 = vshrl.u32 %v11424_v10, 16  ;;  %v11378_v33 = vsel %vm11282_vm2, %v17478_v34, %v11330_v9  ;;  %v11331_v41 = vmul.f32 0.2, %v17485_v43  ;;  %v11332_v54 = vmul.f32 0.2, %v17492_v58 }
0x10a1   : > { %v11579_v28 = vsel %vm17661_vm5, %v14293_v8, %v11578_v23  ;;  %v11588_v3 = vsel %vm17661_vm5, %v11580_v50, %v11587_v53  ;;  %v11595_v32 = vshrl.u32 %v11425_v16, 16  ;;  %v11598_v2 = vshll.u32 %v11425_v16, 16 }
0x10a2   : > { %11852 = vst [vmem:[#allocation2 + $0x98] sm:$0xf] %v11579_v28  ;;  %v14294_v19 = vrot.slane %v11590_v52, 11  ;;  %v11426_v62 = vpack.c.bf16 %v11378_v33, %v11378_v33  ;;  %v11379_v59 = vsel %vm11283_vm3, %v17485_v43, %v11331_v41  ;;  %v11380_v29 = vsel %vm11284_vm4, %v17492_v58, %v11332_v54 }
0x10a3   : > { %11853 = vst [vmem:[#allocation2 + $0x9c] sm:$0xf] %v11588_v3  ;;  %v11597_v42 = vrot.slane %v11595_v32, 7  ;;  %v11427_v26 = vpack.c.bf16 %v11379_v59, %v11379_v59  ;;  %v11428_v8 = vpack.c.bf16 %v11380_v29, %v11380_v29  ;;  %vm11285_vm6 = vcmp.ge.f32.partialorder %v17495_v27, 0.0 }
0x10a4   : > { %v11604_v60 = vshrl.u32 %v11426_v62, 16  ;;  %v11607_v10 = vshll.u32 %v11426_v62, 16  ;;  %v11333_v37 = vmul.f32 0.2, %v17495_v27  ;;  %vm11286_vm7 = vcmp.ge.f32.partialorder %v17505_v21, 0.0 }
0x10a5   : > { %v11600_v9 = vor.u32 %v11598_v2, %v11597_v42  ;;  %v11602_v23 = vrot.slane %v11597_v42, 4  ;;  %v11612_v50 = vshrl.u32 %v11427_v26, 16  ;;  %v11617_v53 = vshrl.u32 %v11428_v8, 16 }
0x10a6   : > { %v11606_v16 = vrot.slane %v11604_v60, 7  ;;  %v11620_v52 = vshll.u32 %v11428_v8, 16  ;;  %v11381_v33 = vsel %vm11285_vm6, %v17495_v27, %v11333_v37  ;;  %vm11287_vm8 = vcmp.ge.f32.partialorder %v17512_v31, 0.0 }
0x10a7   : > { %v11601_v41 = vsel %vm17661_vm5, %v14294_v19, %v11600_v9  ;;  %v14295_v54 = vrot.slane %v11612_v50, 11  ;;  %v11619_v28 = vrot.slane %v11617_v53, 7  ;;  %v11429_v3 = vpack.c.bf16 %v11381_v33, %v11381_v33 }
0x10a8   : > { %11854 = vst [vmem:[#allocation2 + $0xb0] sm:$0xf] %v11601_v41  ;;  %v11609_v32 = vor.u32 %v11607_v10, %v11606_v16  ;;  %v11334_v62 = vmul.f32 0.2, %v17505_v21  ;;  %v11335_v2 = vmul.f32 0.2, %v17512_v31 }
0x10a9   : > { %v11622_v59 = vor.u32 %v11620_v52, %v11619_v28  ;;  %v11624_v29 = vrot.slane %v11619_v28, 4  ;;  %v11626_v42 = vshrl.u32 %v11429_v3, 16  ;;  %v11629_v26 = vshll.u32 %v11429_v3, 16 }
0x10aa   : > { %v11610_v8 = vsel %vm17661_vm5, %v11602_v23, %v11609_v32  ;;  %v11382_v19 = vsel %vm11286_vm7, %v17505_v21, %v11334_v62  ;;  %v11383_v60 = vsel %vm11287_vm8, %v17512_v31, %v11335_v2  ;;  %vm11288_vm12 = vcmp.ge.f32.partialorder %v17515_v15, 0.0 }
0x10ab   : > { %11855 = vst [vmem:[#allocation2 + $0xb4] sm:$0xf] %v11610_v8  ;;  %v11623_v10 = vsel %vm17661_vm5, %v14295_v54, %v11622_v59  ;;  %v11628_v37 = vrot.slane %v11626_v42, 7  ;;  %v11430_v9 = vpack.c.bf16 %v11382_v19, %v11382_v19  ;;  %v11431_v50 = vpack.c.bf16 %v11383_v60, %v11383_v60 }
0x10ac   : > { %11856 = vst [vmem:[#allocation2 + $0xc8] sm:$0xf] %v11623_v10  ;;  %v11336_v53 = vmul.f32 0.2, %v17515_v15  ;;  %vm11289_vm9 = vcmp.ge.f32.partialorder %v17522_v40, 0.0  ;;  %vm11290_vm10 = vcmp.ge.f32.partialorder %v17529_v13, 0.0 }
0x10ad   : > { %v11631_v23 = vor.u32 %v11629_v26, %v11628_v37  ;;  %v11634_v16 = vshrl.u32 %v11430_v9, 16  ;;  %v11639_v52 = vshrl.u32 %v11431_v50, 16  ;;  %v11642_v33 = vshll.u32 %v11431_v50, 16 }
0x10ae   : > { %v11384_v41 = vsel %vm11288_vm12, %v17515_v15, %v11336_v53  ;;  %v11337_v28 = vmul.f32 0.2, %v17522_v40  ;;  %v11338_v54 = vmul.f32 0.2, %v17529_v13  ;;  %vm11291_vm11 = vcmp.ge.f32.partialorder %v17532_v14, 0.0 }
0x10af   : > { %v11632_v3 = vsel %vm17661_vm5, %v11624_v29, %v11631_v23  ;;  %v14296_v32 = vrot.slane %v11634_v16, 11  ;;  %v11641_v62 = vrot.slane %v11639_v52, 7  ;;  %v11432_v2 = vpack.c.bf16 %v11384_v41, %v11384_v41 }
0x10b0   : > { %11857 = vst [vmem:[#allocation2 + $0xcc] sm:$0xf] %v11632_v3  ;;  %v11385_v59 = vsel %vm11289_vm9, %v17522_v40, %v11337_v28  ;;  %v11386_v42 = vsel %vm11290_vm10, %v17529_v13, %v11338_v54  ;;  %v11339_v26 = vmul.f32 0.2, %v17532_v14  ;;  %vm11292_vm13 = vcmp.ge.f32.partialorder %v17539_v44, 0.0 }
0x10b1   : > { %v11644_v8 = vor.u32 %v11642_v33, %v11641_v62  ;;  %v11646_v19 = vrot.slane %v11641_v62, 4  ;;  %v11648_v60 = vshrl.u32 %v11432_v2, 16  ;;  %v11651_v10 = vshll.u32 %v11432_v2, 16 }
0x10b2   : > { %v11433_v37 = vpack.c.bf16 %v11385_v59, %v11385_v59  ;;  %v11434_v9 = vpack.c.bf16 %v11386_v42, %v11386_v42  ;;  %v11387_v29 = vsel %vm11291_vm11, %v17532_v14, %v11339_v26  ;;  %vm11293_vm14 = vcmp.ge.f32.partialorder %v17546_v5, 0.0 }
0x10b3   : > { %v11645_v50 = vsel %vm17661_vm5, %v14296_v32, %v11644_v8  ;;  %v11650_v53 = vrot.slane %v11648_v60, 7  ;;  %v11435_v23 = vpack.c.bf16 %v11387_v29, %v11387_v29  ;;  %v11340_v16 = vmul.f32 0.2, %v17539_v44 }
0x10b4   : > { %11858 = vst [vmem:[#allocation2 + $0xe0] sm:$0xf] %v11645_v50  ;;  %v11656_v52 = vshrl.u32 %v11433_v37, 16  ;;  %v11661_v33 = vshrl.u32 %v11434_v9, 16  ;;  %v11664_v41 = vshll.u32 %v11434_v9, 16  ;;  %vm11294_vm15 = vcmp.ge.f32.partialorder %v17549_v36, 0.0 }
0x10b5   : > { %v11653_v28 = vor.u32 %v11651_v10, %v11650_v53  ;;  %v11670_v54 = vshrl.u32 %v11435_v23, 16  ;;  %v11673_v3 = vshll.u32 %v11435_v23, 16  ;;  %v11341_v62 = vmul.f32 0.2, %v17546_v5 }
0x10b6   : > { %v14297_v2 = vrot.slane %v11656_v52, 11  ;;  %v11663_v59 = vrot.slane %v11661_v33, 7  ;;  %v11388_v32 = vsel %vm11292_vm13, %v17539_v44, %v11340_v16  ;;  %v11342_v42 = vmul.f32 0.2, %v17549_v36 }
0x10b7   : > { %v11654_v26 = vsel %vm17661_vm5, %v11646_v19, %v11653_v28  ;;  %v11672_v8 = vrot.slane %v11670_v54, 7  ;;  %v11389_v60 = vsel %vm11293_vm14, %v17546_v5, %v11341_v62  ;;  %v11436_v10 = vpack.c.bf16 %v11388_v32, %v11388_v32 }
0x10b8   : > { %11859 = vst [vmem:[#allocation2 + $0xe4] sm:$0xf] %v11654_v26  ;;  %v11666_v37 = vor.u32 %v11664_v41, %v11663_v59  ;;  %v11668_v9 = vrot.slane %v11663_v59, 4  ;;  %v11437_v29 = vpack.c.bf16 %v11389_v60, %v11389_v60  ;;  %v11390_v50 = vsel %vm11294_vm15, %v17549_v36, %v11342_v42 }
0x10b9   : > { %v11675_v53 = vor.u32 %v11673_v3, %v11672_v8  ;;  %v11678_v23 = vshrl.u32 %v11436_v10, 16  ;;  %v11438_v16 = vpack.c.bf16 %v11390_v50, %v11390_v50  ;;  %vm11295_vm0 = vcmp.ge.f32.partialorder %v17556_v63, 0.0 }
0x10ba   : > { %v11667_v19 = vsel %vm17661_vm5, %v14297_v2, %v11666_v37  ;;  %v11683_v52 = vshrl.u32 %v11437_v29, 16  ;;  %v11686_v33 = vshll.u32 %v11437_v29, 16  ;;  %vm11296_vm1 = vcmp.ge.f32.partialorder %v17563_v61, 0.0 }
0x10bb   : > { %11860 = vst [vmem:[#allocation2 + $0xf8] sm:$0xf] %v11667_v19  ;;  %v11676_v41 = vsel %vm17661_vm5, %v11668_v9, %v11675_v53  ;;  %v14298_v28 = vrot.slane %v11678_v23, 11  ;;  %v11692_v54 = vshrl.u32 %v11438_v16, 16  ;;  %v11695_v62 = vshll.u32 %v11438_v16, 16 }
0x10bc   : > { %11861 = vst [vmem:[#allocation2 + $0xfc] sm:$0xf] %v11676_v41  ;;  %v11685_v3 = vrot.slane %v11683_v52, 7  ;;  %v11343_v59 = vmul.f32 0.2, %v17556_v63  ;;  %vm11297_vm2 = vcmp.ge.f32.partialorder %v17566_v20, 0.0 }
0x10bd   : > { %v11694_v32 = vrot.slane %v11692_v54, 7  ;;  %v11344_v2 = vmul.f32 0.2, %v17563_v61  ;;  %v11345_v42 = vmul.f32 0.2, %v17566_v20  ;;  %vm11298_vm3 = vcmp.ge.f32.partialorder %v17573_v11, 0.0 }
0x10be   : > { %v11688_v26 = vor.u32 %v11686_v33, %v11685_v3  ;;  %v11690_v8 = vrot.slane %v11685_v3, 4  ;;  %v11391_v60 = vsel %vm11295_vm0, %v17556_v63, %v11343_v59  ;;  %vm11299_vm4 = vcmp.ge.f32.partialorder %v17580_v6, 0.0  ;;  %v18306_v41 = vld [vmem:[#allocation36_spill] sm:$0xff] }
0x10bf   : > { %v11697_v10 = vor.u32 %v11695_v62, %v11694_v32  ;;  %v11392_v37 = vsel %vm11296_vm1, %v17563_v61, %v11344_v2  ;;  %v11439_v9 = vpack.c.bf16 %v11391_v60, %v11391_v60  ;;  %v11393_v29 = vsel %vm11297_vm2, %v17566_v20, %v11345_v42 }
0x10c0   : > { %v11689_v50 = vsel %vm17661_vm5, %v14298_v28, %v11688_v26  ;;  %v11440_v53 = vpack.c.bf16 %v11392_v37, %v11392_v37  ;;  %v11441_v23 = vpack.c.bf16 %v11393_v29, %v11393_v29  ;;  %v11346_v16 = vmul.f32 0.2, %v17573_v11  ;;  %v18308_v29 = vld [vmem:[#allocation38_spill] sm:$0xff] }
0x10c1   : > { %11862 = vst [vmem:[#allocation2 + $0x110] sm:$0xf] %v11689_v50  ;;  %v11698_v19 = vsel %vm17661_vm5, %v11690_v8, %v11697_v10  ;;  %v11700_v52 = vshrl.u32 %v11439_v9, 16  ;;  %v11347_v33 = vmul.f32 0.2, %v17580_v6  ;;  %vm11300_vm6 = vcmp.ge.f32.partialorder %v18306_v41, 0.0 }
0x10c2   : > { %11863 = vst [vmem:[#allocation2 + $0x114] sm:$0xf] %v11698_v19  ;;  %v11705_v54 = vshrl.u32 %v11440_v53, 16  ;;  %v11708_v62 = vshll.u32 %v11440_v53, 16  ;;  %v11714_v3 = vshrl.u32 %v11441_v23, 16  ;;  %v11717_v59 = vshll.u32 %v11441_v23, 16 }
0x10c3   : > { %v14299_v32 = vrot.slane %v11700_v52, 11  ;;  %v11394_v28 = vsel %vm11298_vm3, %v17573_v11, %v11346_v16  ;;  %v11395_v2 = vsel %vm11299_vm4, %v17580_v6, %v11347_v33  ;;  %v11348_v42 = vmul.f32 0.2, %v18306_v41  ;;  %v18307_v9 = vld [vmem:[#allocation37_spill] sm:$0xff] }
0x10c4   : > { %v11707_v26 = vrot.slane %v11705_v54, 7  ;;  %v11716_v8 = vrot.slane %v11714_v3, 7  ;;  %v11442_v60 = vpack.c.bf16 %v11394_v28, %v11394_v28  ;;  %v11443_v10 = vpack.c.bf16 %v11395_v2, %v11395_v2 }
0x10c5   : > { %v11396_v37 = vsel %vm11300_vm6, %v18306_v41, %v11348_v42  ;;  %vm11301_vm7 = vcmp.ge.f32.partialorder %v18307_v9, 0.0  ;;  %vm11302_vm8 = vcmp.ge.f32.partialorder %v18308_v29, 0.0  ;;  %v11349_v50 = vmul.f32 0.2, %v18307_v9 }
0x10c6   : > { %v11710_v53 = vor.u32 %v11708_v62, %v11707_v26  ;;  %v11712_v23 = vrot.slane %v11707_v26, 4  ;;  %v11719_v16 = vor.u32 %v11717_v59, %v11716_v8  ;;  %v11722_v19 = vshrl.u32 %v11442_v60, 16 }
0x10c7   : > { %v11727_v52 = vshrl.u32 %v11443_v10, 16  ;;  %v11730_v33 = vshll.u32 %v11443_v10, 16  ;;  %v11444_v6 = vpack.c.bf16 %v11396_v37, %v11396_v37  ;;  %v11350_v54 = vmul.f32 0.2, %v18308_v29  ;;  %v18309_v10 = vld [vmem:[#allocation39_spill] sm:$0xff] }
0x10c8   : > { %v11711_v3 = vsel %vm17661_vm5, %v14299_v32, %v11710_v53  ;;  %v11720_v41 = vsel %vm17661_vm5, %v11712_v23, %v11719_v16  ;;  %v14300_v28 = vrot.slane %v11722_v19, 11  ;;  %v11397_v2 = vsel %vm11301_vm7, %v18307_v9, %v11349_v50  ;;  %v18310_v16 = vld [vmem:[#allocation41_spill] sm:$0xff] }
0x10c9   : > { %11864 = vst [vmem:[#allocation2 + $0x128] sm:$0xf] %v11711_v3  ;;  %v11729_v42 = vrot.slane %v11727_v52, 7  ;;  %v11736_v62 = vshrl.u32 %v11444_v6, 16  ;;  %v11739_v26 = vshll.u32 %v11444_v6, 16  ;;  %v11398_v59 = vsel %vm11302_vm8, %v18308_v29, %v11350_v54  ;;  %v18311_v3 = vld [vmem:[#allocation43_spill] sm:$0xff] }
0x10ca   : > { %11865 = vst [vmem:[#allocation2 + $0x12c] sm:$0xf] %v11720_v41  ;;  %v11445_v8 = vpack.c.bf16 %v11397_v2, %v11397_v2  ;;  %v11446_v60 = vpack.c.bf16 %v11398_v59, %v11398_v59  ;;  %vm11303_vm12 = vcmp.ge.f32.partialorder %v18309_v10, 0.0  ;;  %v11351_v32 = vmul.f32 0.2, %v18309_v10 }
0x10cb   : > { %v11732_v37 = vor.u32 %v11730_v33, %v11729_v42  ;;  %v11734_v53 = vrot.slane %v11729_v42, 4  ;;  %v11738_v23 = vrot.slane %v11736_v62, 7  ;;  %vm11304_vm9 = vcmp.ge.f32.partialorder %v18310_v16, 0.0 }
0x10cc   : > { %v11744_v9 = vshrl.u32 %v11445_v8, 16  ;;  %v11749_v50 = vshrl.u32 %v11446_v60, 16  ;;  %v11752_v19 = vshll.u32 %v11446_v60, 16  ;;  %v11399_v6 = vsel %vm11303_vm12, %v18309_v10, %v11351_v32 }
0x10cd   : > { %v11733_v29 = vsel %vm17661_vm5, %v14300_v28, %v11732_v37  ;;  %v11741_v52 = vor.u32 %v11739_v26, %v11738_v23  ;;  %v11447_v54 = vpack.c.bf16 %v11399_v6, %v11399_v6  ;;  %vm11305_vm10 = vcmp.ge.f32.partialorder %v18311_v3, 0.0  ;;  %v18312_v26 = vld [vmem:[#allocation45_spill] sm:$0xff]  ;;  %v18313_v6 = vld [vmem:[#allocation47_spill] sm:$0xff] }
0x10ce   : > { %11866 = vst [vmem:[#allocation2 + $0x140] sm:$0xf] %v11733_v29  ;;  %v14301_v41 = vrot.slane %v11744_v9, 11  ;;  %v11751_v2 = vrot.slane %v11749_v50, 7  ;;  %v11352_v33 = vmul.f32 0.2, %v18310_v16 }
0x10cf   : > { %v11742_v42 = vsel %vm17661_vm5, %v11734_v53, %v11741_v52  ;;  %v11758_v62 = vshrl.u32 %v11447_v54, 16  ;;  %v11761_v59 = vshll.u32 %v11447_v54, 16  ;;  %v11353_v8 = vmul.f32 0.2, %v18311_v3 }
0x10d0   : > { %11867 = vst [vmem:[#allocation2 + $0x144] sm:$0xf] %v11742_v42  ;;  %v11754_v60 = vor.u32 %v11752_v19, %v11751_v2  ;;  %v11756_v10 = vrot.slane %v11751_v2, 4  ;;  %v11400_v28 = vsel %vm11304_vm9, %v18310_v16, %v11352_v33  ;;  %vm11306_vm11 = vcmp.ge.f32.partialorder %v18312_v26, 0.0 }
0x10d1   : > { %v11760_v32 = vrot.slane %v11758_v62, 7  ;;  %v11401_v37 = vsel %vm11305_vm10, %v18311_v3, %v11353_v8  ;;  %v11448_v23 = vpack.c.bf16 %v11400_v28, %v11400_v28  ;;  %v11354_v9 = vmul.f32 0.2, %v18312_v26 }
0x10d2   : > { %v11755_v53 = vsel %vm17661_vm5, %v14301_v41, %v11754_v60  ;;  %v11449_v50 = vpack.c.bf16 %v11401_v37, %v11401_v37  ;;  %vm11307_vm13 = vcmp.ge.f32.partialorder %v18313_v6, 0.0  ;;  %vm11308_vm14 = vcmp.ge.f32.partialorder %v17630_v22, 0.0 }
0x10d3   : > { %11868 = vst [vmem:[#allocation2 + $0x158] sm:$0xf] %v11755_v53  ;;  %v11763_v19 = vor.u32 %v11761_v59, %v11760_v32  ;;  %v11766_v29 = vshrl.u32 %v11448_v23, 16  ;;  %v11402_v16 = vsel %vm11306_vm11, %v18312_v26, %v11354_v9  ;;  %v11355_v52 = vmul.f32 0.2, %v18313_v6 }
0x10d4   : > { %v11771_v54 = vshrl.u32 %v11449_v50, 16  ;;  %v11774_v3 = vshll.u32 %v11449_v50, 16  ;;  %v11450_v2 = vpack.c.bf16 %v11402_v16, %v11402_v16  ;;  %v11356_v33 = vmul.f32 0.2, %v17630_v22 }
0x10d5   : > { %v11764_v41 = vsel %vm17661_vm5, %v11756_v10, %v11763_v19  ;;  %v14302_v42 = vrot.slane %v11766_v29, 11  ;;  %v11403_v62 = vsel %vm11307_vm13, %v18313_v6, %v11355_v52  ;;  %vm11309_vm15 = vcmp.ge.f32.partialorder %v17634_v39, 0.0 }
0x10d6   : > { %11869 = vst [vmem:[#allocation2 + $0x15c] sm:$0xf] %v11764_v41  ;;  %v11773_v59 = vrot.slane %v11771_v54, 7  ;;  %v11780_v8 = vshrl.u32 %v11450_v2, 16  ;;  %v11783_v60 = vshll.u32 %v11450_v2, 16  ;;  %v11404_v28 = vsel %vm11308_vm14, %v17630_v22, %v11356_v33 }
0x10d7   : > { %v11451_v26 = vpack.c.bf16 %v11403_v62, %v11403_v62  ;;  %v11452_v32 = vpack.c.bf16 %v11404_v28, %v11404_v28  ;;  %v11357_v37 = vmul.f32 0.2, %v17634_v39 }
0x10d8   : > { %v11776_v23 = vor.u32 %v11774_v3, %v11773_v59  ;;  %v11778_v9 = vrot.slane %v11773_v59, 4  ;;  %v11782_v10 = vrot.slane %v11780_v8, 7 }
0x10d9   : > { %v11788_v53 = vshrl.u32 %v11451_v26, 16  ;;  %v11793_v50 = vshrl.u32 %v11452_v32, 16  ;;  %v11796_v6 = vshll.u32 %v11452_v32, 16  ;;  %v11405_v19 = vsel %vm11309_vm15, %v17634_v39, %v11357_v37 }
0x10da   : > { %v11777_v29 = vsel %vm17661_vm5, %v14302_v42, %v11776_v23  ;;  %v11785_v16 = vor.u32 %v11783_v60, %v11782_v10  ;;  %v11453_v52 = vpack.c.bf16 %v11405_v19, %v11405_v19 }
0x10db   : > { %11870 = vst [vmem:[#allocation2 + $0x170] sm:$0xf] %v11777_v29  ;;  %v14303_v54 = vrot.slane %v11788_v53, 11  ;;  %v11795_v2 = vrot.slane %v11793_v50, 7 }
0x10dc   : > { %v11786_v33 = vsel %vm17661_vm5, %v11778_v9, %v11785_v16  ;;  %v11802_v41 = vshrl.u32 %v11453_v52, 16  ;;  %v11805_v3 = vshll.u32 %v11453_v52, 16 }
0x10dd   : > { %11871 = vst [vmem:[#allocation2 + $0x174] sm:$0xf] %v11786_v33  ;;  %v11798_v62 = vor.u32 %v11796_v6, %v11795_v2  ;;  %v11800_v59 = vrot.slane %v11795_v2, 4 }
0x10de   : > { %v11804_v8 = vrot.slane %v11802_v41, 7 }
0x10df   : > { %v11799_v28 = vsel %vm17661_vm5, %v14303_v54, %v11798_v62 }
0x10e0   : > { %11872 = vst [vmem:[#allocation2 + $0x188] sm:$0xf] %v11799_v28  ;;  %v11807_v26 = vor.u32 %v11805_v3, %v11804_v8 }
0x10e2   : > { %v11808_v42 = vsel %vm17661_vm5, %v11800_v59, %v11807_v26 }
0x10e3   : > { %11873 = vst [vmem:[#allocation2 + $0x18c] sm:$0xf] %v11808_v42 }
0x10e4 PF: > { %s18314_s9 = sld [smem:[#allocation10_spill]] }
0x10ea   : > { %p14304_p4 = scmp.ne.s32.totalorder %s18314_s9, 3 }
0x10ec   : > { %11877 = sbr.rel (%p14304_p4) target bundleno = 4374 (0x1116), region = 76 }
0x10f1   : > { %v11878_v60 = vld [vmem:[%s15451_s18] sm:$0xff]  ;;  %vm11958_vm0 = vcmask 1040384   ;;  %v11959_v32 = vrot.slane %v17366_v48, 7  ;;  %v11960_v37 = vrot.slane %v17373_v38, 7  ;;  %vm12103_vm1 = vcmask 31744   ;;  %v11879_v23 = vld [vmem:[%s15451_s18 + $0x8] sm:$0xff] }
0x10f2   : > { %v11962_v30 = vrot.slane %v17376_v0, 7  ;;  %v11880_v9 = vld [vmem:[%s15451_s18 + $0x10] sm:$0xff]  ;;  %v11964_v10 = vrot.slane %v17383_v49, 7  ;;  %v11965_v53 = vrot.slane %v17390_v7, 7  ;;  %v11881_v50 = vld [vmem:[%s15451_s18 + $0x18] sm:$0xff]  ;;  %v11967_v6 = vrot.slane %v17393_v46, 7 }
0x10f3   : > { %v11961_v19 = vsel %vm11958_vm0, %v11959_v32, %v11960_v37  ;;  %v11882_v29 = vld [vmem:[%s15451_s18 + $0x20] sm:$0xff]  ;;  %v11969_v48 = vrot.slane %v17400_v18, 7  ;;  %v11970_v38 = vrot.slane %v17407_v1, 7  ;;  %v11972_v16 = vrot.slane %v17410_v4, 7  ;;  %v11883_v46 = vld [vmem:[%s15451_s18 + $0x28] sm:$0xff]  ;;  %v11884_v41 = vld [vmem:[%s15451_s18 + $0x30] sm:$0xff] }
0x10f4   : > { %v12071_v0 = vsub.f32 %v11878_v60, %v11961_v19  ;;  %v11963_v49 = vsel %vm11958_vm0, %v11960_v37, %v11962_v30  ;;  %v11966_v7 = vsel %vm11958_vm0, %v11964_v10, %v11965_v53  ;;  %v11968_v52 = vsel %vm11958_vm0, %v11965_v53, %v11967_v6  ;;  %v11885_v8 = vld [vmem:[%s15451_s18 + $0x38] sm:$0xff]  ;;  %v11886_v26 = vld [vmem:[%s15451_s18 + $0x40] sm:$0xff]  ;;  %v11887_v32 = vld [vmem:[%s15451_s18 + $0x48] sm:$0xff] }
0x10f5   : > { %v12072_v54 = vsub.f32 %v11879_v23, %v11963_v49  ;;  %v12073_v2 = vsub.f32 %v11880_v9, %v11966_v7  ;;  %v12074_v33 = vsub.f32 %v11881_v50, %v11968_v52  ;;  %v11971_v18 = vsel %vm11958_vm0, %v11969_v48, %v11970_v38  ;;  %v11888_v37 = vld [vmem:[%s15451_s18 + $0x50] sm:$0xff]  ;;  %v11889_v9 = vld [vmem:[%s15451_s18 + $0x58] sm:$0xff] }
0x10f6   : > { %12104 = vst.msk [vmem:[%s15456_s13] sm:$0xff] %vm12103_vm1, %v12071_v0  ;;  %v12075_v1 = vsub.f32 %v11882_v29, %v11971_v18  ;;  %v11973_v4 = vsel %vm11958_vm0, %v11970_v38, %v11972_v16  ;;  %v11974_v3 = vrot.slane %v17417_v17, 7  ;;  %v11975_v62 = vrot.slane %v17424_v51, 7  ;;  %v11890_v29 = vld [vmem:[%s15451_s18 + $0x60] sm:$0xff]  ;;  %v11891_v16 = vld [vmem:[%s15451_s18 + $0x68] sm:$0xff]  ;;  %v11892_v49 = vld [vmem:[%s15451_s18 + $0x70] sm:$0xff] }
0x10f7   : > { %12105 = vst.msk [vmem:[%s15456_s13 + $0x8] sm:$0xff] %vm12103_vm1, %v12072_v54  ;;  %v12076_v59 = vsub.f32 %v11883_v46, %v11973_v4  ;;  %v11977_v28 = vrot.slane %v17427_v56, 7  ;;  %v11979_v42 = vrot.slane %v17434_v25, 7  ;;  %v11980_v60 = vrot.slane %v17441_v47, 7  ;;  %v11893_v46 = vld [vmem:[%s15451_s18 + $0x78] sm:$0xff] }
0x10f8   : > { %12106 = vst.msk [vmem:[%s15456_s13 + $0x10] sm:$0xff] %vm12103_vm1, %v12073_v2  ;;  %v11976_v17 = vsel %vm11958_vm0, %v11974_v3, %v11975_v62  ;;  %v11982_v51 = vrot.slane %v17444_v45, 7  ;;  %v11984_v23 = vrot.slane %v17451_v12, 7  ;;  %v11985_v30 = vrot.slane %v17458_v24, 7 }
0x10f9   : > { %12107 = vst.msk [vmem:[%s15456_s13 + $0x18] sm:$0xff] %vm12103_vm1, %v12074_v33  ;;  %v12077_v56 = vsub.f32 %v11884_v41, %v11976_v17  ;;  %v11978_v25 = vsel %vm11958_vm0, %v11975_v62, %v11977_v28  ;;  %v11981_v47 = vsel %vm11958_vm0, %v11979_v42, %v11980_v60  ;;  %v11987_v10 = vrot.slane %v17461_v57, 7  ;;  %v11895_v33 = vld [vmem:[%s15451_s18 + $0x88] sm:$0xff]  ;;  %v11897_v28 = vld [vmem:[%s15451_s18 + $0x98] sm:$0xff]  ;;  %v11898_v42 = vld [vmem:[%s15451_s18 + $0xa0] sm:$0xff] }
0x10fa   : > { %12108 = vst.msk [vmem:[%s15456_s13 + $0x20] sm:$0xff] %vm12103_vm1, %v12075_v1  ;;  %v12078_v45 = vsub.f32 %v11885_v8, %v11978_v25  ;;  %v12079_v12 = vsub.f32 %v11886_v26, %v11981_v47  ;;  %v11983_v24 = vsel %vm11958_vm0, %v11980_v60, %v11982_v51  ;;  %v11986_v53 = vsel %vm11958_vm0, %v11984_v23, %v11985_v30  ;;  %v11900_v23 = vld [vmem:[%s15451_s18 + $0xb0] sm:$0xff] }
0x10fb   : > { %12109 = vst.msk [vmem:[%s15456_s13 + $0x28] sm:$0xff] %vm12103_vm1, %v12076_v59  ;;  %v12080_v50 = vsub.f32 %v11887_v32, %v11983_v24  ;;  %v12081_v6 = vsub.f32 %v11888_v37, %v11986_v53  ;;  %v11988_v19 = vsel %vm11958_vm0, %v11985_v30, %v11987_v10  ;;  %v11989_v57 = vrot.slane %v17468_v35, 7  ;;  %v11896_v59 = vld [vmem:[%s15451_s18 + $0x90] sm:$0xff]  ;;  %v11899_v32 = vld [vmem:[%s15451_s18 + $0xa8] sm:$0xff]  ;;  %v11902_v53 = vld [vmem:[%s15451_s18 + $0xc0] sm:$0xff] }
0x10fc   : > { %12110 = vst.msk [vmem:[%s15456_s13 + $0x30] sm:$0xff] %vm12103_vm1, %v12077_v56  ;;  %v12082_v48 = vsub.f32 %v11889_v9, %v11988_v19  ;;  %v11990_v38 = vrot.slane %v17475_v55, 7  ;;  %v11992_v0 = vrot.slane %v17478_v34, 7  ;;  %v11994_v7 = vrot.slane %v17485_v43, 7  ;;  %v11894_v43 = vld [vmem:[%s15451_s18 + $0x80] sm:$0xff]  ;;  %v11901_v9 = vld [vmem:[%s15451_s18 + $0xb8] sm:$0xff] }
0x10fd   : > { %12111 = vst.msk [vmem:[%s15456_s13 + $0x38] sm:$0xff] %vm12103_vm1, %v12078_v45  ;;  %v11995_v52 = vrot.slane %v17492_v58, 7  ;;  %v11997_v35 = vrot.slane %v17495_v27, 7  ;;  %v11999_v54 = vrot.slane %v17505_v21, 7  ;;  %v12000_v2 = vrot.slane %v17512_v31, 7  ;;  %v18317_v19 = vld [vmem:[#allocation37_spill] sm:$0xff] }
0x10fe   : > { %12112 = vst.msk [vmem:[%s15456_s13 + $0x40] sm:$0xff] %vm12103_vm1, %v12079_v12  ;;  %v11991_v55 = vsel %vm11958_vm0, %v11989_v57, %v11990_v38  ;;  %v11993_v34 = vsel %vm11958_vm0, %v11990_v38, %v11992_v0  ;;  %v12002_v58 = vrot.slane %v17515_v15, 7  ;;  %v12004_v18 = vrot.slane %v17522_v40, 7  ;;  %v18315_v12 = vld [vmem:[#allocation35_spill] sm:$0xff]  ;;  %v18318_v57 = vld [vmem:[#allocation38_spill] sm:$0xff] }
0x10ff   : > { %12113 = vst.msk [vmem:[%s15456_s13 + $0x48] sm:$0xff] %vm12103_vm1, %v12080_v50  ;;  %v12083_v27 = vsub.f32 %v11890_v29, %v11991_v55  ;;  %v12084_v21 = vsub.f32 %v11891_v16, %v11993_v34  ;;  %v11996_v31 = vsel %vm11958_vm0, %v11994_v7, %v11995_v52  ;;  %v11998_v1 = vsel %vm11958_vm0, %v11995_v52, %v11997_v35  ;;  %v18316_v50 = vld [vmem:[#allocation36_spill] sm:$0xff]  ;;  %v18319_v38 = vld [vmem:[#allocation39_spill] sm:$0xff]  ;;  %v18322_v35 = vld [vmem:[#allocation45_spill] sm:$0xff] }
0x1100   : > { %12114 = vst.msk [vmem:[%s15456_s13 + $0x50] sm:$0xff] %vm12103_vm1, %v12081_v6  ;;  %v12085_v4 = vsub.f32 %v11892_v49, %v11996_v31  ;;  %v12086_v41 = vsub.f32 %v11893_v46, %v11998_v1  ;;  %v12001_v15 = vsel %vm11958_vm0, %v11999_v54, %v12000_v2  ;;  %v12003_v40 = vsel %vm11958_vm0, %v12000_v2, %v12002_v58  ;;  %v11903_v0 = vld [vmem:[%s15451_s18 + $0xc8] sm:$0xff]  ;;  %v18320_v49 = vld [vmem:[#allocation41_spill] sm:$0xff]  ;;  %v11904_v34 = vld [vmem:[%s15451_s18 + $0xd0] sm:$0xff] }
0x1101   : > { %12115 = vst.msk [vmem:[%s15456_s13 + $0x58] sm:$0xff] %vm12103_vm1, %v12082_v48  ;;  %v12087_v3 = vsub.f32 %v11894_v43, %v12001_v15  ;;  %v12088_v62 = vsub.f32 %v11895_v33, %v12003_v40  ;;  %v12005_v8 = vrot.slane %v17529_v13, 7  ;;  %v12007_v26 = vrot.slane %v17532_v14, 7  ;;  %v18321_v52 = vld [vmem:[#allocation43_spill] sm:$0xff]  ;;  %v11905_v58 = vld [vmem:[%s15451_s18 + $0xd8] sm:$0xff] }
0x1102   : > { %12116 = vst.msk [vmem:[%s15456_s13 + $0x60] sm:$0xff] %vm12103_vm1, %v12083_v27  ;;  %v12009_v60 = vrot.slane %v17539_v44, 7  ;;  %v12010_v17 = vrot.slane %v17546_v5, 7  ;;  %v12012_v51 = vrot.slane %v17549_v36, 7  ;;  %v12014_v37 = vrot.slane %v17556_v63, 7  ;;  %v18323_v1 = vld [vmem:[#allocation47_spill] sm:$0xff] }
0x1103   : > { %12117 = vst.msk [vmem:[%s15456_s13 + $0x68] sm:$0xff] %vm12103_vm1, %v12084_v21  ;;  %v12006_v13 = vsel %vm11958_vm0, %v12004_v18, %v12005_v8  ;;  %v12008_v14 = vsel %vm11958_vm0, %v12005_v8, %v12007_v26  ;;  %v12015_v30 = vrot.slane %v17563_v61, 7  ;;  %v12017_v44 = vrot.slane %v17566_v20, 7  ;;  %v11906_v21 = vld [vmem:[%s15451_s18 + $0xe0] sm:$0xff]  ;;  %v11907_v40 = vld [vmem:[%s15451_s18 + $0xe8] sm:$0xff]  ;;  %v11908_v8 = vld [vmem:[%s15451_s18 + $0xf0] sm:$0xff] }
0x1104   : > { %12118 = vst.msk [vmem:[%s15456_s13 + $0x70] sm:$0xff] %vm12103_vm1, %v12085_v4  ;;  %v12089_v5 = vsub.f32 %v11896_v59, %v12006_v13  ;;  %v12011_v36 = vsel %vm11958_vm0, %v12009_v60, %v12010_v17  ;;  %v12013_v63 = vsel %vm11958_vm0, %v12010_v17, %v12012_v51  ;;  %v12090_v56 = vsub.f32 %v11897_v28, %v12008_v14  ;;  %v11909_v26 = vld [vmem:[%s15451_s18 + $0xf8] sm:$0xff] }
0x1105   : > { %12119 = vst.msk [vmem:[%s15456_s13 + $0x78] sm:$0xff] %vm12103_vm1, %v12086_v41  ;;  %v12091_v25 = vsub.f32 %v11898_v42, %v12011_v36  ;;  %v12092_v47 = vsub.f32 %v11899_v32, %v12013_v63  ;;  %v12016_v61 = vsel %vm11958_vm0, %v12014_v37, %v12015_v30  ;;  %v12018_v10 = vsel %vm11958_vm0, %v12015_v30, %v12017_v44 }
0x1106   : > { %12120 = vst.msk [vmem:[%s15456_s13 + $0x80] sm:$0xff] %vm12103_vm1, %v12087_v3  ;;  %v12093_v20 = vsub.f32 %v11900_v23, %v12016_v61  ;;  %v12019_v45 = vrot.slane %v17573_v11, 7  ;;  %v12020_v24 = vrot.slane %v18315_v12, 7  ;;  %v12022_v6 = vrot.slane %v18316_v50, 7 }
0x1107   : > { %12121 = vst.msk [vmem:[%s15456_s13 + $0x88] sm:$0xff] %vm12103_vm1, %v12088_v62  ;;  %v12024_v29 = vrot.slane %v18317_v19, 7  ;;  %v12025_v48 = vrot.slane %v18318_v57, 7  ;;  %v12027_v16 = vrot.slane %v18319_v38, 7  ;;  %v12029_v7 = vrot.slane %v18320_v49, 7 }
0x1108   : > { %12122 = vst.msk [vmem:[%s15456_s13 + $0x90] sm:$0xff] %vm12103_vm1, %v12089_v5  ;;  %v12021_v11 = vsel %vm11958_vm0, %v12019_v45, %v12020_v24  ;;  %v12030_v46 = vrot.slane %v18321_v52, 7  ;;  %v12032_v54 = vrot.slane %v18322_v35, 7  ;;  %v12094_v2 = vsub.f32 %v11901_v9, %v12018_v10 }
0x1109   : > { %12123 = vst.msk [vmem:[%s15456_s13 + $0x98] sm:$0xff] %vm12103_vm1, %v12090_v56  ;;  %v12023_v55 = vsel %vm11958_vm0, %v12020_v24, %v12022_v6  ;;  %v12026_v43 = vsel %vm11958_vm0, %v12024_v29, %v12025_v48  ;;  %v12095_v33 = vsub.f32 %v11902_v53, %v12021_v11  ;;  %v12028_v18 = vsel %vm11958_vm0, %v12025_v48, %v12027_v16 }
0x110a   : > { %12124 = vst.msk [vmem:[%s15456_s13 + $0xa0] sm:$0xff] %vm12103_vm1, %v12091_v25  ;;  %v12096_v27 = vsub.f32 %v11903_v0, %v12023_v55  ;;  %v12031_v31 = vsel %vm11958_vm0, %v12029_v7, %v12030_v46  ;;  %v12034_v4 = vrot.slane %v18323_v1, 7  ;;  %v12035_v41 = vrot.slane %v17630_v22, 7 }
0x110b   : > { %12125 = vst.msk [vmem:[%s15456_s13 + $0xa8] sm:$0xff] %vm12103_vm1, %v12092_v47  ;;  %v12097_v15 = vsub.f32 %v11904_v34, %v12026_v43  ;;  %v12033_v3 = vsel %vm11958_vm0, %v12030_v46, %v12032_v54  ;;  %v12037_v62 = vrot.slane %v17634_v39, 7  ;;  %v12098_v59 = vsub.f32 %v11905_v58, %v12028_v18 }
0x110c   : > { %12126 = vst.msk [vmem:[%s15456_s13 + $0xb0] sm:$0xff] %vm12103_vm1, %v12093_v20  ;;  %v12036_v22 = vsel %vm11958_vm0, %v12034_v4, %v12035_v41  ;;  %v12099_v28 = vsub.f32 %v11906_v21, %v12031_v31  ;;  %v12100_v60 = vsub.f32 %v11907_v40, %v12033_v3 }
0x110d   : > { %12127 = vst.msk [vmem:[%s15456_s13 + $0xb8] sm:$0xff] %vm12103_vm1, %v12094_v2  ;;  %v12038_v42 = vsel %vm11958_vm0, %v12035_v41, %v12037_v62  ;;  %v12101_v39 = vsub.f32 %v11908_v8, %v12036_v22 }
0x110e   : > { %12128 = vst.msk [vmem:[%s15456_s13 + $0xc0] sm:$0xff] %vm12103_vm1, %v12095_v33  ;;  %v12102_v17 = vsub.f32 %v11909_v26, %v12038_v42 }
0x110f   : > { %12129 = vst.msk [vmem:[%s15456_s13 + $0xc8] sm:$0xff] %vm12103_vm1, %v12096_v27 }
0x1110   : > { %12130 = vst.msk [vmem:[%s15456_s13 + $0xd0] sm:$0xff] %vm12103_vm1, %v12097_v15 }
0x1111   : > { %12131 = vst.msk [vmem:[%s15456_s13 + $0xd8] sm:$0xff] %vm12103_vm1, %v12098_v59 }
0x1112   : > { %12132 = vst.msk [vmem:[%s15456_s13 + $0xe0] sm:$0xff] %vm12103_vm1, %v12099_v28 }
0x1113   : > { %12133 = vst.msk [vmem:[%s15456_s13 + $0xe8] sm:$0xff] %vm12103_vm1, %v12100_v60 }
0x1114   : > { %12134 = vst.msk [vmem:[%s15456_s13 + $0xf0] sm:$0xff] %vm12103_vm1, %v12101_v39 }
0x1115   : > { %12135 = vst.msk [vmem:[%s15456_s13 + $0xf8] sm:$0xff] %vm12103_vm1, %v12102_v17 }
0x1116 PF: > { %s20_s25 = sadd.s32 1, %s15233_s25   ;;  %s18324_s12 = sld [smem:[#allocation13_spill]] }
0x1117   : > { %p17_p5 = scmp.ge.s32.totalorder %s20_s25, 10   ;;  %s18325_s22 = sld [smem:[#allocation11_spill]] }
0x1118   : > { %s18326_s10 = sld [smem:[#allocation12_spill]]  ;;  %s18328_s15 = smov %s15197_s16 }
0x1119   : > { %s18327_s24 = sld [smem:[#allocation14_spill]]  ;;  %s18329_s16 = smov %s15201_s17 }
0x111a   : > { %s18331_s18 = smov %s15209_s19  ;;  %s18332_s19 = smov %s15213_s20 }
0x111b   : > { %s18333_s20 = smov %s15410_s2  ;;  %s18334_s21 = smov %s15225_s23 }
0x111c   : > { %s18330_s17 = smov %s18324_s12  ;;  %19 = sbr.rel (!%p17_p5) target bundleno = 13 (0xd), region = 156 }
0x111e   : > { %s18335_s23 = smov %s18326_s10 }
0x1121   :  { %12157 = vsyncpa [#allocation4], 1 }
0x1122   :  { %12159 = vsyncpa [#allocation4 + $0x1], 1 }
0x1123   :  { %12160 = vsyncpa [#allocation6], 1 }
0x1124   :  { %12162 = vsyncpa [#allocation6 + $0x1], 1 }

</bundles_post_ra>
